<compile_context>
chip_gen: v7x
topology: tpu7x:2x2x1
jax: 0.10.0
libtpu: 0.0.40
codegen_flags: <defaults>
</compile_context>

<pallas_src>
import jax
import jax.numpy as jnp
from jax import lax
from jax.experimental import pallas as pl
from jax.experimental.pallas import tpu as pltpu

# eps used by lossfun_outer's default argument (the module's self.eps=1e-6 is
# never used in forward()).
EPS = float(jnp.finfo(jnp.float32).eps)

# Fully unroll the proposal-bin loop (static slices, best LLO scheduling) up to
# this many bins; above it, fall back to a rolled fori_loop over ref rows.
_UNROLL_MAX_M = 64


def _make_kernel(N, M, loss_weight, approx_reciprocal):
    """Builds the Pallas kernel for a static (N, M, loss_weight, approx) config."""

    def kernel(t_ref, w_ref, that_ref, what_ref, out_ref):
        # Lane-dense transposed layout: samples on sublanes, rays on lanes.
        t = t_ref[...]                     # (N+1, Rt) fine edges, sorted along axis 0
        w = w_ref[...]                     # (N,   Rt) fine weights
        t_lo = t[:N, :]                    # (N, Rt) lower fine edges (aligned slice)
        # NOTE(perf review): t[1:] is a sublane-offset slice of an already-loaded
        # *value* (a few vreg sublane shifts per tile), not a per-step DMA; its
        # cost is negligible next to the tile's HBM traffic.
        t_hi = t[1:, :]                    # (N, Rt) upper fine edges

        if M <= _UNROLL_MAX_M:
            # Hoist the proposal blocks once, then statically unroll over bins.
            that = that_ref[...]           # (M+1, Rt) proposal edges
            what = what_ref[...]           # (M,   Rt) proposal weights
            w_outer = jnp.zeros_like(w)
            for j in range(M):             # static unroll (M is compile-time)
                th = that[j:j + 1, :]      # (1, Rt) lower edge of proposal bin j
                inside = (th >= t_lo) & (th <= t_hi)
                w_outer = w_outer + jnp.where(inside, what[j:j + 1, :], 0.0)
        else:
            # Large-M fallback: rolled loop, dynamic row slices of the refs.
            def body(j, acc):
                th = that_ref[pl.ds(j, 1), :]
                wh = what_ref[pl.ds(j, 1), :]
                inside = (th >= t_lo) & (th <= t_hi)
                return acc + jnp.where(inside, wh, 0.0)

            w_outer = lax.fori_loop(0, M, body, jnp.zeros_like(w), unroll=8)

        diff = jnp.maximum(w - w_outer, 0.0)
        denom = w + EPS
        if approx_reciprocal:
            # EUP vrcp: issue-slot free but only ~1e-3..2e-4 accurate.
            loss = diff * diff * pl.reciprocal(denom, approx=True)
        else:
            loss = diff * diff / denom     # exact (matches the torch math)
        out_ref[...] = (loss_weight * loss).astype(out_ref.dtype)

    return kernel


def _derive_ray_tile(R, N, M, *, max_ray_tile=8192, vmem_budget_bytes=8 * 1024 * 1024):
    """Rays per grid step: as large as a conservative VMEM budget allows."""
    # Double-buffered bytes per ray for the 4 inputs + 1 output (all f32).
    bytes_per_ray = 4 * 2 * ((N + 1) + N + (M + 1) + M + N)
    cap = max(128, (vmem_budget_bytes // bytes_per_ray) // 128 * 128)
    tile = min(max_ray_tile, cap)
    # Keep >= 2 grid steps when possible: lets v7x shard the 'parallel' ray
    # axis across its 2 TensorCores and keeps the pipeline overlapped.
    half = -(-R // 2)                  # ceil(R / 2)
    half = -(-half // 128) * 128       # round up to lane multiple
    tile = min(tile, max(128, half))
    return int(tile)


def proposal_loss_transposed(tT, wT, t_hatT, w_hatT, *, loss_weight=1.0,
                             ray_tile=None, approx_reciprocal=False):
    """ProposalLoss.forward on (samples, rays)-layout inputs.

    tT: (N+1, R), wT: (N, R), t_hatT: (M+1, R), w_hatT: (M, R) -> loss (N, R).
    This entry point does NO layout transposes — preferred for perf-critical
    callers (keep the ray axis minor / lane-dense end to end).
    """
    Np1, R = tT.shape
    N, M = wT.shape[0], w_hatT.shape[0]
    assert Np1 == N + 1 and t_hatT.shape[0] == M + 1
    assert wT.shape[1] == R and t_hatT.shape[1] == R and w_hatT.shape[1] == R

    if ray_tile is None:
        ray_tile = _derive_ray_tile(R, N, M)
    assert ray_tile % 128 == 0 and ray_tile >= 128

    Rp = pl.cdiv(R, ray_tile) * ray_tile
    if Rp != R:
        # Zero padding keeps padded lanes at exactly 0 loss (w=0, w_outer>=0).
        pad = ((0, 0), (0, Rp - R))
        tT, wT = jnp.pad(tT, pad), jnp.pad(wT, pad)
        t_hatT, w_hatT = jnp.pad(t_hatT, pad), jnp.pad(w_hatT, pad)

    kernel = _make_kernel(N, M, float(loss_weight), bool(approx_reciprocal))
    grid = (Rp // ray_tile,)
    lossT = pl.pallas_call(
        kernel,
        out_shape=jax.ShapeDtypeStruct((N, Rp), jnp.float32),
        grid_spec=pltpu.PrefetchScalarGridSpec(
            num_scalar_prefetch=0,
            grid=grid,
            in_specs=[
                pl.BlockSpec((N + 1, ray_tile), lambda i: (0, i)),
                pl.BlockSpec((N, ray_tile), lambda i: (0, i)),
                pl.BlockSpec((M + 1, ray_tile), lambda i: (0, i)),
                pl.BlockSpec((M, ray_tile), lambda i: (0, i)),
            ],
            out_specs=pl.BlockSpec((N, ray_tile), lambda i: (0, i)),
        ),
        compiler_params=pltpu.CompilerParams(
            dimension_semantics=("parallel",)),
    )(tT, wT, t_hatT, w_hatT)
    return lossT if Rp == R else lossT[:, :R]


def proposal_loss(t, w, t_hat, w_hat, **kwargs):
    """ProposalLoss.forward with the torch module's (rays, samples) layout.

    NOTE(perf review): the four input transposes and the output transpose here
    are extra HBM passes in XLA around the kernel; for a memory-bound
    elementwise loss they can cost as much as the kernel itself.  Performance
    critical callers should keep the (samples, rays) layout and call
    proposal_loss_transposed directly.
    """
    return proposal_loss_transposed(t.T, w.T, t_hat.T, w_hat.T, **kwargs).T


def proposal_loss_reference(t, w, t_hat, w_hat, loss_weight=1.0):
    """Pure-JAX mirror of the torch code (searchsorted via counting + gather)."""
    cy1 = jnp.concatenate(
        [jnp.zeros_like(w_hat[..., :1]), jnp.cumsum(w_hat, axis=-1)], axis=-1)
    # torch.searchsorted(t_hat, t, side='left'/'right') == count of t_hat
    # entries strictly-less / less-or-equal than each t.
    idx_left = jnp.sum(t_hat[..., None, :] < t[..., :, None], axis=-1)
    idx_right = jnp.sum(t_hat[..., None, :] <= t[..., :, None], axis=-1)
    # TODO(synk): torch.take_along_dim would index out of bounds when
    # t > max(t_hat); both the kernel and this reference clamp to the last
    # cumulative entry (total proposal mass) instead — documented deviation.
    idx_left = jnp.clip(idx_left, 0, cy1.shape[-1] - 1)
    idx_right = jnp.clip(idx_right, 0, cy1.shape[-1] - 1)
    cy1_lo = jnp.take_along_axis(cy1, idx_left, axis=-1)
    cy1_hi = jnp.take_along_axis(cy1, idx_right, axis=-1)
    w_outer = cy1_hi[..., 1:] - cy1_lo[..., :-1]
    return loss_weight * jnp.maximum(w - w_outer, 0.0) ** 2 / (w + EPS)


if __name__ == "__main__":
    key = jax.random.PRNGKey(0)
    k1, k2, k3, k4 = jax.random.split(key, 4)

    # rays, fine samples, proposal samples.  R chosen so the auto-derived
    # ray_tile is 2048 and the 'parallel' grid has 2 steps.
    R, N, M = 4096, 8, 16

    # Sorted ray-distance edges (cumsum of positive deltas), positive weights.
    dt = jax.random.uniform(k1, (R, N + 1), minval=0.1, maxval=1.0, dtype=jnp.float32)
    t = jnp.cumsum(dt, axis=-1)
    dth = jax.random.uniform(k2, (R, M + 1), minval=0.05, maxval=0.7, dtype=jnp.float32)
    t_hat = jnp.cumsum(dth, axis=-1)
    w = jax.nn.softmax(jax.random.normal(k3, (R, N), dtype=jnp.float32), axis=-1)
    w_hat = jax.nn.softmax(jax.random.normal(k4, (R, M), dtype=jnp.float32), axis=-1)

    out = jax.block_until_ready(proposal_loss(t, w, t_hat, w_hat))

    ref = proposal_loss_reference(t, w, t_hat, w_hat)
    assert out.shape == (R, N) and out.dtype == jnp.float32
    # All kernel math is exact now (no approx reciprocal); only summation-order
    # rounding (~1e-6 abs) differs from the prefix-sum reference.
    assert jnp.allclose(out, ref, rtol=1e-3, atol=1e-5), "mismatch vs reference"

    print("KERNEL_OK")
</pallas_src>

<mosaic_0001>
module attributes {stable_mosaic.version = 11 : i64} {
  func.func @kernel(%arg0: i32, %arg1: memref<9x2048xf32, #tpu.memory_space<vmem>>, %arg2: memref<8x2048xf32, #tpu.memory_space<vmem>>, %arg3: memref<17x2048xf32, #tpu.memory_space<vmem>>, %arg4: memref<16x2048xf32, #tpu.memory_space<vmem>>, %arg5: memref<8x2048xf32, #tpu.memory_space<vmem>>) attributes {dimension_semantics = [#tpu.dimension_semantics<parallel>], iteration_bounds = array<i64: 2>, scalar_prefetch = 0 : i64, scratch_operands = 0 : i64, tpu.core_type = #tpu.core_type<tc>, window_params = [{transform_indices = @transform_0, window_bounds = array<i64: 9, 2048>}, {transform_indices = @transform_1, window_bounds = array<i64: 8, 2048>}, {transform_indices = @transform_2, window_bounds = array<i64: 17, 2048>}, {transform_indices = @transform_3, window_bounds = array<i64: 16, 2048>}, {transform_indices = @transform_4, window_bounds = array<i64: 8, 2048>}]} {
    %c0 = arith.constant 0 : index
    %c0_0 = arith.constant 0 : index
    %0 = vector.load %arg1[%c0, %c0_0] : memref<9x2048xf32, #tpu.memory_space<vmem>>, vector<9x2048xf32>
    %c0_1 = arith.constant 0 : index
    %c0_2 = arith.constant 0 : index
    %1 = vector.load %arg2[%c0_1, %c0_2] : memref<8x2048xf32, #tpu.memory_space<vmem>>, vector<8x2048xf32>
    %2 = vector.extract_strided_slice %0 {offsets = [0, 0], sizes = [8, 2048], strides = [1, 1]} : vector<9x2048xf32> to vector<8x2048xf32>
    %3 = vector.extract_strided_slice %0 {offsets = [1, 0], sizes = [8, 2048], strides = [1, 1]} : vector<9x2048xf32> to vector<8x2048xf32>
    %c0_3 = arith.constant 0 : index
    %c0_4 = arith.constant 0 : index
    %4 = vector.load %arg3[%c0_3, %c0_4] : memref<17x2048xf32, #tpu.memory_space<vmem>>, vector<17x2048xf32>
    %c0_5 = arith.constant 0 : index
    %c0_6 = arith.constant 0 : index
    %5 = vector.load %arg4[%c0_5, %c0_6] : memref<16x2048xf32, #tpu.memory_space<vmem>>, vector<16x2048xf32>
    %cst = arith.constant 0.000000e+00 : f32
    %6 = vector.broadcast %cst : f32 to vector<8x2048xf32>
    %7 = vector.extract_strided_slice %4 {offsets = [0, 0], sizes = [1, 2048], strides = [1, 1]} : vector<17x2048xf32> to vector<1x2048xf32>
    %8 = vector.broadcast %7 : vector<1x2048xf32> to vector<8x2048xf32>
    %9 = arith.cmpf oge, %8, %2 : vector<8x2048xf32>
    %10 = vector.broadcast %7 : vector<1x2048xf32> to vector<8x2048xf32>
    %11 = arith.cmpf ole, %10, %3 : vector<8x2048xf32>
    %12 = arith.andi %9, %11 : vector<8x2048xi1>
    %13 = vector.extract_strided_slice %5 {offsets = [0, 0], sizes = [1, 2048], strides = [1, 1]} : vector<16x2048xf32> to vector<1x2048xf32>
    %cst_7 = arith.constant 0.000000e+00 : f32
    %14 = vector.shape_cast %13 : vector<1x2048xf32> to vector<1x2048xf32>
    %15 = vector.broadcast %14 : vector<1x2048xf32> to vector<8x2048xf32>
    %16 = vector.broadcast %cst_7 : f32 to vector<8x2048xf32>
    %17 = arith.select %12, %15, %16 : vector<8x2048xi1>, vector<8x2048xf32>
    %18 = arith.addf %6, %17 : vector<8x2048xf32>
    %19 = vector.extract_strided_slice %4 {offsets = [1, 0], sizes = [1, 2048], strides = [1, 1]} : vector<17x2048xf32> to vector<1x2048xf32>
    %20 = vector.broadcast %19 : vector<1x2048xf32> to vector<8x2048xf32>
    %21 = arith.cmpf oge, %20, %2 : vector<8x2048xf32>
    %22 = vector.broadcast %19 : vector<1x2048xf32> to vector<8x2048xf32>
    %23 = arith.cmpf ole, %22, %3 : vector<8x2048xf32>
    %24 = arith.andi %21, %23 : vector<8x2048xi1>
    %25 = vector.extract_strided_slice %5 {offsets = [1, 0], sizes = [1, 2048], strides = [1, 1]} : vector<16x2048xf32> to vector<1x2048xf32>
    %cst_8 = arith.constant 0.000000e+00 : f32
    %26 = vector.shape_cast %25 : vector<1x2048xf32> to vector<1x2048xf32>
    %27 = vector.broadcast %26 : vector<1x2048xf32> to vector<8x2048xf32>
    %28 = vector.broadcast %cst_8 : f32 to vector<8x2048xf32>
    %29 = arith.select %24, %27, %28 : vector<8x2048xi1>, vector<8x2048xf32>
    %30 = arith.addf %18, %29 : vector<8x2048xf32>
    %31 = vector.extract_strided_slice %4 {offsets = [2, 0], sizes = [1, 2048], strides = [1, 1]} : vector<17x2048xf32> to vector<1x2048xf32>
    %32 = vector.broadcast %31 : vector<1x2048xf32> to vector<8x2048xf32>
    %33 = arith.cmpf oge, %32, %2 : vector<8x2048xf32>
    %34 = vector.broadcast %31 : vector<1x2048xf32> to vector<8x2048xf32>
    %35 = arith.cmpf ole, %34, %3 : vector<8x2048xf32>
    %36 = arith.andi %33, %35 : vector<8x2048xi1>
    %37 = vector.extract_strided_slice %5 {offsets = [2, 0], sizes = [1, 2048], strides = [1, 1]} : vector<16x2048xf32> to vector<1x2048xf32>
    %cst_9 = arith.constant 0.000000e+00 : f32
    %38 = vector.shape_cast %37 : vector<1x2048xf32> to vector<1x2048xf32>
    %39 = vector.broadcast %38 : vector<1x2048xf32> to vector<8x2048xf32>
    %40 = vector.broadcast %cst_9 : f32 to vector<8x2048xf32>
    %41 = arith.select %36, %39, %40 : vector<8x2048xi1>, vector<8x2048xf32>
    %42 = arith.addf %30, %41 : vector<8x2048xf32>
    %43 = vector.extract_strided_slice %4 {offsets = [3, 0], sizes = [1, 2048], strides = [1, 1]} : vector<17x2048xf32> to vector<1x2048xf32>
    %44 = vector.broadcast %43 : vector<1x2048xf32> to vector<8x2048xf32>
    %45 = arith.cmpf oge, %44, %2 : vector<8x2048xf32>
    %46 = vector.broadcast %43 : vector<1x2048xf32> to vector<8x2048xf32>
    %47 = arith.cmpf ole, %46, %3 : vector<8x2048xf32>
    %48 = arith.andi %45, %47 : vector<8x2048xi1>
    %49 = vector.extract_strided_slice %5 {offsets = [3, 0], sizes = [1, 2048], strides = [1, 1]} : vector<16x2048xf32> to vector<1x2048xf32>
    %cst_10 = arith.constant 0.000000e+00 : f32
    %50 = vector.shape_cast %49 : vector<1x2048xf32> to vector<1x2048xf32>
    %51 = vector.broadcast %50 : vector<1x2048xf32> to vector<8x2048xf32>
    %52 = vector.broadcast %cst_10 : f32 to vector<8x2048xf32>
    %53 = arith.select %48, %51, %52 : vector<8x2048xi1>, vector<8x2048xf32>
    %54 = arith.addf %42, %53 : vector<8x2048xf32>
    %55 = vector.extract_strided_slice %4 {offsets = [4, 0], sizes = [1, 2048], strides = [1, 1]} : vector<17x2048xf32> to vector<1x2048xf32>
    %56 = vector.broadcast %55 : vector<1x2048xf32> to vector<8x2048xf32>
    %57 = arith.cmpf oge, %56, %2 : vector<8x2048xf32>
    %58 = vector.broadcast %55 : vector<1x2048xf32> to vector<8x2048xf32>
    %59 = arith.cmpf ole, %58, %3 : vector<8x2048xf32>
    %60 = arith.andi %57, %59 : vector<8x2048xi1>
    %61 = vector.extract_strided_slice %5 {offsets = [4, 0], sizes = [1, 2048], strides = [1, 1]} : vector<16x2048xf32> to vector<1x2048xf32>
    %cst_11 = arith.constant 0.000000e+00 : f32
    %62 = vector.shape_cast %61 : vector<1x2048xf32> to vector<1x2048xf32>
    %63 = vector.broadcast %62 : vector<1x2048xf32> to vector<8x2048xf32>
    %64 = vector.broadcast %cst_11 : f32 to vector<8x2048xf32>
    %65 = arith.select %60, %63, %64 : vector<8x2048xi1>, vector<8x2048xf32>
    %66 = arith.addf %54, %65 : vector<8x2048xf32>
    %67 = vector.extract_strided_slice %4 {offsets = [5, 0], sizes = [1, 2048], strides = [1, 1]} : vector<17x2048xf32> to vector<1x2048xf32>
    %68 = vector.broadcast %67 : vector<1x2048xf32> to vector<8x2048xf32>
    %69 = arith.cmpf oge, %68, %2 : vector<8x2048xf32>
    %70 = vector.broadcast %67 : vector<1x2048xf32> to vector<8x2048xf32>
    %71 = arith.cmpf ole, %70, %3 : vector<8x2048xf32>
    %72 = arith.andi %69, %71 : vector<8x2048xi1>
    %73 = vector.extract_strided_slice %5 {offsets = [5, 0], sizes = [1, 2048], strides = [1, 1]} : vector<16x2048xf32> to vector<1x2048xf32>
    %cst_12 = arith.constant 0.000000e+00 : f32
    %74 = vector.shape_cast %73 : vector<1x2048xf32> to vector<1x2048xf32>
    %75 = vector.broadcast %74 : vector<1x2048xf32> to vector<8x2048xf32>
    %76 = vector.broadcast %cst_12 : f32 to vector<8x2048xf32>
    %77 = arith.select %72, %75, %76 : vector<8x2048xi1>, vector<8x2048xf32>
    %78 = arith.addf %66, %77 : vector<8x2048xf32>
    %79 = vector.extract_strided_slice %4 {offsets = [6, 0], sizes = [1, 2048], strides = [1, 1]} : vector<17x2048xf32> to vector<1x2048xf32>
    %80 = vector.broadcast %79 : vector<1x2048xf32> to vector<8x2048xf32>
    %81 = arith.cmpf oge, %80, %2 : vector<8x2048xf32>
    %82 = vector.broadcast %79 : vector<1x2048xf32> to vector<8x2048xf32>
    %83 = arith.cmpf ole, %82, %3 : vector<8x2048xf32>
    %84 = arith.andi %81, %83 : vector<8x2048xi1>
    %85 = vector.extract_strided_slice %5 {offsets = [6, 0], sizes = [1, 2048], strides = [1, 1]} : vector<16x2048xf32> to vector<1x2048xf32>
    %cst_13 = arith.constant 0.000000e+00 : f32
    %86 = vector.shape_cast %85 : vector<1x2048xf32> to vector<1x2048xf32>
    %87 = vector.broadcast %86 : vector<1x2048xf32> to vector<8x2048xf32>
    %88 = vector.broadcast %cst_13 : f32 to vector<8x2048xf32>
    %89 = arith.select %84, %87, %88 : vector<8x2048xi1>, vector<8x2048xf32>
    %90 = arith.addf %78, %89 : vector<8x2048xf32>
    %91 = vector.extract_strided_slice %4 {offsets = [7, 0], sizes = [1, 2048], strides = [1, 1]} : vector<17x2048xf32> to vector<1x2048xf32>
    %92 = vector.broadcast %91 : vector<1x2048xf32> to vector<8x2048xf32>
    %93 = arith.cmpf oge, %92, %2 : vector<8x2048xf32>
    %94 = vector.broadcast %91 : vector<1x2048xf32> to vector<8x2048xf32>
    %95 = arith.cmpf ole, %94, %3 : vector<8x2048xf32>
    %96 = arith.andi %93, %95 : vector<8x2048xi1>
    %97 = vector.extract_strided_slice %5 {offsets = [7, 0], sizes = [1, 2048], strides = [1, 1]} : vector<16x2048xf32> to vector<1x2048xf32>
    %cst_14 = arith.constant 0.000000e+00 : f32
    %98 = vector.shape_cast %97 : vector<1x2048xf32> to vector<1x2048xf32>
    %99 = vector.broadcast %98 : vector<1x2048xf32> to vector<8x2048xf32>
    %100 = vector.broadcast %cst_14 : f32 to vector<8x2048xf32>
    %101 = arith.select %96, %99, %100 : vector<8x2048xi1>, vector<8x2048xf32>
    %102 = arith.addf %90, %101 : vector<8x2048xf32>
    %103 = vector.extract_strided_slice %4 {offsets = [8, 0], sizes = [1, 2048], strides = [1, 1]} : vector<17x2048xf32> to vector<1x2048xf32>
    %104 = vector.broadcast %103 : vector<1x2048xf32> to vector<8x2048xf32>
    %105 = arith.cmpf oge, %104, %2 : vector<8x2048xf32>
    %106 = vector.broadcast %103 : vector<1x2048xf32> to vector<8x2048xf32>
    %107 = arith.cmpf ole, %106, %3 : vector<8x2048xf32>
    %108 = arith.andi %105, %107 : vector<8x2048xi1>
    %109 = vector.extract_strided_slice %5 {offsets = [8, 0], sizes = [1, 2048], strides = [1, 1]} : vector<16x2048xf32> to vector<1x2048xf32>
    %cst_15 = arith.constant 0.000000e+00 : f32
    %110 = vector.shape_cast %109 : vector<1x2048xf32> to vector<1x2048xf32>
    %111 = vector.broadcast %110 : vector<1x2048xf32> to vector<8x2048xf32>
    %112 = vector.broadcast %cst_15 : f32 to vector<8x2048xf32>
    %113 = arith.select %108, %111, %112 : vector<8x2048xi1>, vector<8x2048xf32>
    %114 = arith.addf %102, %113 : vector<8x2048xf32>
    %115 = vector.extract_strided_slice %4 {offsets = [9, 0], sizes = [1, 2048], strides = [1, 1]} : vector<17x2048xf32> to vector<1x2048xf32>
    %116 = vector.broadcast %115 : vector<1x2048xf32> to vector<8x2048xf32>
    %117 = arith.cmpf oge, %116, %2 : vector<8x2048xf32>
    %118 = vector.broadcast %115 : vector<1x2048xf32> to vector<8x2048xf32>
    %119 = arith.cmpf ole, %118, %3 : vector<8x2048xf32>
    %120 = arith.andi %117, %119 : vector<8x2048xi1>
    %121 = vector.extract_strided_slice %5 {offsets = [9, 0], sizes = [1, 2048], strides = [1, 1]} : vector<16x2048xf32> to vector<1x2048xf32>
    %cst_16 = arith.constant 0.000000e+00 : f32
    %122 = vector.shape_cast %121 : vector<1x2048xf32> to vector<1x2048xf32>
    %123 = vector.broadcast %122 : vector<1x2048xf32> to vector<8x2048xf32>
    %124 = vector.broadcast %cst_16 : f32 to vector<8x2048xf32>
    %125 = arith.select %120, %123, %124 : vector<8x2048xi1>, vector<8x2048xf32>
    %126 = arith.addf %114, %125 : vector<8x2048xf32>
    %127 = vector.extract_strided_slice %4 {offsets = [10, 0], sizes = [1, 2048], strides = [1, 1]} : vector<17x2048xf32> to vector<1x2048xf32>
    %128 = vector.broadcast %127 : vector<1x2048xf32> to vector<8x2048xf32>
    %129 = arith.cmpf oge, %128, %2 : vector<8x2048xf32>
    %130 = vector.broadcast %127 : vector<1x2048xf32> to vector<8x2048xf32>
    %131 = arith.cmpf ole, %130, %3 : vector<8x2048xf32>
    %132 = arith.andi %129, %131 : vector<8x2048xi1>
    %133 = vector.extract_strided_slice %5 {offsets = [10, 0], sizes = [1, 2048], strides = [1, 1]} : vector<16x2048xf32> to vector<1x2048xf32>
    %cst_17 = arith.constant 0.000000e+00 : f32
    %134 = vector.shape_cast %133 : vector<1x2048xf32> to vector<1x2048xf32>
    %135 = vector.broadcast %134 : vector<1x2048xf32> to vector<8x2048xf32>
    %136 = vector.broadcast %cst_17 : f32 to vector<8x2048xf32>
    %137 = arith.select %132, %135, %136 : vector<8x2048xi1>, vector<8x2048xf32>
    %138 = arith.addf %126, %137 : vector<8x2048xf32>
    %139 = vector.extract_strided_slice %4 {offsets = [11, 0], sizes = [1, 2048], strides = [1, 1]} : vector<17x2048xf32> to vector<1x2048xf32>
    %140 = vector.broadcast %139 : vector<1x2048xf32> to vector<8x2048xf32>
    %141 = arith.cmpf oge, %140, %2 : vector<8x2048xf32>
    %142 = vector.broadcast %139 : vector<1x2048xf32> to vector<8x2048xf32>
    %143 = arith.cmpf ole, %142, %3 : vector<8x2048xf32>
    %144 = arith.andi %141, %143 : vector<8x2048xi1>
    %145 = vector.extract_strided_slice %5 {offsets = [11, 0], sizes = [1, 2048], strides = [1, 1]} : vector<16x2048xf32> to vector<1x2048xf32>
    %cst_18 = arith.constant 0.000000e+00 : f32
    %146 = vector.shape_cast %145 : vector<1x2048xf32> to vector<1x2048xf32>
    %147 = vector.broadcast %146 : vector<1x2048xf32> to vector<8x2048xf32>
    %148 = vector.broadcast %cst_18 : f32 to vector<8x2048xf32>
    %149 = arith.select %144, %147, %148 : vector<8x2048xi1>, vector<8x2048xf32>
    %150 = arith.addf %138, %149 : vector<8x2048xf32>
    %151 = vector.extract_strided_slice %4 {offsets = [12, 0], sizes = [1, 2048], strides = [1, 1]} : vector<17x2048xf32> to vector<1x2048xf32>
    %152 = vector.broadcast %151 : vector<1x2048xf32> to vector<8x2048xf32>
    %153 = arith.cmpf oge, %152, %2 : vector<8x2048xf32>
    %154 = vector.broadcast %151 : vector<1x2048xf32> to vector<8x2048xf32>
    %155 = arith.cmpf ole, %154, %3 : vector<8x2048xf32>
    %156 = arith.andi %153, %155 : vector<8x2048xi1>
    %157 = vector.extract_strided_slice %5 {offsets = [12, 0], sizes = [1, 2048], strides = [1, 1]} : vector<16x2048xf32> to vector<1x2048xf32>
    %cst_19 = arith.constant 0.000000e+00 : f32
    %158 = vector.shape_cast %157 : vector<1x2048xf32> to vector<1x2048xf32>
    %159 = vector.broadcast %158 : vector<1x2048xf32> to vector<8x2048xf32>
    %160 = vector.broadcast %cst_19 : f32 to vector<8x2048xf32>
    %161 = arith.select %156, %159, %160 : vector<8x2048xi1>, vector<8x2048xf32>
    %162 = arith.addf %150, %161 : vector<8x2048xf32>
    %163 = vector.extract_strided_slice %4 {offsets = [13, 0], sizes = [1, 2048], strides = [1, 1]} : vector<17x2048xf32> to vector<1x2048xf32>
    %164 = vector.broadcast %163 : vector<1x2048xf32> to vector<8x2048xf32>
    %165 = arith.cmpf oge, %164, %2 : vector<8x2048xf32>
    %166 = vector.broadcast %163 : vector<1x2048xf32> to vector<8x2048xf32>
    %167 = arith.cmpf ole, %166, %3 : vector<8x2048xf32>
    %168 = arith.andi %165, %167 : vector<8x2048xi1>
    %169 = vector.extract_strided_slice %5 {offsets = [13, 0], sizes = [1, 2048], strides = [1, 1]} : vector<16x2048xf32> to vector<1x2048xf32>
    %cst_20 = arith.constant 0.000000e+00 : f32
    %170 = vector.shape_cast %169 : vector<1x2048xf32> to vector<1x2048xf32>
    %171 = vector.broadcast %170 : vector<1x2048xf32> to vector<8x2048xf32>
    %172 = vector.broadcast %cst_20 : f32 to vector<8x2048xf32>
    %173 = arith.select %168, %171, %172 : vector<8x2048xi1>, vector<8x2048xf32>
    %174 = arith.addf %162, %173 : vector<8x2048xf32>
    %175 = vector.extract_strided_slice %4 {offsets = [14, 0], sizes = [1, 2048], strides = [1, 1]} : vector<17x2048xf32> to vector<1x2048xf32>
    %176 = vector.broadcast %175 : vector<1x2048xf32> to vector<8x2048xf32>
    %177 = arith.cmpf oge, %176, %2 : vector<8x2048xf32>
    %178 = vector.broadcast %175 : vector<1x2048xf32> to vector<8x2048xf32>
    %179 = arith.cmpf ole, %178, %3 : vector<8x2048xf32>
    %180 = arith.andi %177, %179 : vector<8x2048xi1>
    %181 = vector.extract_strided_slice %5 {offsets = [14, 0], sizes = [1, 2048], strides = [1, 1]} : vector<16x2048xf32> to vector<1x2048xf32>
    %cst_21 = arith.constant 0.000000e+00 : f32
    %182 = vector.shape_cast %181 : vector<1x2048xf32> to vector<1x2048xf32>
    %183 = vector.broadcast %182 : vector<1x2048xf32> to vector<8x2048xf32>
    %184 = vector.broadcast %cst_21 : f32 to vector<8x2048xf32>
    %185 = arith.select %180, %183, %184 : vector<8x2048xi1>, vector<8x2048xf32>
    %186 = arith.addf %174, %185 : vector<8x2048xf32>
    %187 = vector.extract_strided_slice %4 {offsets = [15, 0], sizes = [1, 2048], strides = [1, 1]} : vector<17x2048xf32> to vector<1x2048xf32>
    %188 = vector.broadcast %187 : vector<1x2048xf32> to vector<8x2048xf32>
    %189 = arith.cmpf oge, %188, %2 : vector<8x2048xf32>
    %190 = vector.broadcast %187 : vector<1x2048xf32> to vector<8x2048xf32>
    %191 = arith.cmpf ole, %190, %3 : vector<8x2048xf32>
    %192 = arith.andi %189, %191 : vector<8x2048xi1>
    %193 = vector.extract_strided_slice %5 {offsets = [15, 0], sizes = [1, 2048], strides = [1, 1]} : vector<16x2048xf32> to vector<1x2048xf32>
    %cst_22 = arith.constant 0.000000e+00 : f32
    %194 = vector.shape_cast %193 : vector<1x2048xf32> to vector<1x2048xf32>
    %195 = vector.broadcast %194 : vector<1x2048xf32> to vector<8x2048xf32>
    %196 = vector.broadcast %cst_22 : f32 to vector<8x2048xf32>
    %197 = arith.select %192, %195, %196 : vector<8x2048xi1>, vector<8x2048xf32>
    %198 = arith.addf %186, %197 : vector<8x2048xf32>
    %199 = arith.subf %1, %198 : vector<8x2048xf32>
    %cst_23 = arith.constant 0.000000e+00 : f32
    %200 = vector.broadcast %cst_23 : f32 to vector<8x2048xf32>
    %201 = arith.maximumf %199, %200 : vector<8x2048xf32>
    %cst_24 = arith.constant 1.1920929E-7 : f32
    %202 = vector.broadcast %cst_24 : f32 to vector<8x2048xf32>
    %203 = arith.addf %1, %202 : vector<8x2048xf32>
    %204 = arith.mulf %201, %201 : vector<8x2048xf32>
    %205 = arith.divf %204, %203 : vector<8x2048xf32>
    %cst_25 = arith.constant 1.000000e+00 : f32
    %206 = vector.broadcast %cst_25 : f32 to vector<8x2048xf32>
    %207 = arith.mulf %206, %205 : vector<8x2048xf32>
    %c0_26 = arith.constant 0 : index
    %c0_27 = arith.constant 0 : index
    %208 = vector.load %arg5[%c0_26, %c0_27] : memref<8x2048xf32, #tpu.memory_space<vmem>>, vector<8x2048xf32>
    tpu.vector_store %arg5[%c0_26, %c0_27], %207 {strides = array<i32>} : memref<8x2048xf32, #tpu.memory_space<vmem>>, vector<8x2048xf32>,
    return
  }
  func.func @transform_0(%arg0: i32) -> (i32, i32) {
    %c0_i32 = arith.constant 0 : i32
    %c0_i32_0 = arith.constant 0 : i32
    return %c0_i32, %arg0 : i32, i32
  }
  func.func @transform_1(%arg0: i32) -> (i32, i32) {
    %c0_i32 = arith.constant 0 : i32
    %c0_i32_0 = arith.constant 0 : i32
    return %c0_i32, %arg0 : i32, i32
  }
  func.func @transform_2(%arg0: i32) -> (i32, i32) {
    %c0_i32 = arith.constant 0 : i32
    %c0_i32_0 = arith.constant 0 : i32
    return %c0_i32, %arg0 : i32, i32
  }
  func.func @transform_3(%arg0: i32) -> (i32, i32) {
    %c0_i32 = arith.constant 0 : i32
    %c0_i32_0 = arith.constant 0 : i32
    return %c0_i32, %arg0 : i32, i32
  }
  func.func @transform_4(%arg0: i32) -> (i32, i32) {
    %c0_i32 = arith.constant 0 : i32
    %c0_i32_0 = arith.constant 0 : i32
    return %c0_i32, %arg0 : i32, i32
  }
}

</mosaic_0001>

<bundles_post_ra>
// kernel: tpu_custom_call.1
= control target key start
LH: loop header
LB: loop body
LE: loop exit
PB: predicated region body
PF: predicated region fallthrough
CT: control target
= control target key end

     0   :  { %s17184_s0 = inlined_call_operand.hbm [shape: f32[9,4096], index: 0, kind: input, shape index: {}]   ;;  %s17185_s1 = inlined_call_operand.hbm [shape: f32[8,4096], index: 1, kind: input, shape index: {}]   ;;  %s17186_s2 = inlined_call_operand.hbm [shape: f32[17,4096], index: 2, kind: input, shape index: {}]   ;;  %s17187_s3 = inlined_call_operand.hbm [shape: f32[16,4096], index: 3, kind: input, shape index: {}]   ;;  %s17188_s4 = inlined_call_operand.hbm [shape: f32[8,4096], index: 4, kind: output, shape index: {}]  }
   0x1   :  { %17916 = sst [smem:[#allocation99_spill]] %s17184_s0 }
   0x2   :  { %17917 = sst [smem:[#allocation100_spill]] %s17185_s1 }
   0x3   :  { %9 = vsyncpa [#allocation3], 0 }
   0x4   :  { %11 = vsyncpa [#allocation3 + $0x1], 0 }
   0x5   :  { %12 = vsyncpa [#allocation6], 0 }
   0x6   :  { %14 = vsyncpa [#allocation6 + $0x1], 0 }
   0x7   :  { %15 = vsyncpa [#allocation9], 0 }
   0x8   :  { %17 = vsyncpa [#allocation9 + $0x1], 0 }
   0x9   :  { %18 = vsyncpa [#allocation4], 0 }
   0xa   :  { %20 = vsyncpa [#allocation4 + $0x1], 0  ;;  %s6493_s15 = smov 0   ;;  %s6495_s16 = smov 0  }
   0xb   :  { %s6497_s17 = smov 0   ;;  %s6499_s18 = smov 0  }
   0xc LB: > { %17918 = sst [smem:[#allocation15_spill]] %s6453_s17  ;;  %s6514_s19 = sadd.s32 4294967295, %s6457_s18   ;;  %s6457_s18 = sphi %s6499_s18, %s20655_s18   ;;  %s6453_s17 = sphi %s6497_s17, %s20657_s17   ;;  %s6449_s16 = sphi %s6495_s16, %s20659_s16   ;;  %s6445_s15 = sphi %s6493_s15, %s20658_s15  }
   0xd   : > { %17919 = sst [smem:[#allocation16_spill]] %s6457_s18  ;;  %s5832_s20 = sadd.s32 4294967294, %s6457_s18  }
   0xe   : > { %s6518_s21 = sadd.s32 1, %s6457_s18   ;;  %s33_s22 = sadd.s32 1, %s6453_s17 }
   0xf   : > { %17920 = sst [smem:[#allocation17_spill]] %s6518_s21  ;;  %s30_s23 = ssub.s32 %s6457_s18, %s6518_s21 }
  0x10   : > { %p40_p0 = scmp.ne.s32.totalorder %s6453_s17, %s6449_s16  ;;  %p31_p1 = scmp.eq.s32.totalorder %s30_s23, 0 }
  0x11   : > { %p41_p2 = scmp.eq.s32.totalorder %s6457_s18, 0  ;;  %p46_p3 = scmp.ne.s32.totalorder %s6449_s16, %s6445_s15 }
  0x12   : > { %p47_p4 = scmp.eq.s32.totalorder %s6514_s19, 0  ;;  %p148_p7 = scmp.eq.s32.totalorder %s6514_s19, 1 }
  0x13   : > { %s6530_s24 = scalar_select %p31_p1, %s6453_s17, %s33_s22  }
  0x14   : > { %p42_p5 = por %p41_p2, %p40_p0  ;;  %p6532_p6 = por %p47_p4, %p46_p3 }
  0x15   : > { %17921 = sst [smem:[#allocation18_spill]] %s6530_s24  ;;  %p154_p8 = scmp.eq.s32.totalorder %s5832_s20, 1 }
  0x16   : > { %s17922_s25 = scalar_select %p6532_p6, 1, 0 }
  0x17   : > { %p5890_p10 = scmp.lt.s32.totalorder %s6457_s18, 2  ;;  %p6539_p11 = por %p148_p7, %p40_p0 }
  0x18   : > { %p6543_p12 = por %p154_p8, %p46_p3  ;;  %s6548_s28 = sand.u32 1, %s6453_s17  }
  0x19   : > { %s17923_s26 = scalar_select %p6539_p11, 1, 0 }
  0x1a   : > { %s17924_s27 = scalar_select %p6543_p12, 1, 0 }
  0x1b   : > { %s5856_s29 = sshll.u32 %s6457_s18, 11  ;;  %s17926_s0 = sld [smem:[#allocation99_spill]] }
  0x1c   : > { %17925 = sst [smem:[#allocation19_spill]] %s17924_s27  ;;  %p6556_p13 = pnand %p5890_p10, %p42_p5 }
  0x1d   : > { %s195_s8 = sand.u32 1, %s6457_s18   ;;  %s5838_s9 = sshll.u32 %s6548_s28, 7 }
  0x1e   : > { %s17928_s1 = sld [smem:[#allocation100_spill]]  ;;  %s199_s13 = scalar_lea.vmem [#allocation5], %s5838_s9 }
  0x1f   : > { %s207_s14 = sshll.u32 %s199_s13, 4  ;;  %s6570_s23 = scalar_lea.hbm %s17186_s2, %s5856_s29  ;;  %s6572_s14 = int_to_ptr.vmem [resolvable:$true] %s207_s14 }
  0x20   : > { %s6577_s24 = scalar_lea.hbm %s17187_s3, %s5856_s29  ;;  %s6579_s10 = scalar_lea.sflag [#allocation6], %s195_s8 }
  0x21   : > { %s6554_s6 = scalar_lea.hbm %s17926_s0, %s5856_s29  ;;  %p6585_p1 = pneg %p6556_p13 }
  0x24   : > { %s6565_s12 = scalar_lea.hbm %s17928_s1, %s5856_s29  ;;  %s6268_s22 = scalar_lea.hbm %s17928_s1, 4096 }
  0x25   : > { %s6263_s11 = scalar_lea.hbm %s6565_s12, 2048  ;;  %p6269_p4 = scmp.lt.u32.totalorder %s6565_s12, %s17928_s1 }
  0x26   : > { %p6264_p0 = scmp.ne.s32.totalorder %s6565_s12, %s6263_s11  ;;  %p6270_p5 = scmp.lt.u32.totalorder %s6268_s22, %s6263_s11 }
  0x27   : > { %p6272_p8 = scmp.lt.u32.totalorder %s6263_s11, %s6565_s12 }
  0x28   : > { %p6266_p2 = pnand %p6585_p1, %p6264_p0  ;;  %p6271_p7 = por %p6270_p5, %p6269_p4 }
  0x2a   : > { %p6267_p3 = pneg %p6266_p2  ;;  %p6273_p10 = por %p6272_p8, %p6271_p7 }
  0x2c   : > { %p6274_p9 = pnand %p6273_p10, %p6267_p3 }
  0x2e   : > { %6277 = shalt.err (!%p6274_p9)
}
  0x2f   : > { %s6278_s8 = scalar_lea.vmem %s6572_s14, 2048  ;;  %s6459_s5 = smov [#allocation5]  }
  0x30   : > { %p6279_p0 = scmp.ne.s32.totalorder %s6572_s14, %s6278_s8  ;;  %s6283_s13 = sshll.u32 %s6459_s5, 4  ;;  %s6284_s13 = int_to_ptr.vmem [resolvable:$false] %s6283_s13 }
  0x31   : > { %s6285_s20 = scalar_lea.vmem %s6284_s13, 4096  ;;  %p6286_p11 = scmp.lt.s32.totalorder %s6572_s14, %s6284_s13 }
  0x32   : > { %p6281_p2 = pnand %p6279_p0, %p6585_p1  ;;  %p6287_p6 = scmp.lt.s32.totalorder %s6285_s20, %s6278_s8 }
  0x34   : > { %p6282_p12 = pneg %p6281_p2  ;;  %p6288_p4 = por %p6287_p6, %p6286_p11 }
  0x36   : > { %p6289_p5 = pnand %p6288_p4, %p6282_p12 }
  0x38   : > { %6292 = shalt.err (!%p6289_p5)
}
  0x39   : > { %5879 = dma.hbm_to_vmem [thread:$0]  (!%p6556_p13), %s6565_s12, 2048, %s6572_s14, %s6579_s10  }
  0x3a   : > { %p5846_p9 = scmp.ge.s32.totalorder %s6457_s18, 1  ;;  %p254_p6 = scmp.lt.s32.totalorder %s6457_s18, 3 }
  0x3b   : > { %s5835_s11 = sshll.u32 %s6548_s28, 8  ;;  %s5861_s8 = smul.u32 384, %s6548_s28 }
  0x3c   : > { %p6612_p11 = pnand %p5846_p9, %p254_p6  ;;  %s178_s30 = scalar_lea.vmem [#allocation2], %s5835_s11 }
  0x3d   : > { %s185_s29 = sshll.u32 %s178_s30, 4  ;;  %s175_s5 = scalar_lea.sflag [#allocation3], %s6548_s28  ;;  %s6618_s29 = int_to_ptr.vmem [resolvable:$true] %s185_s29 }
  0x3e   : > { %s17930_s22 = scalar_select %p6612_p11, 1, 0 }
  0x3f   : > { %s6293_s13 = scalar_lea.hbm %s6554_s6, 4096  ;;  %s6298_s20 = scalar_lea.hbm %s17926_s0, 8192 }
  0x40   : > { %p6294_p12 = scmp.ne.s32.totalorder %s6554_s6, %s6293_s13  ;;  %p6299_p8 = scmp.lt.u32.totalorder %s6554_s6, %s17926_s0 }
  0x41   : > { %p6300_p10 = scmp.lt.u32.totalorder %s6298_s20, %s6293_s13  ;;  %p6302_p2 = scmp.lt.u32.totalorder %s6293_s13, %s6554_s6 }
  0x42   : > { %p6296_p3 = pnand %p6294_p12, %p6585_p1 }
  0x43   : > { %p6301_p0 = por %p6300_p10, %p6299_p8 }
  0x44   : > { %p6297_p7 = pneg %p6296_p3 }
  0x45   : > { %p6303_p4 = por %p6302_p2, %p6301_p0 }
  0x47   : > { %p6304_p5 = pnand %p6303_p4, %p6297_p7 }
  0x49   : > { %6307 = shalt.err (!%p6304_p5)
}
  0x4a   : > { %s6308_s30 = scalar_lea.vmem %s6618_s29, 4096  ;;  %s6460_s12 = smov [#allocation2]  }
  0x4b   : > { %p6309_p9 = scmp.ne.s32.totalorder %s6618_s29, %s6308_s30  ;;  %s6313_s14 = sshll.u32 %s6460_s12, 4  ;;  %s6314_s14 = int_to_ptr.vmem [resolvable:$false] %s6313_s14 }
  0x4c   : > { %s6315_s1 = scalar_lea.vmem %s6314_s14, 8192  ;;  %p6316_p3 = scmp.lt.s32.totalorder %s6618_s29, %s6314_s14 }
  0x4d   : > { %p6311_p6 = pnand %p6309_p9, %p6585_p1  ;;  %p6317_p11 = scmp.lt.s32.totalorder %s6315_s1, %s6308_s30 }
  0x4f   : > { %p6312_p12 = pneg %p6311_p6  ;;  %p6318_p8 = por %p6317_p11, %p6316_p3 }
  0x51   : > { %p6319_p10 = pnand %p6318_p8, %p6312_p12 }
  0x53   : > { %6322 = shalt.err (!%p6319_p10)
}
  0x54   : > { %s6461_s17 = smov 4096   ;;  %s6462_s13 = smov 2048  }
  0x55   : > { %s6463_s20 = smov 128   ;;  %s218_s30 = scalar_lea.vmem [#allocation7], %s5861_s8 }
  0x56   : > { %5876 = dma.hbm_to_vmem [thread:$0]  (!%p6556_p13), %s6554_s6, 4096, %s6618_s29, %s175_s5, %s6461_s17, %s6462_s13, %s6463_s20  }
  0x57   : > { %s225_s12 = sshll.u32 %s218_s30, 4  ;;  %s6654_s14 = scalar_lea.vmem [#allocation8], %s5835_s11  ;;  %s6650_s12 = int_to_ptr.vmem [resolvable:$true] %s225_s12 }
  0x58   : > { %s246_s1 = sshll.u32 %s6654_s14, 4  ;;  %s6323_s0 = scalar_lea.hbm %s6570_s23, 6144  ;;  %s6684_s1 = int_to_ptr.vmem [resolvable:$true] %s246_s1 }
  0x59   : > { %p6324_p11 = scmp.ne.s32.totalorder %s6570_s23, %s6323_s0  ;;  %s6328_s27 = scalar_lea.hbm %s17186_s2, 12288 }
  0x5a   : > { %p6329_p2 = scmp.lt.u32.totalorder %s6570_s23, %s17186_s2  ;;  %p6330_p4 = scmp.lt.u32.totalorder %s6328_s27, %s6323_s0 }
  0x5b   : > { %p6326_p7 = pnand %p6324_p11, %p6585_p1  ;;  %p6332_p9 = scmp.lt.u32.totalorder %s6323_s0, %s6570_s23 }
  0x5c   : > { %p6331_p5 = por %p6330_p4, %p6329_p2 }
  0x5d   : > { %p6327_p0 = pneg %p6326_p7 }
  0x5e   : > { %p6333_p6 = por %p6332_p9, %p6331_p5 }
  0x60   : > { %p6334_p12 = pnand %p6333_p6, %p6327_p0 }
  0x62   : > { %6337 = shalt.err (!%p6334_p12)
}
  0x63   : > { %s6338_s11 = scalar_lea.vmem %s6650_s12, 6144  ;;  %s6464_s18 = smov [#allocation7]  }
  0x64   : > { %p6339_p3 = scmp.ne.s32.totalorder %s6650_s12, %s6338_s11  ;;  %s6343_s21 = sshll.u32 %s6464_s18, 4  ;;  %s6344_s21 = int_to_ptr.vmem [resolvable:$false] %s6343_s21 }
  0x65   : > { %s6345_s8 = scalar_lea.vmem %s6344_s21, 12288  ;;  %p6346_p11 = scmp.lt.s32.totalorder %s6650_s12, %s6344_s21 }
  0x66   : > { %p6341_p8 = pnand %p6339_p3, %p6585_p1  ;;  %p6347_p7 = scmp.lt.s32.totalorder %s6345_s8, %s6338_s11 }
  0x68   : > { %p6342_p10 = pneg %p6341_p8  ;;  %p6348_p2 = por %p6347_p7, %p6346_p11 }
  0x6a   : > { %p6349_p4 = pnand %p6348_p2, %p6342_p10 }
  0x6c   : > { %6352 = shalt.err (!%p6349_p4)
}
  0x6d   : > { %5882 = dma.hbm_to_vmem [thread:$0]  (!%p6556_p13), %s6570_s23, 6144, %s6650_s12, %s6579_s10, %s6461_s17, %s6462_s13, %s6463_s20  }
  0x6e   : > { %s236_s0 = scalar_lea.sflag [#allocation9], %s6548_s28  ;;  %s6353_s27 = scalar_lea.hbm %s6577_s24, 4096 }
  0x6f   : > { %p6354_p0 = scmp.ne.s32.totalorder %s6577_s24, %s6353_s27  ;;  %s6358_s6 = scalar_lea.hbm %s17187_s3, 8192 }
  0x70   : > { %p6359_p6 = scmp.lt.u32.totalorder %s6577_s24, %s17187_s3  ;;  %p6360_p12 = scmp.lt.u32.totalorder %s6358_s6, %s6353_s27 }
  0x71   : > { %p6356_p5 = pnand %p6354_p0, %p6585_p1  ;;  %p6362_p8 = scmp.lt.u32.totalorder %s6353_s27, %s6577_s24 }
  0x72   : > { %p6361_p3 = por %p6360_p12, %p6359_p6 }
  0x73   : > { %p6357_p9 = pneg %p6356_p5 }
  0x74   : > { %p6363_p10 = por %p6362_p8, %p6361_p3 }
  0x76   : > { %p6364_p11 = pnand %p6363_p10, %p6357_p9 }
  0x78   : > { %6367 = shalt.err (!%p6364_p11)
}
  0x79   : > { %s6368_s23 = scalar_lea.vmem %s6684_s1, 4096  ;;  %s6465_s10 = smov [#allocation8]  }
  0x7a   : > { %p6369_p7 = scmp.ne.s32.totalorder %s6684_s1, %s6368_s23  ;;  %s6373_s12 = sshll.u32 %s6465_s10, 4  ;;  %s6374_s12 = int_to_ptr.vmem [resolvable:$false] %s6373_s12 }
  0x7b   : > { %s6375_s14 = scalar_lea.vmem %s6374_s12, 8192  ;;  %p6376_p0 = scmp.lt.s32.totalorder %s6684_s1, %s6374_s12 }
  0x7c   : > { %p6371_p2 = pnand %p6369_p7, %p6585_p1  ;;  %p6377_p5 = scmp.lt.s32.totalorder %s6375_s14, %s6368_s23 }
  0x7e   : > { %p6372_p4 = pneg %p6371_p2  ;;  %p6378_p6 = por %p6377_p5, %p6376_p0 }
  0x80   : > { %p6379_p12 = pnand %p6378_p6, %p6372_p4 }
  0x82   : > { %6382 = shalt.err (!%p6379_p12)
}
  0x83   : > { %5885 = dma.hbm_to_vmem [thread:$0]  (!%p6556_p13), %s6577_s24, 4096, %s6684_s1, %s236_s0, %s6461_s17, %s6462_s13, %s6463_s20  }
  0x84   : > { %p17931_p1 = scmp.ne.s32.totalorder %s17930_s22, 0 }
  0x86   : > { %258 = sbr.rel (%p17931_p1) target bundleno = 1188 (0x4a4), region = 36 }
  0x8d   : > { %s6716_s9 = sand.u32 1, %s6449_s16   ;;  %p17932_p9 = scmp.ne.s32.totalorder %s17922_s25, 0 }
  0x8e   : > { %s5847_s18 = sshll.u32 %s6716_s9, 8  ;;  %s261_s21 = scalar_lea.sflag [#allocation3], %s6716_s9 }
  0x8f   : > { %s6720_s7 = scalar_lea.vmem [#allocation2], %s5847_s18 }
  0x90   : > { %6428 = dma.done.wait (%p17932_p9), %s261_s21, 4096  }
  0x91   : > { %6430 = vsyncadd (%p17932_p9), %s261_s21, 4294963200  ;;  %s269_s24 = sand.u32 1, %s6514_s19   ;;  %s5848_s28 = sshll.u32 %s6716_s9, 7 }
  0x92   : > { %s270_s22 = scalar_lea.sflag [#allocation6], %s269_s24  ;;  %s6730_s17 = scalar_lea.vmem [#allocation5], %s5848_s28 }
  0x93   : > { %6432 = dma.done.wait (%p17932_p9), %s270_s22, 8192  }
  0x94   : > { %6434 = vsyncadd (%p17932_p9), %s270_s22, 4294959104  ;;  %s5862_s13 = smul.u32 384, %s6716_s9  ;;  %s288_s1 = scalar_lea.sflag [#allocation9], %s6716_s9 }
  0x95   : > { %s6740_s8 = scalar_lea.vmem [#allocation8], %s5847_s18 }
  0x96   : > { %s6737_s20 = scalar_lea.vmem [#allocation7], %s5862_s13 }
  0x97   : > { %6436 = dma.done.wait (%p17932_p9), %s288_s1, 4096  }
  0x98   : > { %6438 = vsyncadd (%p17932_p9), %s288_s1, 4294963200  ;;  %v448_v0 = vlaneseq  ;;  %v6749_v2 = vld [vmem:[%s6737_s20] sm:$0xff]  ;;  %v6755_v4 = vld [vmem:[%s6737_s20 + $0x8] sm:$0xff]  ;;  %vm17281_vm9 = vcmask 1046528   ;;  %s17108_s25 = scalar_lea.vmem [#allocation10], %s5848_s28  ;;  %s5860_s0 = sshll.u32 %s6514_s19, 11 }
  0x99   : > { %17934 = vst [vmem:[#allocation21_spill] sm:$0xff] %v6749_v2  ;;  %17936 = vst [vmem:[#allocation23_spill] sm:$0xff] %v6755_v4  ;;  %v6758_v5 = vld [vmem:[%s6737_s20 + $0x10] sm:$0xff]  ;;  %v6761_v6 = vld [vmem:[%s6737_s20 + $0x18] sm:$0xff]  ;;  %s5696_s27 = sshll.u32 %s17108_s25, 4  ;;  %s17138_s6 = scalar_lea.hbm %s17188_s4, %s5860_s0  ;;  %s17140_s27 = int_to_ptr.vmem [resolvable:$true] %s5696_s27 }
  0x9a   : > { %v6746_v1 = vshrl.u32 %v448_v0, 7  ;;  %17937 = vst [vmem:[#allocation24_spill] sm:$0xff] %v6758_v5  ;;  %17938 = vst [vmem:[#allocation25_spill] sm:$0xff] %v6761_v6  ;;  %v6767_v8 = vld [vmem:[%s6737_s20 + $0x20] sm:$0xff]  ;;  %v6770_v9 = vld [vmem:[%s6737_s20 + $0x28] sm:$0xff]  ;;  %s5682_s19 = scalar_lea.sflag [#allocation4], %s6716_s9 }
  0x9b   : > { %17940 = vst [vmem:[#allocation27_spill] sm:$0xff] %v6767_v8  ;;  %17941 = vst [vmem:[#allocation28_spill] sm:$0xff] %v6770_v9  ;;  %v6773_v10 = vld [vmem:[%s6737_s20 + $0x30] sm:$0xff]  ;;  %v6776_v11 = vld [vmem:[%s6720_s7] sm:$0xff]  ;;  %s6383_s29 = scalar_lea.vmem %s17140_s27, 2048  ;;  %p20650_p3 = scmp.ne.s32.totalorder %s17923_s26, 0 }
  0x9c   : > { %17933 = vst [vmem:[#allocation20_spill] sm:$0xff] %v6746_v1  ;;  %v6752_v3 = vsub.s32 0, %v6746_v1  ;;  %v6764_v7 = vsub.s32 1, %v6746_v1  ;;  %17942 = vst [vmem:[#allocation29_spill] sm:$0xff] %v6773_v10  ;;  %v6779_v12 = vld [vmem:[%s6737_s20 + $0x38] sm:$0xff]  ;;  %v6782_v13 = vld [vmem:[%s6737_s20 + $0x40] sm:$0xff]  ;;  %p6384_p13 = scmp.ne.s32.totalorder %s17140_s27, %s6383_s29 }
  0x9d   : > { %17943 = vst [vmem:[#allocation30_spill] sm:$0xff] %v6776_v11  ;;  %17944 = vst [vmem:[#allocation31_spill] sm:$0xff] %v6779_v12  ;;  %v6785_v14 = vld [vmem:[%s6737_s20 + $0x48] sm:$0xff]  ;;  %v6791_v16 = vld [vmem:[%s6720_s7 + $0x10] sm:$0xff]  ;;  %v6821_v25 = vsub.s32 2, %v6746_v1  ;;  %s6467_s11 = smov [#allocation10]  }
  0x9e   : > { %17935 = vst [vmem:[#allocation22_spill] sm:$0xff] %v6752_v3  ;;  %17939 = vst [vmem:[#allocation26_spill] sm:$0xff] %v6764_v7  ;;  %v6788_v15 = vld [vmem:[%s6720_s7 + $0x8] sm:$0xff]  ;;  %v6794_v17 = vld [vmem:[%s6720_s7 + $0x18] sm:$0xff]  ;;  %v6810_v22 = vrot.slane %v6749_v2, %v6752_v3  ;;  %v6814_v23 = vrot.slane %v6755_v4, %v6752_v3  ;;  %v6818_v24 = vrot.slane %v6758_v5, %v6752_v3  ;;  %p6385_p8 = pnand %p6384_p13, %p20650_p3  ;;  %s6387_s23 = sshll.u32 %s6467_s11, 4  ;;  %s6388_s23 = int_to_ptr.vmem [resolvable:$false] %s6387_s23 }
  0x9f   : > { %17945 = vst [vmem:[#allocation32_spill] sm:$0xff] %v6782_v13  ;;  %17946 = vst [vmem:[#allocation33_spill] sm:$0xff] %v6785_v14  ;;  %v6797_v18 = vld [vmem:[%s6720_s7 + $0x20] sm:$0xff]  ;;  %v6800_v19 = vld [vmem:[%s6737_s20 + $0x50] sm:$0xff]  ;;  %v6843_v32 = vrot.slane %v6761_v6, %v6752_v3  ;;  %v6847_v33 = vrot.slane %v6767_v8, %v6752_v3  ;;  %v6851_v34 = vrot.slane %v6770_v9, %v6752_v3  ;;  %s6389_s10 = scalar_lea.vmem %s6388_s23, 4096  ;;  %p6390_p11 = scmp.lt.s32.totalorder %s17140_s27, %s6388_s23 }
  0xa0   : > { %17947 = vst [vmem:[#allocation34_spill] sm:$0xff] %v6800_v19  ;;  %v6803_v20 = vld [vmem:[%s6737_s20 + $0x58] sm:$0xff]  ;;  %v6806_v21 = vld [vmem:[%s6737_s20 + $0x60] sm:$0xff]  ;;  %17950 = vst [vmem:[#allocation37_spill] sm:$0xff] %v6821_v25  ;;  %v6855_v35 = vrot.slane %v6749_v2, %v6764_v7  ;;  %v6868_v39 = vrot.slane %v6773_v10, %v6752_v3  ;;  %v6872_v40 = vrot.slane %v6779_v12, %v6752_v3  ;;  %p6386_p10 = pneg %p6385_p8  ;;  %p6391_p7 = scmp.lt.s32.totalorder %s6389_s10, %s6383_s29 }
  0xa1   : > { %17948 = vst [vmem:[#allocation35_spill] sm:$0xff] %v6803_v20  ;;  %17949 = vst [vmem:[#allocation36_spill] sm:$0xff] %v6806_v21  ;;  %v6824_v26 = vld [vmem:[%s6720_s7 + $0x28] sm:$0xff]  ;;  %v6827_v27 = vld [vmem:[%s6720_s7 + $0x30] sm:$0xff]  ;;  %v6876_v41 = vrot.slane %v6782_v13, %v6752_v3  ;;  %v6880_v42 = vrot.slane %v6755_v4, %v6764_v7  ;;  %v6893_v46 = vrot.slane %v6785_v14, %v6752_v3 }
  0xa2   : > { %v6830_v28 = vld [vmem:[%s6720_s7 + $0x38] sm:$0xff]  ;;  %v6833_v29 = vld [vmem:[%s6737_s20 + $0x68] sm:$0xff]  ;;  %v6836_v30 = vld [vmem:[%s6737_s20 + $0x70] sm:$0xff]  ;;  %17954 = vst [vmem:[#allocation41_spill] sm:$0xff] %v6855_v35  ;;  %v6897_v47 = vrot.slane %v6800_v19, %v6752_v3  ;;  %v6901_v48 = vrot.slane %v6803_v20, %v6752_v3  ;;  %v6905_v49 = vrot.slane %v6806_v21, %v6752_v3  ;;  %vm528_vm0 = vcmp.le.f32.partialorder %v6810_v22, %v6776_v11  ;;  %p6392_p2 = por %p6391_p7, %p6390_p11 }
  0xa3   : > { %17951 = vst [vmem:[#allocation38_spill] sm:$0xff] %v6833_v29  ;;  %17952 = vst [vmem:[#allocation39_spill] sm:$0xff] %v6836_v30  ;;  %v6839_v31 = vld [vmem:[%s6737_s20 + $0x78] sm:$0xff]  ;;  %v6858_v36 = vld [vmem:[%s6720_s7 + $0x40] sm:$0xff]  ;;  %v6918_v53 = vrot.slane %v6833_v29, %v6752_v3  ;;  %v6922_v54 = vrot.slane %v6836_v30, %v6752_v3  ;;  %vm529_vm1 = vcmp.le.f32.partialorder %v6814_v23, %v6788_v15 }
  0xa4   : > { %17953 = vst [vmem:[#allocation40_spill] sm:$0xff] %v6839_v31  ;;  %v6861_v37 = vld [vmem:[%s6720_s7 + $0x48] sm:$0xff]  ;;  %v6864_v38 = vld [vmem:[%s6720_s7 + $0x50] sm:$0xff]  ;;  %17957 = vst [vmem:[#allocation44_spill] sm:$0xff] %v6880_v42  ;;  %v6926_v55 = vrot.slane %v6839_v31, %v6752_v3  ;;  %vm530_vm2 = vcmp.le.f32.partialorder %v6818_v24, %v6791_v16  ;;  %vm531_vm3 = vcmp.le.f32.partialorder %v6843_v32, %v6794_v17  ;;  %v17271_v31 = vmov 0   ;;  %p6393_p4 = pnand %p6392_p2, %p6386_p10 }
  0xa5   : > { %17955 = vst [vmem:[#allocation42_spill] sm:$0xff] %v6861_v37  ;;  %17956 = vst [vmem:[#allocation43_spill] sm:$0xff] %v6864_v38  ;;  %v6883_v43 = vld [vmem:[%s6720_s7 + $0x58] sm:$0xff]  ;;  %v6886_v44 = vld [vmem:[%s6720_s7 + $0x60] sm:$0xff]  ;;  %vm532_vm4 = vcmp.le.f32.partialorder %v6847_v33, %v6797_v18  ;;  %vm533_vm5 = vcmp.le.f32.partialorder %v6851_v34, %v6824_v26  ;;  %vm534_vm6 = vcmp.le.f32.partialorder %v6868_v39, %v6827_v27  ;;  %v560_v30 = vsel %vm528_vm0, 1, %v17271_v31 }
  0xa6   : > { %17958 = vst [vmem:[#allocation45_spill] sm:$0xff] %v6883_v43  ;;  %17959 = vst [vmem:[#allocation46_spill] sm:$0xff] %v6886_v44  ;;  %v6889_v45 = vld [vmem:[%s6720_s7 + $0x68] sm:$0xff]  ;;  %v6908_v50 = vld [vmem:[%s6720_s7 + $0x70] sm:$0xff]  ;;  %vm535_vm7 = vcmp.le.f32.partialorder %v6872_v40, %v6830_v28  ;;  %vm536_vm8 = vcmp.le.f32.partialorder %v6876_v41, %v6858_v36  ;;  %v561_v29 = vsel %vm529_vm1, 1, %v17271_v31  ;;  %v562_v21 = vsel %vm530_vm2, 1, %v17271_v31 }
  0xa7   : > { %17960 = vst [vmem:[#allocation47_spill] sm:$0xff] %v6889_v45  ;;  %17961 = vst [vmem:[#allocation48_spill] sm:$0xff] %v6908_v50  ;;  %v6911_v51 = vld [vmem:[%s6720_s7 + $0x78] sm:$0xff]  ;;  %v6914_v52 = vld [vmem:[%s6720_s7 + $0x80] sm:$0x1]  ;;  %v563_v20 = vsel %vm531_vm3, 1, %v17271_v31  ;;  %vm17979_vm0 = vcmp.le.f32.partialorder %v6893_v46, %v6861_v37  ;;  %vm17980_vm1 = vcmp.le.f32.partialorder %v6897_v47, %v6864_v38  ;;  %vm17981_vm2 = vcmp.le.f32.partialorder %v6901_v48, %v6883_v43 }
  0xa8   : > { %17962 = vst [vmem:[#allocation49_spill] sm:$0xff] %v6911_v51  ;;  %17963 = vst [vmem:[#allocation50_spill] sm:$0xff] %v6914_v52  ;;  %v6931_v56 = vld [vmem:[%s6720_s7 + $0x88] sm:$0x1]  ;;  %v6934_v57 = vld [vmem:[%s6720_s7 + $0x90] sm:$0x1]  ;;  %vm17983_vm3 = vcmp.le.f32.partialorder %v6905_v49, %v6886_v44 }
  0xa9   : > { %17964 = vst [vmem:[#allocation51_spill] sm:$0xff] %v6931_v56  ;;  %17965 = vst [vmem:[#allocation52_spill] sm:$0xff] %v6934_v57  ;;  %v6937_v58 = vld [vmem:[%s6720_s7 + $0x98] sm:$0x1]  ;;  %v6948_v59 = vld [vmem:[%s6720_s7 + $0xa0] sm:$0x1] }
  0xaa   : > { %17966 = vst [vmem:[#allocation53_spill] sm:$0xff] %v6937_v58  ;;  %17967 = vst [vmem:[#allocation54_spill] sm:$0xff] %v6948_v59  ;;  %v6951_v60 = vld [vmem:[%s6720_s7 + $0xa8] sm:$0x1]  ;;  %v6954_v61 = vld [vmem:[%s6720_s7 + $0xb0] sm:$0x1] }
  0xab   : > { %17968 = vst [vmem:[#allocation55_spill] sm:$0xff] %v6951_v60  ;;  %17969 = vst [vmem:[#allocation56_spill] sm:$0xff] %v6954_v61  ;;  %v6965_v62 = vld [vmem:[%s6720_s7 + $0xb8] sm:$0x1]  ;;  %v6968_v63 = vld [vmem:[%s6720_s7 + $0xc0] sm:$0x1] }
  0xac   : > { %17970 = vst [vmem:[#allocation57_spill] sm:$0xff] %v6965_v62  ;;  %17971 = vst [vmem:[#allocation58_spill] sm:$0xff] %v6968_v63  ;;  %v6971_v0 = vld [vmem:[%s6720_s7 + $0xc8] sm:$0x1]  ;;  %v6982_v1 = vld [vmem:[%s6720_s7 + $0xd0] sm:$0x1] }
  0xad   : > { %17972 = vst [vmem:[#allocation59_spill] sm:$0xff] %v6971_v0  ;;  %17973 = vst [vmem:[#allocation60_spill] sm:$0xff] %v6982_v1  ;;  %v6985_v4 = vld [vmem:[%s6720_s7 + $0xd8] sm:$0x1]  ;;  %v6988_v2 = vld [vmem:[%s6720_s7 + $0xe0] sm:$0x1]  ;;  %vm553_vm13 = vcmp.le.f32.partialorder %v6893_v46, %v6971_v0  ;;  %vm554_vm14 = vcmp.le.f32.partialorder %v6897_v47, %v6982_v1 }
  0xae   : > { %17974 = vst [vmem:[#allocation61_spill] sm:$0xff] %v6985_v4  ;;  %17975 = vst [vmem:[#allocation62_spill] sm:$0xff] %v6988_v2  ;;  %v6999_v25 = vld [vmem:[%s6720_s7 + $0xe8] sm:$0x1]  ;;  %v7002_v42 = vld [vmem:[%s6720_s7 + $0xf0] sm:$0x1]  ;;  %vm555_vm15 = vcmp.le.f32.partialorder %v6901_v48, %v6985_v4  ;;  %vm556_vm11 = vcmp.le.f32.partialorder %v6905_v49, %v6988_v2 }
  0xaf   : > { %17976 = vst [vmem:[#allocation63_spill] sm:$0xff] %v6999_v25  ;;  %17977 = vst [vmem:[#allocation64_spill] sm:$0xff] %v7002_v42  ;;  %v7005_v35 = vld [vmem:[%s6720_s7 + $0xf8] sm:$0x1]  ;;  %vm557_vm10 = vcmp.le.f32.partialorder %v6918_v53, %v6999_v25  ;;  %v564_v19 = vsel %vm532_vm4, 1, %v17271_v31  ;;  %v565_v14 = vsel %vm533_vm5, 1, %v17271_v31  ;;  %vm17985_vm4 = vcmp.le.f32.partialorder %v6918_v53, %v6889_v45 }
  0xb0   : > { %17978 = vst [vmem:[#allocation65_spill] sm:$0xff] %v7005_v35  ;;  %vm559_vm12 = vcmp.le.f32.partialorder %v6926_v55, %v7005_v35  ;;  %v566_v13 = vsel %vm534_vm6, 1, %v17271_v31  ;;  %v7069_v12 = vsel %vm535_vm7, 1, %v17271_v31  ;;  %v7075_v10 = vsel %vm536_vm8, 1, %v17271_v31  ;;  %v7296_v2 = vld [vmem:[%s6740_s8 + $0x20] sm:$0xff]  ;;  %v7299_v4 = vld [vmem:[%s6740_s8 + $0x28] sm:$0xff] }
  0xb1   : > { %v7081_v9 = vsel %vm17979_vm0, 1, %v17271_v31  ;;  %v7087_v8 = vsel %vm17980_vm1, 1, %v17271_v31  ;;  %v7093_v6 = vsel %vm17981_vm2, 1, %v17271_v31  ;;  %v7099_v5 = vsel %vm17983_vm3, 1, %v17271_v31  ;;  %v7319_v1 = vld [vmem:[%s6740_s8 + $0x38] sm:$0xff]  ;;  %v7322_v0 = vld [vmem:[%s6740_s8 + $0x40] sm:$0xff] }
  0xb2   : > { %17982 = vst [vmem:[#allocation66_spill] sm:$0xff] %v7093_v6  ;;  %17984 = vst [vmem:[#allocation67_spill] sm:$0xff] %v7099_v5  ;;  %v7105_v7 = vsel %vm17985_vm4, 1, %v17271_v31  ;;  %vm17987_vm5 = vcmp.le.f32.partialorder %v6810_v22, %v6914_v52  ;;  %vm17988_vm6 = vcmp.le.f32.partialorder %v6922_v54, %v6908_v50  ;;  %vm17990_vm7 = vcmp.le.f32.partialorder %v6926_v55, %v6911_v51 }
  0xb3   : > { %17986 = vst [vmem:[#allocation68_spill] sm:$0xff] %v7105_v7  ;;  %v576_v3 = vsel %vm17987_vm5, 1, %v17271_v31  ;;  %v7115_v43 = vsel %vm17988_vm6, 1, %v17271_v31  ;;  %v7121_v44 = vsel %vm17990_vm7, 1, %v17271_v31  ;;  %vm17992_vm8 = vcmp.le.f32.partialorder %v6814_v23, %v6931_v56  ;;  %18027 = vst [vmem:[#allocation72_spill] sm:$0xff] %v7319_v1 }
  0xb4   : > { %17989 = vst [vmem:[#allocation69_spill] sm:$0xff] %v7115_v43  ;;  %17991 = vst [vmem:[#allocation70_spill] sm:$0xff] %v7121_v44  ;;  %v577_v45 = vsel %vm17992_vm8, 1, %v17271_v31  ;;  %vm17993_vm0 = vcmp.le.f32.partialorder %v6818_v24, %v6934_v57  ;;  %vm17994_vm1 = vcmp.le.f32.partialorder %v6843_v32, %v6937_v58  ;;  %vm17995_vm2 = vcmp.le.f32.partialorder %v6847_v33, %v6948_v59 }
  0xb5   : > { %v578_v52 = vsel %vm17993_vm0, 1, %v17271_v31  ;;  %v579_v50 = vsel %vm17994_vm1, 1, %v17271_v31  ;;  %v580_v51 = vsel %vm17995_vm2, 1, %v17271_v31  ;;  %vm17996_vm3 = vcmp.le.f32.partialorder %v6851_v34, %v6951_v60  ;;  %18028 = vst [vmem:[#allocation73_spill] sm:$0xff] %v7322_v0 }
  0xb6   : > { %v581_v56 = vsel %vm17996_vm3, 1, %v17271_v31  ;;  %vm17997_vm4 = vcmp.le.f32.partialorder %v6868_v39, %v6954_v61  ;;  %vm17998_vm5 = vcmp.le.f32.partialorder %v6872_v40, %v6965_v62  ;;  %vm17999_vm6 = vcmp.le.f32.partialorder %v6876_v41, %v6968_v63 }
  0xb7   : > { %v582_v57 = vsel %vm17997_vm4, 1, %v17271_v31  ;;  %v7151_v58 = vsel %vm17998_vm5, 1, %v17271_v31  ;;  %v7157_v59 = vsel %vm17999_vm6, 1, %v17271_v31  ;;  %v593_v44 = vrot.slane %v560_v30, 1 }
  0xb8   : > { %v594_v60 = vrot.slane %v576_v3, 1  ;;  %vm512_vm7 = vcmp.ge.f32.partialorder %v6810_v22, %v6776_v11  ;;  %v596_v43 = vrot.slane %v561_v29, 1  ;;  %v597_v61 = vrot.slane %v577_v45, 1 }
  0xb9   : > { %v599_v7 = vrot.slane %v562_v21, 1  ;;  %v600_v38 = vrot.slane %v578_v52, 1  ;;  %vm513_vm8 = vcmp.ge.f32.partialorder %v6814_v23, %v6788_v15  ;;  %v602_v62 = vrot.slane %v563_v20, 1 }
  0xba   : > { %v603_v5 = vrot.slane %v579_v50, 1  ;;  %v605_v37 = vrot.slane %v564_v19, 1  ;;  %v606_v6 = vrot.slane %v580_v51, 1  ;;  %vm514_vm0 = vcmp.ge.f32.partialorder %v6818_v24, %v6791_v16 }
  0xbb   : > { %v585_v3 = vsel %vm553_vm13, 1, %v17271_v31  ;;  %v7173_v21 = vsel %vm554_vm14, 1, %v17271_v31  ;;  %v608_v29 = vrot.slane %v565_v14, 1  ;;  %v609_v30 = vrot.slane %v581_v56, 1 }
  0xbc   : > { %vm515_vm1 = vcmp.ge.f32.partialorder %v6843_v32, %v6794_v17  ;;  %v7181_v19 = vsel %vm555_vm15, 1, %v17271_v31  ;;  %v7187_v20 = vsel %vm556_vm11, 1, %v17271_v31  ;;  %v611_v45 = vrot.slane %v566_v13, 1  ;;  %v7336_v32 = vld [vmem:[%s6740_s8 + $0x48] sm:$0xff] }
  0xbd   : > { %v612_v50 = vrot.slane %v582_v57, 1  ;;  %vm516_vm13 = vcmp.ge.f32.partialorder %v6847_v33, %v6797_v18  ;;  %v7195_v14 = vsel %vm557_vm10, 1, %v17271_v31  ;;  %vm18000_vm14 = vcmp.le.f32.partialorder %v6922_v54, %v7002_v42  ;;  %18031 = vst [vmem:[#allocation74_spill] sm:$0xff] %v7336_v32 }
  0xbe   : > { %v7201_v51 = vsel %vm18000_vm14, 1, %v17271_v31  ;;  %v7207_v13 = vsel %vm559_vm12, 1, %v17271_v31  ;;  %v595_v52 = vsel %vm17281_vm9, %v593_v44, %v594_v60  ;;  %vm517_vm11 = vcmp.ge.f32.partialorder %v6851_v34, %v6824_v26 }
  0xbf   : > { %v598_v56 = vsel %vm17281_vm9, %v596_v43, %v597_v61  ;;  %v601_v57 = vsel %vm17281_vm9, %v599_v7, %v600_v38  ;;  %v604_v25 = vsel %vm17281_vm9, %v602_v62, %v603_v5  ;;  %v607_v42 = vsel %vm17281_vm9, %v605_v37, %v606_v6  ;;  %v18001_v43 = vld [vmem:[#allocation66_spill] sm:$0xff] }
  0xc0   : > { %vm518_vm10 = vcmp.ge.f32.partialorder %v6868_v39, %v6827_v27  ;;  %v7219_v35 = vsel %vm17281_vm9, %v608_v29, %v609_v30  ;;  %v614_v31 = vrot.slane %v7069_v12, 1  ;;  %v615_v44 = vrot.slane %v7151_v58, 1  ;;  %v18002_v58 = vld [vmem:[#allocation42_spill] sm:$0xff]  ;;  %v18006_v30 = vld [vmem:[#allocation69_spill] sm:$0xff] }
  0xc1   : > { %v617_v60 = vrot.slane %v7075_v10, 1  ;;  %v7227_v7 = vsel %vm17281_vm9, %v611_v45, %v612_v50  ;;  %v618_v5 = vrot.slane %v7157_v59, 1  ;;  %v620_v6 = vrot.slane %v7081_v9, 1  ;;  %v18003_v59 = vld [vmem:[#allocation67_spill] sm:$0xff]  ;;  %18021 = vst [vmem:[#allocation69_spill] sm:$0xff] %v7296_v2 }
  0xc2   : > { %v621_v37 = vrot.slane %v585_v3, 1  ;;  %v623_v12 = vrot.slane %v7087_v8, 1  ;;  %v624_v38 = vrot.slane %v7173_v21, 1  ;;  %v626_v10 = vrot.slane %v18001_v43, 1  ;;  %v18004_v3 = vld [vmem:[#allocation43_spill] sm:$0xff]  ;;  %v18005_v8 = vld [vmem:[#allocation68_spill] sm:$0xff] }
  0xc3   : > { %vm641_vm2 = vcmp.ne.s32.totalorder %v595_v52, 0  ;;  %v627_v61 = vrot.slane %v7181_v19, 1  ;;  %v629_v62 = vrot.slane %v18003_v59, 1  ;;  %v630_v9 = vrot.slane %v7187_v20, 1  ;;  %v18007_v19 = vld [vmem:[#allocation70_spill] sm:$0xff]  ;;  %v7274_v52 = vld [vmem:[%s6740_s8 + $0x8] sm:$0xff] }
  0xc4   : > { %vm642_vm4 = vcmp.ne.s32.totalorder %v598_v56, 0  ;;  %v632_v21 = vrot.slane %v18005_v8, 1  ;;  %v633_v29 = vrot.slane %v7195_v14, 1  ;;  %v635_v45 = vrot.slane %v18006_v30, 1  ;;  %vm7253_vm5 = vmand %vm512_vm7, %vm641_vm2  ;;  %v7258_v14 = vld [vmem:[%s6740_s8] sm:$0xff]  ;;  %v18011_v8 = vld [vmem:[#allocation45_spill] sm:$0xff] }
  0xc5   : > { %vm643_vm6 = vcmp.ne.s32.totalorder %v601_v57, 0  ;;  %v636_v50 = vrot.slane %v7201_v51, 1  ;;  %v638_v43 = vrot.slane %v18007_v19, 1  ;;  %v639_v59 = vrot.slane %v7207_v13, 1  ;;  %18010 = vst [vmem:[#allocation66_spill] sm:$0xff] %v7258_v14  ;;  %v18012_v51 = vld [vmem:[#allocation46_spill] sm:$0xff]  ;;  %vm7269_vm7 = vmand %vm513_vm8, %vm642_vm4 }
  0xc6   : > { %vm644_vm14 = vcmp.ne.s32.totalorder %v604_v25, 0  ;;  %v616_v13 = vsel %vm17281_vm9, %v614_v31, %v615_v44  ;;  %vm645_vm12 = vcmp.ne.s32.totalorder %v607_v42, 0  ;;  %18015 = vst [vmem:[#allocation42_spill] sm:$0xff] %v7274_v52  ;;  %v7277_v30 = vld [vmem:[%s6740_s8 + $0x10] sm:$0xff]  ;;  %v18017_v19 = vld [vmem:[#allocation47_spill] sm:$0xff]  ;;  %v619_v31 = vsel %vm17281_vm9, %v617_v60, %v618_v5  ;;  %vm7288_vm8 = vmand %vm514_vm0, %vm643_vm6 }
  0xc7   : > { %18016 = vst [vmem:[#allocation67_spill] sm:$0xff] %v7277_v30  ;;  %v622_v56 = vsel %vm17281_vm9, %v620_v6, %v621_v37  ;;  %vm646_vm15 = vcmp.ne.s32.totalorder %v7219_v35, 0  ;;  %v7293_v44 = vld [vmem:[%s6740_s8 + $0x18] sm:$0xff]  ;;  %18022 = vst [vmem:[#allocation70_spill] sm:$0xff] %v7299_v4  ;;  %v7302_v60 = vld [vmem:[%s6740_s8 + $0x30] sm:$0xff]  ;;  %v625_v57 = vsel %vm17281_vm9, %v623_v12, %v624_v38  ;;  %v628_v24 = vsel %vm17281_vm9, %v626_v10, %v627_v61 }
  0xc8   : > { %18020 = vst [vmem:[#allocation68_spill] sm:$0xff] %v7293_v44  ;;  %18023 = vst [vmem:[#allocation71_spill] sm:$0xff] %v7302_v60  ;;  %v18024_v5 = vld [vmem:[#allocation48_spill] sm:$0xff]  ;;  %v631_v6 = vsel %vm17281_vm9, %v629_v62, %v630_v9  ;;  %vm647_vm0 = vcmp.ne.s32.totalorder %v7227_v7, 0  ;;  %v634_v12 = vsel %vm17281_vm9, %v632_v21, %v633_v29  ;;  %v637_v38 = vsel %vm17281_vm9, %v635_v45, %v636_v50  ;;  %v7339_v61 = vld [vmem:[%s6740_s8 + $0x50] sm:$0xff] }
  0xc9   : > { %vm7314_vm6 = vmand %vm515_vm1, %vm644_vm14  ;;  %v640_v10 = vsel %vm17281_vm9, %v638_v43, %v639_v59  ;;  %vm648_vm4 = vcmp.ne.s32.totalorder %v616_v13, 0  ;;  %18032 = vst [vmem:[#allocation75_spill] sm:$0xff] %v7339_v61  ;;  %v18033_v62 = vld [vmem:[#allocation49_spill] sm:$0xff]  ;;  %v18036_v42 = vld [vmem:[#allocation22_spill] sm:$0xff]  ;;  %v18039_v34 = vmov 0  ;;  %vm654_vm3 = vcmp.ne.s32.totalorder %v634_v12, 0 }
  0xca   : > { %vm7331_vm1 = vmand %vm516_vm13, %vm645_vm12  ;;  %v676_v9 = vrot.slane %v7258_v14, %v18036_v42  ;;  %v680_v21 = vrot.slane %v7274_v52, %v18036_v42  ;;  %v7357_v29 = vld [vmem:[%s6740_s8 + $0x58] sm:$0xff]  ;;  %v7360_v45 = vld [vmem:[%s6740_s8 + $0x60] sm:$0xff]  ;;  %v684_v35 = vrot.slane %v7277_v30, %v18036_v42  ;;  %vm18043_vm13 = vcmp.ge.f32.partialorder %v6872_v40, %v6830_v28 }
  0xcb   : > { %vm7348_vm9 = vmand %vm517_vm11, %vm646_vm15  ;;  %18037 = vst [vmem:[#allocation76_spill] sm:$0xff] %v7357_v29  ;;  %v7374_v50 = vld [vmem:[%s6740_s8 + $0x68] sm:$0xff]  ;;  %v7377_v43 = vld [vmem:[%s6740_s8 + $0x70] sm:$0xff]  ;;  %vm653_vm15 = vcmp.ne.s32.totalorder %v631_v6, 0  ;;  %v688_v13 = vrot.slane %v7293_v44, %v18036_v42  ;;  %v692_v40 = vrot.slane %v7296_v2, %v18036_v42  ;;  %v696_v30 = vrot.slane %v7299_v4, %v18036_v42 }
  0xcc   : > { %18038 = vst [vmem:[#allocation77_spill] sm:$0xff] %v7360_v45  ;;  %vm7367_vm11 = vmand %vm518_vm10, %vm647_vm0  ;;  %v7388_v7 = vld [vmem:[%s6740_s8 + $0x78] sm:$0xff]  ;;  %vm18047_vm10 = vcmp.ne.s32.totalorder %v619_v31, 0  ;;  %vm18048_vm0 = vcmp.ge.f32.partialorder %v6876_v41, %v6858_v36  ;;  %v700_v52 = vrot.slane %v7302_v60, %v18036_v42  ;;  %v704_v31 = vrot.slane %v7319_v1, %v18036_v42  ;;  %v18080_v12 = vld [vmem:[#allocation26_spill] sm:$0xff] }
  0xcd   : > { %v18040_v34 = vsel %vm7367_vm11, 4294967295, %v18039_v34  ;;  %18041 = vst [vmem:[#allocation78_spill] sm:$0xff] %v7374_v50  ;;  %18042 = vst [vmem:[#allocation79_spill] sm:$0xff] %v7377_v43  ;;  %v708_v2 = vrot.slane %v7322_v0, %v18036_v42  ;;  %v712_v4 = vrot.slane %v7336_v32, %v18036_v42  ;;  %v716_v60 = vrot.slane %v7339_v61, %v18036_v42  ;;  %v18081_v25 = vld [vmem:[#allocation24_spill] sm:$0xff]  ;;  %v18094_v59 = vld [vmem:[#allocation31_spill] sm:$0xff] }
  0xce   : > { %vm7383_vm2 = vmand %vm18043_vm13, %vm648_vm4  ;;  %18046 = vst [vmem:[#allocation80_spill] sm:$0xff] %v7388_v7  ;;  %vm18051_vm4 = vcmp.ne.s32.totalorder %v622_v56, 0  ;;  %vm18052_vm13 = vcmp.ge.f32.partialorder %v6893_v46, %v18002_v58  ;;  %vm18056_vm14 = vcmp.ge.f32.partialorder %v6897_v47, %v18004_v3  ;;  %v720_v56 = vrot.slane %v7357_v29, %v18036_v42  ;;  %v18098_v46 = vld [vmem:[#allocation34_spill] sm:$0xff]  ;;  %v18100_v47 = vld [vmem:[#allocation35_spill] sm:$0xff] }
  0xcf   : > { %vm7394_vm11 = vmand %vm18048_vm0, %vm18047_vm10  ;;  %vm18055_vm0 = vcmp.ne.s32.totalorder %v625_v57, 0  ;;  %v724_v0 = vrot.slane %v7360_v45, %v18036_v42  ;;  %v728_v32 = vrot.slane %v7374_v50, %v18036_v42  ;;  %v732_v61 = vrot.slane %v7377_v43, %v18036_v42 }
  0xd0   : > { %vm7410_vm10 = vmand %vm18052_vm13, %vm18051_vm4  ;;  %vm18059_vm13 = vcmp.ne.s32.totalorder %v628_v24, 0  ;;  %vm18060_vm12 = vcmp.ge.f32.partialorder %v6901_v48, %v18011_v8  ;;  %v736_v57 = vrot.slane %v7388_v7, %v18036_v42  ;;  %v7450_v45 = vsel %vm7253_vm5, %v676_v9, 0.0  ;;  %v18087_v9 = vld [vmem:[#allocation25_spill] sm:$0xff]  ;;  %v18102_v48 = vld [vmem:[#allocation36_spill] sm:$0xff] }
  0xd1   : > { %vm7426_vm4 = vmand %vm18056_vm14, %vm18055_vm0  ;;  %18063 = vst [vmem:[#allocation81_spill] sm:$0xff] %v7450_v45  ;;  %v7454_v50 = vsel %vm7269_vm7, %v680_v21, 0.0  ;;  %v7458_v24 = vsel %vm7288_vm8, %v684_v35, 0.0  ;;  %v7470_v20 = vsel %vm7314_vm6, %v688_v13, 0.0  ;;  %v7474_v22 = vsel %vm7331_vm1, %v692_v40, 0.0  ;;  %v18088_v21 = vld [vmem:[#allocation27_spill] sm:$0xff] }
  0xd2   : > { %vm7442_vm14 = vmand %vm18060_vm12, %vm18059_vm13  ;;  %18064 = vst [vmem:[#allocation82_spill] sm:$0xff] %v7454_v50  ;;  %vm18066_vm12 = vcmp.ge.f32.partialorder %v6905_v49, %v18012_v51  ;;  %v7478_v23 = vsel %vm7348_vm9, %v696_v30, 0.0  ;;  %vm18072_vm5 = vnez %v18040_v34  ;;  %vm18074_vm7 = vcmp.ge.f32.partialorder %v6918_v53, %v18017_v19  ;;  %v18095_v40 = vld [vmem:[#allocation32_spill] sm:$0xff] }
  0xd3   : > { %18065 = vst [vmem:[#allocation83_spill] sm:$0xff] %v7458_v24  ;;  %vm7464_vm0 = vmand %vm18066_vm12, %vm653_vm15  ;;  %v7482_v6 = vsel %vm18072_vm5, %v700_v52, 0.0  ;;  %v7494_v37 = vsel %vm7383_vm2, %v704_v31, 0.0  ;;  %v7498_v30 = vsel %vm7394_vm11, %v708_v2, 0.0  ;;  %v7502_v52 = vsel %vm7410_vm10, %v712_v4, 0.0  ;;  %v18112_v53 = vld [vmem:[#allocation52_spill] sm:$0xff] }
  0xd4   : > { %18069 = vst [vmem:[#allocation84_spill] sm:$0xff] %v7470_v20  ;;  %18070 = vst [vmem:[#allocation85_spill] sm:$0xff] %v7474_v22  ;;  %v7506_v33 = vrot.slane %v18081_v25, %v18080_v12  ;;  %vm18082_vm9 = vcmp.ne.s32.totalorder %v637_v38, 0  ;;  %v7518_v2 = vsel %vm7426_vm4, %v716_v60, 0.0  ;;  %v7522_v4 = vrot.slane %v18087_v9, %v18080_v12  ;;  %v18089_v38 = vld [vmem:[#allocation28_spill] sm:$0xff]  ;;  %v18093_v60 = vld [vmem:[#allocation29_spill] sm:$0xff] }
  0xd5   : > { %18071 = vst [vmem:[#allocation86_spill] sm:$0xff] %v7478_v23  ;;  %18073 = vst [vmem:[#allocation87_spill] sm:$0xff] %v7482_v6  ;;  %v7526_v34 = vrot.slane %v18088_v21, %v18080_v12  ;;  %v7530_v35 = vrot.slane %v18089_v38, %v18080_v12  ;;  %vm18090_vm2 = vcmp.ne.s32.totalorder %v640_v10, 0  ;;  %vm18091_vm1 = vcmp.ge.f32.partialorder %v6926_v55, %v18033_v62  ;;  %v18097_v10 = vld [vmem:[#allocation33_spill] sm:$0xff]  ;;  %v18115_v21 = vld [vmem:[#allocation55_spill] sm:$0xff] }
  0xd6   : > { %vm7488_vm8 = vmand %vm18074_vm7, %vm654_vm3  ;;  %18077 = vst [vmem:[#allocation88_spill] sm:$0xff] %v7494_v37  ;;  %vm18083_vm3 = vcmp.ge.f32.partialorder %v6922_v54, %v18024_v5  ;;  %v7538_v54 = vsel %vm7442_vm14, %v720_v56, 0.0  ;;  %v7542_v39 = vrot.slane %v18093_v60, %v18080_v12  ;;  %v7546_v13 = vrot.slane %v18094_v59, %v18080_v12  ;;  %v18103_v59 = vld [vmem:[#allocation38_spill] sm:$0xff]  ;;  %v18104_v60 = vld [vmem:[#allocation39_spill] sm:$0xff] }
  0xd7   : > { %18078 = vst [vmem:[#allocation89_spill] sm:$0xff] %v7498_v30  ;;  %18079 = vst [vmem:[#allocation90_spill] sm:$0xff] %v7502_v52  ;;  %v7550_v41 = vrot.slane %v18095_v40, %v18080_v12  ;;  %v7554_v55 = vsel %vm7464_vm0, %v724_v0, 0.0  ;;  %v7558_v31 = vrot.slane %v18097_v10, %v18080_v12  ;;  %v7562_v56 = vrot.slane %v18098_v46, %v18080_v12  ;;  %v18116_v9 = vld [vmem:[#allocation56_spill] sm:$0xff]  ;;  %v18125_v23 = vld [vmem:[#allocation65_spill] sm:$0xff] }
  0xd8   : > { %vm7512_vm6 = vmand %vm18083_vm3, %vm18082_vm9  ;;  %18086 = vst [vmem:[#allocation91_spill] sm:$0xff] %v7518_v2  ;;  %v7566_v42 = vrot.slane %v18100_v47, %v18080_v12  ;;  %v7570_v40 = vsel %vm7488_vm8, %v728_v32, 0.0  ;;  %v7574_v0 = vrot.slane %v18102_v48, %v18080_v12  ;;  %v7578_v10 = vrot.slane %v18103_v59, %v18080_v12  ;;  %v18107_v32 = vld [vmem:[#allocation40_spill] sm:$0xff]  ;;  %v18108_v48 = vld [vmem:[#allocation41_spill] sm:$0xff] }
  0xd9   : > { %vm672_vm11 = vmand %vm18091_vm1, %vm18090_vm2  ;;  %18092 = vst [vmem:[#allocation92_spill] sm:$0xff] %v7538_v54  ;;  %v7582_v46 = vrot.slane %v18104_v60, %v18080_v12  ;;  %v7586_v47 = vsel %vm7512_vm6, %v732_v61, 0.0  ;;  %v7592_v49 = vrot.slane %v18107_v32, %v18080_v12  ;;  %vm849_vm15 = vcmp.le.f32.partialorder %v18108_v48, %v6776_v11  ;;  %v18109_v59 = vld [vmem:[#allocation44_spill] sm:$0xff]  ;;  %v18110_v61 = vld [vmem:[#allocation50_spill] sm:$0xff] }
  0xda   : > { %18096 = vst [vmem:[#allocation93_spill] sm:$0xff] %v7554_v55  ;;  %18099 = vst [vmem:[#allocation94_spill] sm:$0xff] %v7562_v56  ;;  %v7588_v38 = vsel %vm672_vm11, %v736_v57, 0.0  ;;  %vm850_vm10 = vcmp.le.f32.partialorder %v18109_v59, %v6788_v15  ;;  %vm851_vm4 = vcmp.le.f32.partialorder %v7506_v33, %v6791_v16  ;;  %vm852_vm13 = vcmp.le.f32.partialorder %v7522_v4, %v6794_v17  ;;  %v18111_v57 = vld [vmem:[#allocation51_spill] sm:$0xff]  ;;  %v18113_v32 = vld [vmem:[#allocation53_spill] sm:$0xff] }
  0xdb   : > { %18101 = vst [vmem:[#allocation95_spill] sm:$0xff] %v7570_v40  ;;  %18105 = vst [vmem:[#allocation96_spill] sm:$0xff] %v7586_v47  ;;  %vm853_vm14 = vcmp.le.f32.partialorder %v7526_v34, %v6797_v18  ;;  %vm854_vm12 = vcmp.le.f32.partialorder %v7530_v35, %v6824_v26  ;;  %vm855_vm0 = vcmp.le.f32.partialorder %v7542_v39, %v6827_v27  ;;  %v18114_v60 = vld [vmem:[#allocation54_spill] sm:$0xff]  ;;  %v18118_v47 = vld [vmem:[#allocation59_spill] sm:$0xff]  ;;  %v18124_v52 = vmov 0  }
  0xdc   : > { %18106 = vst [vmem:[#allocation97_spill] sm:$0xff] %v7588_v38  ;;  %vm856_vm5 = vcmp.le.f32.partialorder %v7546_v13, %v6830_v28  ;;  %vm857_vm7 = vcmp.le.f32.partialorder %v7550_v41, %v6858_v36  ;;  %v18117_v38 = vld [vmem:[#allocation57_spill] sm:$0xff]  ;;  %vm873_vm9 = vcmp.le.f32.partialorder %v7550_v41, %v6968_v63  ;;  %vm874_vm3 = vcmp.le.f32.partialorder %v7558_v31, %v18118_v47  ;;  %v18119_v25 = vld [vmem:[#allocation60_spill] sm:$0xff]  ;;  %v18121_v55 = vld [vmem:[#allocation62_spill] sm:$0xff] }
  0xdd   : > { %vm875_vm6 = vcmp.le.f32.partialorder %v7562_v56, %v18119_v25  ;;  %v18120_v40 = vld [vmem:[#allocation61_spill] sm:$0xff]  ;;  %vm877_vm1 = vcmp.le.f32.partialorder %v7574_v0, %v18121_v55  ;;  %v18122_v54 = vld [vmem:[#allocation63_spill] sm:$0xff]  ;;  %v18123_v2 = vld [vmem:[#allocation64_spill] sm:$0xff]  ;;  %v881_v30 = vsel %vm849_vm15, 1, %v18124_v52  ;;  %v882_v37 = vsel %vm850_vm10, 1, %v18124_v52 }
  0xde   : > { %vm876_vm2 = vcmp.le.f32.partialorder %v7566_v42, %v18120_v40  ;;  %vm879_vm8 = vcmp.le.f32.partialorder %v7582_v46, %v18123_v2  ;;  %v883_v6 = vsel %vm851_vm4, 1, %v18124_v52  ;;  %vm880_vm11 = vcmp.le.f32.partialorder %v7592_v49, %v18125_v23 }
  0xdf   : > { %v884_v22 = vsel %vm852_vm13, 1, %v18124_v52  ;;  %v885_v20 = vsel %vm853_vm14, 1, %v18124_v52  ;;  %v886_v24 = vsel %vm854_vm12, 1, %v18124_v52  ;;  %v887_v50 = vsel %vm855_vm0, 1, %v18124_v52 }
  0xe0   : > { %v7690_v45 = vsel %vm856_vm5, 1, %v18124_v52  ;;  %v7696_v7 = vsel %vm857_vm7, 1, %v18124_v52  ;;  %vm18126_vm15 = vcmp.le.f32.partialorder %v7558_v31, %v18002_v58  ;;  %vm18127_vm10 = vcmp.le.f32.partialorder %v7562_v56, %v18004_v3 }
  0xe1   : > { %v7702_v43 = vsel %vm18126_vm15, 1, %v18124_v52  ;;  %v7708_v29 = vsel %vm18127_vm10, 1, %v18124_v52  ;;  %vm18128_vm4 = vcmp.le.f32.partialorder %v7566_v42, %v18011_v8  ;;  %vm18129_vm13 = vcmp.le.f32.partialorder %v7574_v0, %v18012_v51 }
  0xe2   : > { %v7714_v1 = vsel %vm18128_vm4, 1, %v18124_v52  ;;  %v7720_v44 = vsel %vm18129_vm13, 1, %v18124_v52  ;;  %vm18131_vm14 = vcmp.le.f32.partialorder %v7578_v10, %v18017_v19  ;;  %vm18133_vm12 = vcmp.le.f32.partialorder %v7582_v46, %v18024_v5 }
  0xe3   : > { %18130 = vst [vmem:[#allocation44_spill] sm:$0xff] %v7720_v44  ;;  %v7726_v14 = vsel %vm18131_vm14, 1, %v18124_v52  ;;  %v7732_v12 = vsel %vm18133_vm12, 1, %v18124_v52  ;;  %vm18135_vm0 = vcmp.le.f32.partialorder %v7592_v49, %v18033_v62  ;;  %vm18137_vm5 = vcmp.le.f32.partialorder %v18108_v48, %v18110_v61 }
  0xe4   : > { %18132 = vst [vmem:[#allocation61_spill] sm:$0xff] %v7726_v14  ;;  %18134 = vst [vmem:[#allocation62_spill] sm:$0xff] %v7732_v12  ;;  %v7738_v8 = vsel %vm18135_vm0, 1, %v18124_v52  ;;  %v897_v51 = vsel %vm18137_vm5, 1, %v18124_v52  ;;  %vm18138_vm7 = vcmp.le.f32.partialorder %v18109_v59, %v18111_v57  ;;  %vm18139_vm15 = vcmp.le.f32.partialorder %v7506_v33, %v18112_v53 }
  0xe5   : > { %18136 = vst [vmem:[#allocation63_spill] sm:$0xff] %v7738_v8  ;;  %v898_v19 = vsel %vm18138_vm7, 1, %v18124_v52  ;;  %v899_v5 = vsel %vm18139_vm15, 1, %v18124_v52  ;;  %vm18140_vm10 = vcmp.le.f32.partialorder %v7522_v4, %v18113_v32  ;;  %vm18141_vm4 = vcmp.le.f32.partialorder %v7526_v34, %v18114_v60 }
  0xe6   : > { %v900_v62 = vsel %vm18140_vm10, 1, %v18124_v52  ;;  %v901_v61 = vsel %vm18141_vm4, 1, %v18124_v52  ;;  %vm18142_vm13 = vcmp.le.f32.partialorder %v7530_v35, %v18115_v21  ;;  %vm18143_vm14 = vcmp.le.f32.partialorder %v7542_v39, %v18116_v9 }
  0xe7   : > { %v902_v57 = vsel %vm18142_vm13, 1, %v18124_v52  ;;  %v903_v53 = vsel %vm18143_vm14, 1, %v18124_v52  ;;  %vm18144_vm12 = vcmp.le.f32.partialorder %v7546_v13, %v18117_v38  ;;  %v7776_v60 = vsel %vm873_vm9, 1, %v18124_v52 }
  0xe8   : > { %v904_v32 = vsel %vm18144_vm12, 1, %v18124_v52  ;;  %v7782_v21 = vsel %vm874_vm3, 1, %v18124_v52  ;;  %v7788_v9 = vsel %vm875_vm6, 1, %v18124_v52  ;;  %vm833_vm0 = vcmp.ge.f32.partialorder %v18108_v48, %v6776_v11 }
  0xe9   : > { %vm834_vm5 = vcmp.ge.f32.partialorder %v18109_v59, %v6788_v15  ;;  %v913_v63 = vrot.slane %v881_v30, 1  ;;  %v914_v38 = vrot.slane %v897_v51, 1  ;;  %v916_v3 = vrot.slane %v882_v37, 1  ;;  %v18168_v59 = vld [vmem:[#allocation94_spill] sm:$0xff] }
  0xea   : > { %v917_v8 = vrot.slane %v898_v19, 1  ;;  %vm835_vm9 = vcmp.ge.f32.partialorder %v7506_v33, %v6791_v16  ;;  %v919_v47 = vrot.slane %v883_v6, 1  ;;  %v920_v12 = vrot.slane %v899_v5, 1 }
  0xeb   : > { %v922_v14 = vrot.slane %v884_v22, 1  ;;  %v923_v44 = vrot.slane %v900_v62, 1  ;;  %vm836_vm3 = vcmp.ge.f32.partialorder %v7522_v4, %v6794_v17  ;;  %v925_v25 = vrot.slane %v885_v20, 1  ;;  %v18178_v4 = vld [vmem:[#allocation46_spill] sm:$0xff] }
  0xec   : > { %v926_v56 = vrot.slane %v901_v61, 1  ;;  %v928_v11 = vrot.slane %v886_v24, 1  ;;  %v929_v48 = vrot.slane %v902_v57, 1  ;;  %vm837_vm6 = vcmp.ge.f32.partialorder %v7526_v34, %v6797_v18  ;;  %v18184_v34 = vld [vmem:[#allocation47_spill] sm:$0xff] }
  0xed   : > { %v908_v51 = vsel %vm876_vm2, 1, %v18124_v52  ;;  %v909_v19 = vsel %vm877_vm1, 1, %v18124_v52  ;;  %v931_v5 = vrot.slane %v887_v50, 1  ;;  %v932_v62 = vrot.slane %v903_v53, 1 }
  0xee   : > { %vm18145_vm15 = vcmp.le.f32.partialorder %v7578_v10, %v18122_v54  ;;  %v911_v20 = vsel %vm879_vm8, 1, %v18124_v52  ;;  %v934_v22 = vrot.slane %v7690_v45, 1  ;;  %v935_v6 = vrot.slane %v904_v32, 1 }
  0xef   : > { %v910_v24 = vsel %vm18145_vm15, 1, %v18124_v52  ;;  %v912_v50 = vsel %vm880_vm11, 1, %v18124_v52  ;;  %vm18146_vm1 = vcmask 1046528   ;;  %v937_v53 = vrot.slane %v7696_v7, 1 }
  0xf0   : > { %v915_v37 = vsel %vm18146_vm1, %v913_v63, %v914_v38  ;;  %vm18147_vm10 = vmmov %vm18146_vm1  ;;  %v946_v7 = vrot.slane %v7714_v1, 1  ;;  %v18154_v38 = vld [vmem:[#allocation44_spill] sm:$0xff]  ;;  %vm18163_vm11 = vcmask 1046528  }
  0xf1   : > { %v918_v30 = vsel %vm18147_vm10, %v916_v3, %v917_v8  ;;  %vm18148_vm4 = vmmov %vm18146_vm1  ;;  %v938_v3 = vrot.slane %v7776_v60, 1  ;;  %v940_v8 = vrot.slane %v7702_v43, 1  ;;  %v949_v60 = vrot.slane %v18154_v38, 1 }
  0xf2   : > { %v921_v61 = vsel %vm18148_vm4, %v919_v47, %v920_v12  ;;  %vm18149_vm13 = vmmov %vm18146_vm1  ;;  %v941_v12 = vrot.slane %v7782_v21, 1  ;;  %vm961_vm4 = vcmp.ne.s32.totalorder %v915_v37, 0  ;;  %v950_v43 = vrot.slane %v909_v19, 1  ;;  %v18164_v19 = vld [vmem:[#allocation63_spill] sm:$0xff] }
  0xf3   : > { %v924_v45 = vsel %vm18149_vm13, %v922_v14, %v923_v44  ;;  %vm18150_vm14 = vmmov %vm18146_vm1  ;;  %vm962_vm13 = vcmp.ne.s32.totalorder %v918_v30, 0  ;;  %v944_v44 = vrot.slane %v7788_v9, 1  ;;  %v953_v47 = vrot.slane %v910_v24, 1  ;;  %v18167_v37 = vld [vmem:[#allocation43_spill] sm:$0xff]  ;;  %v18169_v30 = vld [vmem:[#allocation45_spill] sm:$0xff] }
  0xf4   : > { %v927_v32 = vsel %vm18150_vm14, %v925_v25, %v926_v56  ;;  %vm18151_vm12 = vmmov %vm18146_vm1  ;;  %v947_v25 = vrot.slane %v908_v51, 1  ;;  %vm963_vm14 = vcmp.ne.s32.totalorder %v921_v61, 0  ;;  %v18155_v56 = vld [vmem:[#allocation61_spill] sm:$0xff]  ;;  %v939_v51 = vsel %vm18163_vm11, %v937_v53, %v938_v3 }
  0xf5   : > { %v930_v57 = vsel %vm18151_vm12, %v928_v11, %v929_v48  ;;  %vm18152_vm15 = vmmov %vm18146_vm1  ;;  %v943_v11 = vrot.slane %v7708_v29, 1  ;;  %v952_v21 = vrot.slane %v18155_v56, 1  ;;  %vm964_vm12 = vcmp.ne.s32.totalorder %v924_v45, 0  ;;  %v18156_v48 = vld [vmem:[#allocation62_spill] sm:$0xff]  ;;  %v18205_v56 = vld [vmem:[#allocation68_spill] sm:$0xff] }
  0xf6   : > { %v933_v63 = vsel %vm18152_vm15, %v931_v5, %v932_v62  ;;  %vm18153_vm10 = vmmov %vm18146_vm1  ;;  %v955_v5 = vrot.slane %v18156_v48, 1  ;;  %v956_v62 = vrot.slane %v911_v20, 1  ;;  %vm965_vm15 = vcmp.ne.s32.totalorder %v927_v32, 0  ;;  %v18211_v29 = vld [vmem:[#allocation71_spill] sm:$0xff] }
  0xf7   : > { %v936_v14 = vsel %vm18153_vm10, %v934_v22, %v935_v6  ;;  %v18158_v22 = vld [vmem:[#allocation30_spill] sm:$0xff]  ;;  %vm7852_vm10 = vmand %vm833_vm0, %vm961_vm4  ;;  %v958_v24 = vrot.slane %v18164_v19, 1  ;;  %v959_v20 = vrot.slane %v912_v50, 1  ;;  %vm966_vm8 = vcmp.ne.s32.totalorder %v930_v57, 0  ;;  %v18212_v19 = vld [vmem:[#allocation72_spill] sm:$0xff] }
  0xf8   : > { %vm7859_vm1 = vmand %vm834_vm5, %vm962_vm13  ;;  %v18165_v6 = vmov 0  ;;  %v18171_v50 = vmov 0  ;;  %v18176_v45 = vmov 0  ;;  %v18182_v32 = vmov 0 }
  0xf9   : > { %vm7869_vm0 = vmand %vm835_vm9, %vm963_vm14 }
  0xfa   : > { %v18166_v6 = vsel %vm7869_vm0, 4294967295, %v18165_v6  ;;  %vm18170_vm13 = vmmov %vm18163_vm11  ;;  %vm967_vm11 = vcmp.ne.s32.totalorder %v933_v63, 0  ;;  %v18198_v63 = vld [vmem:[#allocation26_spill] sm:$0xff] }
  0xfb   : > { %v942_v53 = vsel %vm18170_vm13, %v940_v8, %v941_v12  ;;  %vm7882_vm2 = vmand %vm836_vm3, %vm964_vm12 }
  0xfc   : > { %v18172_v50 = vsel %vm7882_vm2, 4294967295, %v18171_v50  ;;  %vm18173_vm9 = vmmov %vm18170_vm13 }
  0xfd   : > { %v945_v33 = vsel %vm18173_vm9, %v943_v11, %v944_v44  ;;  %vm18174_vm14 = vmmov %vm18173_vm9  ;;  %v18185_v11 = vld [vmem:[#allocation48_spill] sm:$0xff] }
  0xfe   : > { %v948_v61 = vsel %vm18174_vm14, %v946_v7, %v947_v25  ;;  %vm18175_vm7 = vmmov %vm18173_vm9  ;;  %vm969_vm9 = vcmp.ne.s32.totalorder %v939_v51, 0  ;;  %v18199_v25 = vld [vmem:[#allocation66_spill] sm:$0xff]  ;;  %v1020_v51 = vrot.slane %v18211_v29, %v18198_v63 }
  0xff   : > { %v951_v3 = vsel %vm18175_vm7, %v949_v60, %v950_v43  ;;  %vm7893_vm13 = vmand %vm837_vm6, %vm965_vm15  ;;  %vm18192_vm15 = vcmp.ge.f32.partialorder %v7546_v13, %v6830_v28  ;;  %v996_v38 = vrot.slane %v18199_v25, %v18198_v63  ;;  %v18244_v13 = vld [vmem:[#allocation84_spill] sm:$0xff]  ;;  %v8438_v25 = vld [vmem:[%s6720_s7 + $0x38] sm:$0xff] }
 0x100   : > { %v18177_v45 = vsel %vm7893_vm13, 4294967295, %v18176_v45  ;;  %vm18179_vm12 = vmmov %vm18175_vm7  ;;  %vm973_vm6 = vcmp.ne.s32.totalorder %v951_v3, 0  ;;  %vm18191_vm13 = vcmp.ne.s32.totalorder %v936_v14, 0  ;;  %v18200_v14 = vld [vmem:[#allocation42_spill] sm:$0xff]  ;;  %v18229_v3 = vld [vmem:[#allocation80_spill] sm:$0xff] }
 0x101   : > { %v954_v8 = vsel %vm18179_vm12, %v952_v21, %v953_v47  ;;  %vm18180_vm4 = vmmov %vm18175_vm7  ;;  %vm18181_vm7 = vcmp.ge.f32.partialorder %v7530_v35, %v6824_v26  ;;  %vm970_vm12 = vcmp.ne.s32.totalorder %v942_v53, 0  ;;  %v18190_v35 = vld [vmem:[#allocation49_spill] sm:$0xff]  ;;  %v1000_v60 = vrot.slane %v18200_v14, %v18198_v63  ;;  %v18225_v14 = vld [vmem:[#allocation79_spill] sm:$0xff] }
 0x102   : > { %v957_v12 = vsel %vm18180_vm4, %v955_v5, %v956_v62  ;;  %vm7905_vm14 = vmand %vm18181_vm7, %vm966_vm8  ;;  %vm971_vm7 = vcmp.ne.s32.totalorder %v945_v33, 0  ;;  %vm974_vm2 = vcmp.ne.s32.totalorder %v954_v8, 0  ;;  %v1008_v21 = vrot.slane %v18205_v56, %v18198_v63  ;;  %v18206_v47 = vld [vmem:[#allocation69_spill] sm:$0xff]  ;;  %v18217_v33 = vld [vmem:[#allocation74_spill] sm:$0xff] }
 0x103   : > { %v18183_v32 = vsel %vm7905_vm14, 4294967295, %v18182_v32  ;;  %vm18186_vm3 = vmmov %vm18180_vm4  ;;  %vm18187_vm4 = vcmp.ge.f32.partialorder %v7542_v39, %v6827_v27  ;;  %vm972_vm14 = vcmp.ne.s32.totalorder %v948_v61, 0  ;;  %vm975_vm0 = vcmp.ne.s32.totalorder %v957_v12, 0  ;;  %v18219_v56 = vld [vmem:[#allocation76_spill] sm:$0xff]  ;;  %v18224_v61 = vld [vmem:[#allocation78_spill] sm:$0xff] }
 0x104   : > { %v960_v44 = vsel %vm18186_vm3, %v958_v24, %v959_v20  ;;  %vm7918_vm5 = vmand %vm18187_vm4, %vm967_vm11  ;;  %vm18195_vm11 = vcmp.ge.f32.partialorder %v7550_v41, %v6858_v36  ;;  %v18204_v41 = vld [vmem:[#allocation67_spill] sm:$0xff]  ;;  %v1012_v48 = vrot.slane %v18206_v47, %v18198_v63  ;;  %v1024_v24 = vrot.slane %v18212_v19, %v18198_v63  ;;  %v18213_v20 = vld [vmem:[#allocation73_spill] sm:$0xff] }
 0x105   : > { %vm7928_vm3 = vmand %vm18192_vm15, %vm18191_vm13  ;;  %vm976_vm8 = vcmp.ne.s32.totalorder %v960_v44, 0  ;;  %vm18201_vm13 = vcmp.ge.f32.partialorder %v7558_v31, %v18002_v58  ;;  %v1004_v43 = vrot.slane %v18204_v41, %v18198_v63  ;;  %v18210_v31 = vld [vmem:[#allocation70_spill] sm:$0xff]  ;;  %v1028_v53 = vrot.slane %v18213_v20, %v18198_v63  ;;  %v18218_v47 = vld [vmem:[#allocation75_spill] sm:$0xff] }
 0x106   : > { %vm7935_vm4 = vmand %vm18195_vm11, %vm969_vm9  ;;  %vm18207_vm9 = vcmp.ge.f32.partialorder %v18168_v59, %v18167_v37  ;;  %v1016_v62 = vrot.slane %v18210_v31, %v18198_v63  ;;  %v1032_v31 = vrot.slane %v18217_v33, %v18198_v63  ;;  %v1036_v29 = vrot.slane %v18218_v47, %v18198_v63  ;;  %v18220_v41 = vld [vmem:[#allocation77_spill] sm:$0xff] }
 0x107   : > { %vm7946_vm15 = vmand %vm18201_vm13, %vm970_vm12  ;;  %vm18214_vm12 = vcmp.ge.f32.partialorder %v7566_v42, %v18169_v30  ;;  %v1040_v19 = vrot.slane %v18219_v56, %v18198_v63  ;;  %v1044_v20 = vrot.slane %v18220_v41, %v18198_v63  ;;  %vm18221_vm13 = vcmp.ge.f32.partialorder %v7574_v0, %v18178_v4  ;;  %v18260_v0 = vld [vmem:[#allocation92_spill] sm:$0xff] }
 0x108   : > { %vm7959_vm11 = vmand %vm18207_vm9, %vm971_vm7  ;;  %v1048_v33 = vrot.slane %v18224_v61, %v18198_v63  ;;  %v1052_v47 = vrot.slane %v18225_v14, %v18198_v63  ;;  %v1057_v56 = vsel %vm7852_vm10, %v996_v38, 0.0  ;;  %v1058_v41 = vsel %vm7859_vm1, %v1000_v60, 0.0  ;;  %v18240_v38 = vld [vmem:[#allocation82_spill] sm:$0xff] }
 0x109   : > { %vm7975_vm7 = vmand %vm18214_vm12, %vm972_vm14  ;;  %vm18226_vm9 = vcmp.ge.f32.partialorder %v7578_v10, %v18184_v34  ;;  %v1056_v61 = vrot.slane %v18229_v3, %v18198_v63  ;;  %vm18230_vm12 = vnez %v18166_v6  ;;  %vm18232_vm10 = vnez %v18177_v45  ;;  %v18266_v10 = vld [vmem:[#allocation37_spill] sm:$0xff]  ;;  %v18293_v63 = vld [vmem:[#allocation56_spill] sm:$0xff] }
 0x10a   : > { %vm7991_vm14 = vmand %vm18221_vm13, %vm973_vm6  ;;  %v1059_v14 = vsel %vm18230_vm12, %v1004_v43, 0.0  ;;  %vm18231_vm13 = vnez %v18172_v50  ;;  %v1061_v1 = vsel %vm18232_vm10, %v1012_v48, 0.0  ;;  %vm18233_vm1 = vcmp.ge.f32.partialorder %v7582_v46, %v18185_v11 }
 0x10b   : > { %vm8007_vm6 = vmand %vm18226_vm9, %vm974_vm2  ;;  %v1060_v9 = vsel %vm18231_vm13, %v1008_v21, 0.0  ;;  %vm18236_vm9 = vnez %v18183_v32  ;;  %v1063_v6 = vsel %vm7918_vm5, %v1020_v51, 0.0  ;;  %v1064_v50 = vsel %vm7928_vm3, %v1024_v24, 0.0  ;;  %v18238_v32 = vld [vmem:[#allocation81_spill] sm:$0xff]  ;;  %v18252_v51 = vld [vmem:[#allocation88_spill] sm:$0xff] }
 0x10c   : > { %vm8023_vm2 = vmand %vm18233_vm1, %vm975_vm0  ;;  %v1062_v8 = vsel %vm18236_vm9, %v1016_v62, 0.0  ;;  %v1065_v45 = vsel %vm7935_vm4, %v1028_v53, 0.0  ;;  %vm18237_vm12 = vcmp.ge.f32.partialorder %v7592_v49, %v18190_v35  ;;  %v1066_v46 = vsel %vm7946_vm15, %v1032_v31, 0.0  ;;  %v18242_v49 = vld [vmem:[#allocation83_spill] sm:$0xff]  ;;  %v18254_v24 = vld [vmem:[#allocation89_spill] sm:$0xff] }
 0x10d   : > { %vm992_vm0 = vmand %vm18237_vm12, %vm976_vm8  ;;  %v1067_v12 = vsel %vm7959_vm11, %v1036_v29, 0.0  ;;  %v8044_v57 = vadd.f32 %v1057_v56, %v18238_v32  ;;  %v8047_v7 = vadd.f32 %v1058_v41, %v18240_v38  ;;  %v1068_v39 = vsel %vm7975_vm7, %v1040_v19, 0.0  ;;  %v18246_v56 = vld [vmem:[#allocation85_spill] sm:$0xff]  ;;  %v18248_v41 = vld [vmem:[#allocation86_spill] sm:$0xff] }
 0x10e   : > { %v1069_v44 = vsel %vm7991_vm14, %v1044_v20, 0.0  ;;  %v8054_v60 = vadd.f32 %v1059_v14, %v18242_v49  ;;  %v8057_v43 = vadd.f32 %v1060_v9, %v18244_v13  ;;  %v1070_v21 = vsel %vm8007_vm6, %v1048_v33, 0.0  ;;  %v18250_v31 = vld [vmem:[#allocation87_spill] sm:$0xff]  ;;  %v18256_v53 = vld [vmem:[#allocation90_spill] sm:$0xff]  ;;  %v18270_v38 = vld [vmem:[#allocation96_spill] sm:$0xff] }
 0x10f   : > { %18239 = vst [vmem:[#allocation64_spill] sm:$0xff] %v8044_v57  ;;  %18241 = vst [vmem:[#allocation65_spill] sm:$0xff] %v8047_v7  ;;  %v8062_v48 = vadd.f32 %v1061_v1, %v18246_v56  ;;  %v8065_v5 = vadd.f32 %v1062_v8, %v18248_v41  ;;  %v8068_v62 = vadd.f32 %v1063_v6, %v18250_v31  ;;  %v1071_v29 = vsel %vm8023_vm2, %v1052_v47, 0.0  ;;  %v18258_v33 = vld [vmem:[#allocation91_spill] sm:$0xff]  ;;  %v18262_v1 = vld [vmem:[#allocation93_spill] sm:$0xff] }
 0x110   : > { %18243 = vst [vmem:[#allocation44_spill] sm:$0xff] %v8054_v60  ;;  %18245 = vst [vmem:[#allocation61_spill] sm:$0xff] %v8057_v43  ;;  %v1072_v14 = vsel %vm992_vm0, %v1056_v61, 0.0  ;;  %v8073_v19 = vadd.f32 %v1064_v50, %v18252_v51  ;;  %v8076_v20 = vadd.f32 %v1065_v45, %v18254_v24  ;;  %v8079_v59 = vadd.f32 %v1066_v46, %v18256_v53  ;;  %v18264_v47 = vld [vmem:[#allocation95_spill] sm:$0xff]  ;;  %v18267_v6 = vld [vmem:[#allocation21_spill] sm:$0xff] }
 0x111   : > { %18247 = vst [vmem:[#allocation62_spill] sm:$0xff] %v8062_v48  ;;  %18249 = vst [vmem:[#allocation41_spill] sm:$0xff] %v8065_v5  ;;  %v8082_v42 = vadd.f32 %v1067_v12, %v18258_v33  ;;  %v8085_v9 = vadd.f32 %v1068_v39, %v18260_v0  ;;  %v8088_v8 = vadd.f32 %v1069_v44, %v18262_v1  ;;  %v18268_v45 = vld [vmem:[#allocation23_spill] sm:$0xff]  ;;  %v18269_v12 = vld [vmem:[#allocation24_spill] sm:$0xff] }
 0x112   : > { %18251 = vst [vmem:[#allocation30_spill] sm:$0xff] %v8068_v62  ;;  %18253 = vst [vmem:[#allocation63_spill] sm:$0xff] %v8073_v19  ;;  %v8091_v61 = vadd.f32 %v1070_v21, %v18264_v47  ;;  %v8095_v50 = vrot.slane %v18267_v6, %v18266_v10  ;;  %v8099_v46 = vrot.slane %v18268_v45, %v18266_v10  ;;  %v18272_v44 = vld [vmem:[#allocation97_spill] sm:$0xff]  ;;  %v18275_v56 = vld [vmem:[#allocation27_spill] sm:$0xff] }
 0x113   : > { %18255 = vst [vmem:[#allocation43_spill] sm:$0xff] %v8076_v20  ;;  %18257 = vst [vmem:[#allocation94_spill] sm:$0xff] %v8079_v59  ;;  %v8103_v32 = vrot.slane %v18269_v12, %v18266_v10  ;;  %v8106_v39 = vadd.f32 %v1071_v29, %v18270_v38  ;;  %v8109_v49 = vadd.f32 %v1072_v14, %v18272_v44  ;;  %v18274_v13 = vld [vmem:[#allocation25_spill] sm:$0xff]  ;;  %v18276_v31 = vld [vmem:[#allocation28_spill] sm:$0xff] }
 0x114   : > { %18259 = vst [vmem:[#allocation45_spill] sm:$0xff] %v8082_v42  ;;  %18261 = vst [vmem:[#allocation46_spill] sm:$0xff] %v8085_v9  ;;  %v8113_v21 = vrot.slane %v18274_v13, %v18266_v10  ;;  %v8117_v41 = vrot.slane %v18275_v56, %v18266_v10  ;;  %v8121_v51 = vrot.slane %v18276_v31, %v18266_v10  ;;  %v18277_v24 = vld [vmem:[#allocation29_spill] sm:$0xff]  ;;  %v18278_v29 = vld [vmem:[#allocation31_spill] sm:$0xff] }
 0x115   : > { %18263 = vst [vmem:[#allocation47_spill] sm:$0xff] %v8088_v8  ;;  %18265 = vst [vmem:[#allocation48_spill] sm:$0xff] %v8091_v61  ;;  %v8125_v53 = vrot.slane %v18277_v24, %v18266_v10  ;;  %v8129_v14 = vrot.slane %v18278_v29, %v18266_v10  ;;  %v18279_v33 = vld [vmem:[#allocation32_spill] sm:$0xff]  ;;  %v18280_v1 = vld [vmem:[#allocation33_spill] sm:$0xff]  ;;  %vm1169_vm5 = vcmp.le.f32.partialorder %v8095_v50, %v18158_v22 }
 0x116   : > { %18271 = vst [vmem:[#allocation49_spill] sm:$0xff] %v8106_v39  ;;  %18273 = vst [vmem:[#allocation81_spill] sm:$0xff] %v8109_v49  ;;  %v8133_v0 = vrot.slane %v18279_v33, %v18266_v10  ;;  %v8137_v47 = vrot.slane %v18280_v1, %v18266_v10  ;;  %v18281_v6 = vld [vmem:[#allocation34_spill] sm:$0xff]  ;;  %v18282_v12 = vld [vmem:[#allocation35_spill] sm:$0xff]  ;;  %vm1170_vm8 = vcmp.le.f32.partialorder %v8099_v46, %v6788_v15  ;;  %v1201_v9 = vsel %vm1169_vm5, 1, %v18124_v52 }
 0x117   : > { %v8141_v45 = vrot.slane %v18281_v6, %v18266_v10  ;;  %v8145_v38 = vrot.slane %v18282_v12, %v18266_v10  ;;  %v18283_v44 = vld [vmem:[#allocation36_spill] sm:$0xff]  ;;  %v18284_v56 = vld [vmem:[#allocation38_spill] sm:$0xff]  ;;  %v18285_v24 = vld [vmem:[#allocation39_spill] sm:$0xff]  ;;  %vm1171_vm3 = vcmp.le.f32.partialorder %v8103_v32, %v6791_v16  ;;  %vm1172_vm4 = vcmp.le.f32.partialorder %v8113_v21, %v6794_v17 }
 0x118   : > { %v8149_v13 = vrot.slane %v18283_v44, %v18266_v10  ;;  %v8153_v31 = vrot.slane %v18284_v56, %v18266_v10  ;;  %v8157_v29 = vrot.slane %v18285_v24, %v18266_v10  ;;  %v18286_v33 = vld [vmem:[#allocation40_spill] sm:$0xff]  ;;  %vm1173_vm15 = vcmp.le.f32.partialorder %v8117_v41, %v6797_v18  ;;  %v18287_v6 = vld [vmem:[#allocation50_spill] sm:$0xff]  ;;  %v18288_v12 = vld [vmem:[#allocation51_spill] sm:$0xff] }
 0x119   : > { %v8161_v1 = vrot.slane %v18286_v33, %v18266_v10  ;;  %vm1174_vm11 = vcmp.le.f32.partialorder %v8121_v51, %v6824_v26  ;;  %vm1175_vm7 = vcmp.le.f32.partialorder %v8125_v53, %v6827_v27  ;;  %vm1176_vm14 = vcmp.le.f32.partialorder %v8129_v14, %v6830_v28  ;;  %v18289_v44 = vld [vmem:[#allocation52_spill] sm:$0xff]  ;;  %v18290_v56 = vld [vmem:[#allocation53_spill] sm:$0xff]  ;;  %v18291_v24 = vld [vmem:[#allocation54_spill] sm:$0xff] }
 0x11a   : > { %vm1177_vm6 = vcmp.le.f32.partialorder %v8133_v0, %v6858_v36  ;;  %v18292_v33 = vld [vmem:[#allocation55_spill] sm:$0xff]  ;;  %v18294_v49 = vld [vmem:[#allocation57_spill] sm:$0xff]  ;;  %v18295_v39 = vld [vmem:[#allocation58_spill] sm:$0xff]  ;;  %vm1196_vm9 = vcmp.le.f32.partialorder %v8145_v38, %v18120_v40  ;;  %vm1197_vm12 = vcmp.le.f32.partialorder %v8149_v13, %v18121_v55  ;;  %vm1198_vm0 = vcmp.le.f32.partialorder %v8153_v31, %v18122_v54 }
 0x11b   : > { %v18296_v61 = vld [vmem:[#allocation59_spill] sm:$0xff]  ;;  %v18297_v8 = vld [vmem:[#allocation60_spill] sm:$0xff]  ;;  %vm1199_vm13 = vcmp.le.f32.partialorder %v8157_v29, %v18123_v2  ;;  %vm1200_vm10 = vcmp.le.f32.partialorder %v8161_v1, %v18125_v23  ;;  %v1202_v42 = vsel %vm1170_vm8, 1, %v18124_v52  ;;  %v1203_v59 = vsel %vm1171_vm3, 1, %v18124_v52  ;;  %v8359_v62 = vld [vmem:[%s6720_s7 + $0x8] sm:$0xff] }
 0x11c   : > { %vm1194_vm1 = vcmp.le.f32.partialorder %v8137_v47, %v18296_v61  ;;  %vm1195_vm2 = vcmp.le.f32.partialorder %v8141_v45, %v18297_v8  ;;  %v1204_v20 = vsel %vm1172_vm4, 1, %v18124_v52  ;;  %v1205_v22 = vsel %vm1173_vm15, 1, %v18124_v52  ;;  %v8342_v19 = vld [vmem:[%s6720_s7] sm:$0xff]  ;;  %v8364_v60 = vld [vmem:[%s6720_s7 + $0x10] sm:$0xff]  ;;  %v8369_v57 = vld [vmem:[%s6720_s7 + $0x18] sm:$0xff] }
 0x11d   : > { %v8251_v15 = vsel %vm1174_vm11, 1, %v18124_v52  ;;  %v8257_v16 = vsel %vm1175_vm7, 1, %v18124_v52  ;;  %v8263_v17 = vsel %vm1176_vm14, 1, %v18124_v52  ;;  %v8269_v18 = vsel %vm1177_vm6, 1, %v18124_v52  ;;  %18312 = vst [vmem:[#allocation82_spill] sm:$0xff] %v8342_v19 }
 0x11e   : > { %vm18298_vm5 = vcmp.le.f32.partialorder %v8137_v47, %v18002_v58  ;;  %vm18299_vm8 = vcmp.le.f32.partialorder %v8141_v45, %v18167_v37  ;;  %vm18300_vm3 = vcmp.le.f32.partialorder %v8145_v38, %v18169_v30  ;;  %vm18301_vm4 = vcmp.le.f32.partialorder %v8149_v13, %v18178_v4 }
 0x11f   : > { %v8275_v26 = vsel %vm18298_vm5, 1, %v18124_v52  ;;  %v8281_v27 = vsel %vm18299_vm8, 1, %v18124_v52  ;;  %v8287_v28 = vsel %vm18300_vm3, 1, %v18124_v52  ;;  %v8293_v36 = vsel %vm18301_vm4, 1, %v18124_v52 }
 0x120   : > { %vm18302_vm15 = vcmp.le.f32.partialorder %v8153_v31, %v18184_v34  ;;  %vm18303_vm11 = vcmp.le.f32.partialorder %v8095_v50, %v18287_v6  ;;  %vm18304_vm7 = vcmp.le.f32.partialorder %v8157_v29, %v18185_v11  ;;  %vm18305_vm14 = vcmp.le.f32.partialorder %v8161_v1, %v18190_v35 }
 0x121   : > { %v8299_v58 = vsel %vm18302_vm15, 1, %v18124_v52  ;;  %v1217_v37 = vsel %vm18303_vm11, 1, %v18124_v52  ;;  %v8309_v30 = vsel %vm18304_vm7, 1, %v18124_v52  ;;  %v8315_v4 = vsel %vm18305_vm14, 1, %v18124_v52 }
 0x122   : > { %vm18306_vm6 = vcmp.le.f32.partialorder %v8099_v46, %v18288_v12  ;;  %vm18307_vm5 = vcmp.le.f32.partialorder %v8103_v32, %v18289_v44  ;;  %vm18308_vm8 = vcmp.le.f32.partialorder %v8113_v21, %v18290_v56  ;;  %vm18309_vm3 = vcmp.le.f32.partialorder %v8117_v41, %v18291_v24 }
 0x123   : > { %v1218_v34 = vsel %vm18306_vm6, 1, %v18124_v52  ;;  %v1219_v6 = vsel %vm18307_vm5, 1, %v18124_v52  ;;  %v1220_v11 = vsel %vm18308_vm8, 1, %v18124_v52  ;;  %v1221_v35 = vsel %vm18309_vm3, 1, %v18124_v52 }
 0x124   : > { %vm18310_vm4 = vcmp.le.f32.partialorder %v8121_v51, %v18292_v33  ;;  %vm18311_vm15 = vcmp.le.f32.partialorder %v8125_v53, %v18293_v63  ;;  %vm1153_vm11 = vcmp.ge.f32.partialorder %v8095_v50, %v8342_v19  ;;  %vm18313_vm7 = vcmp.le.f32.partialorder %v8129_v14, %v18294_v49 }
 0x125   : > { %v1222_v12 = vsel %vm18310_vm4, 1, %v18124_v52  ;;  %v1223_v44 = vsel %vm18311_vm15, 1, %v18124_v52  ;;  %v8350_v56 = vsel %vm18313_vm7, 1, %v18124_v52  ;;  %vm18314_vm14 = vcmp.le.f32.partialorder %v8133_v0, %v18295_v39 }
 0x126   : > { %v8356_v24 = vsel %vm18314_vm14, 1, %v18124_v52  ;;  %v1233_v63 = vrot.slane %v1201_v9, 1  ;;  %v1234_v33 = vrot.slane %v1217_v37, 1  ;;  %vm1154_vm6 = vcmp.ge.f32.partialorder %v8099_v46, %v8359_v62 }
 0x127   : > { %v1236_v5 = vrot.slane %v1202_v42, 1  ;;  %v1237_v48 = vrot.slane %v1218_v34, 1  ;;  %v1239_v49 = vrot.slane %v1203_v59, 1  ;;  %v1240_v43 = vrot.slane %v1219_v6, 1  ;;  %v8387_v34 = vld [vmem:[%s6720_s7 + $0x20] sm:$0xff] }
 0x128   : > { %vm1155_vm5 = vcmp.ge.f32.partialorder %v8103_v32, %v8364_v60  ;;  %v1242_v39 = vrot.slane %v1204_v20, 1  ;;  %v1243_v7 = vrot.slane %v1220_v11, 1  ;;  %v1245_v9 = vrot.slane %v1205_v22, 1  ;;  %v8405_v11 = vld [vmem:[%s6720_s7 + $0x28] sm:$0xff] }
 0x129   : > { %v1246_v37 = vrot.slane %v1221_v35, 1  ;;  %vm1156_vm8 = vcmp.ge.f32.partialorder %v8113_v21, %v8369_v57  ;;  %v8377_v59 = vsel %vm1194_vm1, 1, %v18124_v52  ;;  %v8383_v20 = vsel %vm1195_vm2, 1, %v18124_v52  ;;  %v8525_v32 = vld [vmem:[%s6720_s7 + $0x68] sm:$0xff] }
 0x12a   : > { %v1248_v42 = vrot.slane %v8251_v15, 1  ;;  %v1249_v22 = vrot.slane %v1222_v12, 1  ;;  %vm1157_vm3 = vcmp.ge.f32.partialorder %v8117_v41, %v8387_v34  ;;  %v8395_v61 = vsel %vm1196_vm9, 1, %v18124_v52  ;;  %v8429_v12 = vld [vmem:[%s6720_s7 + $0x30] sm:$0xff]  ;;  %18337 = vst [vmem:[#allocation86_spill] sm:$0xff] %v8525_v32 }
 0x12b   : > { %v8401_v8 = vsel %vm1197_vm12, 1, %v18124_v52  ;;  %v1251_v15 = vrot.slane %v8257_v16, 1  ;;  %v1252_v6 = vrot.slane %v1223_v44, 1  ;;  %vm1158_vm1 = vcmp.ge.f32.partialorder %v8121_v51, %v8405_v11 }
 0x12c   : > { %v8413_v40 = vsel %vm1198_vm0, 1, %v18124_v52  ;;  %v8419_v55 = vsel %vm1199_vm13, 1, %v18124_v52  ;;  %v8425_v16 = vsel %vm1200_vm10, 1, %v18124_v52  ;;  %vm18315_vm2 = vcmask 1046528  }
 0x12d   : > { %v1235_v35 = vsel %vm18315_vm2, %v1233_v63, %v1234_v33  ;;  %vm18316_vm12 = vmmov %vm18315_vm2  ;;  %v1254_v63 = vrot.slane %v8263_v17, 1  ;;  %v1255_v33 = vrot.slane %v8350_v56, 1  ;;  %v1261_v17 = vrot.slane %v8377_v59, 1 }
 0x12e   : > { %v1238_v54 = vsel %vm18316_vm12, %v1236_v5, %v1237_v48  ;;  %vm18317_vm0 = vmmov %vm18315_vm2  ;;  %v1257_v48 = vrot.slane %v8269_v18, 1  ;;  %v8447_v5 = vld [vmem:[%s6720_s7 + $0x40] sm:$0xff]  ;;  %vm1281_vm2 = vcmp.ne.s32.totalorder %v1235_v35, 0  ;;  %v1263_v18 = vrot.slane %v8281_v27, 1 }
 0x12f   : > { %v1241_v2 = vsel %vm18317_vm0, %v1239_v49, %v1240_v43  ;;  %vm18318_vm13 = vmmov %vm18317_vm0  ;;  %v1258_v43 = vrot.slane %v8356_v24, 1  ;;  %v1260_v49 = vrot.slane %v8275_v26, 1  ;;  %v1264_v56 = vrot.slane %v8383_v20, 1 }
 0x130   : > { %v1244_v44 = vsel %vm18318_vm13, %v1242_v39, %v1243_v7  ;;  %vm18319_vm4 = vmmov %vm18317_vm0  ;;  %v8455_v39 = vld [vmem:[%s6720_s7 + $0x48] sm:$0xff]  ;;  %v1266_v26 = vrot.slane %v8287_v28, 1  ;;  %v1267_v24 = vrot.slane %v8395_v61, 1  ;;  %v1270_v27 = vrot.slane %v8401_v8, 1 }
 0x131   : > { %v1247_v3 = vsel %vm18319_vm4, %v1245_v9, %v1246_v37  ;;  %vm18320_vm15 = vmmov %vm18317_vm0  ;;  %v8463_v9 = vld [vmem:[%s6720_s7 + $0x50] sm:$0xff]  ;;  %v1269_v37 = vrot.slane %v8293_v36, 1  ;;  %vm1283_vm4 = vcmp.ne.s32.totalorder %v1241_v2, 0  ;;  %v1272_v59 = vrot.slane %v8299_v58, 1  ;;  %v8487_v36 = vld [vmem:[%s6720_s7 + $0x60] sm:$0xff] }
 0x132   : > { %v1250_v23 = vsel %vm18320_vm15, %v1248_v42, %v1249_v22  ;;  %vm18321_vm14 = vmmov %vm18317_vm0  ;;  %vm1282_vm0 = vcmp.ne.s32.totalorder %v1238_v54, 0  ;;  %18322 = vst [vmem:[#allocation83_spill] sm:$0xff] %v8463_v9  ;;  %v8471_v42 = vld [vmem:[%s6720_s7 + $0x58] sm:$0xff]  ;;  %v1273_v20 = vrot.slane %v8413_v40, 1  ;;  %v1256_v22 = vsel %vm18316_vm12, %v1254_v63, %v1255_v33  ;;  %v8540_v54 = vld [vmem:[%s6720_s7 + $0x70] sm:$0xff] }
 0x133   : > { %v1253_v7 = vsel %vm18321_vm14, %v1251_v15, %v1252_v6  ;;  %18323 = vst [vmem:[#allocation84_spill] sm:$0xff] %v8471_v42  ;;  %vm1284_vm14 = vcmp.ne.s32.totalorder %v1244_v44, 0  ;;  %vm8482_vm13 = vmand %vm1153_vm11, %vm1281_vm2  ;;  %v1275_v58 = vrot.slane %v8309_v30, 1  ;;  %v1276_v61 = vrot.slane %v8419_v55, 1  ;;  %v8545_v2 = vld [vmem:[%s6720_s7 + $0x78] sm:$0xff] }
 0x134   : > { %18326 = vst [vmem:[#allocation85_spill] sm:$0xff] %v8487_v36  ;;  %vm1285_vm7 = vcmp.ne.s32.totalorder %v1247_v3, 0  ;;  %vm8498_vm11 = vmand %vm1154_vm6, %vm1282_vm0  ;;  %v1278_v15 = vrot.slane %v8315_v4, 1  ;;  %v1279_v6 = vrot.slane %v8425_v16, 1  ;;  %v18330_v30 = vmov 0 }
 0x135   : > { %vm18329_vm2 = vmmov %vm18316_vm12  ;;  %vm1286_vm12 = vcmp.ne.s32.totalorder %v1250_v23, 0  ;;  %vm1287_vm10 = vcmp.ne.s32.totalorder %v1253_v7, 0  ;;  %v18335_v4 = vmov 0  ;;  %v18340_v21 = vmov 0  ;;  %18342 = vst [vmem:[#allocation87_spill] sm:$0xff] %v8540_v54  ;;  %v18355_v23 = vld [vmem:[#allocation66_spill] sm:$0xff] }
 0x136   : > { %v1259_v8 = vsel %vm18329_vm2, %v1257_v48, %v1258_v43  ;;  %vm8509_vm15 = vmand %vm1155_vm5, %vm1283_vm4  ;;  %18343 = vst [vmem:[#allocation88_spill] sm:$0xff] %v8545_v2  ;;  %v1316_v33 = vrot.slane %v18355_v23, %v18266_v10  ;;  %v18356_v48 = vld [vmem:[#allocation42_spill] sm:$0xff]  ;;  %v18401_v7 = vld [vmem:[#allocation61_spill] sm:$0xff] }
 0x137   : > { %v18331_v30 = vsel %vm8509_vm15, 4294967295, %v18330_v30  ;;  %vm18332_vm6 = vmmov %vm18329_vm2  ;;  %vm18351_vm15 = vcmp.ne.s32.totalorder %v1256_v22, 0 }
 0x138   : > { %v1262_v46 = vsel %vm18332_vm6, %v1260_v49, %v1261_v17  ;;  %vm18333_vm0 = vmmov %vm18329_vm2  ;;  %v18361_v49 = vld [vmem:[#allocation68_spill] sm:$0xff] }
 0x139   : > { %v1265_v40 = vsel %vm18333_vm0, %v1263_v18, %v1264_v56  ;;  %vm18334_vm2 = vmmov %vm18333_vm0  ;;  %vm1290_vm5 = vcmp.ne.s32.totalorder %v1262_v46, 0  ;;  %v1328_v17 = vrot.slane %v18361_v49, %v18266_v10  ;;  %v18362_v18 = vld [vmem:[#allocation69_spill] sm:$0xff]  ;;  %v18375_v46 = vld [vmem:[#allocation76_spill] sm:$0xff] }
 0x13a   : > { %v1268_v55 = vsel %vm18334_vm2, %v1266_v26, %v1267_v24  ;;  %vm8520_vm9 = vmand %vm1156_vm8, %vm1284_vm14  ;;  %vm1291_vm8 = vcmp.ne.s32.totalorder %v1265_v40, 0  ;;  %vm18348_vm14 = vcmp.ge.f32.partialorder %v8125_v53, %v8429_v12  ;;  %v1320_v53 = vrot.slane %v18356_v48, %v18266_v10  ;;  %v18366_v26 = vld [vmem:[#allocation70_spill] sm:$0xff]  ;;  %v18379_v40 = vld [vmem:[#allocation77_spill] sm:$0xff] }
 0x13b   : > { %v18336_v4 = vsel %vm8520_vm9, 4294967295, %v18335_v4  ;;  %vm18338_vm4 = vmmov %vm18333_vm0  ;;  %v1332_v56 = vrot.slane %v18362_v18, %v18266_v10  ;;  %v1336_v24 = vrot.slane %v18366_v26, %v18266_v10  ;;  %v1360_v23 = vrot.slane %v18375_v46, %v18266_v10 }
 0x13c   : > { %v1271_v16 = vsel %vm18338_vm4, %v1269_v37, %v1270_v27  ;;  %vm18339_vm6 = vmmov %vm18333_vm0  ;;  %v18367_v37 = vld [vmem:[#allocation71_spill] sm:$0xff]  ;;  %v1364_v48 = vrot.slane %v18379_v40, %v18266_v10  ;;  %v1377_v18 = vsel %vm8482_vm13, %v1316_v33, 0.0  ;;  %v1378_v26 = vsel %vm8498_vm11, %v1320_v53, 0.0  ;;  %v18394_v53 = vld [vmem:[#allocation64_spill] sm:$0xff] }
 0x13d   : > { %v1274_v35 = vsel %vm18339_vm6, %v1272_v59, %v1273_v20  ;;  %vm8535_vm2 = vmand %vm1157_vm3, %vm1285_vm7  ;;  %vm1289_vm6 = vcmp.ne.s32.totalorder %v1259_v8, 0  ;;  %v1340_v27 = vrot.slane %v18367_v37, %v18266_v10  ;;  %v18368_v59 = vld [vmem:[#allocation72_spill] sm:$0xff]  ;;  %vm18388_vm11 = vcmp.ge.f32.partialorder %v8153_v31, %v8525_v32  ;;  %v18415_v40 = vld [vmem:[#allocation94_spill] sm:$0xff] }
 0x13e   : > { %v18341_v21 = vsel %vm8535_vm2, 4294967295, %v18340_v21  ;;  %vm18344_vm4 = vmmov %vm18333_vm0  ;;  %vm1294_vm9 = vcmp.ne.s32.totalorder %v1274_v35, 0  ;;  %v1344_v20 = vrot.slane %v18368_v59, %v18266_v10  ;;  %v8679_v3 = vadd.f32 %v1377_v18, %v18394_v53  ;;  %v18419_v18 = vld [vmem:[#allocation46_spill] sm:$0xff] }
 0x13f   : > { %v1277_v44 = vsel %vm18344_vm4, %v1275_v58, %v1276_v61  ;;  %vm8554_vm3 = vmand %vm1158_vm1, %vm1286_vm12  ;;  %vm1293_vm4 = vcmp.ne.s32.totalorder %v1271_v16, 0  ;;  %vm18352_vm1 = vcmp.ge.f32.partialorder %v8129_v14, %v8438_v25  ;;  %v18360_v14 = vld [vmem:[#allocation67_spill] sm:$0xff]  ;;  %v18373_v61 = vld [vmem:[#allocation74_spill] sm:$0xff]  ;;  %vm18387_vm13 = vnez %v18341_v21 }
 0x140   : > { %vm18347_vm7 = vmmov %vm18333_vm0  ;;  %vm1292_vm0 = vcmp.ne.s32.totalorder %v1268_v55, 0  ;;  %v1324_v43 = vrot.slane %v18360_v14, %v18266_v10  ;;  %v1352_v8 = vrot.slane %v18373_v61, %v18266_v10  ;;  %v18380_v14 = vld [vmem:[#allocation78_spill] sm:$0xff]  ;;  %v18384_v55 = vld [vmem:[#allocation79_spill] sm:$0xff]  ;;  %v1381_v50 = vsel %vm18387_vm13, %v1332_v56, 0.0  ;;  %18395 = vst [vmem:[#allocation89_spill] sm:$0xff] %v8679_v3 }
 0x141   : > { %v1280_v41 = vsel %vm18347_vm7, %v1278_v15, %v1279_v6  ;;  %vm8563_vm2 = vmand %vm18348_vm14, %vm1287_vm10  ;;  %vm18357_vm14 = vcmp.ge.f32.partialorder %v8133_v0, %v8447_v5  ;;  %v18374_v15 = vld [vmem:[#allocation75_spill] sm:$0xff]  ;;  %v1368_v49 = vrot.slane %v18380_v14, %v18266_v10  ;;  %v1372_v37 = vrot.slane %v18384_v55, %v18266_v10  ;;  %v18391_v16 = vld [vmem:[#allocation80_spill] sm:$0xff] }
 0x142   : > { %vm8571_vm12 = vmand %vm18352_vm1, %vm18351_vm15  ;;  %vm1296_vm15 = vcmp.ne.s32.totalorder %v1280_v41, 0  ;;  %vm18363_vm1 = vcmp.ge.f32.partialorder %v8137_v47, %v8455_v39  ;;  %v18372_v47 = vld [vmem:[#allocation73_spill] sm:$0xff]  ;;  %v1356_v6 = vrot.slane %v18374_v15, %v18266_v10  ;;  %v1376_v33 = vrot.slane %v18391_v16, %v18266_v10  ;;  %v18403_v56 = vld [vmem:[#allocation62_spill] sm:$0xff] }
 0x143   : > { %vm8582_vm7 = vmand %vm18357_vm14, %vm1289_vm6  ;;  %vm18369_vm6 = vcmp.ge.f32.partialorder %v8141_v45, %v8463_v9  ;;  %v1348_v58 = vrot.slane %v18372_v47, %v18266_v10  ;;  %v1384_v21 = vsel %vm8571_vm12, %v1344_v20, 0.0  ;;  %v8697_v0 = vadd.f32 %v1381_v50, %v18403_v56  ;;  %v18407_v47 = vld [vmem:[#allocation41_spill] sm:$0xff]  ;;  %v18409_v61 = vld [vmem:[#allocation30_spill] sm:$0xff] }
 0x144   : > { %vm8596_vm10 = vmand %vm18363_vm1, %vm1290_vm5  ;;  %vm18376_vm5 = vcmp.ge.f32.partialorder %v8145_v38, %v8471_v42  ;;  %vm18381_vm1 = vcmp.ge.f32.partialorder %v8149_v13, %v8487_v36  ;;  %v18411_v15 = vld [vmem:[#allocation63_spill] sm:$0xff]  ;;  %v18417_v14 = vld [vmem:[#allocation45_spill] sm:$0xff] }
 0x145   : > { %vm8610_vm14 = vmand %vm18369_vm6, %vm1291_vm8  ;;  %vm18385_vm6 = vnez %v18331_v30  ;;  %v1382_v30 = vsel %vm8554_vm3, %v1336_v24, 0.0  ;;  %v1385_v31 = vsel %vm8582_vm7, %v1348_v58, 0.0  ;;  %v1386_v35 = vsel %vm8596_vm10, %v1352_v8, 0.0  ;;  %18404 = vst [vmem:[#allocation93_spill] sm:$0xff] %v8697_v0  ;;  %v18421_v38 = vld [vmem:[#allocation47_spill] sm:$0xff]  ;;  %v18426_v50 = vld [vmem:[#allocation49_spill] sm:$0xff] }
 0x146   : > { %vm8626_vm8 = vmand %vm18376_vm5, %vm1292_vm0  ;;  %v1379_v59 = vsel %vm18385_vm6, %v1324_v43, 0.0  ;;  %vm18386_vm5 = vnez %v18336_v4  ;;  %v1383_v4 = vsel %vm8563_vm2, %v1340_v27, 0.0  ;;  %vm18393_vm6 = vcmp.ge.f32.partialorder %v8157_v29, %v8540_v54  ;;  %v18396_v43 = vld [vmem:[#allocation65_spill] sm:$0xff]  ;;  %v18405_v27 = vld [vmem:[#allocation20_spill] sm:$0xff] }
 0x147   : > { %vm8642_vm0 = vmand %vm18381_vm1, %vm1293_vm4  ;;  %v1380_v28 = vsel %vm18386_vm5, %v1328_v17, 0.0  ;;  %vm18392_vm1 = vcmp.ne.s32.totalorder %v1277_v44, 0  ;;  %v8682_v63 = vadd.f32 %v1378_v26, %v18396_v43  ;;  %vm18398_vm2 = vcmp.ge.f32.partialorder %v8161_v1, %v8545_v2  ;;  %v18399_v44 = vld [vmem:[#allocation44_spill] sm:$0xff]  ;;  %v8762_v53 = vld [vmem:[%s6737_s20 + $0x10] sm:$0xff] }
 0x148   : > { %vm8658_vm4 = vmand %vm18388_vm11, %vm1294_vm9  ;;  %v1387_v29 = vsel %vm8610_vm14, %v1356_v6, 0.0  ;;  %v8691_v51 = vadd.f32 %v1379_v59, %v18399_v44  ;;  %v8694_v17 = vadd.f32 %v1380_v28, %v18401_v7  ;;  %v1388_v24 = vsel %vm8626_vm8, %v1360_v23, 0.0  ;;  %v18413_v23 = vld [vmem:[#allocation43_spill] sm:$0xff]  ;;  %v8742_v16 = vld [vmem:[%s6737_s20] sm:$0xff]  ;;  %18433 = vst [vmem:[#allocation38_spill] sm:$0xff] %v8762_v53 }
 0x149   : > { %vm1311_vm9 = vmand %vm18393_vm6, %vm18392_vm1  ;;  %18397 = vst [vmem:[#allocation90_spill] sm:$0xff] %v8682_v63  ;;  %v1389_v41 = vsel %vm8642_vm0, %v1364_v48, 0.0  ;;  %v1390_v1 = vsel %vm8658_vm4, %v1368_v49, 0.0  ;;  %v8706_v20 = vsub.s32 3, %v18405_v27  ;;  %v8709_v58 = vadd.f32 %v1382_v30, %v18407_v47  ;;  %v8749_v30 = vld [vmem:[%s6737_s20 + $0x8] sm:$0xff]  ;;  %v8776_v7 = vld [vmem:[%s6737_s20 + $0x20] sm:$0xff] }
 0x14a   : > { %vm1312_vm3 = vmand %vm18398_vm2, %vm1296_vm15  ;;  %18400 = vst [vmem:[#allocation91_spill] sm:$0xff] %v8691_v51  ;;  %v1391_v22 = vsel %vm1311_vm9, %v1372_v37, 0.0  ;;  %v8712_v8 = vadd.f32 %v1383_v4, %v18409_v61  ;;  %v8715_v6 = vadd.f32 %v1384_v21, %v18411_v15  ;;  %v8718_v45 = vadd.f32 %v1385_v31, %v18413_v23  ;;  %v18423_v37 = vld [vmem:[#allocation48_spill] sm:$0xff]  ;;  %v18431_v31 = vld [vmem:[#allocation81_spill] sm:$0xff] }
 0x14b   : > { %18402 = vst [vmem:[#allocation92_spill] sm:$0xff] %v8694_v17  ;;  %18406 = vst [vmem:[#allocation95_spill] sm:$0xff] %v8706_v20  ;;  %v1392_v46 = vsel %vm1312_vm3, %v1376_v33, 0.0  ;;  %v8721_v48 = vadd.f32 %v1386_v35, %v18415_v40  ;;  %v8724_v49 = vadd.f32 %v1387_v29, %v18417_v14  ;;  %v8727_v26 = vadd.f32 %v1388_v24, %v18419_v18  ;;  %v8769_v29 = vld [vmem:[%s6737_s20 + $0x18] sm:$0xff]  ;;  %v8783_v24 = vld [vmem:[%s6737_s20 + $0x28] sm:$0xff] }
 0x14c   : > { %18408 = vst [vmem:[#allocation21_spill] sm:$0xff] %v8709_v58  ;;  %18410 = vst [vmem:[#allocation23_spill] sm:$0xff] %v8712_v8  ;;  %v8730_v55 = vadd.f32 %v1389_v41, %v18421_v38  ;;  %v8733_v59 = vadd.f32 %v1390_v1, %v18423_v37  ;;  %v8736_v28 = vsub.s32 4, %v18405_v27  ;;  %v8739_v13 = vadd.f32 %v1391_v22, %v18426_v50  ;;  %v8790_v1 = vld [vmem:[%s6737_s20 + $0x30] sm:$0xff]  ;;  %v8797_v47 = vld [vmem:[%s6737_s20 + $0x38] sm:$0xff] }
 0x14d   : > { %18412 = vst [vmem:[#allocation24_spill] sm:$0xff] %v8715_v6  ;;  %18414 = vst [vmem:[#allocation96_spill] sm:$0xff] %v8718_v45  ;;  %v8746_v33 = vrot.slane %v8742_v16, %v8706_v20  ;;  %v8753_v4 = vrot.slane %v8749_v30, %v8706_v20  ;;  %v8756_v21 = vsub.s32 5, %v18405_v27  ;;  %v8759_v35 = vadd.f32 %v1392_v46, %v18431_v31  ;;  %v8804_v15 = vld [vmem:[%s6737_s20 + $0x40] sm:$0xff]  ;;  %v8811_v23 = vld [vmem:[%s6737_s20 + $0x48] sm:$0xff] }
 0x14e   : > { %18416 = vst [vmem:[#allocation97_spill] sm:$0xff] %v8721_v48  ;;  %18418 = vst [vmem:[#allocation25_spill] sm:$0xff] %v8724_v49  ;;  %v8766_v43 = vrot.slane %v8762_v53, %v8706_v20  ;;  %v8773_v44 = vrot.slane %v8769_v29, %v8706_v20  ;;  %v8780_v56 = vrot.slane %v8776_v7, %v8706_v20  ;;  %v8818_v14 = vld [vmem:[%s6737_s20 + $0x50] sm:$0xff]  ;;  %v8825_v38 = vld [vmem:[%s6737_s20 + $0x58] sm:$0xff] }
 0x14f   : > { %18420 = vst [vmem:[#allocation27_spill] sm:$0xff] %v8727_v26  ;;  %18422 = vst [vmem:[#allocation28_spill] sm:$0xff] %v8730_v55  ;;  %v8787_v41 = vrot.slane %v8783_v24, %v8706_v20  ;;  %v8794_v22 = vrot.slane %v8790_v1, %v8706_v20  ;;  %v8801_v61 = vrot.slane %v8797_v47, %v8706_v20  ;;  %v8832_v50 = vld [vmem:[%s6737_s20 + $0x60] sm:$0xff]  ;;  %v8839_v10 = vld [vmem:[%s6737_s20 + $0x68] sm:$0xff] }
 0x150   : > { %18424 = vst [vmem:[#allocation29_spill] sm:$0xff] %v8733_v59  ;;  %18425 = vst [vmem:[#allocation31_spill] sm:$0xff] %v8736_v28  ;;  %v8808_v46 = vrot.slane %v8804_v15, %v8706_v20  ;;  %v8815_v40 = vrot.slane %v8811_v23, %v8706_v20  ;;  %v8822_v18 = vrot.slane %v8818_v14, %v8706_v20  ;;  %v8952_v53 = vld [vmem:[%s6720_s7 + $0xe0] sm:$0x1]  ;;  %v8962_v59 = vld [vmem:[%s6720_s7 + $0xf0] sm:$0x1] }
 0x151   : > { %18427 = vst [vmem:[#allocation32_spill] sm:$0xff] %v8739_v13  ;;  %18428 = vst [vmem:[#allocation33_spill] sm:$0xff] %v8742_v16  ;;  %v8829_v37 = vrot.slane %v8825_v38, %v8706_v20  ;;  %v8836_v31 = vrot.slane %v8832_v50, %v8706_v20  ;;  %v8843_v27 = vrot.slane %v8839_v10, %v8706_v20  ;;  %v8942_v13 = vld [vmem:[%s6720_s7 + $0xd0] sm:$0x1]  ;;  %v8967_v16 = vld [vmem:[%s6720_s7 + $0xf8] sm:$0x1] }
 0x152   : > { %18429 = vst [vmem:[#allocation34_spill] sm:$0xff] %v8749_v30  ;;  %18430 = vst [vmem:[#allocation35_spill] sm:$0xff] %v8756_v21  ;;  %v8846_v21 = vld [vmem:[%s6737_s20 + $0x70] sm:$0xff]  ;;  %vm1489_vm12 = vcmp.le.f32.partialorder %v8746_v33, %v8342_v19  ;;  %vm1490_vm10 = vcmp.le.f32.partialorder %v8753_v4, %v8359_v62  ;;  %vm1491_vm7 = vcmp.le.f32.partialorder %v8766_v43, %v8364_v60  ;;  %v8957_v30 = vld [vmem:[%s6720_s7 + $0xe8] sm:$0x1] }
 0x153   : > { %18432 = vst [vmem:[#allocation36_spill] sm:$0xff] %v8759_v35  ;;  %18434 = vst [vmem:[#allocation39_spill] sm:$0xff] %v8769_v29  ;;  %vm1492_vm15 = vcmp.le.f32.partialorder %v8773_v44, %v8369_v57  ;;  %vm1493_vm14 = vcmp.le.f32.partialorder %v8780_v56, %v8387_v34  ;;  %vm1494_vm8 = vcmp.le.f32.partialorder %v8787_v41, %v8405_v11  ;;  %v8937_v35 = vld [vmem:[%s6720_s7 + $0xc8] sm:$0x1]  ;;  %v8947_v29 = vld [vmem:[%s6720_s7 + $0xd8] sm:$0x1] }
 0x154   : > { %18435 = vst [vmem:[#allocation40_spill] sm:$0xff] %v8776_v7  ;;  %18436 = vst [vmem:[#allocation50_spill] sm:$0xff] %v8783_v24  ;;  %vm1495_vm0 = vcmp.le.f32.partialorder %v8794_v22, %v8429_v12  ;;  %vm1496_vm5 = vcmp.le.f32.partialorder %v8801_v61, %v8438_v25  ;;  %vm1497_vm13 = vcmp.le.f32.partialorder %v8808_v46, %v8447_v5  ;;  %v8927_v24 = vld [vmem:[%s6720_s7 + $0xb8] sm:$0x1]  ;;  %v8932_v7 = vld [vmem:[%s6720_s7 + $0xc0] sm:$0x1] }
 0x155   : > { %18437 = vst [vmem:[#allocation51_spill] sm:$0xff] %v8790_v1  ;;  %18438 = vst [vmem:[#allocation52_spill] sm:$0xff] %v8797_v47  ;;  %vm1498_vm11 = vcmp.le.f32.partialorder %v8815_v40, %v8455_v39  ;;  %vm1499_vm4 = vcmp.le.f32.partialorder %v8822_v18, %v8463_v9  ;;  %vm1502_vm9 = vcmp.le.f32.partialorder %v8843_v27, %v8525_v32  ;;  %v8917_v47 = vld [vmem:[%s6720_s7 + $0xa8] sm:$0x1]  ;;  %v8922_v1 = vld [vmem:[%s6720_s7 + $0xb0] sm:$0x1] }
 0x156   : > { %18439 = vst [vmem:[#allocation53_spill] sm:$0xff] %v8804_v15  ;;  %18440 = vst [vmem:[#allocation54_spill] sm:$0xff] %v8811_v23  ;;  %v8912_v15 = vld [vmem:[%s6720_s7 + $0xa0] sm:$0x1]  ;;  %vm1517_vm1 = vcmp.le.f32.partialorder %v8836_v31, %v8952_v53  ;;  %vm1518_vm6 = vcmp.le.f32.partialorder %v8843_v27, %v8957_v30  ;;  %v1521_v28 = vsel %vm1489_vm12, 1, %v18124_v52  ;;  %v1522_v55 = vsel %vm1490_vm10, 1, %v18124_v52 }
 0x157   : > { %18441 = vst [vmem:[#allocation55_spill] sm:$0xff] %v8818_v14  ;;  %18442 = vst [vmem:[#allocation56_spill] sm:$0xff] %v8825_v38  ;;  %v8850_v14 = vrot.slane %v8846_v21, %v8706_v20  ;;  %v8853_v38 = vld [vmem:[%s6737_s20 + $0x78] sm:$0xff]  ;;  %v1523_v26 = vsel %vm1491_vm7, 1, %v18124_v52  ;;  %v1524_v49 = vsel %vm1492_vm15, 1, %v18124_v52  ;;  %v1525_v48 = vsel %vm1493_vm14, 1, %v18124_v52 }
 0x158   : > { %18443 = vst [vmem:[#allocation57_spill] sm:$0xff] %v8832_v50  ;;  %18444 = vst [vmem:[#allocation58_spill] sm:$0xff] %v8839_v10  ;;  %v8857_v23 = vrot.slane %v8853_v38, %v8706_v20  ;;  %v8902_v10 = vld [vmem:[%s6720_s7 + $0x90] sm:$0x1]  ;;  %v8907_v50 = vld [vmem:[%s6720_s7 + $0x98] sm:$0x1]  ;;  %vm18461_vm12 = vcmp.le.f32.partialorder %v8829_v37, %v8471_v42  ;;  %vm18463_vm10 = vcmp.le.f32.partialorder %v8836_v31, %v8487_v36 }
 0x159   : > { %18445 = vst [vmem:[#allocation59_spill] sm:$0xff] %v8846_v21  ;;  %18446 = vst [vmem:[#allocation60_spill] sm:$0xff] %v8853_v38  ;;  %v8892_v38 = vld [vmem:[%s6720_s7 + $0x80] sm:$0x1]  ;;  %v8897_v21 = vld [vmem:[%s6720_s7 + $0x88] sm:$0x1]  ;;  %vm1519_vm2 = vcmp.le.f32.partialorder %v8850_v14, %v8962_v59  ;;  %vm18467_vm15 = vcmp.le.f32.partialorder %v8850_v14, %v8540_v54 }
 0x15a   : > { %18447 = vst [vmem:[#allocation66_spill] sm:$0xff] %v8892_v38  ;;  %18448 = vst [vmem:[#allocation42_spill] sm:$0xff] %v8897_v21  ;;  %vm1520_vm3 = vcmp.le.f32.partialorder %v8857_v23, %v8967_v16  ;;  %v1526_v45 = vsel %vm1494_vm8, 1, %v18124_v52  ;;  %v1527_v6 = vsel %vm1495_vm0, 1, %v18124_v52  ;;  %v9003_v8 = vsel %vm1496_vm5, 1, %v18124_v52 }
 0x15b   : > { %18449 = vst [vmem:[#allocation67_spill] sm:$0xff] %v8902_v10  ;;  %18450 = vst [vmem:[#allocation68_spill] sm:$0xff] %v8907_v50  ;;  %v9009_v58 = vsel %vm1497_vm13, 1, %v18124_v52  ;;  %v9015_v0 = vsel %vm1498_vm11, 1, %v18124_v52  ;;  %v9021_v17 = vsel %vm1499_vm4, 1, %v18124_v52  ;;  %v9027_v51 = vsel %vm18461_vm12, 1, %v18124_v52 }
 0x15c   : > { %18451 = vst [vmem:[#allocation69_spill] sm:$0xff] %v8912_v15  ;;  %18452 = vst [vmem:[#allocation70_spill] sm:$0xff] %v8917_v47  ;;  %v9033_v63 = vsel %vm18463_vm10, 1, %v18124_v52  ;;  %v9039_v3 = vsel %vm1502_vm9, 1, %v18124_v52  ;;  %vm18466_vm7 = vcmp.le.f32.partialorder %v8746_v33, %v8892_v38  ;;  %v9049_v42 = vsel %vm18467_vm15, 1, %v18124_v52 }
 0x15d   : > { %18453 = vst [vmem:[#allocation71_spill] sm:$0xff] %v8922_v1  ;;  %18454 = vst [vmem:[#allocation72_spill] sm:$0xff] %v8927_v24  ;;  %v1537_v20 = vsel %vm18466_vm7, 1, %v18124_v52  ;;  %vm18469_vm14 = vcmp.le.f32.partialorder %v8857_v23, %v8545_v2  ;;  %vm18471_vm8 = vcmp.le.f32.partialorder %v8753_v4, %v8897_v21  ;;  %vm18472_vm0 = vcmp.le.f32.partialorder %v8766_v43, %v8902_v10 }
 0x15e   : > { %18455 = vst [vmem:[#allocation73_spill] sm:$0xff] %v8932_v7  ;;  %18456 = vst [vmem:[#allocation74_spill] sm:$0xff] %v8937_v35  ;;  %v9055_v36 = vsel %vm18469_vm14, 1, %v18124_v52  ;;  %v1538_v32 = vsel %vm18471_vm8, 1, %v18124_v52  ;;  %v1539_v38 = vsel %vm18472_vm0, 1, %v18124_v52  ;;  %vm18473_vm5 = vcmp.le.f32.partialorder %v8773_v44, %v8907_v50 }
 0x15f   : > { %18457 = vst [vmem:[#allocation75_spill] sm:$0xff] %v8952_v53  ;;  %18458 = vst [vmem:[#allocation76_spill] sm:$0xff] %v8957_v30  ;;  %v1540_v54 = vsel %vm18473_vm5, 1, %v18124_v52  ;;  %vm18474_vm13 = vcmp.le.f32.partialorder %v8780_v56, %v8912_v15  ;;  %vm18475_vm11 = vcmp.le.f32.partialorder %v8787_v41, %v8917_v47  ;;  %vm18476_vm4 = vcmp.le.f32.partialorder %v8794_v22, %v8922_v1 }
 0x160   : > { %18459 = vst [vmem:[#allocation77_spill] sm:$0xff] %v8962_v59  ;;  %18460 = vst [vmem:[#allocation78_spill] sm:$0xff] %v8967_v16  ;;  %v1541_v2 = vsel %vm18474_vm13, 1, %v18124_v52  ;;  %v1542_v21 = vsel %vm18475_vm11, 1, %v18124_v52  ;;  %v1543_v10 = vsel %vm18476_vm4, 1, %v18124_v52  ;;  %vm18477_vm9 = vcmp.le.f32.partialorder %v8801_v61, %v8927_v24 }
 0x161   : > { %18462 = vst [vmem:[#allocation79_spill] sm:$0xff] %v9027_v51  ;;  %18464 = vst [vmem:[#allocation80_spill] sm:$0xff] %v9033_v63  ;;  %v1544_v50 = vsel %vm18477_vm9, 1, %v18124_v52  ;;  %vm18478_vm12 = vcmp.le.f32.partialorder %v8808_v46, %v8932_v7  ;;  %vm1473_vm10 = vcmp.ge.f32.partialorder %v8746_v33, %v8342_v19  ;;  %vm1474_vm7 = vcmp.ge.f32.partialorder %v8753_v4, %v8359_v62 }
 0x162   : > { %18465 = vst [vmem:[#allocation64_spill] sm:$0xff] %v9039_v3  ;;  %18468 = vst [vmem:[#allocation65_spill] sm:$0xff] %v9049_v42  ;;  %v9089_v15 = vsel %vm18478_vm12, 1, %v18124_v52  ;;  %v1554_v42 = vrot.slane %v1537_v20, 1  ;;  %v1556_v1 = vrot.slane %v1522_v55, 1  ;;  %v1557_v47 = vrot.slane %v1538_v32, 1 }
 0x163   : > { %18470 = vst [vmem:[#allocation44_spill] sm:$0xff] %v9055_v36  ;;  %v1553_v36 = vrot.slane %v1521_v28, 1  ;;  %v1559_v3 = vrot.slane %v1523_v26, 1  ;;  %v1560_v63 = vrot.slane %v1539_v38, 1  ;;  %vm1475_vm15 = vcmp.ge.f32.partialorder %v8766_v43, %v8364_v60 }
 0x164   : > { %v1562_v24 = vrot.slane %v1524_v49, 1  ;;  %v1563_v51 = vrot.slane %v1540_v54, 1  ;;  %v1565_v7 = vrot.slane %v1525_v48, 1  ;;  %v1566_v9 = vrot.slane %v1541_v2, 1 }
 0x165   : > { %vm1476_vm14 = vcmp.ge.f32.partialorder %v8773_v44, %v8369_v57  ;;  %vm18479_vm8 = vcmp.le.f32.partialorder %v8815_v40, %v8937_v35  ;;  %vm18480_vm0 = vcmp.le.f32.partialorder %v8822_v18, %v8942_v13  ;;  %v1568_v26 = vrot.slane %v1526_v45, 1  ;;  %v18512_v44 = vld [vmem:[#allocation85_spill] sm:$0xff] }
 0x166   : > { %v1546_v20 = vsel %vm18479_vm8, 1, %v18124_v52  ;;  %v1547_v32 = vsel %vm18480_vm0, 1, %v18124_v52  ;;  %v1569_v55 = vrot.slane %v1542_v21, 1  ;;  %vm1477_vm5 = vcmp.ge.f32.partialorder %v8780_v56, %v8387_v34  ;;  %v18518_v56 = vld [vmem:[#allocation87_spill] sm:$0xff] }
 0x167   : > { %vm18481_vm13 = vcmp.le.f32.partialorder %v8829_v37, %v8947_v29  ;;  %v1549_v2 = vsel %vm1517_vm1, 1, %v18124_v52  ;;  %v1571_v48 = vrot.slane %v1527_v6, 1  ;;  %v1572_v49 = vrot.slane %v1543_v10, 1 }
 0x168   : > { %v1548_v54 = vsel %vm18481_vm13, 1, %v18124_v52  ;;  %v1550_v45 = vsel %vm1518_vm6, 1, %v18124_v52  ;;  %v1551_v28 = vsel %vm1519_vm2, 1, %v18124_v52  ;;  %v1552_v21 = vsel %vm1520_vm3, 1, %v18124_v52 }
 0x169   : > { %vm18482_vm1 = vcmask 1046528   ;;  %v1574_v16 = vrot.slane %v9003_v8, 1  ;;  %v1575_v52 = vrot.slane %v1544_v50, 1  ;;  %v18489_v8 = vld [vmem:[#allocation83_spill] sm:$0xff] }
 0x16a   : > { %v1555_v10 = vsel %vm18482_vm1, %v1553_v36, %v1554_v42  ;;  %vm18483_vm9 = vmmov %vm18482_vm1  ;;  %v1577_v42 = vrot.slane %v9009_v58, 1  ;;  %v18490_v58 = vld [vmem:[#allocation79_spill] sm:$0xff] }
 0x16b   : > { %v1558_v6 = vsel %vm18483_vm9, %v1556_v1, %v1557_v47  ;;  %vm18484_vm12 = vmmov %vm18482_vm1  ;;  %vm1601_vm9 = vcmp.ne.s32.totalorder %v1555_v10, 0  ;;  %v1587_v1 = vrot.slane %v1548_v54, 1  ;;  %v18491_v47 = vld [vmem:[#allocation80_spill] sm:$0xff] }
 0x16c   : > { %v1561_v38 = vsel %vm18484_vm12, %v1559_v3, %v1560_v63  ;;  %vm18485_vm6 = vmmov %vm18482_vm1  ;;  %v1578_v3 = vrot.slane %v9089_v15, 1  ;;  %v1580_v63 = vrot.slane %v9015_v0, 1  ;;  %vm1602_vm12 = vcmp.ne.s32.totalorder %v1558_v6, 0  ;;  %v18492_v0 = vld [vmem:[#allocation64_spill] sm:$0xff] }
 0x16d   : > { %v1564_v30 = vsel %vm18485_vm6, %v1562_v24, %v1563_v51  ;;  %vm18486_vm8 = vmmov %vm18482_vm1  ;;  %v1583_v51 = vrot.slane %v9021_v17, 1  ;;  %v1586_v24 = vrot.slane %v18490_v58, 1  ;;  %v1589_v50 = vrot.slane %v18491_v47, 1  ;;  %v18494_v17 = vld [vmem:[#allocation65_spill] sm:$0xff]  ;;  %v9272_v47 = vld [vmem:[%s6740_s8 + $0x18] sm:$0xff] }
 0x16e   : > { %v1567_v53 = vsel %vm18486_vm8, %v1565_v7, %v1566_v9  ;;  %vm18487_vm0 = vmmov %vm18482_vm1  ;;  %v1581_v9 = vrot.slane %v1546_v20, 1  ;;  %v1584_v7 = vrot.slane %v1547_v32, 1  ;;  %vm1603_vm8 = vcmp.ne.s32.totalorder %v1561_v38, 0  ;;  %18539 = vst [vmem:[#allocation30_spill] sm:$0xff] %v9272_v47 }
 0x16f   : > { %v1570_v59 = vsel %vm18487_vm0, %v1568_v26, %v1569_v55  ;;  %vm18488_vm13 = vmmov %vm18487_vm0  ;;  %v1590_v15 = vrot.slane %v1549_v2, 1  ;;  %v1592_v20 = vrot.slane %v18492_v0, 1  ;;  %v1593_v26 = vrot.slane %v1550_v45, 1 }
 0x170   : > { %v1573_v36 = vsel %vm18488_vm13, %v1571_v48, %v1572_v49  ;;  %vm1604_vm0 = vcmp.ne.s32.totalorder %v1564_v30, 0  ;;  %vm18493_vm13 = vmmov %vm18482_vm1  ;;  %v1595_v32 = vrot.slane %v18494_v17, 1  ;;  %v1596_v48 = vrot.slane %v1551_v28, 1  ;;  %v18502_v28 = vld [vmem:[#allocation84_spill] sm:$0xff] }
 0x171   : > { %v1576_v55 = vsel %vm18493_vm13, %v1574_v16, %v1575_v52  ;;  %vm1605_vm1 = vcmp.ne.s32.totalorder %v1567_v53, 0  ;;  %vm9162_vm6 = vmand %vm1473_vm10, %vm1601_vm9  ;;  %v1579_v52 = vsel %vm18493_vm13, %v1577_v42, %v1578_v3  ;;  %v18499_v16 = vld [vmem:[#allocation44_spill] sm:$0xff]  ;;  %v1599_v45 = vrot.slane %v1552_v21, 1  ;;  %v18513_v42 = vld [vmem:[#allocation86_spill] sm:$0xff] }
 0x172   : > { %vm9170_vm3 = vmand %vm1474_vm7, %vm1602_vm12  ;;  %v1598_v49 = vrot.slane %v18499_v16, 1  ;;  %vm1606_vm2 = vcmp.ne.s32.totalorder %v1570_v59, 0  ;;  %v18510_v30 = vmov 0  ;;  %v18516_v53 = vmov 0  ;;  %v9310_v16 = vld [vmem:[%s6740_s8 + $0x48] sm:$0xff] }
 0x173   : > { %vm9180_vm10 = vmand %vm1475_vm15, %vm1603_vm8  ;;  %18548 = vst [vmem:[#allocation47_spill] sm:$0xff] %v9310_v16 }
 0x174   : > { %vm18503_vm9 = vmmov %vm18493_vm13  ;;  %vm1607_vm13 = vcmp.ne.s32.totalorder %v1573_v36, 0  ;;  %v9249_v36 = vld [vmem:[%s6740_s8] sm:$0xff] }
 0x175   : > { %v1582_v4 = vsel %vm18503_vm9, %v1580_v63, %v1581_v9  ;;  %vm18504_vm12 = vmmov %vm18503_vm9  ;;  %v18519_v63 = vld [vmem:[#allocation88_spill] sm:$0xff]  ;;  %18531 = vst [vmem:[#allocation61_spill] sm:$0xff] %v9249_v36 }
 0x176   : > { %v1585_v10 = vsel %vm18504_vm12, %v1583_v51, %v1584_v7  ;;  %vm9192_vm4 = vmand %vm1476_vm14, %vm1604_vm0  ;;  %vm18521_vm14 = vcmp.ge.f32.partialorder %v8794_v22, %v8429_v12  ;;  %v18532_v51 = vld [vmem:[#allocation95_spill] sm:$0xff] }
 0x177   : > { %vm18507_vm15 = vmmov %vm18503_vm9  ;;  %v1636_v7 = vrot.slane %v9249_v36, %v18532_v51 }
 0x178   : > { %v1588_v43 = vsel %vm18507_vm15, %v1586_v24, %v1587_v1  ;;  %vm18508_vm8 = vmmov %vm18503_vm9  ;;  %vm1609_vm15 = vcmp.ne.s32.totalorder %v1579_v52, 0  ;;  %v9259_v24 = vld [vmem:[%s6740_s8 + $0x10] sm:$0xff]  ;;  %v9305_v52 = vld [vmem:[%s6740_s8 + $0x40] sm:$0xff] }
 0x179   : > { %v1591_v6 = vsel %vm18508_vm8, %v1589_v50, %v1590_v15  ;;  %vm18509_vm11 = vmmov %vm18508_vm8  ;;  %18534 = vst [vmem:[#allocation41_spill] sm:$0xff] %v9259_v24  ;;  %v1648_v50 = vrot.slane %v9272_v47, %v18532_v51  ;;  %v9277_v15 = vld [vmem:[%s6740_s8 + $0x20] sm:$0xff] }
 0x17a   : > { %v1594_v38 = vsel %vm18509_vm11, %v1592_v20, %v1593_v26  ;;  %vm9203_vm9 = vmand %vm1477_vm5, %vm1605_vm1  ;;  %vm18515_vm11 = vcmp.ge.f32.partialorder %v8787_v41, %v8405_v11  ;;  %vm1613_vm5 = vcmp.ne.s32.totalorder %v1591_v6, 0  ;;  %vm18525_vm1 = vcmp.ge.f32.partialorder %v8801_v61, %v8438_v25  ;;  %v9254_v61 = vld [vmem:[%s6740_s8 + $0x8] sm:$0xff]  ;;  %18540 = vst [vmem:[#allocation63_spill] sm:$0xff] %v9277_v15 }
 0x17b   : > { %v18511_v30 = vsel %vm9203_vm9, 4294967295, %v18510_v30  ;;  %vm18514_vm12 = vmmov %vm18508_vm8  ;;  %vm18524_vm9 = vcmp.ne.s32.totalorder %v1576_v55, 0  ;;  %18533 = vst [vmem:[#allocation62_spill] sm:$0xff] %v9254_v61  ;;  %v1640_v58 = vrot.slane %v9254_v61, %v18532_v51  ;;  %v1652_v0 = vrot.slane %v9277_v15, %v18532_v51  ;;  %v9282_v20 = vld [vmem:[%s6740_s8 + $0x28] sm:$0xff]  ;;  %v9295_v55 = vld [vmem:[%s6740_s8 + $0x30] sm:$0xff] }
 0x17c   : > { %v1597_v3 = vsel %vm18514_vm12, %v1595_v32, %v1596_v48  ;;  %vm9216_vm8 = vmand %vm18515_vm11, %vm1606_vm2  ;;  %vm1611_vm2 = vcmp.ne.s32.totalorder %v1585_v10, 0  ;;  %vm1612_vm11 = vcmp.ne.s32.totalorder %v1588_v43, 0  ;;  %18541 = vst [vmem:[#allocation43_spill] sm:$0xff] %v9282_v20  ;;  %v1660_v17 = vrot.slane %v9295_v55, %v18532_v51  ;;  %v9300_v32 = vld [vmem:[%s6740_s8 + $0x38] sm:$0xff]  ;;  %v9338_v43 = vld [vmem:[%s6740_s8 + $0x68] sm:$0xff] }
 0x17d   : > { %v18517_v53 = vsel %vm9216_vm8, 4294967295, %v18516_v53  ;;  %vm18520_vm0 = vmmov %vm18514_vm12  ;;  %vm1614_vm8 = vcmp.ne.s32.totalorder %v1594_v38, 0  ;;  %vm1615_vm12 = vcmp.ne.s32.totalorder %v1597_v3, 0  ;;  %18545 = vst [vmem:[#allocation94_spill] sm:$0xff] %v9295_v55  ;;  %v1664_v48 = vrot.slane %v9300_v32, %v18532_v51  ;;  %v18570_v3 = vld [vmem:[#allocation89_spill] sm:$0xff] }
 0x17e   : > { %v1600_v9 = vsel %vm18520_vm0, %v1598_v49, %v1599_v45  ;;  %vm9229_vm7 = vmand %vm18521_vm14, %vm1607_vm13  ;;  %vm18528_vm13 = vcmp.ge.f32.partialorder %v8808_v46, %v8447_v5  ;;  %v1644_v46 = vrot.slane %v9259_v24, %v18532_v51  ;;  %18546 = vst [vmem:[#allocation45_spill] sm:$0xff] %v9300_v32  ;;  %v1672_v49 = vrot.slane %v9310_v16, %v18532_v51  ;;  %v9333_v16 = vld [vmem:[%s6740_s8 + $0x60] sm:$0xff] }
 0x17f   : > { %vm9237_vm0 = vmand %vm18525_vm1, %vm18524_vm9  ;;  %vm1616_vm9 = vcmp.ne.s32.totalorder %v1600_v9, 0  ;;  %vm18536_vm1 = vcmp.ge.f32.partialorder %v8815_v40, %v8455_v39  ;;  %v1656_v40 = vrot.slane %v9282_v20, %v18532_v51  ;;  %18547 = vst [vmem:[#allocation46_spill] sm:$0xff] %v9305_v52  ;;  %v1688_v55 = vrot.slane %v9338_v43, %v18532_v51  ;;  %v9351_v20 = vld [vmem:[%s6740_s8 + $0x70] sm:$0xff] }
 0x180   : > { %vm9244_vm14 = vmand %vm18528_vm13, %vm1609_vm15  ;;  %vm18535_vm15 = vcmp.ne.s32.totalorder %v1582_v4, 0  ;;  %v9323_v4 = vld [vmem:[%s6740_s8 + $0x50] sm:$0xff]  ;;  %18554 = vst [vmem:[#allocation81_spill] sm:$0xff] %v9333_v16  ;;  %v1698_v15 = vsel %vm9170_vm3, %v1640_v58, 0.0  ;;  %v1699_v6 = vsel %vm9180_vm10, %v1644_v46, 0.0  ;;  %v1700_v2 = vsel %vm9192_vm4, %v1648_v50, 0.0 }
 0x181   : > { %vm9267_vm13 = vmand %vm18536_vm1, %vm18535_vm15  ;;  %vm18542_vm15 = vcmp.ge.f32.partialorder %v8822_v18, %v18489_v8  ;;  %v1668_v18 = vrot.slane %v9305_v52, %v18532_v51  ;;  %18552 = vst [vmem:[#allocation48_spill] sm:$0xff] %v9323_v4  ;;  %v1676_v10 = vrot.slane %v9323_v4, %v18532_v51  ;;  %v9328_v52 = vld [vmem:[%s6740_s8 + $0x58] sm:$0xff]  ;;  %vm18564_vm3 = vnez %v18511_v30  ;;  %v18572_v58 = vld [vmem:[#allocation90_spill] sm:$0xff] }
 0x182   : > { %vm9290_vm1 = vmand %vm18542_vm15, %vm1611_vm2  ;;  %vm18549_vm2 = vcmp.ge.f32.partialorder %v8829_v37, %v18502_v28  ;;  %18553 = vst [vmem:[#allocation49_spill] sm:$0xff] %v9328_v52  ;;  %v1680_v32 = vrot.slane %v9328_v52, %v18532_v51  ;;  %v1684_v37 = vrot.slane %v9333_v16, %v18532_v51  ;;  %v1692_v52 = vrot.slane %v9351_v20, %v18532_v51  ;;  %v18574_v46 = vld [vmem:[#allocation91_spill] sm:$0xff]  ;;  %v18586_v4 = vld [vmem:[#allocation96_spill] sm:$0xff] }
 0x183   : > { %vm9318_vm15 = vmand %vm18549_vm2, %vm1612_vm11  ;;  %18555 = vst [vmem:[#allocation79_spill] sm:$0xff] %v9338_v43  ;;  %vm18556_vm11 = vcmp.ge.f32.partialorder %v8836_v31, %v18512_v44  ;;  %v1697_v16 = vsel %vm9162_vm6, %v1636_v7, 0.0  ;;  %v9370_v43 = vld [vmem:[%s6740_s8 + $0x78] sm:$0xff]  ;;  %v1701_v33 = vsel %vm18564_vm3, %v1652_v0, 0.0  ;;  %vm18565_vm6 = vnez %v18517_v53  ;;  %v18578_v0 = vld [vmem:[#allocation93_spill] sm:$0xff] }
 0x184   : > { %vm9346_vm2 = vmand %vm18556_vm11, %vm1613_vm5  ;;  %18559 = vst [vmem:[#allocation80_spill] sm:$0xff] %v9351_v20  ;;  %vm18560_vm5 = vcmp.ge.f32.partialorder %v8843_v27, %v18513_v42  ;;  %v1696_v54 = vrot.slane %v9370_v43, %v18532_v51  ;;  %v1702_v38 = vsel %vm18565_vm6, %v1656_v40, 0.0  ;;  %vm18566_vm10 = vcmp.ge.f32.partialorder %v8850_v14, %v18518_v56 }
 0x185   : > { %vm9365_vm11 = vmand %vm18560_vm5, %vm1614_vm8  ;;  %18563 = vst [vmem:[#allocation64_spill] sm:$0xff] %v9370_v43  ;;  %v1703_v7 = vsel %vm9229_vm7, %v1660_v17, 0.0  ;;  %v1704_v21 = vsel %vm9237_vm0, %v1664_v48, 0.0  ;;  %v1705_v30 = vsel %vm9244_vm14, %v1668_v18, 0.0  ;;  %v1706_v53 = vsel %vm9267_vm13, %v1672_v49, 0.0  ;;  %v18582_v48 = vld [vmem:[#allocation23_spill] sm:$0xff] }
 0x186   : > { %vm9384_vm8 = vmand %vm18566_vm10, %vm1615_vm12  ;;  %vm18569_vm4 = vcmp.ge.f32.partialorder %v8857_v23, %v18519_v63  ;;  %v1707_v14 = vsel %vm9290_vm1, %v1676_v10, 0.0  ;;  %v9403_v59 = vadd.f32 %v1697_v16, %v18570_v3  ;;  %v9406_v41 = vadd.f32 %v1698_v15, %v18572_v58  ;;  %v18576_v23 = vld [vmem:[#allocation92_spill] sm:$0xff]  ;;  %v18580_v15 = vld [vmem:[#allocation21_spill] sm:$0xff] }
 0x187   : > { %vm1632_vm12 = vmand %vm18569_vm4, %vm1616_vm9  ;;  %v9409_v22 = vadd.f32 %v1699_v6, %v18574_v46  ;;  %v1708_v1 = vsel %vm9318_vm15, %v1680_v32, 0.0  ;;  %v1709_v9 = vsel %vm9346_vm2, %v1684_v37, 0.0  ;;  %v9416_v50 = vadd.f32 %v1700_v2, %v18576_v23  ;;  %v18584_v16 = vld [vmem:[#allocation24_spill] sm:$0xff]  ;;  %v18588_v37 = vld [vmem:[#allocation97_spill] sm:$0xff] }
 0x188   : > { %18571 = vst [vmem:[#allocation65_spill] sm:$0xff] %v9403_v59  ;;  %18573 = vst [vmem:[#allocation44_spill] sm:$0xff] %v9406_v41  ;;  %v9419_v40 = vadd.f32 %v1701_v33, %v18578_v0  ;;  %v1710_v26 = vsel %vm9365_vm11, %v1688_v55, 0.0  ;;  %v9424_v17 = vadd.f32 %v1702_v38, %v18580_v15  ;;  %v9427_v18 = vadd.f32 %v1703_v7, %v18582_v48  ;;  %v18590_v55 = vld [vmem:[#allocation25_spill] sm:$0xff]  ;;  %v18592_v2 = vld [vmem:[#allocation27_spill] sm:$0xff] }
 0x189   : > { %18575 = vst [vmem:[#allocation89_spill] sm:$0xff] %v9409_v22  ;;  %18577 = vst [vmem:[#allocation90_spill] sm:$0xff] %v9416_v50  ;;  %v9430_v32 = vadd.f32 %v1704_v21, %v18584_v16  ;;  %v1711_v49 = vsel %vm9384_vm8, %v1692_v52, 0.0  ;;  %v1712_v45 = vsel %vm1632_vm12, %v1696_v54, 0.0  ;;  %v9435_v10 = vadd.f32 %v1705_v30, %v18586_v4  ;;  %v18594_v38 = vld [vmem:[#allocation28_spill] sm:$0xff]  ;;  %v18596_v21 = vld [vmem:[#allocation31_spill] sm:$0xff] }
 0x18a   : > { %18579 = vst [vmem:[#allocation91_spill] sm:$0xff] %v9419_v40  ;;  %18581 = vst [vmem:[#allocation92_spill] sm:$0xff] %v9424_v17  ;;  %v9438_v6 = vadd.f32 %v1706_v53, %v18588_v37  ;;  %v9441_v31 = vadd.f32 %v1707_v14, %v18590_v55  ;;  %v9444_v33 = vadd.f32 %v1708_v1, %v18592_v2  ;;  %v18597_v3 = vld [vmem:[#allocation33_spill] sm:$0xff]  ;;  %v18601_v30 = vld [vmem:[#allocation34_spill] sm:$0xff] }
 0x18b   : > { %18583 = vst [vmem:[#allocation93_spill] sm:$0xff] %v9427_v18  ;;  %18585 = vst [vmem:[#allocation21_spill] sm:$0xff] %v9430_v32  ;;  %v9447_v7 = vadd.f32 %v1709_v9, %v18594_v38  ;;  %v9451_v27 = vrot.slane %v18597_v3, %v18596_v21  ;;  %v18599_v52 = vld [vmem:[#allocation29_spill] sm:$0xff]  ;;  %v9458_v53 = vrot.slane %v18601_v30, %v18596_v21  ;;  %v18602_v14 = vld [vmem:[#allocation38_spill] sm:$0xff] }
 0x18c   : > { %18587 = vst [vmem:[#allocation23_spill] sm:$0xff] %v9435_v10  ;;  %18589 = vst [vmem:[#allocation24_spill] sm:$0xff] %v9438_v6  ;;  %v9454_v54 = vadd.f32 %v1710_v26, %v18599_v52  ;;  %v9462_v58 = vrot.slane %v18602_v14, %v18596_v21  ;;  %v18603_v46 = vld [vmem:[#allocation39_spill] sm:$0xff]  ;;  %v18604_v9 = vld [vmem:[#allocation32_spill] sm:$0xff] }
 0x18d   : > { %18591 = vst [vmem:[#allocation96_spill] sm:$0xff] %v9441_v31  ;;  %18593 = vst [vmem:[#allocation97_spill] sm:$0xff] %v9444_v33  ;;  %v9466_v1 = vrot.slane %v18603_v46, %v18596_v21  ;;  %v9469_v23 = vadd.f32 %v1711_v49, %v18604_v9  ;;  %v18606_v0 = vld [vmem:[#allocation36_spill] sm:$0xff]  ;;  %v18609_v16 = vld [vmem:[#allocation50_spill] sm:$0xff]  ;;  %vm1809_vm7 = vcmp.le.f32.partialorder %v9451_v27, %v8342_v19  ;;  %v18630_v33 = vmov 0  }
 0x18e   : > { %18595 = vst [vmem:[#allocation25_spill] sm:$0xff] %v9447_v7  ;;  %18598 = vst [vmem:[#allocation27_spill] sm:$0xff] %v9451_v27  ;;  %v9472_v15 = vadd.f32 %v1712_v45, %v18606_v0  ;;  %v18608_v26 = vld [vmem:[#allocation40_spill] sm:$0xff]  ;;  %v9480_v4 = vrot.slane %v18609_v16, %v18596_v21  ;;  %v18610_v37 = vld [vmem:[#allocation51_spill] sm:$0xff]  ;;  %vm1810_vm0 = vcmp.le.f32.partialorder %v9458_v53, %v8359_v62  ;;  %v1841_v31 = vsel %vm1809_vm7, 1, %v18630_v33 }
 0x18f   : > { %18600 = vst [vmem:[#allocation28_spill] sm:$0xff] %v9454_v54  ;;  %18605 = vst [vmem:[#allocation29_spill] sm:$0xff] %v9469_v23  ;;  %v9476_v48 = vrot.slane %v18608_v26, %v18596_v21  ;;  %v9484_v55 = vrot.slane %v18610_v37, %v18596_v21  ;;  %v18611_v2 = vld [vmem:[#allocation52_spill] sm:$0xff]  ;;  %v18612_v49 = vld [vmem:[#allocation53_spill] sm:$0xff]  ;;  %vm1811_vm14 = vcmp.le.f32.partialorder %v9462_v58, %v8364_v60  ;;  %v1842_v18 = vsel %vm1810_vm0, 1, %v18630_v33 }
 0x190   : > { %18607 = vst [vmem:[#allocation32_spill] sm:$0xff] %v9472_v15  ;;  %v9488_v38 = vrot.slane %v18611_v2, %v18596_v21  ;;  %v9492_v45 = vrot.slane %v18612_v49, %v18596_v21  ;;  %v18613_v52 = vld [vmem:[#allocation54_spill] sm:$0xff]  ;;  %v18614_v0 = vld [vmem:[#allocation55_spill] sm:$0xff]  ;;  %v18615_v15 = vld [vmem:[#allocation56_spill] sm:$0xff]  ;;  %vm1812_vm9 = vcmp.le.f32.partialorder %v9466_v1, %v8369_v57  ;;  %vm1814_vm1 = vcmp.le.f32.partialorder %v9480_v4, %v8405_v11 }
 0x191   : > { %v9496_v9 = vrot.slane %v18613_v52, %v18596_v21  ;;  %v9500_v51 = vrot.slane %v18614_v0, %v18596_v21  ;;  %v9504_v37 = vrot.slane %v18615_v15, %v18596_v21  ;;  %v18616_v16 = vld [vmem:[#allocation57_spill] sm:$0xff]  ;;  %v18617_v26 = vld [vmem:[#allocation58_spill] sm:$0xff]  ;;  %v18618_v46 = vld [vmem:[#allocation59_spill] sm:$0xff]  ;;  %vm1813_vm13 = vcmp.le.f32.partialorder %v9476_v48, %v8387_v34 }
 0x192   : > { %v9508_v2 = vrot.slane %v18616_v16, %v18596_v21  ;;  %v9512_v49 = vrot.slane %v18617_v26, %v18596_v21  ;;  %v9516_v52 = vrot.slane %v18618_v46, %v18596_v21  ;;  %v18619_v23 = vld [vmem:[#allocation60_spill] sm:$0xff]  ;;  %vm1815_vm15 = vcmp.le.f32.partialorder %v9484_v55, %v8429_v12  ;;  %v18621_v46 = vld [vmem:[#allocation42_spill] sm:$0xff]  ;;  %v18622_v26 = vld [vmem:[#allocation67_spill] sm:$0xff] }
 0x193   : > { %v9520_v0 = vrot.slane %v18619_v23, %v18596_v21  ;;  %vm1816_vm2 = vcmp.le.f32.partialorder %v9488_v38, %v8438_v25  ;;  %vm1817_vm5 = vcmp.le.f32.partialorder %v9492_v45, %v8447_v5  ;;  %v18620_v23 = vld [vmem:[#allocation66_spill] sm:$0xff]  ;;  %v18623_v16 = vld [vmem:[#allocation68_spill] sm:$0xff]  ;;  %v18624_v15 = vld [vmem:[#allocation69_spill] sm:$0xff]  ;;  %vm1836_vm8 = vcmp.le.f32.partialorder %v9504_v37, %v8947_v29 }
 0x194   : > { %v18625_v14 = vld [vmem:[#allocation70_spill] sm:$0xff]  ;;  %v18626_v30 = vld [vmem:[#allocation71_spill] sm:$0xff]  ;;  %v18627_v3 = vld [vmem:[#allocation72_spill] sm:$0xff]  ;;  %v1843_v17 = vsel %vm1811_vm14, 1, %v18630_v33  ;;  %v1844_v40 = vsel %vm1812_vm9, 1, %v18630_v33  ;;  %v1845_v50 = vsel %vm1813_vm13, 1, %v18630_v33  ;;  %vm18634_vm7 = vcmp.le.f32.partialorder %v9496_v9, %v8455_v39 }
 0x195   : > { %vm1831_vm12 = vcmp.le.f32.partialorder %v9484_v55, %v18626_v30  ;;  %vm1832_vm11 = vcmp.le.f32.partialorder %v9488_v38, %v18627_v3  ;;  %v18628_v54 = vld [vmem:[#allocation73_spill] sm:$0xff]  ;;  %v18629_v7 = vld [vmem:[#allocation75_spill] sm:$0xff]  ;;  %v18631_v6 = vld [vmem:[#allocation76_spill] sm:$0xff]  ;;  %v1846_v22 = vsel %vm1814_vm1, 1, %v18630_v33  ;;  %v1847_v41 = vsel %vm1815_vm15, 1, %v18630_v33 }
 0x196   : > { %vm1837_vm4 = vcmp.le.f32.partialorder %v9508_v2, %v18629_v7  ;;  %vm1838_vm3 = vcmp.le.f32.partialorder %v9512_v49, %v18631_v6  ;;  %v18632_v10 = vld [vmem:[#allocation77_spill] sm:$0xff]  ;;  %v18633_v32 = vld [vmem:[#allocation78_spill] sm:$0xff]  ;;  %v1848_v59 = vsel %vm1816_vm2, 1, %v18630_v33  ;;  %v9622_v43 = vsel %vm1817_vm5, 1, %v18630_v33 }
 0x197   : > { %vm1839_vm6 = vcmp.le.f32.partialorder %v9516_v52, %v18632_v10  ;;  %vm1840_vm10 = vcmp.le.f32.partialorder %v9520_v0, %v18633_v32  ;;  %v9628_v20 = vsel %vm18634_vm7, 1, %v18630_v33  ;;  %vm18635_vm0 = vcmp.le.f32.partialorder %v9500_v51, %v18489_v8 }
 0x198   : > { %v9634_v47 = vsel %vm18635_vm0, 1, %v18630_v33  ;;  %vm18636_vm14 = vcmp.le.f32.partialorder %v9504_v37, %v18502_v28  ;;  %vm18637_vm9 = vcmp.le.f32.partialorder %v9508_v2, %v18512_v44  ;;  %vm18639_vm13 = vcmp.le.f32.partialorder %v9512_v49, %v18513_v42 }
 0x199   : > { %v9640_v24 = vsel %vm18636_vm14, 1, %v18630_v33  ;;  %v9646_v61 = vsel %vm18637_vm9, 1, %v18630_v33  ;;  %v9652_v36 = vsel %vm18639_vm13, 1, %v18630_v33  ;;  %vm18641_vm1 = vcmp.le.f32.partialorder %v9516_v52, %v18518_v56 }
 0x19a   : > { %18638 = vst [vmem:[#allocation36_spill] sm:$0xff] %v9646_v61  ;;  %18640 = vst [vmem:[#allocation75_spill] sm:$0xff] %v9652_v36  ;;  %v9658_v21 = vsel %vm18641_vm1, 1, %v18630_v33  ;;  %vm18643_vm15 = vcmp.le.f32.partialorder %v9520_v0, %v18519_v63  ;;  %vm18645_vm2 = vcmp.le.f32.partialorder %v9451_v27, %v18620_v23  ;;  %vm18646_vm5 = vcmp.le.f32.partialorder %v9458_v53, %v18621_v46 }
 0x19b   : > { %18642 = vst [vmem:[#allocation76_spill] sm:$0xff] %v9658_v21  ;;  %v9664_v28 = vsel %vm18643_vm15, 1, %v18630_v33  ;;  %v1857_v44 = vsel %vm18645_vm2, 1, %v18630_v33  ;;  %v1858_v42 = vsel %vm18646_vm5, 1, %v18630_v33  ;;  %vm18647_vm7 = vcmp.le.f32.partialorder %v9462_v58, %v18622_v26 }
 0x19c   : > { %18644 = vst [vmem:[#allocation78_spill] sm:$0xff] %v9664_v28  ;;  %v1859_v56 = vsel %vm18647_vm7, 1, %v18630_v33  ;;  %vm18648_vm0 = vcmp.le.f32.partialorder %v9466_v1, %v18623_v16  ;;  %vm18649_vm14 = vcmp.le.f32.partialorder %v9476_v48, %v18624_v15  ;;  %vm18650_vm9 = vcmp.le.f32.partialorder %v9480_v4, %v18625_v14 }
 0x19d   : > { %v1860_v63 = vsel %vm18648_vm0, 1, %v18630_v33  ;;  %v1861_v23 = vsel %vm18649_vm14, 1, %v18630_v33  ;;  %v1862_v46 = vsel %vm18650_vm9, 1, %v18630_v33  ;;  %v1863_v26 = vsel %vm1831_vm12, 1, %v18630_v33 }
 0x19e   : > { %v1864_v16 = vsel %vm1832_vm11, 1, %v18630_v33  ;;  %vm18651_vm13 = vcmp.le.f32.partialorder %v9492_v45, %v18628_v54  ;;  %vm1793_vm1 = vcmp.ge.f32.partialorder %v9451_v27, %v8342_v19  ;;  %vm18652_vm15 = vcmp.le.f32.partialorder %v9496_v9, %v8937_v35 }
 0x19f   : > { %v9702_v15 = vsel %vm18651_vm13, 1, %v18630_v33  ;;  %v9710_v30 = vsel %vm18652_vm15, 1, %v18630_v33  ;;  %vm18653_vm12 = vcmp.le.f32.partialorder %v9500_v51, %v8942_v13  ;;  %v1873_v14 = vrot.slane %v1841_v31, 1 }
 0x1a0   : > { %v9716_v3 = vsel %vm18653_vm12, 1, %v18630_v33  ;;  %v1874_v28 = vrot.slane %v1857_v44, 1  ;;  %vm1794_vm11 = vcmp.ge.f32.partialorder %v9458_v53, %v8359_v62  ;;  %v1876_v54 = vrot.slane %v1842_v18, 1 }
 0x1a1   : > { %v1877_v21 = vrot.slane %v1858_v42, 1  ;;  %v1879_v19 = vrot.slane %v1843_v17, 1  ;;  %v1880_v27 = vrot.slane %v1859_v56, 1  ;;  %vm1795_vm2 = vcmp.ge.f32.partialorder %v9462_v58, %v8364_v60  ;;  %v18684_v60 = vld [vmem:[#allocation86_spill] sm:$0xff]  ;;  %v18685_v58 = vld [vmem:[#allocation87_spill] sm:$0xff] }
 0x1a2   : > { %v1882_v35 = vrot.slane %v1844_v40, 1  ;;  %v1883_v36 = vrot.slane %v1860_v63, 1  ;;  %v1885_v61 = vrot.slane %v1845_v50, 1  ;;  %v1886_v8 = vrot.slane %v1861_v23, 1 }
 0x1a3   : > { %vm1796_vm5 = vcmp.ge.f32.partialorder %v9466_v1, %v8369_v57  ;;  %v1868_v44 = vsel %vm1836_vm8, 1, %v18630_v33  ;;  %v1869_v42 = vsel %vm1837_vm4, 1, %v18630_v33  ;;  %v1888_v56 = vrot.slane %v1846_v22, 1  ;;  %v18689_v57 = vld [vmem:[#allocation88_spill] sm:$0xff] }
 0x1a4   : > { %v1889_v17 = vrot.slane %v1862_v46, 1  ;;  %vm1797_vm7 = vcmp.ge.f32.partialorder %v9476_v48, %v8387_v34  ;;  %v1891_v63 = vrot.slane %v1847_v41, 1  ;;  %v1892_v50 = vrot.slane %v1863_v26, 1  ;;  %v18702_v48 = vld [vmem:[#allocation61_spill] sm:$0xff] }
 0x1a5   : > { %v1894_v40 = vrot.slane %v1848_v59, 1  ;;  %v1895_v18 = vrot.slane %v1864_v16, 1  ;;  %v1870_v31 = vsel %vm1838_vm3, 1, %v18630_v33  ;;  %v1871_v22 = vsel %vm1839_vm6, 1, %v18630_v33  ;;  %v18743_v34 = vld [vmem:[#allocation89_spill] sm:$0xff] }
 0x1a6   : > { %v1872_v41 = vsel %vm1840_vm10, 1, %v18630_v33  ;;  %vm18654_vm8 = vcmask 1046528   ;;  %v1897_v33 = vrot.slane %v9622_v43, 1  ;;  %v1906_v43 = vrot.slane %v9640_v24, 1 }
 0x1a7   : > { %v1875_v59 = vsel %vm18654_vm8, %v1873_v14, %v1874_v28  ;;  %vm18655_vm14 = vmmov %vm18654_vm8  ;;  %v1898_v28 = vrot.slane %v9702_v15, 1  ;;  %v1900_v14 = vrot.slane %v9628_v20, 1  ;;  %v18662_v20 = vld [vmem:[#allocation83_spill] sm:$0xff]  ;;  %v1910_v15 = vrot.slane %v1869_v42, 1  ;;  %v18671_v42 = vld [vmem:[#allocation78_spill] sm:$0xff] }
 0x1a8   : > { %v1878_v46 = vsel %vm18655_vm14, %v1876_v54, %v1877_v21  ;;  %vm18656_vm9 = vmmov %vm18654_vm8  ;;  %vm1921_vm14 = vcmp.ne.s32.totalorder %v1875_v59, 0  ;;  %v1907_v21 = vrot.slane %v1868_v44, 1  ;;  %v1916_v44 = vrot.slane %v1871_v22, 1  ;;  %v18674_v59 = vld [vmem:[#allocation85_spill] sm:$0xff] }
 0x1a9   : > { %v1881_v23 = vsel %vm18656_vm9, %v1879_v19, %v1880_v27  ;;  %vm18657_vm3 = vmmov %vm18654_vm8  ;;  %v18663_v27 = vld [vmem:[#allocation36_spill] sm:$0xff]  ;;  %v18677_v22 = vmov 0 }
 0x1aa   : > { %v1884_v26 = vsel %vm18657_vm3, %v1882_v35, %v1883_v36  ;;  %vm18658_vm13 = vmmov %vm18657_vm3  ;;  %v1903_v36 = vrot.slane %v9634_v47, 1  ;;  %v1909_v54 = vrot.slane %v18663_v27, 1  ;;  %v18666_v47 = vld [vmem:[#allocation76_spill] sm:$0xff]  ;;  %v1919_v27 = vrot.slane %v1872_v41, 1 }
 0x1ab   : > { %v1887_v16 = vsel %vm18658_vm13, %v1885_v61, %v1886_v8  ;;  %vm18659_vm15 = vmmov %vm18657_vm3  ;;  %v1901_v8 = vrot.slane %v9710_v30, 1  ;;  %v1904_v61 = vrot.slane %v9716_v3, 1  ;;  %v18664_v30 = vld [vmem:[#allocation84_spill] sm:$0xff]  ;;  %v18722_v3 = vld [vmem:[#allocation49_spill] sm:$0xff] }
 0x1ac   : > { %v1890_v10 = vsel %vm18659_vm15, %v1888_v56, %v1889_v17  ;;  %vm18660_vm12 = vmmov %vm18657_vm3  ;;  %vm1923_vm15 = vcmp.ne.s32.totalorder %v1881_v23, 0  ;;  %v18665_v56 = vld [vmem:[#allocation75_spill] sm:$0xff]  ;;  %vm1925_vm13 = vcmp.ne.s32.totalorder %v1887_v16, 0  ;;  %v18687_v23 = vmov 0 }
 0x1ad   : > { %v1893_v19 = vsel %vm18660_vm12, %v1891_v63, %v1892_v50  ;;  %vm18661_vm8 = vmmov %vm18657_vm3  ;;  %vm1922_vm3 = vcmp.ne.s32.totalorder %v1878_v46, 0  ;;  %v1912_v17 = vrot.slane %v18665_v56, 1  ;;  %v1913_v63 = vrot.slane %v1870_v31, 1 }
 0x1ae   : > { %v1896_v35 = vsel %vm18661_vm8, %v1894_v40, %v1895_v18  ;;  %v1915_v50 = vrot.slane %v18666_v47, 1  ;;  %vm1924_vm8 = vcmp.ne.s32.totalorder %v1884_v26, 0  ;;  %vm9782_vm9 = vmand %vm1793_vm1, %vm1921_vm14  ;;  %v1918_v18 = vrot.slane %v18671_v42, 1  ;;  %v18723_v42 = vld [vmem:[#allocation81_spill] sm:$0xff]  ;;  %v18733_v40 = vld [vmem:[#allocation64_spill] sm:$0xff] }
 0x1af   : > { %vm9791_vm12 = vmand %vm1794_vm11, %vm1922_vm3  ;;  %vm18675_vm1 = vcmask 1046528   ;;  %vm1926_vm6 = vcmp.ne.s32.totalorder %v1890_v10, 0  ;;  %v18701_v10 = vld [vmem:[#allocation31_spill] sm:$0xff] }
 0x1b0   : > { %v1899_v56 = vsel %vm18675_vm1, %v1897_v33, %v1898_v28  ;;  %vm18676_vm14 = vmmov %vm18675_vm1  ;;  %v18682_v33 = vmov 0  ;;  %v18703_v28 = vld [vmem:[#allocation62_spill] sm:$0xff] }
 0x1b1   : > { %v1902_v47 = vsel %vm18676_vm14, %v1900_v14, %v1901_v8  ;;  %vm9803_vm4 = vmand %vm1795_vm2, %vm1923_vm15  ;;  %vm1929_vm2 = vcmp.ne.s32.totalorder %v1899_v56, 0  ;;  %v1960_v14 = vrot.slane %v18703_v28, %v18701_v10 }
 0x1b2   : > { %v18678_v22 = vsel %vm9803_vm4, 4294967295, %v18677_v22  ;;  %vm18679_vm11 = vmmov %vm18675_vm1  ;;  %vm18698_vm4 = vcmp.ge.f32.partialorder %v9488_v38, %v8438_v25  ;;  %v18708_v38 = vld [vmem:[#allocation30_spill] sm:$0xff] }
 0x1b3   : > { %v1905_v62 = vsel %vm18679_vm11, %v1903_v36, %v1904_v61  ;;  %vm18680_vm3 = vmmov %vm18675_vm1  ;;  %vm1928_vm11 = vcmp.ne.s32.totalorder %v1896_v35, 0  ;;  %v18709_v35 = vld [vmem:[#allocation63_spill] sm:$0xff]  ;;  %v18714_v61 = vld [vmem:[#allocation94_spill] sm:$0xff] }
 0x1b4   : > { %v1908_v53 = vsel %vm18680_vm3, %v1906_v43, %v1907_v21  ;;  %vm18681_vm0 = vmmov %vm18675_vm1  ;;  %v1920_v26 = vsel %vm18680_vm3, %v1918_v18, %v1919_v27  ;;  %v1972_v8 = vrot.slane %v18709_v35, %v18701_v10  ;;  %v1980_v43 = vrot.slane %v18714_v61, %v18701_v10  ;;  %v18715_v21 = vld [vmem:[#allocation45_spill] sm:$0xff] }
 0x1b5   : > { %v1911_v41 = vsel %vm18681_vm0, %v1909_v54, %v1910_v15  ;;  %vm9814_vm1 = vmand %vm1796_vm5, %vm1924_vm8  ;;  %vm1932_vm10 = vcmp.ne.s32.totalorder %v1908_v53, 0  ;;  %vm18695_vm5 = vcmp.ge.f32.partialorder %v9484_v55, %v8429_v12  ;;  %v18704_v12 = vld [vmem:[#allocation41_spill] sm:$0xff]  ;;  %v1984_v54 = vrot.slane %v18715_v21, %v18701_v10  ;;  %v18716_v15 = vld [vmem:[#allocation46_spill] sm:$0xff] }
 0x1b6   : > { %v18683_v33 = vsel %vm9814_vm1, 4294967295, %v18682_v33  ;;  %vm18686_vm14 = vmmov %vm18681_vm0  ;;  %vm18694_vm1 = vcmp.ne.s32.totalorder %v1893_v19, 0  ;;  %v1964_v55 = vrot.slane %v18704_v12, %v18701_v10  ;;  %v1968_v19 = vrot.slane %v18708_v38, %v18701_v10 }
 0x1b7   : > { %v1914_v46 = vsel %vm18686_vm14, %v1912_v17, %v1913_v63  ;;  %vm9827_vm0 = vmand %vm1797_vm7, %vm1925_vm13  ;;  %vm18691_vm14 = vcmp.ge.f32.partialorder %v9480_v4, %v8405_v11  ;;  %vm1930_vm7 = vcmp.ne.s32.totalorder %v1902_v47, 0  ;;  %vm1931_vm13 = vcmp.ne.s32.totalorder %v1905_v62, 0 }
 0x1b8   : > { %v18688_v23 = vsel %vm9827_vm0, 4294967295, %v18687_v23  ;;  %vm18690_vm8 = vmmov %vm18680_vm3  ;;  %vm1933_vm0 = vcmp.ne.s32.totalorder %v1911_v41, 0  ;;  %v1956_v4 = vrot.slane %v18702_v48, %v18701_v10  ;;  %v1988_v17 = vrot.slane %v18716_v15, %v18701_v10 }
 0x1b9   : > { %v1917_v1 = vsel %vm18690_vm8, %v1915_v50, %v1916_v44  ;;  %vm9839_vm15 = vmand %vm18691_vm14, %vm1926_vm6  ;;  %vm18705_vm14 = vcmp.ge.f32.partialorder %v9492_v45, %v8447_v5  ;;  %v18713_v5 = vld [vmem:[#allocation43_spill] sm:$0xff]  ;;  %v18721_v50 = vld [vmem:[#allocation48_spill] sm:$0xff]  ;;  %v2000_v44 = vrot.slane %v18722_v3, %v18701_v10  ;;  %v2004_v18 = vrot.slane %v18723_v42, %v18701_v10 }
 0x1ba   : > { %vm9847_vm8 = vmand %vm18695_vm5, %vm18694_vm1  ;;  %vm1935_vm1 = vcmp.ne.s32.totalorder %v1917_v1, 0  ;;  %vm1936_vm5 = vcmp.ne.s32.totalorder %v1920_v26, 0  ;;  %v1976_v45 = vrot.slane %v18713_v5, %v18701_v10  ;;  %v1996_v24 = vrot.slane %v18721_v50, %v18701_v10  ;;  %v18750_v26 = vld [vmem:[#allocation92_spill] sm:$0xff] }
 0x1bb   : > { %vm9854_vm6 = vmand %vm18698_vm4, %vm1928_vm11  ;;  %vm18710_vm4 = vcmp.ge.f32.partialorder %v9496_v9, %v8455_v39  ;;  %v18720_v9 = vld [vmem:[#allocation47_spill] sm:$0xff]  ;;  %v2017_v56 = vsel %vm9782_vm9, %v1956_v4, 0.0  ;;  %v2018_v47 = vsel %vm9791_vm12, %v1960_v14, 0.0  ;;  %v2016_v4 = vrot.slane %v18733_v40, %v18701_v10  ;;  %v18746_v14 = vld [vmem:[#allocation90_spill] sm:$0xff] }
 0x1bc   : > { %vm9867_vm3 = vmand %vm18705_vm14, %vm1929_vm2  ;;  %vm18717_vm2 = vcmp.ge.f32.partialorder %v9500_v51, %v18662_v20  ;;  %v1992_v63 = vrot.slane %v18720_v9, %v18701_v10  ;;  %vm18724_vm14 = vcmp.ge.f32.partialorder %v9504_v37, %v18664_v30  ;;  %v18727_v20 = vld [vmem:[#allocation79_spill] sm:$0xff]  ;;  %v18732_v30 = vld [vmem:[#allocation80_spill] sm:$0xff]  ;;  %vm18734_vm9 = vnez %v18683_v33 }
 0x1bd   : > { %vm9879_vm11 = vmand %vm18710_vm4, %vm1930_vm7  ;;  %v2008_v27 = vrot.slane %v18727_v20, %v18701_v10  ;;  %vm18728_vm4 = vnez %v18678_v22  ;;  %v2012_v53 = vrot.slane %v18732_v30, %v18701_v10  ;;  %v2020_v31 = vsel %vm18734_vm9, %v1968_v19, 0.0  ;;  %v18748_v19 = vld [vmem:[#allocation91_spill] sm:$0xff]  ;;  %v18766_v37 = vld [vmem:[#allocation28_spill] sm:$0xff] }
 0x1be   : > { %vm9895_vm7 = vmand %vm18717_vm2, %vm1931_vm13  ;;  %v2019_v62 = vsel %vm18728_vm4, %v1964_v55, 0.0  ;;  %vm18729_vm2 = vcmp.ge.f32.partialorder %v9508_v2, %v18674_v59  ;;  %vm18735_vm12 = vnez %v18688_v23  ;;  %vm18737_vm4 = vcmp.ge.f32.partialorder %v9512_v49, %v18684_v60  ;;  %v18739_v60 = vld [vmem:[#allocation65_spill] sm:$0xff]  ;;  %v18741_v23 = vld [vmem:[#allocation44_spill] sm:$0xff] }
 0x1bf   : > { %vm9911_vm13 = vmand %vm18724_vm14, %vm1932_vm10  ;;  %v2021_v22 = vsel %vm18735_vm12, %v1972_v8, 0.0  ;;  %vm18736_vm14 = vcmp.ne.s32.totalorder %v1914_v46, 0  ;;  %v2022_v2 = vsel %vm9839_vm15, %v1976_v45, 0.0  ;;  %v2023_v59 = vsel %vm9847_vm8, %v1980_v43, 0.0  ;;  %v18754_v43 = vld [vmem:[#allocation21_spill] sm:$0xff] }
 0x1c0   : > { %vm9927_vm10 = vmand %vm18729_vm2, %vm1933_vm0  ;;  %v2024_v41 = vsel %vm9854_vm6, %v1984_v54, 0.0  ;;  %v2025_v33 = vsel %vm9867_vm3, %v1988_v17, 0.0  ;;  %vm18738_vm2 = vcmp.ge.f32.partialorder %v9516_v52, %v18685_v58  ;;  %v2026_v49 = vsel %vm9879_vm11, %v1992_v63, 0.0  ;;  %v18756_v17 = vld [vmem:[#allocation23_spill] sm:$0xff]  ;;  %v18758_v63 = vld [vmem:[#allocation24_spill] sm:$0xff] }
 0x1c1   : > { %vm1950_vm0 = vmand %vm18737_vm4, %vm18736_vm14  ;;  %v9958_v46 = vadd.f32 %v2017_v56, %v18739_v60  ;;  %v9961_v16 = vadd.f32 %v2018_v47, %v18741_v23  ;;  %v9964_v11 = vadd.f32 %v2019_v62, %v18743_v34  ;;  %vm18745_vm15 = vcmp.ge.f32.partialorder %v9520_v0, %v18689_v57  ;;  %v18752_v0 = vld [vmem:[#allocation93_spill] sm:$0xff]  ;;  %v18774_v23 = vld [vmem:[#allocation39_spill] sm:$0xff] }
 0x1c2   : > { %vm1951_vm9 = vmand %vm18738_vm2, %vm1935_vm1  ;;  %v2027_v52 = vsel %vm9895_vm7, %v1996_v24, 0.0  ;;  %v2028_v58 = vsel %vm9911_vm13, %v2000_v44, 0.0  ;;  %v2029_v1 = vsel %vm9927_vm10, %v2004_v18, 0.0  ;;  %v9977_v55 = vadd.f32 %v2020_v31, %v18746_v14  ;;  %v18760_v18 = vld [vmem:[#allocation96_spill] sm:$0xff]  ;;  %v18764_v47 = vld [vmem:[#allocation25_spill] sm:$0xff] }
 0x1c3   : > { %18740 = vst [vmem:[#allocation83_spill] sm:$0xff] %v9958_v46  ;;  %18742 = vst [vmem:[#allocation36_spill] sm:$0xff] %v9961_v16  ;;  %v2030_v25 = vsel %vm1950_vm0, %v2008_v27, 0.0  ;;  %v9980_v8 = vadd.f32 %v2021_v22, %v18748_v19  ;;  %v9983_v36 = vadd.f32 %v2022_v2, %v18750_v26  ;;  %v9986_v57 = vadd.f32 %v2023_v59, %v18752_v0  ;;  %v18762_v27 = vld [vmem:[#allocation97_spill] sm:$0xff]  ;;  %v18768_v31 = vld [vmem:[#allocation35_spill] sm:$0xff] }
 0x1c4   : > { %18744 = vst [vmem:[#allocation84_spill] sm:$0xff] %v9964_v11  ;;  %vm1952_vm8 = vmand %vm18745_vm15, %vm1936_vm5  ;;  %v2031_v45 = vsel %vm1951_vm9, %v2012_v53, 0.0  ;;  %v9989_v54 = vadd.f32 %v2024_v41, %v18754_v43  ;;  %v9992_v39 = vadd.f32 %v2025_v33, %v18756_v17  ;;  %v9995_v24 = vadd.f32 %v2026_v49, %v18758_v63  ;;  %v18769_v22 = vld [vmem:[#allocation33_spill] sm:$0xff]  ;;  %v18770_v59 = vld [vmem:[#allocation34_spill] sm:$0xff] }
 0x1c5   : > { %18747 = vst [vmem:[#allocation75_spill] sm:$0xff] %v9977_v55  ;;  %18749 = vst [vmem:[#allocation76_spill] sm:$0xff] %v9980_v8  ;;  %v2032_v44 = vsel %vm1952_vm8, %v2016_v4, 0.0  ;;  %v9998_v51 = vadd.f32 %v2027_v52, %v18760_v18  ;;  %v10001_v56 = vadd.f32 %v2028_v58, %v18762_v27  ;;  %v10004_v62 = vadd.f32 %v2029_v1, %v18764_v47  ;;  %v18771_v4 = vld [vmem:[#allocation38_spill] sm:$0xff]  ;;  %v18772_v49 = vld [vmem:[#allocation29_spill] sm:$0xff] }
 0x1c6   : > { %18751 = vst [vmem:[#allocation27_spill] sm:$0xff] %v9983_v36  ;;  %18753 = vst [vmem:[#allocation82_spill] sm:$0xff] %v9986_v57  ;;  %v10007_v53 = vadd.f32 %v2030_v25, %v18766_v37  ;;  %v10011_v2 = vrot.slane %v18769_v22, %v18768_v31  ;;  %v10015_v41 = vrot.slane %v18770_v59, %v18768_v31  ;;  %v18775_v52 = vld [vmem:[#allocation40_spill] sm:$0xff]  ;;  %v18776_v1 = vld [vmem:[#allocation50_spill] sm:$0xff]  ;;  %v18807_v30 = vmov 0  }
 0x1c7   : > { %18755 = vst [vmem:[#allocation78_spill] sm:$0xff] %v9989_v54  ;;  %18757 = vst [vmem:[#allocation85_spill] sm:$0xff] %v9992_v39  ;;  %v10019_v33 = vrot.slane %v18771_v4, %v18768_v31  ;;  %v10022_v60 = vadd.f32 %v2031_v45, %v18772_v49  ;;  %v10026_v34 = vrot.slane %v18774_v23, %v18768_v31  ;;  %v18777_v25 = vld [vmem:[#allocation32_spill] sm:$0xff]  ;;  %v18779_v26 = vld [vmem:[#allocation51_spill] sm:$0xff] }
 0x1c8   : > { %18759 = vst [vmem:[#allocation86_spill] sm:$0xff] %v9995_v24  ;;  %18761 = vst [vmem:[#allocation87_spill] sm:$0xff] %v9998_v51  ;;  %v10030_v58 = vrot.slane %v18775_v52, %v18768_v31  ;;  %v10034_v14 = vrot.slane %v18776_v1, %v18768_v31  ;;  %v10037_v19 = vadd.f32 %v2032_v44, %v18777_v25  ;;  %v18780_v45 = vld [vmem:[#allocation52_spill] sm:$0xff]  ;;  %v18781_v17 = vld [vmem:[#allocation53_spill] sm:$0xff] }
 0x1c9   : > { %18763 = vst [vmem:[#allocation88_spill] sm:$0xff] %v10001_v56  ;;  %18765 = vst [vmem:[#allocation65_spill] sm:$0xff] %v10004_v62  ;;  %v10041_v0 = vrot.slane %v18779_v26, %v18768_v31  ;;  %v10045_v43 = vrot.slane %v18780_v45, %v18768_v31  ;;  %v10049_v63 = vrot.slane %v18781_v17, %v18768_v31  ;;  %v18782_v18 = vld [vmem:[#allocation54_spill] sm:$0xff]  ;;  %v18783_v44 = vld [vmem:[#allocation55_spill] sm:$0xff] }
 0x1ca   : > { %18767 = vst [vmem:[#allocation44_spill] sm:$0xff] %v10007_v53  ;;  %18773 = vst [vmem:[#allocation89_spill] sm:$0xff] %v10022_v60  ;;  %v10053_v27 = vrot.slane %v18782_v18, %v18768_v31  ;;  %v10057_v47 = vrot.slane %v18783_v44, %v18768_v31  ;;  %v18784_v37 = vld [vmem:[#allocation56_spill] sm:$0xff]  ;;  %v18785_v59 = vld [vmem:[#allocation57_spill] sm:$0xff] }
 0x1cb   : > { %18778 = vst [vmem:[#allocation90_spill] sm:$0xff] %v10037_v19  ;;  %v10061_v22 = vrot.slane %v18784_v37, %v18768_v31  ;;  %v10065_v4 = vrot.slane %v18785_v59, %v18768_v31  ;;  %v18786_v49 = vld [vmem:[#allocation58_spill] sm:$0xff]  ;;  %v18787_v52 = vld [vmem:[#allocation59_spill] sm:$0xff]  ;;  %v18788_v25 = vld [vmem:[#allocation60_spill] sm:$0xff] }
 0x1cc   : > { %v10069_v23 = vrot.slane %v18786_v49, %v18768_v31  ;;  %v10073_v1 = vrot.slane %v18787_v52, %v18768_v31  ;;  %v10077_v26 = vrot.slane %v18788_v25, %v18768_v31  ;;  %v10080_v45 = vld [vmem:[%s6720_s7] sm:$0xff]  ;;  %v10085_v17 = vld [vmem:[%s6720_s7 + $0x8] sm:$0xff]  ;;  %v10090_v18 = vld [vmem:[%s6720_s7 + $0x10] sm:$0xff]  ;;  %vm2155_vm9 = vcmp.le.f32.partialorder %v10057_v47, %v8942_v13 }
 0x1cd   : > { %18789 = vst [vmem:[#allocation91_spill] sm:$0xff] %v10080_v45  ;;  %vm2129_vm3 = vcmp.le.f32.partialorder %v10011_v2, %v10080_v45  ;;  %vm2130_vm6 = vcmp.le.f32.partialorder %v10015_v41, %v10085_v17  ;;  %vm2131_vm1 = vcmp.le.f32.partialorder %v10019_v33, %v10090_v18  ;;  %v10095_v44 = vld [vmem:[%s6720_s7 + $0x18] sm:$0xff]  ;;  %v10100_v37 = vld [vmem:[%s6720_s7 + $0x20] sm:$0xff]  ;;  %v10105_v59 = vld [vmem:[%s6720_s7 + $0x28] sm:$0xff]  ;;  %vm2156_vm15 = vcmp.le.f32.partialorder %v10061_v22, %v8947_v29 }
 0x1ce   : > { %vm2132_vm5 = vcmp.le.f32.partialorder %v10026_v34, %v10095_v44  ;;  %vm2133_vm11 = vcmp.le.f32.partialorder %v10030_v58, %v10100_v37  ;;  %vm2134_vm7 = vcmp.le.f32.partialorder %v10034_v14, %v10105_v59  ;;  %v10110_v49 = vld [vmem:[%s6720_s7 + $0x30] sm:$0xff]  ;;  %v10115_v52 = vld [vmem:[%s6720_s7 + $0x38] sm:$0xff]  ;;  %v10120_v25 = vld [vmem:[%s6720_s7 + $0x40] sm:$0xff]  ;;  %vm2157_vm14 = vcmp.le.f32.partialorder %v10065_v4, %v18629_v7 }
 0x1cf   : > { %vm2135_vm13 = vcmp.le.f32.partialorder %v10041_v0, %v10110_v49  ;;  %vm2136_vm10 = vcmp.le.f32.partialorder %v10045_v43, %v10115_v52  ;;  %vm2137_vm12 = vcmp.le.f32.partialorder %v10049_v63, %v10120_v25  ;;  %v10125_v10 = vld [vmem:[%s6720_s7 + $0x48] sm:$0xff]  ;;  %v10130_v19 = vld [vmem:[%s6720_s7 + $0x50] sm:$0xff]  ;;  %v10135_v60 = vld [vmem:[%s6720_s7 + $0x58] sm:$0xff]  ;;  %vm2158_vm8 = vcmp.le.f32.partialorder %v10069_v23, %v18631_v6 }
 0x1d0   : > { %18790 = vst [vmem:[#allocation92_spill] sm:$0xff] %v10130_v19  ;;  %18791 = vst [vmem:[#allocation93_spill] sm:$0xff] %v10135_v60  ;;  %v10140_v53 = vld [vmem:[%s6720_s7 + $0x60] sm:$0xff]  ;;  %v10145_v62 = vld [vmem:[%s6720_s7 + $0x68] sm:$0xff]  ;;  %vm2160_vm2 = vcmp.le.f32.partialorder %v10077_v26, %v18633_v32  ;;  %v2161_v20 = vsel %vm2129_vm3, 1, %v18807_v30  ;;  %v2162_v42 = vsel %vm2130_vm6, 1, %v18807_v30  ;;  %vm18808_vm3 = vcmp.le.f32.partialorder %v10053_v27, %v10125_v10 }
 0x1d1   : > { %18792 = vst [vmem:[#allocation21_spill] sm:$0xff] %v10140_v53  ;;  %18793 = vst [vmem:[#allocation23_spill] sm:$0xff] %v10145_v62  ;;  %v10150_v56 = vld [vmem:[%s6720_s7 + $0x70] sm:$0xff]  ;;  %v10155_v51 = vld [vmem:[%s6720_s7 + $0x78] sm:$0xff]  ;;  %v2163_v3 = vsel %vm2131_vm1, 1, %v18807_v30  ;;  %v2164_v50 = vsel %vm2132_vm5, 1, %v18807_v30  ;;  %vm18809_vm6 = vcmp.le.f32.partialorder %v10057_v47, %v10130_v19  ;;  %vm18810_vm1 = vcmp.le.f32.partialorder %v10061_v22, %v10135_v60 }
 0x1d2   : > { %18794 = vst [vmem:[#allocation24_spill] sm:$0xff] %v10150_v56  ;;  %18795 = vst [vmem:[#allocation96_spill] sm:$0xff] %v10155_v51  ;;  %v18796_v24 = vld [vmem:[#allocation66_spill] sm:$0xff]  ;;  %v18798_v54 = vld [vmem:[#allocation67_spill] sm:$0xff]  ;;  %v2165_v9 = vsel %vm2133_vm11, 1, %v18807_v30  ;;  %v2166_v15 = vsel %vm2134_vm7, 1, %v18807_v30  ;;  %vm18812_vm5 = vcmp.le.f32.partialorder %v10065_v4, %v10140_v53  ;;  %vm18814_vm11 = vcmp.le.f32.partialorder %v10069_v23, %v10145_v62 }
 0x1d3   : > { %v18797_v39 = vld [vmem:[#allocation42_spill] sm:$0xff]  ;;  %v18799_v57 = vld [vmem:[#allocation68_spill] sm:$0xff]  ;;  %v18800_v36 = vld [vmem:[#allocation69_spill] sm:$0xff]  ;;  %v2167_v21 = vsel %vm2135_vm13, 1, %v18807_v30  ;;  %v10223_v61 = vsel %vm2136_vm10, 1, %v18807_v30  ;;  %v10229_v5 = vsel %vm2137_vm12, 1, %v18807_v30  ;;  %vm18816_vm7 = vcmp.le.f32.partialorder %v10011_v2, %v18796_v24 }
 0x1d4   : > { %v18801_v8 = vld [vmem:[#allocation70_spill] sm:$0xff]  ;;  %v18802_v55 = vld [vmem:[#allocation71_spill] sm:$0xff]  ;;  %v18803_v11 = vld [vmem:[#allocation72_spill] sm:$0xff]  ;;  %v10235_v35 = vsel %vm18808_vm3, 1, %v18807_v30  ;;  %v10241_v38 = vsel %vm18809_vm6, 1, %v18807_v30  ;;  %v10247_v12 = vsel %vm18810_vm1, 1, %v18807_v30  ;;  %vm18817_vm13 = vcmp.le.f32.partialorder %v10073_v1, %v10150_v56 }
 0x1d5   : > { %v18804_v16 = vld [vmem:[#allocation73_spill] sm:$0xff]  ;;  %v18805_v46 = vld [vmem:[#allocation74_spill] sm:$0xff]  ;;  %18811 = vst [vmem:[#allocation97_spill] sm:$0xff] %v10247_v12  ;;  %v10253_v28 = vsel %vm18812_vm5, 1, %v18807_v30  ;;  %v10259_v48 = vsel %vm18814_vm11, 1, %v18807_v30  ;;  %v2177_v31 = vsel %vm18816_vm7, 1, %v18807_v30  ;;  %vm18819_vm10 = vcmp.le.f32.partialorder %v10077_v26, %v10155_v51 }
 0x1d6   : > { %vm2154_vm4 = vcmp.le.f32.partialorder %v10053_v27, %v18805_v46  ;;  %v18806_v40 = vld [vmem:[#allocation77_spill] sm:$0xff]  ;;  %18813 = vst [vmem:[#allocation25_spill] sm:$0xff] %v10253_v28  ;;  %18815 = vst [vmem:[#allocation28_spill] sm:$0xff] %v10259_v48  ;;  %v10269_v60 = vsel %vm18817_vm13, 1, %v18807_v30  ;;  %v10275_v53 = vsel %vm18819_vm10, 1, %v18807_v30  ;;  %vm18821_vm12 = vcmp.le.f32.partialorder %v10015_v41, %v18797_v39 }
 0x1d7   : > { %vm2159_vm0 = vcmp.le.f32.partialorder %v10073_v1, %v18806_v40  ;;  %18818 = vst [vmem:[#allocation33_spill] sm:$0xff] %v10269_v60  ;;  %18820 = vst [vmem:[#allocation34_spill] sm:$0xff] %v10275_v53  ;;  %v2178_v62 = vsel %vm18821_vm12, 1, %v18807_v30  ;;  %vm18822_vm3 = vcmp.le.f32.partialorder %v10019_v33, %v18798_v54  ;;  %vm18823_vm6 = vcmp.le.f32.partialorder %v10026_v34, %v18799_v57 }
 0x1d8   : > { %v2179_v24 = vsel %vm18822_vm3, 1, %v18807_v30  ;;  %v2180_v56 = vsel %vm18823_vm6, 1, %v18807_v30  ;;  %vm18824_vm1 = vcmp.le.f32.partialorder %v10030_v58, %v18800_v36  ;;  %vm18825_vm5 = vcmp.le.f32.partialorder %v10034_v14, %v18801_v8 }
 0x1d9   : > { %v2181_v51 = vsel %vm18824_vm1, 1, %v18807_v30  ;;  %v2182_v39 = vsel %vm18825_vm5, 1, %v18807_v30  ;;  %vm18826_vm11 = vcmp.le.f32.partialorder %v10041_v0, %v18802_v55  ;;  %vm18827_vm7 = vcmp.le.f32.partialorder %v10045_v43, %v18803_v11 }
 0x1da   : > { %v2183_v54 = vsel %vm18826_vm11, 1, %v18807_v30  ;;  %v2184_v57 = vsel %vm18827_vm7, 1, %v18807_v30  ;;  %vm18828_vm13 = vcmp.le.f32.partialorder %v10049_v63, %v18804_v16  ;;  %v2193_v53 = vrot.slane %v2161_v20, 1 }
 0x1db   : > { %v10309_v36 = vsel %vm18828_vm13, 1, %v18807_v30  ;;  %v2194_v60 = vrot.slane %v2177_v31, 1  ;;  %vm2113_vm10 = vcmp.ge.f32.partialorder %v10011_v2, %v10080_v45  ;;  %vm2114_vm12 = vcmp.ge.f32.partialorder %v10015_v41, %v10085_v17 }
 0x1dc   : > { %v2196_v55 = vrot.slane %v2162_v42, 1  ;;  %v2197_v8 = vrot.slane %v2178_v62, 1  ;;  %v2199_v48 = vrot.slane %v2163_v3, 1  ;;  %v2200_v28 = vrot.slane %v2179_v24, 1 }
 0x1dd   : > { %vm2115_vm3 = vcmp.ge.f32.partialorder %v10019_v33, %v10090_v18  ;;  %v2202_v11 = vrot.slane %v2164_v50, 1  ;;  %v2203_v12 = vrot.slane %v2180_v56, 1  ;;  %v2205_v16 = vrot.slane %v2165_v9, 1 }
 0x1de   : > { %v2206_v19 = vrot.slane %v2181_v51, 1  ;;  %vm2116_vm6 = vcmp.ge.f32.partialorder %v10026_v34, %v10095_v44  ;;  %v2186_v20 = vsel %vm2154_vm4, 1, %v18807_v30  ;;  %v2187_v3 = vsel %vm2155_vm9, 1, %v18807_v30  ;;  %v18859_v34 = vld [vmem:[#allocation21_spill] sm:$0xff] }
 0x1df   : > { %v2208_v42 = vrot.slane %v2166_v15, 1  ;;  %v2209_v62 = vrot.slane %v2182_v39, 1  ;;  %vm2117_vm1 = vcmp.ge.f32.partialorder %v10030_v58, %v10100_v37  ;;  %v2188_v9 = vsel %vm2156_vm15, 1, %v18807_v30  ;;  %v18865_v58 = vld [vmem:[#allocation24_spill] sm:$0xff] }
 0x1e0   : > { %v2189_v50 = vsel %vm2157_vm14, 1, %v18807_v30  ;;  %v2211_v46 = vrot.slane %v2167_v21, 1  ;;  %v2212_v51 = vrot.slane %v2183_v54, 1  ;;  %v2190_v13 = vsel %vm2158_vm8, 1, %v18807_v30 }
 0x1e1   : > { %v2191_v29 = vsel %vm2159_vm0, 1, %v18807_v30  ;;  %v2192_v7 = vsel %vm2160_vm2, 1, %v18807_v30  ;;  %vm18829_vm14 = vcmask 1046528   ;;  %v2214_v32 = vrot.slane %v10223_v61, 1  ;;  %v18836_v61 = vld [vmem:[#allocation92_spill] sm:$0xff] }
 0x1e2   : > { %v2195_v21 = vsel %vm18829_vm14, %v2193_v53, %v2194_v60  ;;  %vm18830_vm15 = vmmov %vm18829_vm14  ;;  %v2215_v24 = vrot.slane %v2184_v57, 1  ;;  %v2217_v53 = vrot.slane %v10229_v5, 1  ;;  %v2224_v39 = vrot.slane %v2187_v3, 1  ;;  %v18837_v5 = vld [vmem:[#allocation97_spill] sm:$0xff] }
 0x1e3   : > { %v2198_v15 = vsel %vm18830_vm15, %v2196_v55, %v2197_v8  ;;  %vm18831_vm5 = vmmov %vm18829_vm14  ;;  %vm2241_vm15 = vcmp.ne.s32.totalorder %v2195_v21, 0  ;;  %v2226_v54 = vrot.slane %v18837_v5, 1  ;;  %v2227_v57 = vrot.slane %v2188_v9, 1  ;;  %v18838_v55 = vld [vmem:[#allocation25_spill] sm:$0xff] }
 0x1e4   : > { %v2201_v6 = vsel %vm18831_vm5, %v2199_v48, %v2200_v28  ;;  %vm18832_vm8 = vmmov %vm18831_vm5  ;;  %v2218_v48 = vrot.slane %v10309_v36, 1  ;;  %v2220_v28 = vrot.slane %v10235_v35, 1  ;;  %v2229_v8 = vrot.slane %v18838_v55, 1  ;;  %v18839_v35 = vld [vmem:[#allocation28_spill] sm:$0xff]  ;;  %v18886_v55 = vld [vmem:[#allocation63_spill] sm:$0xff] }
 0x1e5   : > { %v2204_v56 = vsel %vm18832_vm8, %v2202_v11, %v2203_v12  ;;  %vm18833_vm11 = vmmov %vm18831_vm5  ;;  %v2221_v12 = vrot.slane %v2186_v20, 1  ;;  %v2230_v36 = vrot.slane %v2189_v50, 1  ;;  %v2232_v11 = vrot.slane %v18839_v35, 1 }
 0x1e6   : > { %v2207_v31 = vsel %vm18833_vm11, %v2205_v16, %v2206_v19  ;;  %vm18834_vm7 = vmmov %vm18831_vm5  ;;  %v2223_v19 = vrot.slane %v10241_v38, 1  ;;  %vm2243_vm11 = vcmp.ne.s32.totalorder %v2201_v6, 0  ;;  %v2233_v16 = vrot.slane %v2190_v13, 1  ;;  %v18841_v38 = vld [vmem:[#allocation33_spill] sm:$0xff] }
 0x1e7   : > { %v2210_v40 = vsel %vm18834_vm7, %v2208_v42, %v2209_v62  ;;  %vm18835_vm13 = vmmov %vm18831_vm5  ;;  %vm2242_vm5 = vcmp.ne.s32.totalorder %v2198_v15, 0  ;;  %vm2244_vm7 = vcmp.ne.s32.totalorder %v2204_v56, 0  ;;  %v2235_v3 = vrot.slane %v18841_v38, 1 }
 0x1e8   : > { %v2213_v60 = vsel %vm18835_vm13, %v2211_v46, %v2212_v51  ;;  %vm18840_vm13 = vmmov %vm18832_vm8  ;;  %v2236_v42 = vrot.slane %v2191_v29, 1  ;;  %vm2245_vm14 = vcmp.ne.s32.totalorder %v2207_v31, 0  ;;  %v18846_v46 = vld [vmem:[#allocation34_spill] sm:$0xff]  ;;  %v2239_v13 = vrot.slane %v2192_v7, 1  ;;  %v18849_v29 = vld [vmem:[#allocation93_spill] sm:$0xff] }
 0x1e9   : > { %v2216_v20 = vsel %vm18840_vm13, %v2214_v32, %v2215_v24  ;;  %vm10382_vm8 = vmand %vm2113_vm10, %vm2241_vm15  ;;  %v2219_v50 = vsel %vm18840_vm13, %v2217_v53, %v2218_v48  ;;  %v2238_v51 = vrot.slane %v18846_v46, 1  ;;  %vm2246_vm0 = vcmp.ne.s32.totalorder %v2210_v40, 0  ;;  %v18860_v32 = vld [vmem:[#allocation23_spill] sm:$0xff]  ;;  %v18866_v53 = vld [vmem:[#allocation96_spill] sm:$0xff] }
 0x1ea   : > { %vm10390_vm2 = vmand %vm2114_vm12, %vm2242_vm5  ;;  %v18847_v2 = vmov 0  ;;  %v18852_v7 = vmov 0  ;;  %v18857_v56 = vmov 0  ;;  %v18863_v31 = vmov 0  ;;  %v18920_v40 = vld [vmem:[#allocation83_spill] sm:$0xff] }
 0x1eb   : > { %vm10400_vm10 = vmand %vm2115_vm3, %vm2243_vm11 }
 0x1ec   : > { %v18848_v2 = vsel %vm10400_vm10, 4294967295, %v18847_v2  ;;  %vm18850_vm15 = vmmov %vm18840_vm13  ;;  %vm18875_vm10 = vcmp.ge.f32.partialorder %v10049_v63, %v10120_v25  ;;  %v18885_v63 = vld [vmem:[#allocation30_spill] sm:$0xff] }
 0x1ed   : > { %v2222_v41 = vsel %vm18850_vm15, %v2220_v28, %v2221_v12  ;;  %vm18851_vm5 = vmmov %vm18840_vm13  ;;  %vm2247_vm13 = vcmp.ne.s32.totalorder %v2213_v60, 0  ;;  %v18878_v60 = vld [vmem:[#allocation35_spill] sm:$0xff]  ;;  %v18879_v28 = vld [vmem:[#allocation61_spill] sm:$0xff] }
 0x1ee   : > { %v2225_v21 = vsel %vm18851_vm5, %v2223_v19, %v2224_v39  ;;  %vm10412_vm9 = vmand %vm2116_vm6, %vm2244_vm7  ;;  %vm2250_vm7 = vcmp.ne.s32.totalorder %v2222_v41, 0  ;;  %v2276_v12 = vrot.slane %v18879_v28, %v18878_v60  ;;  %v18880_v19 = vld [vmem:[#allocation62_spill] sm:$0xff]  ;;  %v18899_v41 = vld [vmem:[#allocation49_spill] sm:$0xff] }
 0x1ef   : > { %v18853_v7 = vsel %vm10412_vm9, 4294967295, %v18852_v7  ;;  %vm18854_vm3 = vmmov %vm18851_vm5  ;;  %vm18871_vm9 = vcmp.ne.s32.totalorder %v2216_v20, 0  ;;  %v2280_v39 = vrot.slane %v18880_v19, %v18878_v60  ;;  %v18892_v20 = vld [vmem:[#allocation45_spill] sm:$0xff] }
 0x1f0   : > { %v2228_v33 = vsel %vm18854_vm3, %v2226_v54, %v2227_v57  ;;  %vm18855_vm11 = vmmov %vm18854_vm3  ;;  %v2288_v57 = vrot.slane %v18885_v63, %v18878_v60  ;;  %v2304_v38 = vrot.slane %v18892_v20, %v18878_v60  ;;  %v18900_v28 = vld [vmem:[#allocation81_spill] sm:$0xff]  ;;  %v18926_v54 = vld [vmem:[#allocation75_spill] sm:$0xff] }
 0x1f1   : > { %v2231_v15 = vsel %vm18855_vm11, %v2229_v8, %v2230_v36  ;;  %vm18856_vm4 = vmmov %vm18854_vm3  ;;  %v2292_v8 = vrot.slane %v18886_v55, %v18878_v60  ;;  %v18887_v36 = vld [vmem:[#allocation43_spill] sm:$0xff]  ;;  %v2324_v19 = vrot.slane %v18900_v28, %v18878_v60  ;;  %v18936_v28 = vld [vmem:[#allocation78_spill] sm:$0xff] }
 0x1f2   : > { %v2234_v6 = vsel %vm18856_vm4, %v2232_v11, %v2233_v16  ;;  %vm10423_vm15 = vmand %vm2117_vm1, %vm2245_vm14  ;;  %vm18862_vm4 = vcmp.ge.f32.partialorder %v10034_v14, %v10105_v59  ;;  %vm18872_vm1 = vcmp.ge.f32.partialorder %v10045_v43, %v10115_v52  ;;  %v18881_v43 = vld [vmem:[#allocation41_spill] sm:$0xff]  ;;  %v2296_v35 = vrot.slane %v18887_v36, %v18878_v60  ;;  %v400_v11 = vld [vmem:[%s6737_s20 + $0x80] sm:$0xff] }
 0x1f3   : > { %v18858_v56 = vsel %vm10423_vm15, 4294967295, %v18857_v56  ;;  %vm18861_vm5 = vmmov %vm18854_vm3  ;;  %vm2249_vm3 = vcmp.ne.s32.totalorder %v2219_v50, 0  ;;  %vm2254_vm15 = vcmp.ne.s32.totalorder %v2234_v6, 0  ;;  %v2284_v5 = vrot.slane %v18881_v43, %v18878_v60  ;;  %v18894_v50 = vld [vmem:[#allocation47_spill] sm:$0xff] }
 0x1f4   : > { %v2237_v24 = vsel %vm18861_vm5, %v2235_v3, %v2236_v42  ;;  %vm10436_vm11 = vmand %vm18862_vm4, %vm2246_vm0  ;;  %vm2251_vm0 = vcmp.ne.s32.totalorder %v2225_v21, 0  ;;  %vm2252_vm4 = vcmp.ne.s32.totalorder %v2228_v33, 0  ;;  %v18893_v3 = vld [vmem:[#allocation46_spill] sm:$0xff]  ;;  %v2312_v46 = vrot.slane %v18894_v50, %v18878_v60  ;;  %v18901_v43 = vld [vmem:[#allocation79_spill] sm:$0xff] }
 0x1f5   : > { %v18864_v31 = vsel %vm10436_vm11, 4294967295, %v18863_v31  ;;  %vm18867_vm6 = vmmov %vm18861_vm5  ;;  %vm18868_vm5 = vcmp.ge.f32.partialorder %v10041_v0, %v10110_v49  ;;  %vm2253_vm11 = vcmp.ne.s32.totalorder %v2231_v15, 0  ;;  %v2308_v42 = vrot.slane %v18893_v3, %v18878_v60  ;;  %v18905_v33 = vld [vmem:[#allocation80_spill] sm:$0xff] }
 0x1f6   : > { %v2240_v48 = vsel %vm18867_vm6, %v2238_v51, %v2239_v13  ;;  %vm10449_vm12 = vmand %vm18868_vm5, %vm2247_vm13  ;;  %vm2255_vm6 = vcmp.ne.s32.totalorder %v2237_v24, 0  ;;  %v18898_v51 = vld [vmem:[#allocation48_spill] sm:$0xff]  ;;  %v2320_v21 = vrot.slane %v18899_v41, %v18878_v60  ;;  %v2328_v63 = vrot.slane %v18901_v43, %v18878_v60  ;;  %v18938_v43 = vld [vmem:[#allocation85_spill] sm:$0xff] }
 0x1f7   : > { %vm10457_vm14 = vmand %vm18872_vm1, %vm18871_vm9  ;;  %vm2256_vm9 = vcmp.ne.s32.totalorder %v2240_v48, 0  ;;  %vm18882_vm1 = vcmp.ge.f32.partialorder %v10053_v27, %v10125_v10  ;;  %v18891_v27 = vld [vmem:[#allocation94_spill] sm:$0xff]  ;;  %v2316_v13 = vrot.slane %v18898_v51, %v18878_v60  ;;  %v2332_v55 = vrot.slane %v18905_v33, %v18878_v60  ;;  %v18910_v15 = vld [vmem:[#allocation64_spill] sm:$0xff] }
 0x1f8   : > { %vm10464_vm13 = vmand %vm18875_vm10, %vm2249_vm3  ;;  %vm18888_vm10 = vcmp.ge.f32.partialorder %v10057_v47, %v18836_v61  ;;  %v2300_v16 = vrot.slane %v18891_v27, %v18878_v60  ;;  %v2337_v36 = vsel %vm10382_vm8, %v2276_v12, 0.0  ;;  %v2338_v27 = vsel %vm10390_vm2, %v2280_v39, 0.0  ;;  %v18922_v12 = vld [vmem:[#allocation36_spill] sm:$0xff] }
 0x1f9   : > { %vm10477_vm5 = vmand %vm18882_vm1, %vm2250_vm7  ;;  %vm18895_vm7 = vcmp.ge.f32.partialorder %v10061_v22, %v18849_v29  ;;  %vm18902_vm1 = vcmp.ge.f32.partialorder %v10065_v4, %v18859_v34  ;;  %v2336_v3 = vrot.slane %v18910_v15, %v18878_v60  ;;  %vm18912_vm8 = vnez %v18858_v56  ;;  %v18924_v39 = vld [vmem:[#allocation84_spill] sm:$0xff]  ;;  %v18940_v22 = vld [vmem:[#allocation86_spill] sm:$0xff] }
 0x1fa   : > { %vm10491_vm3 = vmand %vm18888_vm10, %vm2251_vm0  ;;  %vm18906_vm10 = vnez %v18848_v2  ;;  %v2341_v9 = vsel %vm18912_vm8, %v2292_v8, 0.0  ;;  %vm18913_vm2 = vnez %v18864_v31  ;;  %v2344_v6 = vsel %vm10457_vm14, %v2304_v38, 0.0  ;;  %v18928_v8 = vld [vmem:[#allocation76_spill] sm:$0xff]  ;;  %v18946_v4 = vld [vmem:[#allocation65_spill] sm:$0xff] }
 0x1fb   : > { %vm10507_vm0 = vmand %vm18895_vm7, %vm2252_vm4  ;;  %v2339_v20 = vsel %vm18906_vm10, %v2284_v5, 0.0  ;;  %vm18907_vm7 = vcmp.ge.f32.partialorder %v10069_v23, %v18860_v32  ;;  %v2342_v2 = vsel %vm18913_vm2, %v2296_v35, 0.0  ;;  %v2345_v56 = vsel %vm10464_vm13, %v2308_v42, 0.0  ;;  %v18930_v42 = vld [vmem:[#allocation27_spill] sm:$0xff]  ;;  %v18934_v51 = vld [vmem:[#allocation20_spill] sm:$0xff] }
 0x1fc   : > { %vm10523_vm4 = vmand %vm18902_vm1, %vm2253_vm11  ;;  %vm18911_vm1 = vnez %v18853_v7  ;;  %v2343_v7 = vsel %vm10449_vm12, %v2300_v16, 0.0  ;;  %v2346_v24 = vsel %vm10477_vm5, %v2312_v46, 0.0  ;;  %v2347_v31 = vsel %vm10491_vm3, %v2316_v13, 0.0  ;;  %v401_v16 = vld [vmem:[%s6737_s20 + $0x88] sm:$0xff]  ;;  %v18932_v46 = vld [vmem:[#allocation82_spill] sm:$0xff] }
 0x1fd   : > { %vm10539_vm11 = vmand %vm18907_vm7, %vm2254_vm15  ;;  %v2340_v62 = vsel %vm18911_vm1, %v2288_v57, 0.0  ;;  %vm18914_vm15 = vcmp.ge.f32.partialorder %v10073_v1, %v18865_v58  ;;  %vm18917_vm7 = vcmp.ge.f32.partialorder %v10077_v26, %v18866_v53  ;;  %v10578_v14 = vadd.f32 %v2337_v36, %v18920_v40  ;;  %v18942_v36 = vld [vmem:[#allocation87_spill] sm:$0xff] }
 0x1fe   : > { %vm10555_vm10 = vmand %vm18914_vm15, %vm2255_vm6  ;;  %v10581_v0 = vadd.f32 %v2338_v27, %v18922_v12  ;;  %v10584_v5 = vadd.f32 %v2339_v20, %v18924_v39  ;;  %v2348_v48 = vsel %vm10507_vm0, %v2320_v21, 0.0  ;;  %v2349_v26 = vsel %vm10523_vm4, %v2324_v19, 0.0  ;;  %v18944_v20 = vld [vmem:[#allocation88_spill] sm:$0xff]  ;;  %v10657_v12 = vld [vmem:[%s6737_s20 + $0x8] sm:$0xff] }
 0x1ff   : > { %vm10571_vm6 = vmand %vm18917_vm7, %vm2256_vm9  ;;  %18921 = vst [vmem:[#allocation38_spill] sm:$0xff] %v10578_v14  ;;  %v10591_v57 = vadd.f32 %v2340_v62, %v18926_v54  ;;  %v10594_v35 = vadd.f32 %v2341_v9, %v18928_v8  ;;  %v2350_v38 = vsel %vm10539_vm11, %v2328_v63, 0.0  ;;  %v10601_v50 = vadd.f32 %v2342_v2, %v18930_v42  ;;  %v18951_v2 = vld [vmem:[#allocation22_spill] sm:$0xff]  ;;  %v10671_v54 = vld [vmem:[%s6737_s20 + $0x18] sm:$0xff] }
 0x200   : > { %18923 = vst [vmem:[#allocation29_spill] sm:$0xff] %v10581_v0  ;;  %18925 = vst [vmem:[#allocation39_spill] sm:$0xff] %v10584_v5  ;;  %v10604_v47 = vadd.f32 %v2343_v7, %v18932_v46  ;;  %v10607_v13 = vsub.s32 6, %v18934_v51  ;;  %v2351_v41 = vsel %vm10555_vm10, %v2332_v55, 0.0  ;;  %v2352_v21 = vsel %vm10571_vm6, %v2336_v3, 0.0  ;;  %v18948_v3 = vld [vmem:[#allocation44_spill] sm:$0xff] }
 0x201   : > { %18927 = vst [vmem:[#allocation40_spill] sm:$0xff] %v10591_v57  ;;  %18929 = vst [vmem:[#allocation50_spill] sm:$0xff] %v10594_v35  ;;  %v10614_v19 = vadd.f32 %v2344_v6, %v18936_v28  ;;  %v10617_v63 = vadd.f32 %v2345_v56, %v18938_v43  ;;  %v10620_v33 = vadd.f32 %v2346_v24, %v18940_v22  ;;  %v10635_v9 = vsub.s32 7, %v18934_v51  ;;  %v18954_v6 = vld [vmem:[#allocation89_spill] sm:$0xff]  ;;  %v18956_v24 = vld [vmem:[#allocation90_spill] sm:$0xff] }
 0x202   : > { %18931 = vst [vmem:[#allocation32_spill] sm:$0xff] %v10601_v50  ;;  %18933 = vst [vmem:[#allocation51_spill] sm:$0xff] %v10604_v47  ;;  %v10623_v27 = vadd.f32 %v2347_v31, %v18942_v36  ;;  %v10626_v55 = vadd.f32 %v2348_v48, %v18944_v20  ;;  %v10629_v15 = vadd.f32 %v2349_v26, %v18946_v4  ;;  %v10650_v31 = vld [vmem:[%s6737_s20] sm:$0xff]  ;;  %v10664_v48 = vld [vmem:[%s6737_s20 + $0x10] sm:$0xff] }
 0x203   : > { %18935 = vst [vmem:[#allocation52_spill] sm:$0xff] %v10607_v13  ;;  %18937 = vst [vmem:[#allocation53_spill] sm:$0xff] %v10614_v19  ;;  %v10632_v62 = vadd.f32 %v2350_v38, %v18948_v3  ;;  %v10638_v23 = vrot.slane %v400_v11, %v18951_v2  ;;  %v10641_v7 = vrot.slane %v401_v16, %v18951_v2  ;;  %v10678_v11 = vld [vmem:[%s6737_s20 + $0x20] sm:$0xff]  ;;  %v10685_v38 = vld [vmem:[%s6737_s20 + $0x28] sm:$0xff] }
 0x204   : > { %18939 = vst [vmem:[#allocation54_spill] sm:$0xff] %v10617_v63  ;;  %18941 = vst [vmem:[#allocation55_spill] sm:$0xff] %v10620_v33  ;;  %v10644_v56 = vadd.f32 %v2351_v41, %v18954_v6  ;;  %v10647_v1 = vadd.f32 %v2352_v21, %v18956_v24  ;;  %v10654_v40 = vrot.slane %v10650_v31, %v10607_v13  ;;  %v10692_v46 = vld [vmem:[%s6737_s20 + $0x30] sm:$0xff]  ;;  %v10699_v41 = vld [vmem:[%s6737_s20 + $0x38] sm:$0xff] }
 0x205   : > { %18943 = vst [vmem:[#allocation56_spill] sm:$0xff] %v10623_v27  ;;  %18945 = vst [vmem:[#allocation57_spill] sm:$0xff] %v10626_v55  ;;  %v10661_v39 = vrot.slane %v10657_v12, %v10607_v13  ;;  %v10668_v26 = vrot.slane %v10664_v48, %v10607_v13  ;;  %v10675_v8 = vrot.slane %v10671_v54, %v10607_v13  ;;  %v10706_v28 = vld [vmem:[%s6737_s20 + $0x40] sm:$0xff]  ;;  %v10713_v22 = vld [vmem:[%s6737_s20 + $0x48] sm:$0xff] }
 0x206   : > { %18947 = vst [vmem:[#allocation58_spill] sm:$0xff] %v10629_v15  ;;  %18949 = vst [vmem:[#allocation59_spill] sm:$0xff] %v10632_v62  ;;  %v10682_v16 = vrot.slane %v10678_v11, %v10607_v13  ;;  %v10689_v42 = vrot.slane %v10685_v38, %v10607_v13  ;;  %v10696_v51 = vrot.slane %v10692_v46, %v10607_v13  ;;  %v10720_v20 = vld [vmem:[%s6737_s20 + $0x50] sm:$0xff]  ;;  %v10727_v3 = vld [vmem:[%s6737_s20 + $0x58] sm:$0xff] }
 0x207   : > { %18950 = vst [vmem:[#allocation60_spill] sm:$0xff] %v10635_v9  ;;  %18952 = vst [vmem:[#allocation66_spill] sm:$0xff] %v10638_v23  ;;  %v10703_v21 = vrot.slane %v10699_v41, %v10607_v13  ;;  %v10710_v43 = vrot.slane %v10706_v28, %v10607_v13  ;;  %v10717_v36 = vrot.slane %v10713_v22, %v10607_v13  ;;  %v10734_v24 = vld [vmem:[%s6737_s20 + $0x60] sm:$0xff]  ;;  %v10748_v2 = vld [vmem:[%s6737_s20 + $0x70] sm:$0xff] }
 0x208   : > { %18953 = vst [vmem:[#allocation42_spill] sm:$0xff] %v10641_v7  ;;  %18955 = vst [vmem:[#allocation67_spill] sm:$0xff] %v10644_v56  ;;  %v10724_v4 = vrot.slane %v10720_v20, %v10607_v13  ;;  %v10731_v6 = vrot.slane %v10727_v3, %v10607_v13  ;;  %v10738_v60 = vrot.slane %v10734_v24, %v10607_v13  ;;  %v10741_v7 = vld [vmem:[%s6737_s20 + $0x68] sm:$0xff]  ;;  %v10849_v56 = vld [vmem:[%s6720_s7 + $0xd8] sm:$0x1] }
 0x209   : > { %18957 = vst [vmem:[#allocation68_spill] sm:$0xff] %v10647_v1  ;;  %18958 = vst [vmem:[#allocation69_spill] sm:$0xff] %v10650_v31  ;;  %v10745_v23 = vrot.slane %v10741_v7, %v10607_v13  ;;  %vm2449_vm12 = vcmp.le.f32.partialorder %v10654_v40, %v10080_v45  ;;  %vm2450_vm14 = vcmp.le.f32.partialorder %v10661_v39, %v10085_v17  ;;  %v10829_v1 = vld [vmem:[%s6720_s7 + $0xb8] sm:$0x1]  ;;  %v10863_v31 = vld [vmem:[%s6720_s7 + $0xe8] sm:$0x1] }
 0x20a   : > { %18959 = vst [vmem:[#allocation70_spill] sm:$0xff] %v10654_v40  ;;  %18960 = vst [vmem:[#allocation71_spill] sm:$0xff] %v10657_v12  ;;  %vm2451_vm13 = vcmp.le.f32.partialorder %v10668_v26, %v10090_v18  ;;  %vm2452_vm9 = vcmp.le.f32.partialorder %v10675_v8, %v10095_v44  ;;  %vm2453_vm5 = vcmp.le.f32.partialorder %v10682_v16, %v10100_v37  ;;  %v2481_v12 = vsel %vm2449_vm12, 1, %v18807_v30  ;;  %v10868_v9 = vld [vmem:[%s6720_s7 + $0xf0] sm:$0x1] }
 0x20b   : > { %18961 = vst [vmem:[#allocation72_spill] sm:$0xff] %v10664_v48  ;;  %18962 = vst [vmem:[#allocation73_spill] sm:$0xff] %v10671_v54  ;;  %vm2454_vm3 = vcmp.le.f32.partialorder %v10689_v42, %v10105_v59  ;;  %vm2455_vm0 = vcmp.le.f32.partialorder %v10696_v51, %v10110_v49  ;;  %vm2456_vm4 = vcmp.le.f32.partialorder %v10703_v21, %v10115_v52  ;;  %v10844_v54 = vld [vmem:[%s6720_s7 + $0xd0] sm:$0x1]  ;;  %v10854_v48 = vld [vmem:[%s6720_s7 + $0xe0] sm:$0x1] }
 0x20c   : > { %18963 = vst [vmem:[#allocation74_spill] sm:$0xff] %v10678_v11  ;;  %18964 = vst [vmem:[#allocation77_spill] sm:$0xff] %v10685_v38  ;;  %vm2457_vm11 = vcmp.le.f32.partialorder %v10710_v43, %v10120_v25  ;;  %vm2458_vm1 = vcmp.le.f32.partialorder %v10717_v36, %v10125_v10  ;;  %vm2459_vm8 = vcmp.le.f32.partialorder %v10724_v4, %v18836_v61  ;;  %v10834_v38 = vld [vmem:[%s6720_s7 + $0xc0] sm:$0x1]  ;;  %v10839_v11 = vld [vmem:[%s6720_s7 + $0xc8] sm:$0x1] }
 0x20d   : > { %18965 = vst [vmem:[#allocation97_spill] sm:$0xff] %v10692_v46  ;;  %18966 = vst [vmem:[#allocation25_spill] sm:$0xff] %v10699_v41  ;;  %vm2462_vm10 = vcmp.le.f32.partialorder %v10745_v23, %v18860_v32  ;;  %v10819_v41 = vld [vmem:[%s6720_s7 + $0xa8] sm:$0x1]  ;;  %v10824_v46 = vld [vmem:[%s6720_s7 + $0xb0] sm:$0x1]  ;;  %vm2474_vm15 = vcmp.le.f32.partialorder %v10717_v36, %v10839_v11  ;;  %vm2478_vm7 = vcmp.le.f32.partialorder %v10745_v23, %v10863_v31 }
 0x20e   : > { %18967 = vst [vmem:[#allocation28_spill] sm:$0xff] %v10706_v28  ;;  %18968 = vst [vmem:[#allocation33_spill] sm:$0xff] %v10713_v22  ;;  %v10814_v28 = vld [vmem:[%s6720_s7 + $0xa0] sm:$0x1]  ;;  %v10873_v62 = vld [vmem:[%s6720_s7 + $0xf8] sm:$0x1]  ;;  %vm18991_vm12 = vcmp.le.f32.partialorder %v10731_v6, %v18849_v29 }
 0x20f   : > { %18969 = vst [vmem:[#allocation34_spill] sm:$0xff] %v10720_v20  ;;  %18970 = vst [vmem:[#allocation61_spill] sm:$0xff] %v10727_v3  ;;  %v10752_v20 = vrot.slane %v10748_v2, %v10607_v13  ;;  %v10755_v3 = vld [vmem:[%s6737_s20 + $0x78] sm:$0xff]  ;;  %v2482_v15 = vsel %vm2450_vm14, 1, %v18807_v30  ;;  %v2483_v55 = vsel %vm2451_vm13, 1, %v18807_v30  ;;  %v2484_v27 = vsel %vm2452_vm9, 1, %v18807_v30 }
 0x210   : > { %18971 = vst [vmem:[#allocation62_spill] sm:$0xff] %v10734_v24  ;;  %18972 = vst [vmem:[#allocation41_spill] sm:$0xff] %v10741_v7  ;;  %v10759_v22 = vrot.slane %v10755_v3, %v10607_v13  ;;  %v10804_v7 = vld [vmem:[%s6720_s7 + $0x90] sm:$0x1]  ;;  %v10809_v24 = vld [vmem:[%s6720_s7 + $0x98] sm:$0x1]  ;;  %vm18992_vm14 = vcmp.le.f32.partialorder %v10738_v60, %v18859_v34 }
 0x211   : > { %18973 = vst [vmem:[#allocation30_spill] sm:$0xff] %v10748_v2  ;;  %18974 = vst [vmem:[#allocation63_spill] sm:$0xff] %v10755_v3  ;;  %v10794_v3 = vld [vmem:[%s6720_s7 + $0x80] sm:$0x1]  ;;  %v10799_v2 = vld [vmem:[%s6720_s7 + $0x88] sm:$0x1]  ;;  %vm2479_vm6 = vcmp.le.f32.partialorder %v10752_v20, %v10868_v9  ;;  %vm18995_vm13 = vcmp.le.f32.partialorder %v10752_v20, %v18865_v58 }
 0x212   : > { %18975 = vst [vmem:[#allocation43_spill] sm:$0xff] %v10794_v3  ;;  %18976 = vst [vmem:[#allocation94_spill] sm:$0xff] %v10799_v2  ;;  %vm2480_vm2 = vcmp.le.f32.partialorder %v10759_v22, %v10873_v62  ;;  %v2485_v33 = vsel %vm2453_vm5, 1, %v18807_v30  ;;  %v2486_v63 = vsel %vm2454_vm3, 1, %v18807_v30  ;;  %v2487_v19 = vsel %vm2455_vm0, 1, %v18807_v30 }
 0x213   : > { %18977 = vst [vmem:[#allocation45_spill] sm:$0xff] %v10804_v7  ;;  %18978 = vst [vmem:[#allocation46_spill] sm:$0xff] %v10809_v24  ;;  %v2488_v47 = vsel %vm2456_vm4, 1, %v18807_v30  ;;  %v10909_v50 = vsel %vm2457_vm11, 1, %v18807_v30  ;;  %v10915_v35 = vsel %vm2458_vm1, 1, %v18807_v30  ;;  %v10921_v57 = vsel %vm2459_vm8, 1, %v18807_v30 }
 0x214   : > { %18979 = vst [vmem:[#allocation47_spill] sm:$0xff] %v10814_v28  ;;  %18980 = vst [vmem:[#allocation48_spill] sm:$0xff] %v10819_v41  ;;  %v10927_v5 = vsel %vm18991_vm12, 1, %v18807_v30  ;;  %v10933_v0 = vsel %vm18992_vm14, 1, %v18807_v30  ;;  %v10939_v14 = vsel %vm2462_vm10, 1, %v18807_v30  ;;  %v10945_v13 = vsel %vm18995_vm13, 1, %v18807_v30 }
 0x215   : > { %18981 = vst [vmem:[#allocation49_spill] sm:$0xff] %v10824_v46  ;;  %18982 = vst [vmem:[#allocation81_spill] sm:$0xff] %v10829_v1  ;;  %vm18997_vm9 = vcmp.le.f32.partialorder %v10759_v22, %v18866_v53  ;;  %vm18999_vm5 = vcmp.le.f32.partialorder %v10654_v40, %v10794_v3  ;;  %vm19000_vm3 = vcmp.le.f32.partialorder %v10661_v39, %v10799_v2 }
 0x216   : > { %18983 = vst [vmem:[#allocation79_spill] sm:$0xff] %v10834_v38  ;;  %18984 = vst [vmem:[#allocation80_spill] sm:$0xff] %v10839_v11  ;;  %v10951_v29 = vsel %vm18997_vm9, 1, %v18807_v30  ;;  %v2497_v34 = vsel %vm18999_vm5, 1, %v18807_v30  ;;  %v2498_v32 = vsel %vm19000_vm3, 1, %v18807_v30  ;;  %vm19001_vm0 = vcmp.le.f32.partialorder %v10668_v26, %v10804_v7 }
 0x217   : > { %18985 = vst [vmem:[#allocation64_spill] sm:$0xff] %v10844_v54  ;;  %18986 = vst [vmem:[#allocation83_spill] sm:$0xff] %v10849_v56  ;;  %v2499_v58 = vsel %vm19001_vm0, 1, %v18807_v30  ;;  %vm19002_vm4 = vcmp.le.f32.partialorder %v10675_v8, %v10809_v24  ;;  %vm19003_vm11 = vcmp.le.f32.partialorder %v10682_v16, %v10814_v28  ;;  %vm19004_vm1 = vcmp.le.f32.partialorder %v10689_v42, %v10819_v41 }
 0x218   : > { %18987 = vst [vmem:[#allocation36_spill] sm:$0xff] %v10854_v48  ;;  %18988 = vst [vmem:[#allocation84_spill] sm:$0xff] %v10863_v31  ;;  %v2500_v53 = vsel %vm19002_vm4, 1, %v18807_v30  ;;  %v2501_v3 = vsel %vm19003_vm11, 1, %v18807_v30  ;;  %v2502_v2 = vsel %vm19004_vm1, 1, %v18807_v30  ;;  %vm19005_vm8 = vcmp.le.f32.partialorder %v10696_v51, %v10824_v46 }
 0x219   : > { %18989 = vst [vmem:[#allocation75_spill] sm:$0xff] %v10868_v9  ;;  %18990 = vst [vmem:[#allocation76_spill] sm:$0xff] %v10873_v62  ;;  %v2503_v7 = vsel %vm19005_vm8, 1, %v18807_v30  ;;  %vm19006_vm10 = vcmp.le.f32.partialorder %v10703_v21, %v10829_v1  ;;  %vm19007_vm12 = vcmp.le.f32.partialorder %v10710_v43, %v10834_v38  ;;  %vm2433_vm14 = vcmp.ge.f32.partialorder %v10654_v40, %v10080_v45 }
 0x21a   : > { %18993 = vst [vmem:[#allocation27_spill] sm:$0xff] %v10933_v0  ;;  %18994 = vst [vmem:[#allocation82_spill] sm:$0xff] %v10939_v14  ;;  %v2504_v24 = vsel %vm19006_vm10, 1, %v18807_v30  ;;  %v10989_v28 = vsel %vm19007_vm12, 1, %v18807_v30  ;;  %v10997_v46 = vsel %vm2474_vm15, 1, %v18807_v30  ;;  %vm19008_vm13 = vcmp.le.f32.partialorder %v10724_v4, %v10844_v54 }
 0x21b   : > { %18996 = vst [vmem:[#allocation20_spill] sm:$0xff] %v10945_v13  ;;  %18998 = vst [vmem:[#allocation78_spill] sm:$0xff] %v10951_v29  ;;  %v11003_v1 = vsel %vm19008_vm13, 1, %v18807_v30  ;;  %v2513_v41 = vrot.slane %v2481_v12, 1  ;;  %v2514_v29 = vrot.slane %v2497_v34, 1  ;;  %vm2434_vm9 = vcmp.ge.f32.partialorder %v10661_v39, %v10085_v17 }
 0x21c   : > { %v2516_v38 = vrot.slane %v2482_v15, 1  ;;  %v2517_v13 = vrot.slane %v2498_v32, 1  ;;  %v2519_v45 = vrot.slane %v2483_v55, 1  ;;  %v2520_v40 = vrot.slane %v2499_v58, 1 }
 0x21d   : > { %vm2435_vm5 = vcmp.ge.f32.partialorder %v10668_v26, %v10090_v18  ;;  %v2522_v11 = vrot.slane %v2484_v27, 1  ;;  %v2523_v14 = vrot.slane %v2500_v53, 1  ;;  %v2525_v0 = vrot.slane %v2485_v33, 1  ;;  %v19041_v26 = vld [vmem:[#allocation23_spill] sm:$0xff] }
 0x21e   : > { %v2526_v61 = vrot.slane %v2501_v3, 1  ;;  %vm2436_vm15 = vcmp.ge.f32.partialorder %v10675_v8, %v10095_v44  ;;  %vm19009_vm3 = vcmp.le.f32.partialorder %v10731_v6, %v10849_v56  ;;  %vm19010_vm0 = vcmp.le.f32.partialorder %v10738_v60, %v10854_v48 }
 0x21f   : > { %v2508_v34 = vsel %vm19009_vm3, 1, %v18807_v30  ;;  %v2509_v32 = vsel %vm19010_vm0, 1, %v18807_v30  ;;  %v2528_v58 = vrot.slane %v2486_v63, 1  ;;  %v2529_v55 = vrot.slane %v2502_v2, 1 }
 0x220   : > { %vm2437_vm4 = vcmp.ge.f32.partialorder %v10682_v16, %v10100_v37  ;;  %v2531_v53 = vrot.slane %v2487_v19, 1  ;;  %v2532_v33 = vrot.slane %v2503_v7, 1  ;;  %v2534_v27 = vrot.slane %v2488_v47, 1  ;;  %v19098_v16 = vld [vmem:[#allocation29_spill] sm:$0xff] }
 0x221   : > { %v2535_v15 = vrot.slane %v2504_v24, 1  ;;  %v2510_v12 = vsel %vm2478_vm7, 1, %v18807_v30  ;;  %v2511_v63 = vsel %vm2479_vm6, 1, %v18807_v30  ;;  %v2512_v19 = vsel %vm2480_vm2, 1, %v18807_v30 }
 0x222   : > { %vm19011_vm1 = vcmask 1046528   ;;  %v2537_v30 = vrot.slane %v10909_v50, 1  ;;  %v2544_v50 = vrot.slane %v11003_v1, 1  ;;  %v19025_v1 = vld [vmem:[#allocation91_spill] sm:$0xff]  ;;  %v19044_v8 = vmov 0 }
 0x223   : > { %v2515_v47 = vsel %vm19011_vm1, %v2513_v41, %v2514_v29  ;;  %vm19012_vm10 = vmmov %vm19011_vm1  ;;  %v2538_v29 = vrot.slane %v10989_v28, 1  ;;  %v2540_v41 = vrot.slane %v10915_v35, 1  ;;  %v19019_v35 = vld [vmem:[#allocation92_spill] sm:$0xff]  ;;  %v2550_v28 = vrot.slane %v2509_v32, 1  ;;  %v19028_v32 = vld [vmem:[#allocation78_spill] sm:$0xff] }
 0x224   : > { %v2518_v2 = vsel %vm19012_vm10, %v2516_v38, %v2517_v13  ;;  %vm19013_vm12 = vmmov %vm19011_vm1  ;;  %vm2561_vm10 = vcmp.ne.s32.totalorder %v2515_v47, 0  ;;  %v2546_v13 = vrot.slane %v10927_v5, 1  ;;  %v19031_v47 = vld [vmem:[#allocation21_spill] sm:$0xff]  ;;  %v11195_v5 = vld [vmem:[%s6740_s8 + $0x30] sm:$0xff] }
 0x225   : > { %v2521_v7 = vsel %vm19013_vm12, %v2519_v45, %v2520_v40  ;;  %vm19014_vm7 = vmmov %vm19011_vm1  ;;  %v2547_v40 = vrot.slane %v2508_v34, 1  ;;  %v2556_v34 = vrot.slane %v2511_v63, 1  ;;  %19073 = vst [vmem:[#allocation89_spill] sm:$0xff] %v11195_v5 }
 0x226   : > { %v2524_v3 = vsel %vm19014_vm7, %v2522_v11, %v2523_v14  ;;  %vm19015_vm13 = vmmov %vm19011_vm1  ;;  %vm2562_vm7 = vcmp.ne.s32.totalorder %v2518_v2, 0  ;;  %v19020_v11 = vld [vmem:[#allocation27_spill] sm:$0xff] }
 0x227   : > { %v2527_v24 = vsel %vm19015_vm13, %v2525_v0, %v2526_v61  ;;  %vm19016_vm3 = vmmov %vm19011_vm1  ;;  %v2541_v61 = vrot.slane %v10997_v46, 1  ;;  %v2543_v0 = vrot.slane %v10921_v57, 1  ;;  %v2549_v38 = vrot.slane %v19020_v11, 1  ;;  %v19021_v46 = vld [vmem:[#allocation93_spill] sm:$0xff]  ;;  %v19023_v57 = vld [vmem:[#allocation20_spill] sm:$0xff] }
 0x228   : > { %v2530_v9 = vsel %vm19016_vm3, %v2528_v58, %v2529_v55  ;;  %vm19017_vm0 = vmmov %vm19011_vm1  ;;  %vm2563_vm3 = vcmp.ne.s32.totalorder %v2521_v7, 0  ;;  %v19022_v58 = vld [vmem:[#allocation82_spill] sm:$0xff]  ;;  %v2559_v11 = vrot.slane %v2512_v19, 1  ;;  %vm2565_vm13 = vcmp.ne.s32.totalorder %v2527_v24, 0  ;;  %v19042_v7 = vld [vmem:[#allocation24_spill] sm:$0xff] }
 0x229   : > { %v2533_v45 = vsel %vm19017_vm0, %v2531_v53, %v2532_v33  ;;  %vm19018_vm1 = vmmov %vm19017_vm0  ;;  %v2552_v55 = vrot.slane %v19022_v58, 1  ;;  %v2553_v53 = vrot.slane %v2510_v12, 1  ;;  %v2555_v33 = vrot.slane %v19023_v57, 1 }
 0x22a   : > { %v2536_v14 = vsel %vm19018_vm1, %v2534_v27, %v2535_v15  ;;  %vm2564_vm1 = vcmp.ne.s32.totalorder %v2524_v3, 0  ;;  %vm11069_vm12 = vmand %vm2433_vm14, %vm2561_vm10  ;;  %v2558_v15 = vrot.slane %v19028_v32, 1  ;;  %vm19032_vm14 = vcmask 1046528   ;;  %v19046_v3 = vld [vmem:[#allocation96_spill] sm:$0xff]  ;;  %v11200_v32 = vld [vmem:[%s6740_s8 + $0x38] sm:$0xff] }
 0x22b   : > { %vm11078_vm0 = vmand %vm2434_vm9, %vm2562_vm7  ;;  %v2539_v58 = vsel %vm19032_vm14, %v2537_v30, %v2538_v29  ;;  %vm2566_vm6 = vcmp.ne.s32.totalorder %v2530_v9, 0  ;;  %19074 = vst [vmem:[#allocation90_spill] sm:$0xff] %v11200_v32 }
 0x22c   : > { %vm19033_vm10 = vmmov %vm19032_vm14 }
 0x22d   : > { %v2542_v57 = vsel %vm19033_vm10, %v2540_v41, %v2541_v61  ;;  %vm11090_vm8 = vmand %vm2435_vm5, %vm2563_vm3  ;;  %vm19049_vm3 = vcmp.ge.f32.partialorder %v10689_v42, %v10105_v59  ;;  %v11148_v42 = vld [vmem:[%s6740_s8] sm:$0xff] }
 0x22e   : > { %vm19036_vm9 = vmmov %vm19033_vm10  ;;  %19059 = vst [vmem:[#allocation85_spill] sm:$0xff] %v11148_v42 }
 0x22f   : > { %v2545_v39 = vsel %vm19036_vm9, %v2543_v0, %v2544_v50  ;;  %vm19037_vm7 = vmmov %vm19036_vm9  ;;  %vm2568_vm9 = vcmp.ne.s32.totalorder %v2536_v14, 0  ;;  %v19060_v14 = vld [vmem:[#allocation52_spill] sm:$0xff]  ;;  %v11158_v50 = vld [vmem:[%s6740_s8 + $0x10] sm:$0xff] }
 0x230   : > { %v2548_v19 = vsel %vm19037_vm7, %v2546_v13, %v2547_v40  ;;  %vm19038_vm11 = vmmov %vm19037_vm7  ;;  %19062 = vst [vmem:[#allocation87_spill] sm:$0xff] %v11158_v50  ;;  %v11172_v40 = vld [vmem:[%s6740_s8 + $0x18] sm:$0xff] }
 0x231   : > { %v2551_v2 = vsel %vm19038_vm11, %v2549_v38, %v2550_v28  ;;  %vm11101_vm14 = vmand %vm2436_vm15, %vm2564_vm1  ;;  %vm2572_vm2 = vcmp.ne.s32.totalorder %v2548_v19, 0  ;;  %19067 = vst [vmem:[#allocation88_spill] sm:$0xff] %v11172_v40  ;;  %v2608_v38 = vrot.slane %v11172_v40, %v19060_v14  ;;  %v11177_v28 = vld [vmem:[%s6740_s8 + $0x20] sm:$0xff]  ;;  %v11246_v40 = vld [vmem:[%s6740_s8 + $0x68] sm:$0xff] }
 0x232   : > { %vm19043_vm10 = vmmov %vm19037_vm7  ;;  %vm2573_vm15 = vcmp.ne.s32.totalorder %v2551_v2, 0  ;;  %19068 = vst [vmem:[#allocation65_spill] sm:$0xff] %v11177_v28 }
 0x233   : > { %v2554_v29 = vsel %vm19043_vm10, %v2552_v55, %v2553_v53  ;;  %vm11114_vm11 = vmand %vm2437_vm4, %vm2565_vm13  ;;  %vm2570_vm4 = vcmp.ne.s32.totalorder %v2542_v57, 0  ;;  %vm2571_vm13 = vcmp.ne.s32.totalorder %v2545_v39, 0  ;;  %v2612_v55 = vrot.slane %v11177_v28, %v19060_v14  ;;  %v11190_v53 = vld [vmem:[%s6740_s8 + $0x28] sm:$0xff]  ;;  %v11228_v39 = vld [vmem:[%s6740_s8 + $0x58] sm:$0xff]  ;;  %19086 = vst [vmem:[#allocation70_spill] sm:$0xff] %v11246_v40 }
 0x234   : > { %v19045_v8 = vsel %vm11114_vm11, 4294967295, %v19044_v8  ;;  %vm19047_vm1 = vmmov %vm19037_vm7  ;;  %vm19052_vm11 = vcmp.ne.s32.totalorder %v2533_v45, 0  ;;  %v2596_v45 = vrot.slane %v11148_v42, %v19060_v14  ;;  %19072 = vst [vmem:[#allocation44_spill] sm:$0xff] %v11190_v53  ;;  %v11218_v57 = vld [vmem:[%s6740_s8 + $0x48] sm:$0xff]  ;;  %v2660_v63 = vsel %vm11101_vm14, %v2608_v38, 0.0  ;;  %v19100_v38 = vld [vmem:[#allocation39_spill] sm:$0xff] }
 0x235   : > { %v2557_v41 = vsel %vm19047_vm1, %v2555_v33, %v2556_v34  ;;  %vm19048_vm7 = vmmov %vm19047_vm1  ;;  %vm19053_vm1 = vcmp.ge.f32.partialorder %v10696_v51, %v10110_v49  ;;  %v11153_v51 = vld [vmem:[%s6740_s8 + $0x8] sm:$0xff]  ;;  %v2616_v33 = vrot.slane %v11190_v53, %v19060_v14  ;;  %v2620_v34 = vrot.slane %v11195_v5, %v19060_v14  ;;  %19079 = vst [vmem:[#allocation27_spill] sm:$0xff] %v11218_v57  ;;  %v11233_v53 = vld [vmem:[%s6740_s8 + $0x60] sm:$0xff] }
 0x236   : > { %v11122_v61 = vsel %vm19048_vm7, %v2558_v15, %v2559_v11  ;;  %vm11128_vm5 = vmand %vm19049_vm3, %vm2566_vm6  ;;  %vm19056_vm6 = vcmp.ge.f32.partialorder %v10703_v21, %v10115_v52  ;;  %19061 = vst [vmem:[#allocation86_spill] sm:$0xff] %v11153_v51  ;;  %v2600_v0 = vrot.slane %v11153_v51, %v19060_v14  ;;  %v2604_v21 = vrot.slane %v11158_v50, %v19060_v14  ;;  %v11205_v15 = vld [vmem:[%s6740_s8 + $0x40] sm:$0xff]  ;;  %v11689_v42 = vld [vmem:[%s6720_s7 + $0x38] sm:$0xff] }
 0x237   : > { %vm11136_vm7 = vmand %vm19053_vm1, %vm19052_vm11  ;;  %vm19063_vm1 = vcmp.ne.s32.totalorder %v2539_v58, 0  ;;  %vm19069_vm11 = vcmp.ge.f32.partialorder %v10717_v36, %v10125_v10  ;;  %v2624_v36 = vrot.slane %v11200_v32, %v19060_v14  ;;  %19075 = vst [vmem:[#allocation92_spill] sm:$0xff] %v11205_v15  ;;  %v2628_v11 = vrot.slane %v11205_v15, %v19060_v14  ;;  %v11223_v32 = vld [vmem:[%s6740_s8 + $0x50] sm:$0xff] }
 0x238   : > { %vm11143_vm3 = vmand %vm19056_vm6, %vm2568_vm9  ;;  %vm2575_vm9 = vcmp.ne.s32.totalorder %v2557_v41, 0  ;;  %vm19064_vm6 = vcmp.ge.f32.partialorder %v10710_v43, %v10120_v25  ;;  %v2632_v5 = vrot.slane %v11218_v57, %v19060_v14  ;;  %19080 = vst [vmem:[#allocation93_spill] sm:$0xff] %v11223_v32  ;;  %v2636_v15 = vrot.slane %v11223_v32, %v19060_v14  ;;  %v19114_v57 = vld [vmem:[#allocation54_spill] sm:$0xff] }
 0x239   : > { %vm11167_vm10 = vmand %vm19064_vm6, %vm19063_vm1  ;;  %19081 = vst [vmem:[#allocation82_spill] sm:$0xff] %v11228_v39  ;;  %v2644_v28 = vrot.slane %v11233_v53, %v19060_v14  ;;  %v2648_v32 = vrot.slane %v11246_v40, %v19060_v14  ;;  %v2658_v50 = vsel %vm11078_vm0, %v2600_v0, 0.0  ;;  %v2659_v19 = vsel %vm11090_vm8, %v2604_v21, 0.0  ;;  %v11622_v40 = vld [vmem:[%s6720_s7 + $0x18] sm:$0xff] }
 0x23a   : > { %vm11185_vm1 = vmand %vm19069_vm11, %vm2570_vm4  ;;  %vm19076_vm4 = vcmp.ge.f32.partialorder %v10724_v4, %v19019_v35  ;;  %v2640_v4 = vrot.slane %v11228_v39, %v19060_v14  ;;  %19082 = vst [vmem:[#allocation20_spill] sm:$0xff] %v11233_v53  ;;  %v2657_v39 = vsel %vm11069_vm12, %v2596_v45, 0.0  ;;  %v11265_v53 = vld [vmem:[%s6740_s8 + $0x70] sm:$0xff]  ;;  %v11270_v45 = vld [vmem:[%s6740_s8 + $0x78] sm:$0xff]  ;;  %vm19092_vm8 = vnez %v19045_v8 }
 0x23b   : > { %vm11213_vm11 = vmand %vm19076_vm4, %vm2571_vm13  ;;  %vm19083_vm13 = vcmp.ge.f32.partialorder %v10731_v6, %v19021_v46  ;;  %19090 = vst [vmem:[#allocation91_spill] sm:$0xff] %v11265_v53  ;;  %v2652_v27 = vrot.slane %v11265_v53, %v19060_v14  ;;  %v2656_v12 = vrot.slane %v11270_v45, %v19060_v14  ;;  %vm19093_vm12 = vcmp.ne.s32.totalorder %v2554_v29, 0  ;;  %v19096_v29 = vld [vmem:[#allocation38_spill] sm:$0xff]  ;;  %v19146_v14 = vld [vmem:[#allocation63_spill] sm:$0xff] }
 0x23c   : > { %vm11241_vm6 = vmand %vm19083_vm13, %vm2572_vm2  ;;  %vm19087_vm2 = vcmp.ge.f32.partialorder %v10738_v60, %v19031_v47  ;;  %19091 = vst [vmem:[#allocation78_spill] sm:$0xff] %v11270_v45  ;;  %v2661_v60 = vsel %vm19092_vm8, %v2612_v55, 0.0  ;;  %vm19094_vm0 = vcmp.ge.f32.partialorder %v10745_v23, %v19041_v26  ;;  %v2662_v2 = vsel %vm11128_vm5, %v2616_v33, 0.0  ;;  %v19106_v33 = vld [vmem:[#allocation50_spill] sm:$0xff] }
 0x23d   : > { %vm11260_vm4 = vmand %vm19087_vm2, %vm2573_vm15  ;;  %v2663_v0 = vsel %vm11136_vm7, %v2620_v34, 0.0  ;;  %v2664_v21 = vsel %vm11143_vm3, %v2624_v36, 0.0  ;;  %v2665_v30 = vsel %vm11167_vm10, %v2628_v11, 0.0  ;;  %vm19095_vm14 = vcmp.ge.f32.partialorder %v10752_v20, %v19042_v7  ;;  %v19112_v11 = vld [vmem:[#allocation53_spill] sm:$0xff]  ;;  %v11617_v45 = vld [vmem:[%s6720_s7 + $0x10] sm:$0xff] }
 0x23e   : > { %vm2590_vm15 = vmand %vm19094_vm0, %vm19093_vm12  ;;  %v2666_v23 = vsel %vm11185_vm1, %v2632_v5, 0.0  ;;  %v11297_v8 = vadd.f32 %v2657_v39, %v19096_v29  ;;  %v11300_v24 = vadd.f32 %v2658_v50, %v19098_v16  ;;  %v11303_v9 = vadd.f32 %v2659_v19, %v19100_v38  ;;  %v19104_v50 = vld [vmem:[#allocation40_spill] sm:$0xff]  ;;  %v19127_v16 = vld [vmem:[#allocation69_spill] sm:$0xff] }
 0x23f   : > { %vm2591_vm13 = vmand %vm19095_vm14, %vm2575_vm9  ;;  %vm19102_vm5 = vcmp.ne.s32.totalorder %v11122_v61, 0  ;;  %vm19103_vm10 = vcmp.ge.f32.partialorder %v10759_v22, %v19046_v3  ;;  %v2667_v20 = vsel %vm11213_vm11, %v2636_v15, 0.0  ;;  %v2668_v41 = vsel %vm11241_vm6, %v2640_v4, 0.0  ;;  %v19108_v61 = vld [vmem:[#allocation32_spill] sm:$0xff]  ;;  %v19110_v22 = vld [vmem:[#allocation51_spill] sm:$0xff] }
 0x240   : > { %19097 = vst [vmem:[#allocation21_spill] sm:$0xff] %v11297_v8  ;;  %19099 = vst [vmem:[#allocation23_spill] sm:$0xff] %v11300_v24  ;;  %v2669_v13 = vsel %vm11260_vm4, %v2644_v28, 0.0  ;;  %v11317_v55 = vadd.f32 %v2660_v63, %v19104_v50  ;;  %v2670_v43 = vsel %vm2590_vm15, %v2648_v32, 0.0  ;;  %v11320_v5 = vadd.f32 %v2661_v60, %v19106_v33  ;;  %v19116_v28 = vld [vmem:[#allocation55_spill] sm:$0xff]  ;;  %v19118_v19 = vld [vmem:[#allocation56_spill] sm:$0xff] }
 0x241   : > { %19101 = vst [vmem:[#allocation24_spill] sm:$0xff] %v11303_v9  ;;  %vm2592_vm7 = vmand %vm19103_vm10, %vm19102_vm5  ;;  %v11323_v34 = vadd.f32 %v2662_v2, %v19108_v61  ;;  %v11326_v36 = vadd.f32 %v2663_v0, %v19110_v22  ;;  %v2671_v15 = vsel %vm2591_vm13, %v2652_v27, 0.0  ;;  %v11329_v58 = vadd.f32 %v2664_v21, %v19112_v11  ;;  %v19120_v63 = vld [vmem:[#allocation57_spill] sm:$0xff]  ;;  %v19122_v2 = vld [vmem:[#allocation58_spill] sm:$0xff] }
 0x242   : > { %19105 = vst [vmem:[#allocation96_spill] sm:$0xff] %v11317_v55  ;;  %19107 = vst [vmem:[#allocation38_spill] sm:$0xff] %v11320_v5  ;;  %v11332_v39 = vadd.f32 %v2665_v30, %v19114_v57  ;;  %v11335_v4 = vadd.f32 %v2666_v23, %v19116_v28  ;;  %v2672_v32 = vsel %vm2592_vm7, %v2656_v12, 0.0  ;;  %v11338_v6 = vadd.f32 %v2667_v20, %v19118_v19  ;;  %v19124_v27 = vld [vmem:[#allocation59_spill] sm:$0xff]  ;;  %v19126_v21 = vld [vmem:[#allocation60_spill] sm:$0xff] }
 0x243   : > { %19109 = vst [vmem:[#allocation29_spill] sm:$0xff] %v11323_v34  ;;  %19111 = vst [vmem:[#allocation39_spill] sm:$0xff] %v11326_v36  ;;  %v11341_v60 = vadd.f32 %v2668_v41, %v19120_v63  ;;  %v11344_v0 = vadd.f32 %v2669_v13, %v19122_v2  ;;  %v11347_v29 = vadd.f32 %v2670_v43, %v19124_v27  ;;  %v19128_v23 = vld [vmem:[#allocation71_spill] sm:$0xff]  ;;  %v19129_v12 = vld [vmem:[#allocation72_spill] sm:$0xff] }
 0x244   : > { %19113 = vst [vmem:[#allocation40_spill] sm:$0xff] %v11329_v58  ;;  %19115 = vst [vmem:[#allocation50_spill] sm:$0xff] %v11332_v39  ;;  %v11351_v30 = vrot.slane %v19127_v16, %v19126_v21  ;;  %v11355_v38 = vrot.slane %v19128_v23, %v19126_v21  ;;  %v11359_v20 = vrot.slane %v19129_v12, %v19126_v21  ;;  %v19130_v41 = vld [vmem:[#allocation67_spill] sm:$0xff]  ;;  %v19132_v13 = vld [vmem:[#allocation73_spill] sm:$0xff] }
 0x245   : > { %19117 = vst [vmem:[#allocation32_spill] sm:$0xff] %v11335_v4  ;;  %19119 = vst [vmem:[#allocation51_spill] sm:$0xff] %v11338_v6  ;;  %v11362_v50 = vadd.f32 %v2671_v15, %v19130_v41  ;;  %v11366_v33 = vrot.slane %v19132_v13, %v19126_v21  ;;  %v19133_v43 = vld [vmem:[#allocation74_spill] sm:$0xff]  ;;  %v19134_v22 = vld [vmem:[#allocation77_spill] sm:$0xff]  ;;  %v19158_v4 = vmov 0  }
 0x246   : > { %19121 = vst [vmem:[#allocation53_spill] sm:$0xff] %v11341_v60  ;;  %19123 = vst [vmem:[#allocation54_spill] sm:$0xff] %v11344_v0  ;;  %v11370_v61 = vrot.slane %v19133_v43, %v19126_v21  ;;  %v11374_v11 = vrot.slane %v19134_v22, %v19126_v21  ;;  %v19135_v57 = vld [vmem:[#allocation68_spill] sm:$0xff]  ;;  %v19137_v19 = vld [vmem:[#allocation97_spill] sm:$0xff]  ;;  %vm2769_vm3 = vcmp.le.f32.partialorder %v11351_v30, %v19025_v1 }
 0x247   : > { %19125 = vst [vmem:[#allocation55_spill] sm:$0xff] %v11347_v29  ;;  %19131 = vst [vmem:[#allocation56_spill] sm:$0xff] %v11362_v50  ;;  %v11377_v28 = vadd.f32 %v2672_v32, %v19135_v57  ;;  %v11381_v63 = vrot.slane %v19137_v19, %v19126_v21  ;;  %v19138_v15 = vld [vmem:[#allocation25_spill] sm:$0xff]  ;;  %v19139_v27 = vld [vmem:[#allocation28_spill] sm:$0xff]  ;;  %vm2770_vm9 = vcmp.le.f32.partialorder %v11355_v38, %v10085_v17  ;;  %v2801_v39 = vsel %vm2769_vm3, 1, %v19158_v4 }
 0x248   : > { %v11385_v2 = vrot.slane %v19138_v15, %v19126_v21  ;;  %v11389_v16 = vrot.slane %v19139_v27, %v19126_v21  ;;  %v19140_v23 = vld [vmem:[#allocation33_spill] sm:$0xff]  ;;  %v19141_v41 = vld [vmem:[#allocation34_spill] sm:$0xff]  ;;  %vm2771_vm1 = vcmp.le.f32.partialorder %v11359_v20, %v10090_v18  ;;  %vm2772_vm11 = vcmp.le.f32.partialorder %v11366_v33, %v10095_v44  ;;  %v19155_v0 = vld [vmem:[#allocation79_spill] sm:$0xff] }
 0x249   : > { %19136 = vst [vmem:[#allocation57_spill] sm:$0xff] %v11377_v28  ;;  %v11393_v12 = vrot.slane %v19140_v23, %v19126_v21  ;;  %v11397_v32 = vrot.slane %v19141_v41, %v19126_v21  ;;  %v19142_v13 = vld [vmem:[#allocation61_spill] sm:$0xff]  ;;  %v19143_v22 = vld [vmem:[#allocation62_spill] sm:$0xff]  ;;  %v11417_v41 = vrot.slane %v19146_v14, %v19126_v21  ;;  %vm2773_vm6 = vcmp.le.f32.partialorder %v11370_v61, %v10100_v37  ;;  %v19147_v14 = vld [vmem:[#allocation43_spill] sm:$0xff] }
 0x24a   : > { %v11401_v43 = vrot.slane %v19142_v13, %v19126_v21  ;;  %v11405_v57 = vrot.slane %v19143_v22, %v19126_v21  ;;  %v19144_v19 = vld [vmem:[#allocation41_spill] sm:$0xff]  ;;  %v19145_v27 = vld [vmem:[#allocation30_spill] sm:$0xff]  ;;  %vm2774_vm2 = vcmp.le.f32.partialorder %v11374_v11, %v10105_v59  ;;  %vm2775_vm4 = vcmp.le.f32.partialorder %v11381_v63, %v10110_v49  ;;  %v19152_v28 = vld [vmem:[#allocation48_spill] sm:$0xff] }
 0x24b   : > { %v11409_v15 = vrot.slane %v19144_v19, %v19126_v21  ;;  %v11413_v23 = vrot.slane %v19145_v27, %v19126_v21  ;;  %vm2776_vm8 = vcmp.le.f32.partialorder %v11385_v2, %v10115_v52  ;;  %vm2777_vm12 = vcmp.le.f32.partialorder %v11389_v16, %v10120_v25  ;;  %v19148_v13 = vld [vmem:[#allocation94_spill] sm:$0xff]  ;;  %v19149_v22 = vld [vmem:[#allocation45_spill] sm:$0xff]  ;;  %v19151_v27 = vld [vmem:[#allocation47_spill] sm:$0xff] }
 0x24c   : > { %v19150_v19 = vld [vmem:[#allocation46_spill] sm:$0xff]  ;;  %v19153_v50 = vld [vmem:[#allocation49_spill] sm:$0xff]  ;;  %v19156_v60 = vld [vmem:[#allocation80_spill] sm:$0xff]  ;;  %vm2795_vm13 = vcmp.le.f32.partialorder %v11397_v32, %v10844_v54  ;;  %vm2796_vm5 = vcmp.le.f32.partialorder %v11401_v43, %v10849_v56  ;;  %vm2797_vm10 = vcmp.le.f32.partialorder %v11405_v57, %v10854_v48  ;;  %vm2800_vm15 = vcmp.le.f32.partialorder %v11417_v41, %v10873_v62 }
 0x24d   : > { %v19154_v29 = vld [vmem:[#allocation81_spill] sm:$0xff]  ;;  %vm2794_vm14 = vcmp.le.f32.partialorder %v11393_v12, %v19156_v60  ;;  %vm2798_vm7 = vcmp.le.f32.partialorder %v11409_v15, %v10863_v31  ;;  %v19157_v6 = vld [vmem:[#allocation75_spill] sm:$0xff]  ;;  %v2802_v58 = vsel %vm2770_vm9, 1, %v19158_v4  ;;  %v2803_v36 = vsel %vm2771_vm1, 1, %v19158_v4  ;;  %v11680_v54 = vld [vmem:[%s6720_s7 + $0x30] sm:$0xff] }
 0x24e   : > { %vm2799_vm0 = vcmp.le.f32.partialorder %v11413_v23, %v19157_v6  ;;  %v2804_v34 = vsel %vm2772_vm11, 1, %v19158_v4  ;;  %v2805_v5 = vsel %vm2773_vm6, 1, %v19158_v4  ;;  %v11507_v17 = vsel %vm2774_vm2, 1, %v19158_v4 }
 0x24f   : > { %v11513_v18 = vsel %vm2775_vm4, 1, %v19158_v4  ;;  %v11519_v44 = vsel %vm2776_vm8, 1, %v19158_v4  ;;  %v11525_v37 = vsel %vm2777_vm12, 1, %v19158_v4  ;;  %vm19159_vm3 = vcmp.le.f32.partialorder %v11393_v12, %v10125_v10 }
 0x250   : > { %v11531_v59 = vsel %vm19159_vm3, 1, %v19158_v4  ;;  %vm19160_vm9 = vcmp.le.f32.partialorder %v11397_v32, %v19019_v35  ;;  %vm19161_vm1 = vcmp.le.f32.partialorder %v11401_v43, %v19021_v46  ;;  %vm19162_vm11 = vcmp.le.f32.partialorder %v11405_v57, %v19031_v47 }
 0x251   : > { %v11537_v49 = vsel %vm19160_vm9, 1, %v19158_v4  ;;  %v11543_v52 = vsel %vm19161_vm1, 1, %v19158_v4  ;;  %v11549_v25 = vsel %vm19162_vm11, 1, %v19158_v4  ;;  %vm19163_vm6 = vcmp.le.f32.partialorder %v11409_v15, %v19041_v26 }
 0x252   : > { %v11555_v10 = vsel %vm19163_vm6, 1, %v19158_v4  ;;  %vm19164_vm2 = vcmp.le.f32.partialorder %v11351_v30, %v19147_v14  ;;  %vm19165_vm4 = vcmp.le.f32.partialorder %v11413_v23, %v19042_v7  ;;  %vm19166_vm8 = vcmp.le.f32.partialorder %v11417_v41, %v19046_v3 }
 0x253   : > { %v2817_v35 = vsel %vm19164_vm2, 1, %v19158_v4  ;;  %v11565_v46 = vsel %vm19165_vm4, 1, %v19158_v4  ;;  %v11571_v47 = vsel %vm19166_vm8, 1, %v19158_v4  ;;  %vm19167_vm12 = vcmp.le.f32.partialorder %v11355_v38, %v19148_v13 }
 0x254   : > { %v2818_v26 = vsel %vm19167_vm12, 1, %v19158_v4  ;;  %vm19168_vm3 = vcmp.le.f32.partialorder %v11359_v20, %v19149_v22  ;;  %vm19169_vm9 = vcmp.le.f32.partialorder %v11366_v33, %v19150_v19  ;;  %vm19170_vm1 = vcmp.le.f32.partialorder %v11370_v61, %v19151_v27 }
 0x255   : > { %v2819_v14 = vsel %vm19168_vm3, 1, %v19158_v4  ;;  %v2820_v7 = vsel %vm19169_vm9, 1, %v19158_v4  ;;  %v2821_v3 = vsel %vm19170_vm1, 1, %v19158_v4  ;;  %vm19171_vm11 = vcmp.le.f32.partialorder %v11374_v11, %v19152_v28 }
 0x256   : > { %v2822_v13 = vsel %vm19171_vm11, 1, %v19158_v4  ;;  %vm19172_vm6 = vcmp.le.f32.partialorder %v11381_v63, %v19153_v50  ;;  %vm2753_vm2 = vcmp.ge.f32.partialorder %v11351_v30, %v19025_v1  ;;  %vm19173_vm4 = vcmp.le.f32.partialorder %v11385_v2, %v19154_v29  ;;  %v11612_v50 = vld [vmem:[%s6720_s7 + $0x8] sm:$0xff] }
 0x257   : > { %v2823_v22 = vsel %vm19172_vm6, 1, %v19158_v4  ;;  %v11603_v19 = vsel %vm19173_vm4, 1, %v19158_v4  ;;  %vm19174_vm8 = vcmp.le.f32.partialorder %v11389_v16, %v19155_v0  ;;  %v2833_v27 = vrot.slane %v2801_v39, 1 }
 0x258   : > { %v11609_v28 = vsel %vm19174_vm8, 1, %v19158_v4  ;;  %v2834_v55 = vrot.slane %v2817_v35, 1  ;;  %vm2754_vm12 = vcmp.ge.f32.partialorder %v11355_v38, %v11612_v50  ;;  %v2836_v9 = vrot.slane %v2802_v58, 1 }
 0x259   : > { %v2837_v24 = vrot.slane %v2818_v26, 1  ;;  %v2839_v29 = vrot.slane %v2803_v36, 1  ;;  %v2840_v8 = vrot.slane %v2819_v14, 1  ;;  %vm2755_vm3 = vcmp.ge.f32.partialorder %v11359_v20, %v11617_v45  ;;  %v11640_v14 = vld [vmem:[%s6720_s7 + $0x20] sm:$0xff] }
 0x25a   : > { %v2842_v0 = vrot.slane %v2804_v34, 1  ;;  %v2843_v53 = vrot.slane %v2820_v7, 1  ;;  %v2845_v39 = vrot.slane %v2805_v5, 1  ;;  %v2846_v35 = vrot.slane %v2821_v3, 1  ;;  %v11658_v3 = vld [vmem:[%s6720_s7 + $0x28] sm:$0xff] }
 0x25b   : > { %vm2756_vm9 = vcmp.ge.f32.partialorder %v11366_v33, %v11622_v40  ;;  %v11630_v36 = vsel %vm2794_vm14, 1, %v19158_v4  ;;  %v11636_v34 = vsel %vm2795_vm13, 1, %v19158_v4  ;;  %v2848_v5 = vrot.slane %v11507_v17, 1  ;;  %v11785_v33 = vld [vmem:[%s6720_s7 + $0x68] sm:$0xff] }
 0x25c   : > { %v2849_v58 = vrot.slane %v2822_v13, 1  ;;  %vm2757_vm1 = vcmp.ge.f32.partialorder %v11370_v61, %v11640_v14  ;;  %v11648_v26 = vsel %vm2796_vm5, 1, %v19158_v4  ;;  %v11654_v7 = vsel %vm2797_vm10, 1, %v19158_v4  ;;  %19201 = vst [vmem:[#allocation71_spill] sm:$0xff] %v11785_v33  ;;  %v11804_v61 = vld [vmem:[%s6720_s7 + $0x78] sm:$0xff] }
 0x25d   : > { %v2851_v13 = vrot.slane %v11513_v18, 1  ;;  %v2852_v17 = vrot.slane %v2823_v22, 1  ;;  %v2830_v56 = vsel %vm2798_vm7, 1, %v19158_v4  ;;  %v11670_v48 = vsel %vm2799_vm0, 1, %v19158_v4  ;;  %19207 = vst [vmem:[#allocation67_spill] sm:$0xff] %v11804_v61 }
 0x25e   : > { %v11676_v22 = vsel %vm2800_vm15, 1, %v19158_v4  ;;  %vm19175_vm13 = vcmask 1046528   ;;  %v2855_v62 = vrot.slane %v11603_v19, 1  ;;  %v2861_v19 = vrot.slane %v11630_v36, 1 }
 0x25f   : > { %v2835_v18 = vsel %vm19175_vm13, %v2833_v27, %v2834_v55  ;;  %vm19176_vm10 = vmmov %vm19175_vm13  ;;  %v2854_v27 = vrot.slane %v11519_v44, 1  ;;  %v2863_v44 = vrot.slane %v11537_v49, 1  ;;  %v2870_v49 = vrot.slane %v11654_v7, 1  ;;  %v11790_v7 = vld [vmem:[%s6720_s7 + $0x70] sm:$0xff] }
 0x260   : > { %v2838_v31 = vsel %vm19176_vm10, %v2836_v9, %v2837_v24  ;;  %vm19177_vm7 = vmmov %vm19176_vm10  ;;  %v2857_v24 = vrot.slane %v11525_v37, 1  ;;  %v11698_v9 = vld [vmem:[%s6720_s7 + $0x40] sm:$0xff]  ;;  %vm2881_vm13 = vcmp.ne.s32.totalorder %v2835_v18, 0  ;;  %v2864_v37 = vrot.slane %v11636_v34, 1  ;;  %19202 = vst [vmem:[#allocation72_spill] sm:$0xff] %v11790_v7  ;;  %v19216_v18 = vld [vmem:[#allocation85_spill] sm:$0xff] }
 0x261   : > { %v2841_v6 = vsel %vm19177_vm7, %v2839_v29, %v2840_v8  ;;  %vm19178_vm0 = vmmov %vm19177_vm7  ;;  %v2858_v8 = vrot.slane %v11609_v28, 1  ;;  %v11706_v29 = vld [vmem:[%s6720_s7 + $0x48] sm:$0xff]  ;;  %vm2882_vm7 = vcmp.ne.s32.totalorder %v2838_v31, 0  ;;  %v2866_v28 = vrot.slane %v11543_v52, 1 }
 0x262   : > { %v2844_v60 = vsel %vm19178_vm0, %v2842_v0, %v2843_v53  ;;  %vm19179_vm11 = vmmov %vm19178_vm0  ;;  %v2860_v0 = vrot.slane %v11531_v59, 1  ;;  %v2867_v59 = vrot.slane %v11648_v26, 1  ;;  %v2872_v36 = vrot.slane %v11555_v10, 1 }
 0x263   : > { %v2847_v51 = vsel %vm19179_vm11, %v2845_v39, %v2846_v35  ;;  %vm19180_vm6 = vmmov %vm19178_vm0  ;;  %v11714_v39 = vld [vmem:[%s6720_s7 + $0x50] sm:$0xff]  ;;  %v2869_v35 = vrot.slane %v11549_v25, 1  ;;  %vm2883_vm11 = vcmp.ne.s32.totalorder %v2841_v6, 0  ;;  %v2873_v34 = vrot.slane %v2830_v56, 1 }
 0x264   : > { %v2850_v55 = vsel %vm19180_vm6, %v2848_v5, %v2849_v58  ;;  %vm19181_vm8 = vmmov %vm19178_vm0  ;;  %19182 = vst [vmem:[#allocation58_spill] sm:$0xff] %v11714_v39  ;;  %v11722_v5 = vld [vmem:[%s6720_s7 + $0x58] sm:$0xff]  ;;  %v2875_v58 = vrot.slane %v11565_v46, 1  ;;  %v2876_v26 = vrot.slane %v11670_v48, 1  ;;  %v2878_v30 = vrot.slane %v11571_v47, 1  ;;  %v11759_v48 = vld [vmem:[%s6720_s7 + $0x60] sm:$0xff] }
 0x265   : > { %v2853_v53 = vsel %vm19181_vm8, %v2851_v13, %v2852_v17  ;;  %19183 = vst [vmem:[#allocation59_spill] sm:$0xff] %v11722_v5  ;;  %vm2884_vm8 = vcmp.ne.s32.totalorder %v2844_v60, 0  ;;  %vm11732_vm0 = vmand %vm2753_vm2, %vm2881_vm13  ;;  %vm2886_vm2 = vcmp.ne.s32.totalorder %v2850_v55, 0  ;;  %v19194_v6 = vmov 0 }
 0x266   : > { %vm19186_vm10 = vmmov %vm19180_vm6  ;;  %vm2885_vm6 = vcmp.ne.s32.totalorder %v2847_v51, 0  ;;  %19192 = vst [vmem:[#allocation69_spill] sm:$0xff] %v11759_v48  ;;  %v19199_v60 = vmov 0  ;;  %v19205_v51 = vmov 0  ;;  %v2916_v55 = vrot.slane %v19216_v18, %v19126_v21 }
 0x267   : > { %v2856_v25 = vsel %vm19186_vm10, %v2854_v27, %v2855_v62  ;;  %vm11743_vm4 = vmand %vm2754_vm12, %vm2882_vm7  ;;  %v2879_v62 = vrot.slane %v11676_v22, 1  ;;  %v2865_v10 = vsel %vm19186_vm10, %v2863_v44, %v2864_v37  ;;  %vm2887_vm7 = vcmp.ne.s32.totalorder %v2853_v53, 0  ;;  %v19220_v27 = vld [vmem:[#allocation86_spill] sm:$0xff]  ;;  %v19227_v37 = vld [vmem:[#allocation44_spill] sm:$0xff] }
 0x268   : > { %vm19189_vm15 = vmmov %vm19186_vm10 }
 0x269   : > { %v2859_v1 = vsel %vm19189_vm15, %v2857_v24, %v2858_v8  ;;  %vm11754_vm13 = vmand %vm2755_vm3, %vm2883_vm11  ;;  %v2920_v24 = vrot.slane %v19220_v27, %v19126_v21  ;;  %v19222_v8 = vld [vmem:[#allocation88_spill] sm:$0xff]  ;;  %v19241_v27 = vld [vmem:[#allocation70_spill] sm:$0xff] }
 0x26a   : > { %vm19193_vm15 = vmmov %vm19186_vm10 }
 0x26b   : > { %v2862_v38 = vsel %vm19193_vm15, %v2860_v0, %v2861_v19  ;;  %vm11769_vm5 = vmand %vm2756_vm9, %vm2884_vm8  ;;  %vm2891_vm8 = vcmp.ne.s32.totalorder %v2865_v10, 0  ;;  %v2928_v0 = vrot.slane %v19222_v8, %v19126_v21  ;;  %v19240_v10 = vld [vmem:[#allocation20_spill] sm:$0xff]  ;;  %v2977_v8 = vsel %vm11732_vm0, %v2916_v55, 0.0 }
 0x26c   : > { %v19195_v6 = vsel %vm11769_vm5, 4294967295, %v19194_v6  ;;  %vm19196_vm3 = vmmov %vm19186_vm10  ;;  %vm2889_vm10 = vcmp.ne.s32.totalorder %v2859_v1, 0  ;;  %vm2890_vm9 = vcmp.ne.s32.totalorder %v2862_v38, 0  ;;  %vm19213_vm5 = vcmp.ge.f32.partialorder %v11385_v2, %v11689_v42  ;;  %v19221_v2 = vld [vmem:[#allocation87_spill] sm:$0xff]  ;;  %v19235_v1 = vld [vmem:[#allocation93_spill] sm:$0xff] }
 0x26d   : > { %v2868_v20 = vsel %vm19196_vm3, %v2866_v28, %v2867_v59  ;;  %vm19197_vm11 = vmmov %vm19196_vm3  ;;  %v2924_v53 = vrot.slane %v19221_v2, %v19126_v21  ;;  %v2936_v28 = vrot.slane %v19227_v37, %v19126_v21  ;;  %v19228_v59 = vld [vmem:[#allocation89_spill] sm:$0xff]  ;;  %v2964_v18 = vrot.slane %v19240_v10, %v19126_v21  ;;  %v19266_v19 = vld [vmem:[#allocation96_spill] sm:$0xff] }
 0x26e   : > { %v2871_v46 = vsel %vm19197_vm11, %v2869_v35, %v2870_v49  ;;  %vm19198_vm14 = vmmov %vm19196_vm3  ;;  %v2940_v35 = vrot.slane %v19228_v59, %v19126_v21  ;;  %v2968_v2 = vrot.slane %v19241_v27, %v19126_v21  ;;  %v2978_v37 = vsel %vm11743_vm4, %v2920_v24, 0.0  ;;  %v19270_v49 = vld [vmem:[#allocation38_spill] sm:$0xff]  ;;  %v11992_v27 = vld [vmem:[%s6737_s20 + $0xc0] sm:$0xff] }
 0x26f   : > { %v2874_v47 = vsel %vm19198_vm14, %v2872_v36, %v2873_v34  ;;  %vm11780_vm15 = vmand %vm2757_vm1, %vm2885_vm6  ;;  %vm19204_vm1 = vcmp.ge.f32.partialorder %v11374_v11, %v11658_v3  ;;  %v19233_v34 = vld [vmem:[#allocation92_spill] sm:$0xff]  ;;  %v2979_v59 = vsel %vm11754_vm13, %v2924_v53, 0.0  ;;  %vm19247_vm0 = vcmp.ge.f32.partialorder %v11409_v15, %v11785_v33  ;;  %19282 = vst [vmem:[#allocation85_spill] sm:$0xff] %v11992_v27  ;;  %v19295_v15 = vld [vmem:[#allocation54_spill] sm:$0xff] }
 0x270   : > { %v19200_v60 = vsel %vm11780_vm15, 4294967295, %v19199_v60  ;;  %vm19203_vm14 = vmmov %vm19196_vm3  ;;  %vm19212_vm15 = vcmp.ne.s32.totalorder %v2856_v25, 0  ;;  %v2948_v25 = vrot.slane %v19233_v34, %v19126_v21  ;;  %v19264_v53 = vld [vmem:[#allocation24_spill] sm:$0xff] }
 0x271   : > { %v2877_v13 = vsel %vm19203_vm14, %v2875_v58, %v2876_v26  ;;  %vm11799_vm6 = vmand %vm19204_vm1, %vm2886_vm2  ;;  %vm19209_vm14 = vcmp.ge.f32.partialorder %v11381_v63, %v11680_v54  ;;  %vm2892_vm2 = vcmp.ne.s32.totalorder %v2868_v20, 0  ;;  %vm2893_vm1 = vcmp.ne.s32.totalorder %v2871_v46, 0  ;;  %v19234_v58 = vld [vmem:[#allocation27_spill] sm:$0xff]  ;;  %v19250_v46 = vld [vmem:[#allocation78_spill] sm:$0xff] }
 0x272   : > { %v19206_v51 = vsel %vm11799_vm6, 4294967295, %v19205_v51  ;;  %vm19208_vm11 = vmmov %vm19196_vm3  ;;  %vm2894_vm6 = vcmp.ne.s32.totalorder %v2874_v47, 0  ;;  %v2952_v26 = vrot.slane %v19234_v58, %v19126_v21  ;;  %v19245_v20 = vld [vmem:[#allocation91_spill] sm:$0xff]  ;;  %v2976_v56 = vrot.slane %v19250_v46, %v19126_v21  ;;  %v11973_v58 = vld [vmem:[%s6737_s20 + $0xa8] sm:$0xff] }
 0x273   : > { %v2880_v17 = vsel %vm19208_vm11, %v2878_v30, %v2879_v62  ;;  %vm11813_vm12 = vmand %vm19209_vm14, %vm2887_vm7  ;;  %vm19217_vm7 = vcmp.ge.f32.partialorder %v11389_v16, %v11698_v9  ;;  %v19226_v16 = vld [vmem:[#allocation65_spill] sm:$0xff]  ;;  %v2956_v30 = vrot.slane %v19235_v1, %v19126_v21  ;;  %v19239_v62 = vld [vmem:[#allocation82_spill] sm:$0xff]  ;;  %vm19251_vm4 = vnez %v19200_v60  ;;  %19275 = vst [vmem:[#allocation61_spill] sm:$0xff] %v11973_v58 }
 0x274   : > { %vm11821_vm3 = vmand %vm19213_vm5, %vm19212_vm15  ;;  %vm2896_vm5 = vcmp.ne.s32.totalorder %v2880_v17, 0  ;;  %vm19223_vm15 = vcmp.ge.f32.partialorder %v11393_v12, %v11706_v29  ;;  %v2932_v44 = vrot.slane %v19226_v16, %v19126_v21  ;;  %v19232_v12 = vld [vmem:[#allocation90_spill] sm:$0xff]  ;;  %v2960_v38 = vrot.slane %v19239_v62, %v19126_v21  ;;  %v19262_v63 = vld [vmem:[#allocation23_spill] sm:$0xff] }
 0x275   : > { %vm11830_vm14 = vmand %vm19217_vm7, %vm2889_vm10  ;;  %vm19229_vm10 = vcmp.ge.f32.partialorder %v11397_v32, %v11714_v39  ;;  %v2944_v36 = vrot.slane %v19232_v12, %v19126_v21  ;;  %v2972_v16 = vrot.slane %v19245_v20, %v19126_v21  ;;  %vm19252_vm13 = vnez %v19206_v51  ;;  %v19277_v32 = vld [vmem:[#allocation39_spill] sm:$0xff]  ;;  %v19310_v21 = vld [vmem:[#allocation42_spill] sm:$0xff] }
 0x276   : > { %vm11843_vm11 = vmand %vm19223_vm15, %vm2890_vm9  ;;  %vm19236_vm9 = vcmp.ge.f32.partialorder %v11401_v43, %v11722_v5  ;;  %vm19242_vm15 = vcmp.ge.f32.partialorder %v11405_v57, %v11759_v48  ;;  %v2981_v31 = vsel %vm19251_vm4, %v2932_v44, 0.0  ;;  %v2983_v47 = vsel %vm11813_vm12, %v2940_v35, 0.0  ;;  %v11957_v44 = vld [vmem:[%s6737_s20 + $0x98] sm:$0xff]  ;;  %v19284_v43 = vld [vmem:[#allocation50_spill] sm:$0xff] }
 0x277   : > { %vm11857_vm7 = vmand %vm19229_vm10, %vm2891_vm8  ;;  %vm19246_vm10 = vnez %v19195_v6  ;;  %v2982_v6 = vsel %vm19252_vm13, %v2936_v28, 0.0  ;;  %v2984_v55 = vsel %vm11821_vm3, %v2944_v36, 0.0  ;;  %v2985_v60 = vsel %vm11830_vm14, %v2948_v25, 0.0  ;;  %19269 = vst [vmem:[#allocation25_spill] sm:$0xff] %v11957_v44  ;;  %v19272_v36 = vld [vmem:[#allocation29_spill] sm:$0xff]  ;;  %v11970_v25 = vld [vmem:[%s6737_s20 + $0xa0] sm:$0xff] }
 0x278   : > { %vm11873_vm8 = vmand %vm19236_vm9, %vm2892_vm2  ;;  %v2980_v52 = vsel %vm19246_vm10, %v2928_v0, 0.0  ;;  %vm19253_vm9 = vcmp.ne.s32.totalorder %v2877_v13, 0  ;;  %v2986_v51 = vsel %vm11843_vm11, %v2952_v26, 0.0  ;;  %v19257_v13 = vld [vmem:[#allocation21_spill] sm:$0xff]  ;;  %vm19259_vm12 = vcmp.ge.f32.partialorder %v11417_v41, %v11804_v61  ;;  %v11954_v41 = vld [vmem:[%s6737_s20 + $0x90] sm:$0xff]  ;;  %19274 = vst [vmem:[#allocation34_spill] sm:$0xff] %v11970_v25 }
 0x279   : > { %vm11889_vm2 = vmand %vm19242_vm15, %vm2893_vm1  ;;  %v11932_v22 = vadd.f32 %v2977_v8, %v19257_v13  ;;  %v2987_v11 = vsel %vm11857_vm7, %v2956_v30, 0.0  ;;  %v11945_v24 = vadd.f32 %v2978_v37, %v19262_v63  ;;  %v11948_v0 = vadd.f32 %v2979_v59, %v19264_v53  ;;  %19268 = vst [vmem:[#allocation97_spill] sm:$0xff] %v11954_v41  ;;  %v11976_v26 = vld [vmem:[%s6737_s20 + $0xb0] sm:$0xff]  ;;  %v11995_v8 = vld [vmem:[%s6737_s20 + $0xc8] sm:$0xff] }
 0x27a   : > { %vm11905_vm1 = vmand %vm19247_vm0, %vm2894_vm6  ;;  %vm19254_vm6 = vcmp.ge.f32.partialorder %v11413_v23, %v11790_v7  ;;  %v11951_v17 = vadd.f32 %v2980_v52, %v19266_v19  ;;  %v2988_v28 = vsel %vm11873_vm8, %v2960_v38, 0.0  ;;  %v2989_v35 = vsel %vm11889_vm2, %v2964_v18, 0.0  ;;  %19276 = vst [vmem:[#allocation62_spill] sm:$0xff] %v11976_v26  ;;  %v19279_v38 = vld [vmem:[#allocation40_spill] sm:$0xff]  ;;  %v11989_v18 = vld [vmem:[%s6737_s20 + $0xb8] sm:$0xff] }
 0x27b   : > { %vm11921_vm15 = vmand %vm19254_vm6, %vm19253_vm9  ;;  %19258 = vst [vmem:[#allocation73_spill] sm:$0xff] %v11932_v22  ;;  %v11964_v12 = vadd.f32 %v2981_v31, %v19270_v49  ;;  %v11967_v34 = vadd.f32 %v2982_v6, %v19272_v36  ;;  %v2990_v1 = vsel %vm11905_vm1, %v2968_v2, 0.0  ;;  %v11983_v62 = vadd.f32 %v2983_v47, %v19277_v32  ;;  %v19288_v59 = vld [vmem:[#allocation51_spill] sm:$0xff]  ;;  %v12009_v57 = vld [vmem:[%s6737_s20 + $0xd0] sm:$0xff] }
 0x27c   : > { %vm11938_vm10 = vmand %vm19259_vm12, %vm2896_vm5  ;;  %19263 = vst [vmem:[#allocation74_spill] sm:$0xff] %v11945_v24  ;;  %v2991_v30 = vsel %vm11921_vm15, %v2972_v16, 0.0  ;;  %v11986_v10 = vadd.f32 %v2984_v55, %v19279_v38  ;;  %v12000_v20 = vadd.f32 %v2985_v60, %v19284_v43  ;;  %v19286_v16 = vld [vmem:[#allocation32_spill] sm:$0xff]  ;;  %v12006_v52 = vadd.f32 %v2987_v11, %v19288_v59  ;;  %v12012_v46 = vld [vmem:[%s6737_s20 + $0xd8] sm:$0xff] }
 0x27d   : > { %19265 = vst [vmem:[#allocation77_spill] sm:$0xff] %v11948_v0  ;;  %19267 = vst [vmem:[#allocation68_spill] sm:$0xff] %v11951_v17  ;;  %v2992_v2 = vsel %vm11938_vm10, %v2976_v56, 0.0  ;;  %v12003_v37 = vadd.f32 %v2986_v51, %v19286_v16  ;;  %v12015_v31 = vld [vmem:[%s6737_s20 + $0xe0] sm:$0xff]  ;;  %v19293_v6 = vld [vmem:[#allocation53_spill] sm:$0xff]  ;;  %v12021_v56 = vadd.f32 %v2989_v35, %v19295_v15  ;;  %vm3090_vm11 = vcmp.le.f32.partialorder %v19310_v21, %v11612_v50 }
 0x27e   : > { %19271 = vst [vmem:[#allocation28_spill] sm:$0xff] %v11964_v12  ;;  %19273 = vst [vmem:[#allocation33_spill] sm:$0xff] %v11967_v34  ;;  %v12018_v47 = vadd.f32 %v2988_v28, %v19293_v6  ;;  %v19297_v55 = vld [vmem:[#allocation22_spill] sm:$0xff]  ;;  %v12032_v13 = vld [vmem:[%s6737_s20 + $0xe8] sm:$0xff] }
 0x27f   : > { %19278 = vst [vmem:[#allocation41_spill] sm:$0xff] %v11983_v62  ;;  %19280 = vst [vmem:[#allocation30_spill] sm:$0xff] %v11986_v10  ;;  %v12025_v60 = vrot.slane %v11954_v41, %v19297_v55  ;;  %v12029_v51 = vrot.slane %v11957_v44, %v19297_v55  ;;  %v12035_v23 = vld [vmem:[%s6737_s20 + $0xf0] sm:$0xff]  ;;  %v12038_v11 = vld [vmem:[%s6737_s20 + $0xf8] sm:$0xff]  ;;  %v12048_v35 = vrot.slane %v11970_v25, %v19297_v55 }
 0x280   : > { %19281 = vst [vmem:[#allocation63_spill] sm:$0xff] %v11989_v18  ;;  %19283 = vst [vmem:[#allocation86_spill] sm:$0xff] %v11995_v8  ;;  %v19301_v63 = vld [vmem:[#allocation55_spill] sm:$0xff]  ;;  %v19303_v19 = vld [vmem:[#allocation56_spill] sm:$0xff]  ;;  %v12052_v49 = vrot.slane %v11973_v58, %v19297_v55  ;;  %v12059_v38 = vrot.slane %v11976_v26, %v19297_v55  ;;  %v12071_v43 = vrot.slane %v11995_v8, %v19297_v55 }
 0x281   : > { %19285 = vst [vmem:[#allocation87_spill] sm:$0xff] %v12000_v20  ;;  %19287 = vst [vmem:[#allocation88_spill] sm:$0xff] %v12003_v37  ;;  %v12041_v53 = vadd.f32 %v2990_v1, %v19301_v63  ;;  %v12044_v28 = vadd.f32 %v2991_v30, %v19303_v19  ;;  %v19305_v36 = vld [vmem:[#allocation57_spill] sm:$0xff]  ;;  %v12063_v1 = vrot.slane %v11989_v18, %v19297_v55  ;;  %v12098_v19 = vld [vmem:[%s6720_s7] sm:$0xff] }
 0x282   : > { %19289 = vst [vmem:[#allocation65_spill] sm:$0xff] %v12006_v52  ;;  %19290 = vst [vmem:[#allocation44_spill] sm:$0xff] %v12009_v57  ;;  %v12055_v32 = vadd.f32 %v2992_v2, %v19305_v36  ;;  %v12067_v30 = vrot.slane %v11992_v27, %v19297_v55  ;;  %v12075_v2 = vrot.slane %v12009_v57, %v19297_v55  ;;  %v19309_v36 = vld [vmem:[#allocation66_spill] sm:$0xff]  ;;  %v19316_v57 = vld [vmem:[#allocation48_spill] sm:$0xff] }
 0x283   : > { %19291 = vst [vmem:[#allocation89_spill] sm:$0xff] %v12012_v46  ;;  %19292 = vst [vmem:[#allocation90_spill] sm:$0xff] %v12015_v31  ;;  %v12079_v16 = vrot.slane %v12012_v46, %v19297_v55  ;;  %v12083_v59 = vrot.slane %v12015_v31, %v19297_v55  ;;  %v12087_v6 = vrot.slane %v12032_v13, %v19297_v55  ;;  %v19314_v31 = vld [vmem:[#allocation46_spill] sm:$0xff]  ;;  %v19315_v46 = vld [vmem:[#allocation47_spill] sm:$0xff] }
 0x284   : > { %19294 = vst [vmem:[#allocation92_spill] sm:$0xff] %v12018_v47  ;;  %19296 = vst [vmem:[#allocation27_spill] sm:$0xff] %v12021_v56  ;;  %v12091_v15 = vrot.slane %v12035_v23, %v19297_v55  ;;  %v12095_v63 = vrot.slane %v12038_v11, %v19297_v55  ;;  %vm3089_vm3 = vcmp.le.f32.partialorder %v19309_v36, %v12098_v19  ;;  %v19317_v8 = vld [vmem:[#allocation49_spill] sm:$0xff]  ;;  %v19319_v18 = vld [vmem:[#allocation79_spill] sm:$0xff] }
 0x285   : > { %19298 = vst [vmem:[#allocation93_spill] sm:$0xff] %v12032_v13  ;;  %19299 = vst [vmem:[#allocation82_spill] sm:$0xff] %v12035_v23  ;;  %vm3091_vm14 = vcmp.le.f32.partialorder %v12025_v60, %v11617_v45  ;;  %vm3092_vm5 = vcmp.le.f32.partialorder %v12029_v51, %v11622_v40  ;;  %vm3093_vm7 = vcmp.le.f32.partialorder %v12048_v35, %v11640_v14  ;;  %v19312_v23 = vld [vmem:[#allocation94_spill] sm:$0xff]  ;;  %v19313_v13 = vld [vmem:[#allocation45_spill] sm:$0xff] }
 0x286   : > { %19300 = vst [vmem:[#allocation20_spill] sm:$0xff] %v12038_v11  ;;  %19302 = vst [vmem:[#allocation70_spill] sm:$0xff] %v12041_v53  ;;  %vm3094_vm8 = vcmp.le.f32.partialorder %v12052_v49, %v11658_v3  ;;  %vm3095_vm2 = vcmp.le.f32.partialorder %v12059_v38, %v11680_v54  ;;  %vm3096_vm0 = vcmp.le.f32.partialorder %v12063_v1, %v11689_v42  ;;  %v19311_v11 = vld [vmem:[#allocation43_spill] sm:$0xff]  ;;  %v19318_v27 = vld [vmem:[#allocation81_spill] sm:$0xff]  ;;  %v3122_v53 = vsel %vm3090_vm11, 1, %v19158_v4 }
 0x287   : > { %19304 = vst [vmem:[#allocation91_spill] sm:$0xff] %v12044_v28  ;;  %19306 = vst [vmem:[#allocation78_spill] sm:$0xff] %v12055_v32  ;;  %vm3097_vm1 = vcmp.le.f32.partialorder %v12067_v30, %v11698_v9  ;;  %vm3113_vm13 = vcmp.le.f32.partialorder %v12067_v30, %v19319_v18  ;;  %v19320_v26 = vld [vmem:[#allocation80_spill] sm:$0xff]  ;;  %v19322_v25 = vld [vmem:[#allocation83_spill] sm:$0xff]  ;;  %v3121_v28 = vsel %vm3089_vm3, 1, %v19158_v4  ;;  %v3123_v56 = vsel %vm3091_vm14, 1, %v19158_v4 }
 0x288   : > { %19307 = vst [vmem:[#allocation21_spill] sm:$0xff] %v12075_v2  ;;  %19308 = vst [vmem:[#allocation23_spill] sm:$0xff] %v12098_v19  ;;  %vm3114_vm9 = vcmp.le.f32.partialorder %v12071_v43, %v19320_v26  ;;  %v19321_v58 = vld [vmem:[#allocation64_spill] sm:$0xff]  ;;  %vm3116_vm15 = vcmp.le.f32.partialorder %v12079_v16, %v19322_v25  ;;  %v19325_v32 = vld [vmem:[#allocation75_spill] sm:$0xff]  ;;  %v3124_v52 = vsel %vm3092_vm5, 1, %v19158_v4  ;;  %v3125_v37 = vsel %vm3093_vm7, 1, %v19158_v4 }
 0x289   : > { %vm3115_vm6 = vcmp.le.f32.partialorder %v12075_v2, %v19321_v58  ;;  %v19323_v44 = vld [vmem:[#allocation36_spill] sm:$0xff]  ;;  %vm3119_vm4 = vcmp.le.f32.partialorder %v12091_v15, %v19325_v32  ;;  %v3126_v20 = vsel %vm3094_vm8, 1, %v19158_v4  ;;  %v3127_v10 = vsel %vm3095_vm2, 1, %v19158_v4 }
 0x28a   : > { %vm3117_vm12 = vcmp.le.f32.partialorder %v12083_v59, %v19323_v44  ;;  %v19324_v41 = vld [vmem:[#allocation84_spill] sm:$0xff]  ;;  %v12196_v62 = vsel %vm3096_vm0, 1, %v19158_v4  ;;  %v12202_v34 = vsel %vm3097_vm1, 1, %v19158_v4  ;;  %vm19327_vm3 = vcmp.le.f32.partialorder %v12071_v43, %v11706_v29 }
 0x28b   : > { %v19326_v47 = vld [vmem:[#allocation76_spill] sm:$0xff]  ;;  %v12208_v12 = vsel %vm19327_vm3, 1, %v19158_v4  ;;  %vm19328_vm11 = vcmp.le.f32.partialorder %v12075_v2, %v11714_v39  ;;  %vm19329_vm14 = vcmp.le.f32.partialorder %v12079_v16, %v11722_v5  ;;  %vm19330_vm5 = vcmp.le.f32.partialorder %v12083_v59, %v11759_v48 }
 0x28c   : > { %vm3120_vm10 = vcmp.le.f32.partialorder %v12095_v63, %v19326_v47  ;;  %v12214_v17 = vsel %vm19328_vm11, 1, %v19158_v4  ;;  %v12220_v0 = vsel %vm19329_vm14, 1, %v19158_v4  ;;  %v12226_v24 = vsel %vm19330_vm5, 1, %v19158_v4 }
 0x28d   : > { %19331 = vst [vmem:[#allocation24_spill] sm:$0xff] %v12226_v24  ;;  %vm19332_vm7 = vcmp.le.f32.partialorder %v12087_v6, %v11785_v33  ;;  %vm19334_vm8 = vcmp.le.f32.partialorder %v12091_v15, %v11790_v7  ;;  %vm19336_vm2 = vcmp.le.f32.partialorder %v12095_v63, %v11804_v61  ;;  %vm19338_vm0 = vcmp.le.f32.partialorder %v19309_v36, %v19311_v11 }
 0x28e   : > { %v12232_v22 = vsel %vm19332_vm7, 1, %v19158_v4  ;;  %v12238_v55 = vsel %vm19334_vm8, 1, %v19158_v4  ;;  %v12244_v5 = vsel %vm19336_vm2, 1, %v19158_v4  ;;  %v3137_v48 = vsel %vm19338_vm0, 1, %v19158_v4 }
 0x28f   : > { %19333 = vst [vmem:[#allocation96_spill] sm:$0xff] %v12232_v22  ;;  %19335 = vst [vmem:[#allocation38_spill] sm:$0xff] %v12238_v55  ;;  %vm19339_vm1 = vcmp.le.f32.partialorder %v19310_v21, %v19312_v23  ;;  %vm19340_vm3 = vcmp.le.f32.partialorder %v12025_v60, %v19313_v13  ;;  %vm19341_vm11 = vcmp.le.f32.partialorder %v12029_v51, %v19314_v31  ;;  %v3153_v18 = vrot.slane %v3121_v28, 1 }
 0x290   : > { %19337 = vst [vmem:[#allocation29_spill] sm:$0xff] %v12244_v5  ;;  %v3138_v33 = vsel %vm19339_vm1, 1, %v19158_v4  ;;  %v3139_v7 = vsel %vm19340_vm3, 1, %v19158_v4  ;;  %v3140_v61 = vsel %vm19341_vm11, 1, %v19158_v4  ;;  %vm19342_vm14 = vcmp.le.f32.partialorder %v12048_v35, %v19315_v46 }
 0x291   : > { %v3141_v11 = vsel %vm19342_vm14, 1, %v19158_v4  ;;  %vm19343_vm5 = vcmp.le.f32.partialorder %v12052_v49, %v19316_v57  ;;  %vm19344_vm7 = vcmp.le.f32.partialorder %v12059_v38, %v19317_v8  ;;  %vm19345_vm8 = vcmp.le.f32.partialorder %v12063_v1, %v19318_v27 }
 0x292   : > { %v3142_v23 = vsel %vm19343_vm5, 1, %v19158_v4  ;;  %v3143_v13 = vsel %vm19344_vm7, 1, %v19158_v4  ;;  %v3144_v31 = vsel %vm19345_vm8, 1, %v19158_v4  ;;  %v12282_v46 = vsel %vm3113_vm13, 1, %v19158_v4 }
 0x293   : > { %v12288_v57 = vsel %vm3114_vm9, 1, %v19158_v4  ;;  %v12294_v8 = vsel %vm3115_vm6, 1, %v19158_v4  ;;  %vm3073_vm2 = vcmp.ge.f32.partialorder %v19309_v36, %v12098_v19  ;;  %vm3074_vm0 = vcmp.ge.f32.partialorder %v19310_v21, %v11612_v50  ;;  %v12389_v21 = vld [vmem:[%s6740_s8 + $0x80] sm:$0xff] }
 0x294   : > { %v3154_v27 = vrot.slane %v3137_v48, 1  ;;  %v3156_v39 = vrot.slane %v3122_v53, 1  ;;  %v3157_v5 = vrot.slane %v3138_v33, 1  ;;  %vm3075_vm13 = vcmp.ge.f32.partialorder %v12025_v60, %v11617_v45  ;;  %19368 = vst [vmem:[#allocation39_spill] sm:$0xff] %v12389_v21 }
 0x295   : > { %v3159_v26 = vrot.slane %v3123_v56, 1  ;;  %v3160_v55 = vrot.slane %v3139_v7, 1  ;;  %v3162_v22 = vrot.slane %v3124_v52, 1  ;;  %v3163_v24 = vrot.slane %v3140_v61, 1 }
 0x296   : > { %vm3076_vm9 = vcmp.ge.f32.partialorder %v12029_v51, %v11622_v40  ;;  %v3165_v58 = vrot.slane %v3125_v37, 1  ;;  %v3166_v2 = vrot.slane %v3141_v11, 1  ;;  %v3168_v19 = vrot.slane %v3126_v20, 1 }
 0x297   : > { %v3169_v36 = vrot.slane %v3142_v23, 1  ;;  %vm3077_vm6 = vcmp.ge.f32.partialorder %v12048_v35, %v11640_v14  ;;  %v3148_v48 = vsel %vm3116_vm15, 1, %v19158_v4  ;;  %v3149_v33 = vsel %vm3117_vm12, 1, %v19158_v4  ;;  %v19356_v23 = vld [vmem:[#allocation96_spill] sm:$0xff] }
 0x298   : > { %v3171_v7 = vrot.slane %v3127_v10, 1  ;;  %v3172_v61 = vrot.slane %v3143_v13, 1  ;;  %vm3078_vm1 = vcmp.ge.f32.partialorder %v12052_v49, %v11658_v3  ;;  %vm19346_vm3 = vcmp.le.f32.partialorder %v12087_v6, %v19324_v41 }
 0x299   : > { %v12320_v20 = vsel %vm19346_vm3, 1, %v19158_v4  ;;  %v12326_v25 = vsel %vm3119_vm4, 1, %v19158_v4  ;;  %v3174_v44 = vrot.slane %v12196_v62, 1  ;;  %v3175_v37 = vrot.slane %v3144_v31, 1 }
 0x29a   : > { %vm3079_vm15 = vcmp.ge.f32.partialorder %v12059_v38, %v11680_v54  ;;  %v12335_v10 = vsel %vm3120_vm10, 1, %v19158_v4  ;;  %vm19347_vm12 = vcmask 1046528   ;;  %v3177_v32 = vrot.slane %v12202_v34, 1 }
 0x29b   : > { %v3155_v41 = vsel %vm19347_vm12, %v3153_v18, %v3154_v27  ;;  %vm19348_vm11 = vmmov %vm19347_vm12  ;;  %v3184_v34 = vrot.slane %v12294_v8, 1  ;;  %v3190_v11 = vrot.slane %v3149_v33, 1  ;;  %v3192_v13 = vrot.slane %v19356_v23, 1  ;;  %v19399_v23 = vld [vmem:[#allocation67_spill] sm:$0xff] }
 0x29c   : > { %v3158_v52 = vsel %vm19348_vm11, %v3156_v39, %v3157_v5  ;;  %vm19349_vm14 = vmmov %vm19348_vm11  ;;  %v3178_v39 = vrot.slane %v12282_v46, 1  ;;  %v3180_v5 = vrot.slane %v12208_v12, 1  ;;  %v3193_v31 = vrot.slane %v12320_v20, 1  ;;  %v19357_v46 = vld [vmem:[#allocation38_spill] sm:$0xff] }
 0x29d   : > { %v3161_v56 = vsel %vm19349_vm14, %v3159_v26, %v3160_v55  ;;  %vm19350_vm5 = vmmov %vm19348_vm11  ;;  %v3181_v55 = vrot.slane %v12288_v57, 1  ;;  %vm3201_vm14 = vcmp.ne.s32.totalorder %v3155_v41, 0  ;;  %v3196_v57 = vrot.slane %v12326_v25, 1  ;;  %v19370_v20 = vld [vmem:[#allocation58_spill] sm:$0xff]  ;;  %v19371_v25 = vld [vmem:[#allocation21_spill] sm:$0xff] }
 0x29e   : > { %v3164_v62 = vsel %vm19350_vm5, %v3162_v22, %v3163_v24  ;;  %vm19351_vm7 = vmmov %vm19350_vm5  ;;  %v3183_v24 = vrot.slane %v12214_v17, 1  ;;  %v3195_v17 = vrot.slane %v19357_v46, 1  ;;  %vm19364_vm10 = vcmask 1046528   ;;  %v12411_v41 = vld [vmem:[%s6740_s8 + $0x98] sm:$0xff] }
 0x29f   : > { %v3167_v53 = vsel %vm19351_vm7, %v3165_v58, %v3166_v2  ;;  %vm19352_vm8 = vmmov %vm19350_vm5  ;;  %v3186_v2 = vrot.slane %v12220_v0, 1  ;;  %vm3203_vm7 = vcmp.ne.s32.totalorder %v3161_v56, 0  ;;  %v19359_v0 = vld [vmem:[#allocation23_spill] sm:$0xff]  ;;  %v3179_v26 = vsel %vm19364_vm10, %v3177_v32, %v3178_v39  ;;  %v19365_v58 = vld [vmem:[#allocation29_spill] sm:$0xff]  ;;  %19377 = vst [vmem:[#allocation32_spill] sm:$0xff] %v12411_v41 }
 0x2a0   : > { %v3170_v28 = vsel %vm19352_vm8, %v3168_v19, %v3169_v36  ;;  %vm19353_vm3 = vmmov %vm19350_vm5  ;;  %vm3202_vm5 = vcmp.ne.s32.totalorder %v3158_v52, 0  ;;  %v3187_v19 = vrot.slane %v3148_v48, 1  ;;  %v19355_v36 = vld [vmem:[#allocation24_spill] sm:$0xff]  ;;  %vm3204_vm8 = vcmp.ne.s32.totalorder %v3164_v62, 0  ;;  %v12428_v39 = vld [vmem:[%s6740_s8 + $0xa8] sm:$0xff] }
 0x2a1   : > { %v3173_v47 = vsel %vm19353_vm3, %v3171_v7, %v3172_v61  ;;  %vm19354_vm11 = vmmov %vm19353_vm3  ;;  %v3189_v12 = vrot.slane %v19355_v36, 1  ;;  %vm3205_vm3 = vcmp.ne.s32.totalorder %v3167_v53, 0  ;;  %v3198_v48 = vrot.slane %v19365_v58, 1  ;;  %v12392_v61 = vld [vmem:[%s6740_s8 + $0x88] sm:$0xff]  ;;  %v12414_v52 = vld [vmem:[%s6740_s8 + $0xa0] sm:$0xff]  ;;  %19384 = vst [vmem:[#allocation53_spill] sm:$0xff] %v12428_v39 }
 0x2a2   : > { %v3176_v22 = vsel %vm19354_vm11, %v3174_v44, %v3175_v37  ;;  %vm12366_vm11 = vmand %vm3073_vm2, %vm3201_vm14  ;;  %v3199_v33 = vrot.slane %v12335_v10, 1  ;;  %vm3206_vm4 = vcmp.ne.s32.totalorder %v3170_v28, 0  ;;  %19369 = vst [vmem:[#allocation40_spill] sm:$0xff] %v12392_v61  ;;  %v19372_v44 = vld [vmem:[#allocation59_spill] sm:$0xff]  ;;  %v12408_v10 = vld [vmem:[%s6740_s8 + $0x90] sm:$0xff]  ;;  %v19395_v49 = vmov 0 }
 0x2a3   : > { %vm12373_vm12 = vmand %vm3074_vm0, %vm3202_vm5  ;;  %vm3207_vm5 = vcmp.ne.s32.totalorder %v3173_v47, 0  ;;  %19376 = vst [vmem:[#allocation50_spill] sm:$0xff] %v12408_v10  ;;  %vm3208_vm0 = vcmp.ne.s32.totalorder %v3176_v22, 0  ;;  %v19393_v36 = vld [vmem:[#allocation72_spill] sm:$0xff]  ;;  %v12481_v47 = vld [vmem:[%s6740_s8 + $0xd8] sm:$0xff] }
 0x2a4   : > { %vm12384_vm2 = vmand %vm3075_vm13, %vm3203_vm7  ;;  %19378 = vst [vmem:[#allocation51_spill] sm:$0xff] %v12414_v52  ;;  %v19442_v22 = vld [vmem:[#allocation68_spill] sm:$0xff] }
 0x2a5   : > { %vm19373_vm14 = vmmov %vm19364_vm10  ;;  %19403 = vst [vmem:[#allocation43_spill] sm:$0xff] %v12481_v47 }
 0x2a6   : > { %v3182_v37 = vsel %vm19373_vm14, %v3180_v5, %v3181_v55  ;;  %vm12403_vm13 = vmand %vm3076_vm9, %vm3204_vm8  ;;  %v12431_v5 = vld [vmem:[%s6740_s8 + $0xb0] sm:$0xff]  ;;  %v19386_v55 = vld [vmem:[#allocation69_spill] sm:$0xff]  ;;  %vm19400_vm8 = vcmp.ge.f32.partialorder %v12063_v1, %v11689_v42 }
 0x2a7   : > { %vm19379_vm7 = vmmov %vm19364_vm10  ;;  %19385 = vst [vmem:[#allocation54_spill] sm:$0xff] %v12431_v5  ;;  %v19409_v1 = vld [vmem:[#allocation22_spill] sm:$0xff] }
 0x2a8   : > { %v3185_v56 = vsel %vm19379_vm7, %v3183_v24, %v3184_v34  ;;  %vm19380_vm14 = vmmov %vm19379_vm7  ;;  %v3194_v24 = vsel %vm19379_vm7, %v3192_v13, %v3193_v31  ;;  %v12446_v34 = vld [vmem:[%s6740_s8 + $0xb8] sm:$0xff]  ;;  %v12484_v13 = vld [vmem:[%s6740_s8 + $0xe0] sm:$0xff]  ;;  %v3236_v31 = vrot.slane %v12389_v21, %v19409_v1  ;;  %v3240_v46 = vrot.slane %v12392_v61, %v19409_v1 }
 0x2a9   : > { %v3188_v32 = vsel %vm19380_vm14, %v3186_v2, %v3187_v19  ;;  %vm19381_vm10 = vmmov %vm19379_vm7  ;;  %19390 = vst [vmem:[#allocation55_spill] sm:$0xff] %v12446_v34  ;;  %v12449_v2 = vld [vmem:[%s6740_s8 + $0xc0] sm:$0xff]  ;;  %v19392_v19 = vld [vmem:[#allocation71_spill] sm:$0xff]  ;;  %vm19413_vm14 = vcmp.ge.f32.partialorder %v12071_v43, %v11706_v29  ;;  %v3244_v8 = vrot.slane %v12408_v10, %v19409_v1  ;;  %v3252_v58 = vrot.slane %v12414_v52, %v19409_v1 }
 0x2aa   : > { %v3191_v62 = vsel %vm19381_vm10, %v3189_v12, %v3190_v11  ;;  %vm12423_vm9 = vmand %vm3077_vm6, %vm3205_vm3  ;;  %19391 = vst [vmem:[#allocation56_spill] sm:$0xff] %v12449_v2  ;;  %v12465_v12 = vld [vmem:[%s6740_s8 + $0xc8] sm:$0xff]  ;;  %v12468_v11 = vld [vmem:[%s6740_s8 + $0xd0] sm:$0xff]  ;;  %v3268_v52 = vrot.slane %v12449_v2, %v19409_v1  ;;  %v3284_v2 = vrot.slane %v12484_v13, %v19409_v1 }
 0x2ab   : > { %vm19387_vm10 = vmmov %vm19379_vm7  ;;  %19397 = vst [vmem:[#allocation57_spill] sm:$0xff] %v12465_v12  ;;  %v3301_v27 = vsel %vm12423_vm9, %v3252_v58, 0.0  ;;  %v19452_v58 = vld [vmem:[#allocation87_spill] sm:$0xff] }
 0x2ac   : > { %v3197_v53 = vsel %vm19387_vm10, %v3195_v17, %v3196_v57  ;;  %vm12441_vm6 = vmand %vm3078_vm1, %vm3206_vm4  ;;  %19398 = vst [vmem:[#allocation42_spill] sm:$0xff] %v12468_v11  ;;  %vm19406_vm4 = vcmp.ge.f32.partialorder %v12067_v30, %v11698_v9  ;;  %v12499_v17 = vld [vmem:[%s6740_s8 + $0xe8] sm:$0xff]  ;;  %v12502_v57 = vld [vmem:[%s6740_s8 + $0xf0] sm:$0xff] }
 0x2ad   : > { %vm19394_vm10 = vmmov %vm19379_vm7  ;;  %vm3211_vm7 = vcmp.ne.s32.totalorder %v3185_v56, 0  ;;  %19404 = vst [vmem:[#allocation94_spill] sm:$0xff] %v12484_v13  ;;  %v3272_v56 = vrot.slane %v12465_v12, %v19409_v1  ;;  %v3298_v13 = vsel %vm12373_vm12, %v3240_v46, 0.0  ;;  %vm19431_vm12 = vcmp.ne.s32.totalorder %v3197_v53, 0  ;;  %v19436_v53 = vld [vmem:[#allocation73_spill] sm:$0xff] }
 0x2ae   : > { %v3200_v28 = vsel %vm19394_vm10, %v3198_v48, %v3199_v33  ;;  %vm12460_vm1 = vmand %vm3079_vm15, %vm3207_vm5  ;;  %vm3212_vm10 = vcmp.ne.s32.totalorder %v3188_v32, 0  ;;  %19410 = vst [vmem:[#allocation45_spill] sm:$0xff] %v12499_v17  ;;  %v12519_v48 = vld [vmem:[%s6740_s8 + $0xf8] sm:$0xff]  ;;  %v3256_v33 = vrot.slane %v12428_v39, %v19409_v1  ;;  %v3288_v32 = vrot.slane %v12499_v17, %v19409_v1  ;;  %v19446_v46 = vld [vmem:[#allocation33_spill] sm:$0xff] }
 0x2af   : > { %v19396_v49 = vsel %vm12460_vm1, 4294967295, %v19395_v49  ;;  %vm12476_vm15 = vmand %vm19400_vm8, %vm3208_vm0  ;;  %vm19405_vm1 = vcmp.ne.s32.totalorder %v3179_v26, 0  ;;  %19411 = vst [vmem:[#allocation46_spill] sm:$0xff] %v12502_v57  ;;  %vm19412_vm8 = vcmp.ne.s32.totalorder %v3182_v37, 0  ;;  %v3248_v26 = vrot.slane %v12411_v41, %v19409_v1 }
 0x2b0   : > { %vm12490_vm3 = vmand %vm19406_vm4, %vm19405_vm1  ;;  %19416 = vst [vmem:[#allocation47_spill] sm:$0xff] %v12519_v48  ;;  %vm19417_vm1 = vcmp.ge.f32.partialorder %v19371_v25, %v19370_v20  ;;  %v3260_v37 = vrot.slane %v12431_v5, %v19409_v1  ;;  %v3264_v41 = vrot.slane %v12446_v34, %v19409_v1  ;;  %v3276_v5 = vrot.slane %v12468_v11, %v19409_v1 }
 0x2b1   : > { %vm12508_vm5 = vmand %vm19413_vm14, %vm19412_vm8  ;;  %vm19420_vm14 = vcmp.ge.f32.partialorder %v12079_v16, %v19372_v44  ;;  %v3280_v34 = vrot.slane %v12481_v47, %v19409_v1  ;;  %vm19423_vm8 = vcmp.ne.s32.totalorder %v3191_v62, 0  ;;  %v3292_v11 = vrot.slane %v12502_v57, %v19409_v1 }
 0x2b2   : > { %vm12525_vm4 = vmand %vm19417_vm1, %vm3211_vm7  ;;  %vm19424_vm1 = vcmp.ge.f32.partialorder %v12083_v59, %v19386_v55  ;;  %v3297_v47 = vsel %vm12366_vm11, %v3236_v31, 0.0  ;;  %vm19428_vm0 = vcmp.ge.f32.partialorder %v12087_v6, %v19392_v19  ;;  %v3296_v62 = vrot.slane %v12519_v48, %v19409_v1 }
 0x2b3   : > { %vm12541_vm7 = vmand %vm19420_vm14, %vm3212_vm10  ;;  %vm19427_vm14 = vcmp.ne.s32.totalorder %v3194_v24, 0  ;;  %v3299_v57 = vsel %vm12384_vm2, %v3244_v8, 0.0  ;;  %v3300_v18 = vsel %vm12403_vm13, %v3248_v26, 0.0  ;;  %vm19432_vm11 = vcmp.ge.f32.partialorder %v12091_v15, %v19393_v36 }
 0x2b4   : > { %vm12557_vm10 = vmand %vm19424_vm1, %vm19423_vm8  ;;  %v3302_v6 = vsel %vm12441_vm6, %v3256_v33, 0.0  ;;  %vm19433_vm1 = vnez %v19396_v49  ;;  %v3304_v7 = vsel %vm12476_vm15, %v3264_v41, 0.0  ;;  %v3305_v60 = vsel %vm12490_vm3, %v3268_v52, 0.0  ;;  %v19438_v49 = vld [vmem:[#allocation74_spill] sm:$0xff]  ;;  %v19454_v33 = vld [vmem:[#allocation88_spill] sm:$0xff] }
 0x2b5   : > { %vm12573_vm8 = vmand %vm19428_vm0, %vm19427_vm14  ;;  %v3303_v24 = vsel %vm19433_vm1, %v3260_v37, 0.0  ;;  %vm19434_vm2 = vcmp.ne.s32.totalorder %v3200_v28, 0  ;;  %vm19435_vm13 = vcmp.ge.f32.partialorder %v12095_v63, %v19399_v23  ;;  %v3306_v15 = vsel %vm12508_vm5, %v3272_v56, 0.0  ;;  %v19440_v63 = vld [vmem:[#allocation77_spill] sm:$0xff]  ;;  %v19458_v56 = vld [vmem:[#allocation92_spill] sm:$0xff] }
 0x2b6   : > { %vm3231_vm0 = vmand %vm19432_vm11, %vm19431_vm12  ;;  %v3307_v51 = vsel %vm12525_vm4, %v3276_v5, 0.0  ;;  %v12606_v35 = vadd.f32 %v3297_v47, %v19436_v53  ;;  %v12609_v38 = vadd.f32 %v3298_v13, %v19438_v49  ;;  %v3308_v41 = vsel %vm12541_vm7, %v3280_v34, 0.0  ;;  %v19444_v13 = vld [vmem:[#allocation28_spill] sm:$0xff]  ;;  %v19470_v53 = vld [vmem:[#allocation78_spill] sm:$0xff] }
 0x2b7   : > { %vm3232_vm9 = vmand %vm19435_vm13, %vm19434_vm2  ;;  %v3309_v52 = vsel %vm12557_vm10, %v3284_v2, 0.0  ;;  %v12616_v28 = vadd.f32 %v3299_v57, %v19440_v63  ;;  %v12619_v1 = vadd.f32 %v3300_v18, %v19442_v22  ;;  %v3310_v5 = vsel %vm12573_vm8, %v3288_v32, 0.0  ;;  %v19448_v2 = vld [vmem:[#allocation41_spill] sm:$0xff]  ;;  %v19450_v57 = vld [vmem:[#allocation30_spill] sm:$0xff] }
 0x2b8   : > { %19437 = vst [vmem:[#allocation48_spill] sm:$0xff] %v12606_v35  ;;  %19439 = vst [vmem:[#allocation49_spill] sm:$0xff] %v12609_v38  ;;  %v3311_v47 = vsel %vm3231_vm0, %v3292_v11, 0.0  ;;  %v12624_v31 = vadd.f32 %v3301_v27, %v19444_v13  ;;  %v12627_v34 = vadd.f32 %v3302_v6, %v19446_v46  ;;  %v3312_v30 = vsel %vm3232_vm9, %v3296_v62, 0.0  ;;  %v19456_v11 = vld [vmem:[#allocation65_spill] sm:$0xff]  ;;  %v19460_v32 = vld [vmem:[#allocation27_spill] sm:$0xff] }
 0x2b9   : > { %19441 = vst [vmem:[#allocation81_spill] sm:$0xff] %v12616_v28  ;;  %19443 = vst [vmem:[#allocation79_spill] sm:$0xff] %v12619_v1  ;;  %v12630_v8 = vadd.f32 %v3303_v24, %v19448_v2  ;;  %v12633_v26 = vadd.f32 %v3304_v7, %v19450_v57  ;;  %v12636_v43 = vadd.f32 %v3305_v60, %v19452_v58  ;;  %v19462_v62 = vld [vmem:[#allocation70_spill] sm:$0xff]  ;;  %v19464_v27 = vld [vmem:[#allocation91_spill] sm:$0xff] }
 0x2ba   : > { %19445 = vst [vmem:[#allocation80_spill] sm:$0xff] %v12624_v31  ;;  %19447 = vst [vmem:[#allocation64_spill] sm:$0xff] %v12627_v34  ;;  %v12639_v37 = vadd.f32 %v3306_v15, %v19454_v33  ;;  %v12642_v25 = vadd.f32 %v3307_v51, %v19456_v11  ;;  %v12645_v16 = vadd.f32 %v3308_v41, %v19458_v56  ;;  %v12657_v24 = vld [vmem:[%s6737_s20 + $0x80] sm:$0xff]  ;;  %v19467_v7 = vld [vmem:[#allocation26_spill] sm:$0xff] }
 0x2bb   : > { %19449 = vst [vmem:[#allocation83_spill] sm:$0xff] %v12630_v8  ;;  %19451 = vst [vmem:[#allocation36_spill] sm:$0xff] %v12633_v26  ;;  %v12648_v59 = vadd.f32 %v3309_v52, %v19460_v32  ;;  %v12651_v18 = vadd.f32 %v3310_v5, %v19462_v62  ;;  %v12654_v6 = vadd.f32 %v3311_v47, %v19464_v27  ;;  %v12664_v15 = vld [vmem:[%s6737_s20 + $0x88] sm:$0xff]  ;;  %v19474_v5 = vld [vmem:[#allocation34_spill] sm:$0xff] }
 0x2bc   : > { %19453 = vst [vmem:[#allocation84_spill] sm:$0xff] %v12636_v43  ;;  %19455 = vst [vmem:[#allocation75_spill] sm:$0xff] %v12639_v37  ;;  %v12661_v60 = vrot.slane %v12657_v24, %v19467_v7  ;;  %v12668_v51 = vrot.slane %v12664_v15, %v19467_v7  ;;  %v12671_v49 = vadd.f32 %v3312_v30, %v19470_v53  ;;  %v19472_v41 = vld [vmem:[#allocation97_spill] sm:$0xff]  ;;  %v19476_v2 = vld [vmem:[#allocation62_spill] sm:$0xff] }
 0x2bd   : > { %19457 = vst [vmem:[#allocation76_spill] sm:$0xff] %v12642_v25  ;;  %19459 = vst [vmem:[#allocation24_spill] sm:$0xff] %v12645_v16  ;;  %v12675_v52 = vrot.slane %v19472_v41, %v19467_v7  ;;  %v19473_v63 = vld [vmem:[#allocation25_spill] sm:$0xff]  ;;  %v12683_v47 = vrot.slane %v19474_v5, %v19467_v7  ;;  %v12691_v30 = vrot.slane %v19476_v2, %v19467_v7  ;;  %v19477_v57 = vld [vmem:[#allocation63_spill] sm:$0xff] }
 0x2be   : > { %19461 = vst [vmem:[#allocation96_spill] sm:$0xff] %v12648_v59  ;;  %19463 = vst [vmem:[#allocation38_spill] sm:$0xff] %v12651_v18  ;;  %v12679_v22 = vrot.slane %v19473_v63, %v19467_v7  ;;  %v19475_v13 = vld [vmem:[#allocation61_spill] sm:$0xff]  ;;  %v12695_v58 = vrot.slane %v19477_v57, %v19467_v7  ;;  %v19479_v56 = vld [vmem:[#allocation86_spill] sm:$0xff]  ;;  %vm3409_vm6 = vcmp.le.f32.partialorder %v12661_v60, %v19359_v0 }
 0x2bf   : > { %19465 = vst [vmem:[#allocation66_spill] sm:$0xff] %v12654_v6  ;;  %19466 = vst [vmem:[#allocation29_spill] sm:$0xff] %v12657_v24  ;;  %v12687_v46 = vrot.slane %v19475_v13, %v19467_v7  ;;  %v19478_v33 = vld [vmem:[#allocation85_spill] sm:$0xff]  ;;  %v12703_v32 = vrot.slane %v19479_v56, %v19467_v7  ;;  %v19480_v62 = vld [vmem:[#allocation44_spill] sm:$0xff]  ;;  %vm3410_vm3 = vcmp.le.f32.partialorder %v12668_v51, %v11612_v50  ;;  %v3441_v26 = vsel %vm3409_vm6, 1, %v19158_v4 }
 0x2c0   : > { %19468 = vst [vmem:[#allocation21_spill] sm:$0xff] %v12661_v60  ;;  %19469 = vst [vmem:[#allocation22_spill] sm:$0xff] %v12664_v15  ;;  %v12699_v11 = vrot.slane %v19478_v33, %v19467_v7  ;;  %v12707_v27 = vrot.slane %v19480_v62, %v19467_v7  ;;  %v19482_v53 = vld [vmem:[#allocation89_spill] sm:$0xff]  ;;  %v19483_v13 = vld [vmem:[#allocation90_spill] sm:$0xff]  ;;  %vm3411_vm15 = vcmp.le.f32.partialorder %v12675_v52, %v11617_v45  ;;  %v3442_v8 = vsel %vm3410_vm3, 1, %v19158_v4 }
 0x2c1   : > { %19471 = vst [vmem:[#allocation73_spill] sm:$0xff] %v12671_v49  ;;  %v12711_v2 = vrot.slane %v19482_v53, %v19467_v7  ;;  %v12715_v57 = vrot.slane %v19483_v13, %v19467_v7  ;;  %v19484_v5 = vld [vmem:[#allocation93_spill] sm:$0xff]  ;;  %v19485_v63 = vld [vmem:[#allocation82_spill] sm:$0xff]  ;;  %v19486_v41 = vld [vmem:[#allocation20_spill] sm:$0xff]  ;;  %vm3412_vm5 = vcmp.le.f32.partialorder %v12679_v22, %v11622_v40  ;;  %vm3413_vm4 = vcmp.le.f32.partialorder %v12683_v47, %v11640_v14 }
 0x2c2   : > { %19481 = vst [vmem:[#allocation74_spill] sm:$0xff] %v12707_v27  ;;  %v12719_v33 = vrot.slane %v19484_v5, %v19467_v7  ;;  %v12723_v56 = vrot.slane %v19485_v63, %v19467_v7  ;;  %v12727_v62 = vrot.slane %v19486_v41, %v19467_v7  ;;  %vm3414_vm7 = vcmp.le.f32.partialorder %v12687_v46, %v11658_v3  ;;  %v12762_v41 = vld [vmem:[%s6720_s7 + $0x80] sm:$0x1]  ;;  %v12767_v63 = vld [vmem:[%s6720_s7 + $0x88] sm:$0x1] }
 0x2c3   : > { %vm3415_vm10 = vcmp.le.f32.partialorder %v12691_v30, %v11680_v54  ;;  %vm3416_vm14 = vcmp.le.f32.partialorder %v12695_v58, %v11689_v42  ;;  %vm3417_vm8 = vcmp.le.f32.partialorder %v12699_v11, %v11698_v9  ;;  %vm3418_vm12 = vcmp.le.f32.partialorder %v12703_v32, %v11706_v29  ;;  %19487 = vst [vmem:[#allocation77_spill] sm:$0xff] %v12762_v41  ;;  %v12772_v5 = vld [vmem:[%s6720_s7 + $0x90] sm:$0x1]  ;;  %v12777_v13 = vld [vmem:[%s6720_s7 + $0x98] sm:$0x1] }
 0x2c4   : > { %vm3419_vm11 = vcmp.le.f32.partialorder %v12707_v27, %v19370_v20  ;;  %vm3422_vm2 = vcmp.le.f32.partialorder %v12719_v33, %v19392_v19  ;;  %19488 = vst [vmem:[#allocation68_spill] sm:$0xff] %v12767_v63  ;;  %19489 = vst [vmem:[#allocation28_spill] sm:$0xff] %v12772_v5  ;;  %v12782_v53 = vld [vmem:[%s6720_s7 + $0xa0] sm:$0x1]  ;;  %v12787_v49 = vld [vmem:[%s6720_s7 + $0xa8] sm:$0x1]  ;;  %vm19498_vm6 = vcmp.le.f32.partialorder %v12711_v2, %v19372_v44 }
 0x2c5   : > { %19490 = vst [vmem:[#allocation33_spill] sm:$0xff] %v12777_v13  ;;  %19491 = vst [vmem:[#allocation41_spill] sm:$0xff] %v12782_v53  ;;  %v12792_v15 = vld [vmem:[%s6720_s7 + $0xb0] sm:$0x1]  ;;  %v12797_v24 = vld [vmem:[%s6720_s7 + $0xb8] sm:$0x1]  ;;  %vm19499_vm3 = vcmp.le.f32.partialorder %v12715_v57, %v19386_v55 }
 0x2c6   : > { %19492 = vst [vmem:[#allocation30_spill] sm:$0xff] %v12787_v49  ;;  %19493 = vst [vmem:[#allocation87_spill] sm:$0xff] %v12792_v15  ;;  %v12802_v6 = vld [vmem:[%s6720_s7 + $0xc0] sm:$0x1]  ;;  %v12807_v18 = vld [vmem:[%s6720_s7 + $0xc8] sm:$0x1] }
 0x2c7   : > { %19494 = vst [vmem:[#allocation88_spill] sm:$0xff] %v12797_v24  ;;  %19495 = vst [vmem:[#allocation65_spill] sm:$0xff] %v12802_v6  ;;  %v12812_v59 = vld [vmem:[%s6720_s7 + $0xd0] sm:$0x1]  ;;  %v12817_v16 = vld [vmem:[%s6720_s7 + $0xd8] sm:$0x1] }
 0x2c8   : > { %19496 = vst [vmem:[#allocation92_spill] sm:$0xff] %v12807_v18  ;;  %19497 = vst [vmem:[#allocation27_spill] sm:$0xff] %v12812_v59  ;;  %vm3436_vm9 = vcmp.le.f32.partialorder %v12711_v2, %v12817_v16  ;;  %v12822_v25 = vld [vmem:[%s6720_s7 + $0xe0] sm:$0x1]  ;;  %v12827_v37 = vld [vmem:[%s6720_s7 + $0xe8] sm:$0x1] }
 0x2c9   : > { %vm3437_vm0 = vcmp.le.f32.partialorder %v12715_v57, %v12822_v25  ;;  %vm3438_vm1 = vcmp.le.f32.partialorder %v12719_v33, %v12827_v37  ;;  %v12832_v43 = vld [vmem:[%s6720_s7 + $0xf0] sm:$0x1]  ;;  %v3443_v34 = vsel %vm3411_vm15, 1, %v19158_v4  ;;  %v12849_v31 = vld [vmem:[%s6720_s7 + $0xf8] sm:$0x1]  ;;  %v3444_v1 = vsel %vm3412_vm5, 1, %v19158_v4 }
 0x2ca   : > { %vm3440_vm13 = vcmp.le.f32.partialorder %v12727_v62, %v12849_v31  ;;  %v3445_v28 = vsel %vm3413_vm4, 1, %v19158_v4  ;;  %v3446_v38 = vsel %vm3414_vm7, 1, %v19158_v4  ;;  %v3447_v35 = vsel %vm3415_vm10, 1, %v19158_v4 }
 0x2cb   : > { %v12873_v48 = vsel %vm3416_vm14, 1, %v19158_v4  ;;  %v12879_v17 = vsel %vm3417_vm8, 1, %v19158_v4  ;;  %v12885_v12 = vsel %vm3418_vm12, 1, %v19158_v4  ;;  %v12891_v39 = vsel %vm3419_vm11, 1, %v19158_v4 }
 0x2cc   : > { %v12897_v10 = vsel %vm19498_vm6, 1, %v19158_v4  ;;  %v12903_v61 = vsel %vm19499_vm3, 1, %v19158_v4  ;;  %v12909_v21 = vsel %vm3422_vm2, 1, %v19158_v4  ;;  %vm19502_vm15 = vcmp.le.f32.partialorder %v12723_v56, %v19393_v36 }
 0x2cd   : > { %19500 = vst [vmem:[#allocation70_spill] sm:$0xff] %v12903_v61  ;;  %19501 = vst [vmem:[#allocation91_spill] sm:$0xff] %v12909_v21  ;;  %v12915_v7 = vsel %vm19502_vm15, 1, %v19158_v4  ;;  %vm19504_vm5 = vcmp.le.f32.partialorder %v12727_v62, %v19399_v23  ;;  %vm19506_vm4 = vcmp.le.f32.partialorder %v12661_v60, %v12762_v41  ;;  %vm19507_vm7 = vcmp.le.f32.partialorder %v12668_v51, %v12767_v63 }
 0x2ce   : > { %19503 = vst [vmem:[#allocation78_spill] sm:$0xff] %v12915_v7  ;;  %v12921_v44 = vsel %vm19504_vm5, 1, %v19158_v4  ;;  %v3457_v55 = vsel %vm19506_vm4, 1, %v19158_v4  ;;  %v3458_v19 = vsel %vm19507_vm7, 1, %v19158_v4  ;;  %vm19508_vm10 = vcmp.le.f32.partialorder %v12675_v52, %v12772_v5 }
 0x2cf   : > { %19505 = vst [vmem:[#allocation98_spill] sm:$0xff] %v12921_v44  ;;  %v3459_v36 = vsel %vm19508_vm10, 1, %v19158_v4  ;;  %vm19509_vm14 = vcmp.le.f32.partialorder %v12679_v22, %v12777_v13  ;;  %vm19510_vm8 = vcmp.le.f32.partialorder %v12683_v47, %v12782_v53  ;;  %vm19511_vm12 = vcmp.le.f32.partialorder %v12687_v46, %v12787_v49 }
 0x2d0   : > { %v3460_v23 = vsel %vm19509_vm14, 1, %v19158_v4  ;;  %v3461_v41 = vsel %vm19510_vm8, 1, %v19158_v4  ;;  %v3462_v63 = vsel %vm19511_vm12, 1, %v19158_v4  ;;  %vm19512_vm11 = vcmp.le.f32.partialorder %v12691_v30, %v12792_v15 }
 0x2d1   : > { %v3463_v5 = vsel %vm19512_vm11, 1, %v19158_v4  ;;  %vm19513_vm2 = vcmp.le.f32.partialorder %v12695_v58, %v12797_v24  ;;  %vm19514_vm6 = vcmp.le.f32.partialorder %v12699_v11, %v12802_v6  ;;  %vm19515_vm3 = vcmp.le.f32.partialorder %v12703_v32, %v12807_v18 }
 0x2d2   : > { %v3464_v13 = vsel %vm19513_vm2, 1, %v19158_v4  ;;  %v12959_v53 = vsel %vm19514_vm6, 1, %v19158_v4  ;;  %v12965_v49 = vsel %vm19515_vm3, 1, %v19158_v4  ;;  %vm19516_vm15 = vcmp.le.f32.partialorder %v12707_v27, %v12812_v59 }
 0x2d3   : > { %v12971_v15 = vsel %vm19516_vm15, 1, %v19158_v4  ;;  %vm3393_vm5 = vcmp.ge.f32.partialorder %v12661_v60, %v19359_v0  ;;  %vm3394_vm4 = vcmp.ge.f32.partialorder %v12668_v51, %v11612_v50  ;;  %v3473_v6 = vrot.slane %v3441_v26, 1  ;;  %v19540_v50 = vld [vmem:[#allocation74_spill] sm:$0xff]  ;;  %v19541_v51 = vld [vmem:[#allocation59_spill] sm:$0xff] }
 0x2d4   : > { %v3474_v24 = vrot.slane %v3457_v55, 1  ;;  %v3476_v20 = vrot.slane %v3442_v8, 1  ;;  %v3477_v44 = vrot.slane %v3458_v19, 1  ;;  %vm3395_vm7 = vcmp.ge.f32.partialorder %v12675_v52, %v11617_v45 }
 0x2d5   : > { %v3479_v18 = vrot.slane %v3443_v34, 1  ;;  %v3480_v7 = vrot.slane %v3459_v36, 1  ;;  %v3482_v21 = vrot.slane %v3444_v1, 1  ;;  %v3483_v61 = vrot.slane %v3460_v23, 1 }
 0x2d6   : > { %vm3396_vm10 = vcmp.ge.f32.partialorder %v12679_v22, %v11622_v40  ;;  %v3485_v59 = vrot.slane %v3445_v28, 1  ;;  %v3486_v27 = vrot.slane %v3461_v41, 1  ;;  %v3488_v0 = vrot.slane %v3446_v38, 1  ;;  %v19550_v40 = vld [vmem:[#allocation69_spill] sm:$0xff] }
 0x2d7   : > { %v3489_v60 = vrot.slane %v3462_v63, 1  ;;  %vm3397_vm14 = vcmp.ge.f32.partialorder %v12683_v47, %v11640_v14  ;;  %v3468_v55 = vsel %vm3436_vm9, 1, %v19158_v4  ;;  %v3469_v19 = vsel %vm3437_vm0, 1, %v19158_v4  ;;  %v19556_v14 = vld [vmem:[#allocation71_spill] sm:$0xff]  ;;  %v19557_v47 = vld [vmem:[#allocation72_spill] sm:$0xff] }
 0x2d8   : > { %v3491_v36 = vrot.slane %v3447_v35, 1  ;;  %v3492_v23 = vrot.slane %v3463_v5, 1  ;;  %v3470_v38 = vsel %vm3438_vm1, 1, %v19158_v4  ;;  %vm19517_vm12 = vcmp.le.f32.partialorder %v12723_v56, %v12832_v43 }
 0x2d9   : > { %v3471_v28 = vsel %vm19517_vm12, 1, %v19158_v4  ;;  %v3494_v1 = vrot.slane %v12873_v48, 1  ;;  %v3495_v34 = vrot.slane %v3464_v13, 1  ;;  %v3472_v35 = vsel %vm3440_vm13, 1, %v19158_v4 }
 0x2da   : > { %vm19518_vm9 = vcmask 1046528   ;;  %v3497_v13 = vrot.slane %v12879_v17, 1  ;;  %v3506_v17 = vrot.slane %v12897_v10, 1  ;;  %vm19535_vm13 = vcmask 1046528  }
 0x2db   : > { %v3475_v8 = vsel %vm19518_vm9, %v3473_v6, %v3474_v24  ;;  %vm19519_vm11 = vmmov %vm19518_vm9  ;;  %v19526_v24 = vld [vmem:[#allocation70_spill] sm:$0xff] }
 0x2dc   : > { %v3478_v26 = vsel %vm19519_vm11, %v3476_v20, %v3477_v44  ;;  %vm19520_vm1 = vmmov %vm19518_vm9  ;;  %v3498_v20 = vrot.slane %v12959_v53, 1  ;;  %v3500_v44 = vrot.slane %v12885_v12, 1  ;;  %v3510_v12 = vrot.slane %v3469_v19, 1  ;;  %v19528_v53 = vld [vmem:[#allocation78_spill] sm:$0xff] }
 0x2dd   : > { %v3481_v41 = vsel %vm19520_vm1, %v3479_v18, %v3480_v7  ;;  %vm19521_vm6 = vmmov %vm19520_vm1  ;;  %v3501_v18 = vrot.slane %v12965_v49, 1  ;;  %v3509_v7 = vrot.slane %v19526_v24, 1  ;;  %v19536_v19 = vld [vmem:[#allocation98_spill] sm:$0xff] }
 0x2de   : > { %v3484_v48 = vsel %vm19521_vm6, %v3482_v21, %v3483_v61  ;;  %vm19522_vm3 = vmmov %vm19520_vm1  ;;  %vm3522_vm6 = vcmp.ne.s32.totalorder %v3478_v26, 0  ;;  %v3504_v61 = vrot.slane %v12971_v15, 1  ;;  %v19583_v24 = vld [vmem:[#allocation54_spill] sm:$0xff] }
 0x2df   : > { %v3487_v63 = vsel %vm19522_vm3, %v3485_v59, %v3486_v27  ;;  %vm19523_vm15 = vmmov %vm19520_vm1  ;;  %v3507_v59 = vrot.slane %v3468_v55, 1  ;;  %vm3523_vm3 = vcmp.ne.s32.totalorder %v3481_v41, 0  ;;  %v3513_v27 = vrot.slane %v3470_v38, 1 }
 0x2e0   : > { %v3490_v5 = vsel %vm19523_vm15, %v3488_v0, %v3489_v60  ;;  %vm19524_vm12 = vmmov %vm19520_vm1  ;;  %v3503_v0 = vrot.slane %v12891_v39, 1  ;;  %v19527_v60 = vld [vmem:[#allocation91_spill] sm:$0xff]  ;;  %vm3524_vm15 = vcmp.ne.s32.totalorder %v3484_v48, 0  ;;  %v3499_v55 = vsel %vm19535_vm13, %v3497_v13, %v3498_v20  ;;  %v19590_v39 = vld [vmem:[#allocation42_spill] sm:$0xff] }
 0x2e1   : > { %v3493_v6 = vsel %vm19524_vm12, %v3491_v36, %v3492_v23  ;;  %vm19525_vm11 = vmmov %vm19520_vm1  ;;  %vm3521_vm1 = vcmp.ne.s32.totalorder %v3475_v8, 0  ;;  %v3512_v49 = vrot.slane %v19527_v60, 1  ;;  %v3515_v36 = vrot.slane %v19528_v53, 1  ;;  %v19539_v8 = vld [vmem:[#allocation58_spill] sm:$0xff] }
 0x2e2   : > { %v3496_v21 = vsel %vm19525_vm11, %v3494_v1, %v3495_v34  ;;  %v3516_v23 = vrot.slane %v3471_v28, 1  ;;  %vm3525_vm12 = vcmp.ne.s32.totalorder %v3487_v63, 0  ;;  %v19530_v1 = vld [vmem:[#allocation23_spill] sm:$0xff]  ;;  %vm13035_vm11 = vmand %vm3393_vm5, %vm3521_vm1  ;;  %v3518_v38 = vrot.slane %v19536_v19, 1 }
 0x2e3   : > { %vm13042_vm9 = vmand %vm3394_vm4, %vm3522_vm6  ;;  %v3519_v28 = vrot.slane %v3472_v35, 1  ;;  %vm3526_vm2 = vcmp.ne.s32.totalorder %v3490_v5, 0  ;;  %v19537_v34 = vmov 0  ;;  %v19543_v35 = vmov 0  ;;  %v19591_v19 = vld [vmem:[#allocation43_spill] sm:$0xff] }
 0x2e4   : > { %vm13052_vm5 = vmand %vm3395_vm7, %vm3523_vm3  ;;  %v19548_v48 = vmov 0  ;;  %v19554_v63 = vmov 0 }
 0x2e5   : > { %v19538_v34 = vsel %vm13052_vm5, 4294967295, %v19537_v34  ;;  %vm19542_vm6 = vmmov %vm19535_vm13  ;;  %vm3527_vm13 = vcmp.ne.s32.totalorder %v3493_v6, 0  ;;  %v19571_v6 = vld [vmem:[#allocation39_spill] sm:$0xff] }
 0x2e6   : > { %v3502_v26 = vsel %vm19542_vm6, %v3500_v44, %v3501_v18  ;;  %vm13065_vm0 = vmand %vm3396_vm10, %vm3524_vm15  ;;  %v19572_v18 = vld [vmem:[#allocation40_spill] sm:$0xff] }
 0x2e7   : > { %v19544_v35 = vsel %vm13065_vm0, 4294967295, %v19543_v35  ;;  %vm19545_vm7 = vmmov %vm19542_vm6 }
 0x2e8   : > { %v3505_v45 = vsel %vm19545_vm7, %v3503_v0, %v3504_v61  ;;  %vm19546_vm3 = vmmov %vm19542_vm6  ;;  %vm3529_vm7 = vcmp.ne.s32.totalorder %v3499_v55, 0  ;;  %v19578_v61 = vld [vmem:[#allocation51_spill] sm:$0xff] }
 0x2e9   : > { %v3508_v52 = vsel %vm19546_vm3, %v3506_v17, %v3507_v59  ;;  %vm19547_vm8 = vmmov %vm19546_vm3  ;;  %v19620_v59 = vld [vmem:[#allocation83_spill] sm:$0xff] }
 0x2ea   : > { %v3511_v41 = vsel %vm19547_vm8, %v3509_v7, %v3510_v12  ;;  %vm13076_vm6 = vmand %vm3397_vm14, %vm3525_vm12  ;;  %vm19553_vm8 = vcmp.ge.f32.partialorder %v12687_v46, %v11658_v3  ;;  %v19562_v3 = vld [vmem:[#allocation67_spill] sm:$0xff]  ;;  %vm19564_vm12 = vcmp.ge.f32.partialorder %v12695_v58, %v11689_v42 }
 0x2eb   : > { %v19549_v48 = vsel %vm13076_vm6, 4294967295, %v19548_v48  ;;  %vm19551_vm15 = vmmov %vm19546_vm3  ;;  %vm3533_vm14 = vcmp.ne.s32.totalorder %v3511_v41, 0  ;;  %vm19563_vm6 = vcmp.ne.s32.totalorder %v3496_v21, 0  ;;  %v19584_v12 = vld [vmem:[#allocation55_spill] sm:$0xff] }
 0x2ec   : > { %v3514_v22 = vsel %vm19551_vm15, %v3512_v49, %v3513_v27  ;;  %vm19552_vm1 = vmmov %vm19546_vm3  ;;  %vm3530_vm15 = vcmp.ne.s32.totalorder %v3502_v26, 0  ;;  %v19585_v49 = vld [vmem:[#allocation56_spill] sm:$0xff]  ;;  %v19597_v26 = vld [vmem:[#allocation46_spill] sm:$0xff] }
 0x2ed   : > { %v3517_v13 = vsel %vm19552_vm1, %v3515_v36, %v3516_v23  ;;  %vm13088_vm3 = vmand %vm19553_vm8, %vm3526_vm2  ;;  %vm3531_vm8 = vcmp.ne.s32.totalorder %v3505_v45, 0  ;;  %vm3534_vm0 = vcmp.ne.s32.totalorder %v3514_v22, 0  ;;  %v19589_v36 = vld [vmem:[#allocation57_spill] sm:$0xff]  ;;  %v19601_v41 = vld [vmem:[#allocation47_spill] sm:$0xff] }
 0x2ee   : > { %v19555_v63 = vsel %vm13088_vm3, 4294967295, %v19554_v63  ;;  %vm19558_vm10 = vmmov %vm19552_vm1  ;;  %vm19559_vm1 = vcmp.ge.f32.partialorder %v12691_v30, %v11680_v54  ;;  %vm3532_vm3 = vcmp.ne.s32.totalorder %v3508_v52, 0  ;;  %vm3535_vm5 = vcmp.ne.s32.totalorder %v3517_v13, 0  ;;  %v19570_v30 = vld [vmem:[#allocation26_spill] sm:$0xff]  ;;  %v19608_v13 = vld [vmem:[#allocation48_spill] sm:$0xff] }
 0x2ef   : > { %v3520_v20 = vsel %vm19558_vm10, %v3518_v38, %v3519_v28  ;;  %vm13101_vm4 = vmand %vm19559_vm1, %vm3527_vm13  ;;  %vm19567_vm13 = vcmp.ge.f32.partialorder %v12699_v11, %v11698_v9  ;;  %v3556_v44 = vrot.slane %v19571_v6, %v19570_v30  ;;  %v3560_v21 = vrot.slane %v19572_v18, %v19570_v30  ;;  %v19576_v9 = vld [vmem:[#allocation50_spill] sm:$0xff]  ;;  %v19577_v11 = vld [vmem:[#allocation32_spill] sm:$0xff] }
 0x2f0   : > { %vm13111_vm10 = vmand %vm19564_vm12, %vm19563_vm6  ;;  %vm3536_vm2 = vcmp.ne.s32.totalorder %v3520_v20, 0  ;;  %vm19573_vm6 = vcmp.ge.f32.partialorder %v12703_v32, %v11706_v29  ;;  %v3564_v58 = vrot.slane %v19576_v9, %v19570_v30  ;;  %v3568_v0 = vrot.slane %v19577_v11, %v19570_v30  ;;  %v19582_v29 = vld [vmem:[#allocation53_spill] sm:$0xff]  ;;  %v19592_v28 = vld [vmem:[#allocation94_spill] sm:$0xff] }
 0x2f1   : > { %vm13118_vm1 = vmand %vm19567_vm13, %vm3529_vm7  ;;  %v3572_v17 = vrot.slane %v19578_v61, %v19570_v30  ;;  %vm19579_vm7 = vcmp.ge.f32.partialorder %v19540_v50, %v19539_v8  ;;  %v3576_v32 = vrot.slane %v19582_v29, %v19570_v30  ;;  %v3580_v7 = vrot.slane %v19583_v24, %v19570_v30  ;;  %v19596_v50 = vld [vmem:[#allocation45_spill] sm:$0xff]  ;;  %v19614_v46 = vld [vmem:[#allocation79_spill] sm:$0xff] }
 0x2f2   : > { %vm13129_vm12 = vmand %vm19573_vm6, %vm3530_vm15  ;;  %v3584_v60 = vrot.slane %v19584_v12, %v19570_v30  ;;  %v3588_v27 = vrot.slane %v19585_v49, %v19570_v30  ;;  %vm19586_vm15 = vcmp.ge.f32.partialorder %v12711_v2, %v19541_v51  ;;  %v3592_v23 = vrot.slane %v19589_v36, %v19570_v30 }
 0x2f3   : > { %vm13142_vm13 = vmand %vm19579_vm7, %vm3531_vm8  ;;  %v3596_v55 = vrot.slane %v19590_v39, %v19570_v30  ;;  %v3600_v38 = vrot.slane %v19591_v19, %v19570_v30  ;;  %v3604_v8 = vrot.slane %v19592_v28, %v19570_v30  ;;  %vm19593_vm6 = vcmp.ge.f32.partialorder %v12715_v57, %v19550_v40  ;;  %v19636_v57 = vld [vmem:[#allocation66_spill] sm:$0xff] }
 0x2f4   : > { %vm13158_vm8 = vmand %vm19586_vm15, %vm3532_vm3  ;;  %v3608_v51 = vrot.slane %v19596_v50, %v19570_v30  ;;  %v3612_v45 = vrot.slane %v19597_v26, %v19570_v30  ;;  %v3617_v52 = vsel %vm13035_vm11, %v3556_v44, 0.0  ;;  %v3618_v28 = vsel %vm13042_vm9, %v3560_v21, 0.0  ;;  %v19616_v21 = vld [vmem:[#allocation80_spill] sm:$0xff] }
 0x2f5   : > { %vm13174_vm3 = vmand %vm19593_vm6, %vm3533_vm14  ;;  %vm19598_vm7 = vcmp.ge.f32.partialorder %v12719_v33, %v19556_v14  ;;  %v3616_v40 = vrot.slane %v19601_v41, %v19570_v30  ;;  %vm19602_vm15 = vnez %v19538_v34  ;;  %vm19603_vm6 = vnez %v19544_v35  ;;  %v19610_v14 = vld [vmem:[#allocation49_spill] sm:$0xff] }
 0x2f6   : > { %vm13190_vm14 = vmand %vm19598_vm7, %vm3534_vm0  ;;  %v3619_v26 = vsel %vm19602_vm15, %v3564_v58, 0.0  ;;  %v3620_v15 = vsel %vm19603_vm6, %v3568_v0, 0.0  ;;  %vm19604_vm11 = vnez %v19549_v48  ;;  %vm19605_vm9 = vcmp.ge.f32.partialorder %v12723_v56, %v19557_v47  ;;  %v19618_v58 = vld [vmem:[#allocation64_spill] sm:$0xff] }
 0x2f7   : > { %v3621_v10 = vsel %vm19604_vm11, %v3572_v17, 0.0  ;;  %vm3551_vm0 = vmand %vm19605_vm9, %vm3535_vm5  ;;  %vm19606_vm7 = vnez %v19555_v63  ;;  %v3623_v22 = vsel %vm13101_vm4, %v3580_v7, 0.0  ;;  %v3624_v34 = vsel %vm13111_vm10, %v3584_v60, 0.0  ;;  %v19622_v7 = vld [vmem:[#allocation36_spill] sm:$0xff] }
 0x2f8   : > { %v3622_v33 = vsel %vm19606_vm7, %v3576_v32, 0.0  ;;  %v3625_v35 = vsel %vm13118_vm1, %v3588_v27, 0.0  ;;  %vm19607_vm15 = vcmp.ge.f32.partialorder %v12727_v62, %v19562_v3  ;;  %v3626_v56 = vsel %vm13129_vm12, %v3592_v23, 0.0  ;;  %v19612_v62 = vld [vmem:[#allocation81_spill] sm:$0xff]  ;;  %v19624_v27 = vld [vmem:[#allocation84_spill] sm:$0xff]  ;;  %v19626_v23 = vld [vmem:[#allocation75_spill] sm:$0xff] }
 0x2f9   : > { %vm3552_vm6 = vmand %vm19607_vm15, %vm3536_vm2  ;;  %v3627_v48 = vsel %vm13142_vm13, %v3596_v55, 0.0  ;;  %v13223_v63 = vadd.f32 %v3617_v52, %v19608_v13  ;;  %v13226_v47 = vadd.f32 %v3618_v28, %v19610_v14  ;;  %v3628_v5 = vsel %vm13158_vm8, %v3600_v38, 0.0  ;;  %v19628_v38 = vld [vmem:[#allocation76_spill] sm:$0xff]  ;;  %v19645_v14 = vld [vmem:[#allocation25_spill] sm:$0xff] }
 0x2fa   : > { %v3629_v20 = vsel %vm13174_vm3, %v3604_v8, 0.0  ;;  %v13233_v3 = vadd.f32 %v3619_v26, %v19612_v62  ;;  %v13236_v54 = vadd.f32 %v3620_v15, %v19614_v46  ;;  %v3630_v30 = vsel %vm13190_vm14, %v3608_v51, 0.0  ;;  %v19630_v8 = vld [vmem:[#allocation24_spill] sm:$0xff]  ;;  %v19638_v15 = vld [vmem:[#allocation37_spill] sm:$0xff] }
 0x2fb   : > { %19609 = vst [vmem:[#allocation70_spill] sm:$0xff] %v13223_v63  ;;  %19611 = vst [vmem:[#allocation91_spill] sm:$0xff] %v13226_v47  ;;  %v3631_v44 = vsel %vm3551_vm0, %v3612_v45, 0.0  ;;  %v13241_v42 = vadd.f32 %v3621_v10, %v19616_v21  ;;  %v13244_v0 = vadd.f32 %v3622_v33, %v19618_v58  ;;  %v3632_v17 = vsel %vm3552_vm6, %v3616_v40, 0.0  ;;  %v19632_v51 = vld [vmem:[#allocation96_spill] sm:$0xff]  ;;  %v19634_v45 = vld [vmem:[#allocation38_spill] sm:$0xff] }
 0x2fc   : > { %19613 = vst [vmem:[#allocation78_spill] sm:$0xff] %v13233_v3  ;;  %19615 = vst [vmem:[#allocation21_spill] sm:$0xff] %v13236_v54  ;;  %v13247_v32 = vadd.f32 %v3623_v22, %v19620_v59  ;;  %v13250_v60 = vadd.f32 %v3624_v34, %v19622_v7  ;;  %v13253_v53 = vadd.f32 %v3625_v35, %v19624_v27  ;;  %v19639_v10 = vld [vmem:[#allocation29_spill] sm:$0xff]  ;;  %v19641_v22 = vld [vmem:[#allocation22_spill] sm:$0xff] }
 0x2fd   : > { %19617 = vst [vmem:[#allocation23_spill] sm:$0xff] %v13241_v42  ;;  %19619 = vst [vmem:[#allocation98_spill] sm:$0xff] %v13244_v0  ;;  %v13256_v55 = vadd.f32 %v3626_v56, %v19626_v23  ;;  %v13259_v28 = vadd.f32 %v3627_v48, %v19628_v38  ;;  %v13262_v2 = vadd.f32 %v3628_v5, %v19630_v8  ;;  %v19642_v35 = vld [vmem:[#allocation73_spill] sm:$0xff]  ;;  %v19649_v58 = vld [vmem:[#allocation63_spill] sm:$0xff] }
 0x2fe   : > { %19621 = vst [vmem:[#allocation58_spill] sm:$0xff] %v13247_v32  ;;  %19623 = vst [vmem:[#allocation74_spill] sm:$0xff] %v13250_v60  ;;  %v13265_v26 = vadd.f32 %v3629_v20, %v19632_v51  ;;  %v13268_v52 = vadd.f32 %v3630_v30, %v19634_v45  ;;  %v13271_v40 = vadd.f32 %v3631_v44, %v19636_v57  ;;  %v19644_v48 = vld [vmem:[#allocation97_spill] sm:$0xff]  ;;  %v19646_v20 = vld [vmem:[#allocation34_spill] sm:$0xff] }
 0x2ff   : > { %19625 = vst [vmem:[#allocation59_spill] sm:$0xff] %v13253_v53  ;;  %19627 = vst [vmem:[#allocation69_spill] sm:$0xff] %v13256_v55  ;;  %v13275_v33 = vrot.slane %v19639_v10, %v19638_v15  ;;  %v13279_v34 = vrot.slane %v19641_v22, %v19638_v15  ;;  %v13282_v56 = vadd.f32 %v3632_v17, %v19642_v35  ;;  %v19647_v46 = vld [vmem:[#allocation61_spill] sm:$0xff]  ;;  %v19648_v44 = vld [vmem:[#allocation62_spill] sm:$0xff] }
 0x300   : > { %19629 = vst [vmem:[#allocation71_spill] sm:$0xff] %v13259_v28  ;;  %19631 = vst [vmem:[#allocation72_spill] sm:$0xff] %v13262_v2  ;;  %v13286_v13 = vrot.slane %v19644_v48, %v19638_v15  ;;  %v13290_v5 = vrot.slane %v19645_v14, %v19638_v15  ;;  %v13294_v62 = vrot.slane %v19646_v20, %v19638_v15  ;;  %v19650_v59 = vld [vmem:[#allocation85_spill] sm:$0xff]  ;;  %v19651_v27 = vld [vmem:[#allocation86_spill] sm:$0xff] }
 0x301   : > { %19633 = vst [vmem:[#allocation67_spill] sm:$0xff] %v13265_v26  ;;  %19635 = vst [vmem:[#allocation26_spill] sm:$0xff] %v13268_v52  ;;  %v13298_v30 = vrot.slane %v19647_v46, %v19638_v15  ;;  %v13302_v21 = vrot.slane %v19648_v44, %v19638_v15  ;;  %v13306_v17 = vrot.slane %v19649_v58, %v19638_v15  ;;  %v19652_v38 = vld [vmem:[#allocation44_spill] sm:$0xff]  ;;  %v19654_v51 = vld [vmem:[#allocation89_spill] sm:$0xff] }
 0x302   : > { %19637 = vst [vmem:[#allocation48_spill] sm:$0xff] %v13271_v40  ;;  %19640 = vst [vmem:[#allocation49_spill] sm:$0xff] %v13275_v33  ;;  %v13310_v7 = vrot.slane %v19650_v59, %v19638_v15  ;;  %v13314_v23 = vrot.slane %v19651_v27, %v19638_v15  ;;  %v13318_v8 = vrot.slane %v19652_v38, %v19638_v15  ;;  %v19655_v57 = vld [vmem:[#allocation90_spill] sm:$0xff]  ;;  %v19656_v48 = vld [vmem:[#allocation93_spill] sm:$0xff] }
 0x303   : > { %19643 = vst [vmem:[#allocation81_spill] sm:$0xff] %v13282_v56  ;;  %v13322_v45 = vrot.slane %v19654_v51, %v19638_v15  ;;  %v13326_v35 = vrot.slane %v19655_v57, %v19638_v15  ;;  %v13330_v14 = vrot.slane %v19656_v48, %v19638_v15  ;;  %v19657_v20 = vld [vmem:[#allocation82_spill] sm:$0xff]  ;;  %v19658_v44 = vld [vmem:[#allocation20_spill] sm:$0xff]  ;;  %vm3729_vm5 = vcmp.le.f32.partialorder %v13275_v33, %v19530_v1  ;;  %v13343_v59 = vld [vmem:[%s6720_s7 + $0x8] sm:$0xff] }
 0x304   : > { %19653 = vst [vmem:[#allocation79_spill] sm:$0xff] %v13318_v8  ;;  %v13334_v46 = vrot.slane %v19657_v20, %v19638_v15  ;;  %v13338_v58 = vrot.slane %v19658_v44, %v19638_v15  ;;  %vm3730_vm4 = vcmp.le.f32.partialorder %v13279_v34, %v13343_v59  ;;  %v13348_v27 = vld [vmem:[%s6720_s7 + $0x10] sm:$0xff]  ;;  %v13353_v38 = vld [vmem:[%s6720_s7 + $0x18] sm:$0xff]  ;;  %v13358_v51 = vld [vmem:[%s6720_s7 + $0x20] sm:$0xff]  ;;  %v3761_v41 = vsel %vm3729_vm5, 1, %v19158_v4 }
 0x305   : > { %vm3731_vm2 = vcmp.le.f32.partialorder %v13286_v13, %v13348_v27  ;;  %vm3732_vm10 = vcmp.le.f32.partialorder %v13290_v5, %v13353_v38  ;;  %vm3733_vm1 = vcmp.le.f32.partialorder %v13294_v62, %v13358_v51  ;;  %v13363_v57 = vld [vmem:[%s6720_s7 + $0x28] sm:$0xff]  ;;  %v13368_v48 = vld [vmem:[%s6720_s7 + $0x30] sm:$0xff]  ;;  %v13373_v20 = vld [vmem:[%s6720_s7 + $0x38] sm:$0xff]  ;;  %vm3756_vm15 = vcmp.le.f32.partialorder %v13322_v45, %v12817_v16 }
 0x306   : > { %vm3734_vm12 = vcmp.le.f32.partialorder %v13298_v30, %v13363_v57  ;;  %vm3735_vm13 = vcmp.le.f32.partialorder %v13302_v21, %v13368_v48  ;;  %vm3736_vm8 = vcmp.le.f32.partialorder %v13306_v17, %v13373_v20  ;;  %v13378_v44 = vld [vmem:[%s6720_s7 + $0x40] sm:$0xff]  ;;  %v13383_v56 = vld [vmem:[%s6720_s7 + $0x48] sm:$0xff]  ;;  %v13388_v22 = vld [vmem:[%s6720_s7 + $0x50] sm:$0xff]  ;;  %vm3757_vm14 = vcmp.le.f32.partialorder %v13326_v35, %v12822_v25 }
 0x307   : > { %vm3737_vm3 = vcmp.le.f32.partialorder %v13310_v7, %v13378_v44  ;;  %19659 = vst [vmem:[#allocation80_spill] sm:$0xff] %v13388_v22  ;;  %v13393_v10 = vld [vmem:[%s6720_s7 + $0x58] sm:$0xff]  ;;  %v13398_v40 = vld [vmem:[%s6720_s7 + $0x60] sm:$0xff]  ;;  %v13403_v52 = vld [vmem:[%s6720_s7 + $0x68] sm:$0xff]  ;;  %vm3759_vm9 = vcmp.le.f32.partialorder %v13334_v46, %v12832_v43  ;;  %v3762_v50 = vsel %vm3730_vm4, 1, %v19158_v4  ;;  %v3763_v19 = vsel %vm3731_vm2, 1, %v19158_v4 }
 0x308   : > { %19660 = vst [vmem:[#allocation64_spill] sm:$0xff] %v13393_v10  ;;  %19661 = vst [vmem:[#allocation83_spill] sm:$0xff] %v13398_v40  ;;  %v13408_v26 = vld [vmem:[%s6720_s7 + $0x70] sm:$0xff]  ;;  %v13413_v2 = vld [vmem:[%s6720_s7 + $0x78] sm:$0xff]  ;;  %vm3760_vm6 = vcmp.le.f32.partialorder %v13338_v58, %v12849_v31  ;;  %v3764_v39 = vsel %vm3732_vm10, 1, %v19158_v4  ;;  %v3765_v1 = vsel %vm3733_vm1, 1, %v19158_v4  ;;  %vm19676_vm5 = vcmp.le.f32.partialorder %v13314_v23, %v13383_v56 }
 0x309   : > { %19662 = vst [vmem:[#allocation36_spill] sm:$0xff] %v13403_v52  ;;  %19663 = vst [vmem:[#allocation84_spill] sm:$0xff] %v13408_v26  ;;  %v19665_v28 = vld [vmem:[#allocation77_spill] sm:$0xff]  ;;  %v19666_v55 = vld [vmem:[#allocation68_spill] sm:$0xff]  ;;  %v3766_v36 = vsel %vm3734_vm12, 1, %v19158_v4  ;;  %v3767_v49 = vsel %vm3735_vm13, 1, %v19158_v4  ;;  %vm19677_vm4 = vcmp.le.f32.partialorder %v13318_v8, %v13388_v22  ;;  %vm19678_vm2 = vcmp.le.f32.partialorder %v13322_v45, %v13393_v10 }
 0x30a   : > { %19664 = vst [vmem:[#allocation75_spill] sm:$0xff] %v13413_v2  ;;  %v19667_v53 = vld [vmem:[#allocation28_spill] sm:$0xff]  ;;  %v19668_v60 = vld [vmem:[#allocation33_spill] sm:$0xff]  ;;  %v19670_v0 = vld [vmem:[#allocation30_spill] sm:$0xff]  ;;  %v13481_v12 = vsel %vm3736_vm8, 1, %v19158_v4  ;;  %v13487_v24 = vsel %vm3737_vm3, 1, %v19158_v4  ;;  %vm19679_vm10 = vcmp.le.f32.partialorder %v13326_v35, %v13398_v40  ;;  %vm19681_vm1 = vcmp.le.f32.partialorder %v13330_v14, %v13403_v52 }
 0x30b   : > { %v19669_v32 = vld [vmem:[#allocation41_spill] sm:$0xff]  ;;  %v19671_v42 = vld [vmem:[#allocation87_spill] sm:$0xff]  ;;  %v19672_v54 = vld [vmem:[#allocation88_spill] sm:$0xff]  ;;  %v13493_v29 = vsel %vm19676_vm5, 1, %v19158_v4  ;;  %v13499_v61 = vsel %vm19677_vm4, 1, %v19158_v4  ;;  %v13505_v11 = vsel %vm19678_vm2, 1, %v19158_v4  ;;  %vm19683_vm12 = vcmp.le.f32.partialorder %v13334_v46, %v13408_v26 }
 0x30c   : > { %v19673_v3 = vld [vmem:[#allocation65_spill] sm:$0xff]  ;;  %v19674_v47 = vld [vmem:[#allocation92_spill] sm:$0xff]  ;;  %v19675_v63 = vld [vmem:[#allocation27_spill] sm:$0xff]  ;;  %v13511_v9 = vsel %vm19679_vm10, 1, %v19158_v4  ;;  %v13517_v18 = vsel %vm19681_vm1, 1, %v19158_v4  ;;  %v13523_v6 = vsel %vm19683_vm12, 1, %v19158_v4  ;;  %vm19685_vm13 = vcmp.le.f32.partialorder %v13338_v58, %v13413_v2 }
 0x30d   : > { %vm3753_vm0 = vcmp.le.f32.partialorder %v13310_v7, %v19673_v3  ;;  %vm3754_vm11 = vcmp.le.f32.partialorder %v13314_v23, %v19674_v47  ;;  %vm3755_vm7 = vcmp.le.f32.partialorder %v13318_v8, %v19675_v63  ;;  %19680 = vst [vmem:[#allocation76_spill] sm:$0xff] %v13511_v9  ;;  %19682 = vst [vmem:[#allocation24_spill] sm:$0xff] %v13517_v18  ;;  %v13529_v15 = vsel %vm19685_vm13, 1, %v19158_v4 }
 0x30e   : > { %19684 = vst [vmem:[#allocation96_spill] sm:$0xff] %v13523_v6  ;;  %19686 = vst [vmem:[#allocation38_spill] sm:$0xff] %v13529_v15  ;;  %vm19687_vm8 = vcmp.le.f32.partialorder %v13275_v33, %v19665_v28  ;;  %vm19688_vm3 = vcmp.le.f32.partialorder %v13279_v34, %v19666_v55  ;;  %vm19689_vm5 = vcmp.le.f32.partialorder %v13286_v13, %v19667_v53  ;;  %v3793_v3 = vrot.slane %v3761_v41, 1 }
 0x30f   : > { %v3777_v40 = vsel %vm19687_vm8, 1, %v19158_v4  ;;  %v3778_v52 = vsel %vm19688_vm3, 1, %v19158_v4  ;;  %v3779_v26 = vsel %vm19689_vm5, 1, %v19158_v4  ;;  %vm19690_vm4 = vcmp.le.f32.partialorder %v13290_v5, %v19668_v60 }
 0x310   : > { %v3780_v2 = vsel %vm19690_vm4, 1, %v19158_v4  ;;  %vm19691_vm2 = vcmp.le.f32.partialorder %v13294_v62, %v19669_v32  ;;  %vm19692_vm10 = vcmp.le.f32.partialorder %v13298_v30, %v19670_v0  ;;  %vm19693_vm1 = vcmp.le.f32.partialorder %v13302_v21, %v19671_v42 }
 0x311   : > { %v3781_v28 = vsel %vm19691_vm2, 1, %v19158_v4  ;;  %v3782_v55 = vsel %vm19692_vm10, 1, %v19158_v4  ;;  %v3783_v53 = vsel %vm19693_vm1, 1, %v19158_v4  ;;  %vm19694_vm12 = vcmp.le.f32.partialorder %v13306_v17, %v19672_v54  ;;  %v13582_v54 = vld [vmem:[%s6720_s7] sm:$0xff] }
 0x312   : > { %v3784_v60 = vsel %vm19694_vm12, 1, %v19158_v4  ;;  %v13567_v32 = vsel %vm3753_vm0, 1, %v19158_v4  ;;  %v13573_v0 = vsel %vm3754_vm11, 1, %v19158_v4  ;;  %v13579_v42 = vsel %vm3755_vm7, 1, %v19158_v4  ;;  %19695 = vst [vmem:[#allocation66_spill] sm:$0xff] %v13582_v54 }
 0x313   : > { %vm3713_vm13 = vcmp.ge.f32.partialorder %v13275_v33, %v13582_v54  ;;  %vm3714_vm0 = vcmp.ge.f32.partialorder %v13279_v34, %v13343_v59  ;;  %v3794_v10 = vrot.slane %v3777_v40, 1  ;;  %v3796_v22 = vrot.slane %v3762_v50, 1  ;;  %v19719_v34 = vld [vmem:[#allocation79_spill] sm:$0xff] }
 0x314   : > { %v3797_v47 = vrot.slane %v3778_v52, 1  ;;  %vm3715_vm11 = vcmp.ge.f32.partialorder %v13286_v13, %v13348_v27  ;;  %v3799_v15 = vrot.slane %v3763_v19, 1  ;;  %v3800_v6 = vrot.slane %v3779_v26, 1 }
 0x315   : > { %v3802_v63 = vrot.slane %v3764_v39, 1  ;;  %v3803_v8 = vrot.slane %v3780_v2, 1  ;;  %vm3716_vm7 = vcmp.ge.f32.partialorder %v13290_v5, %v13353_v38  ;;  %v3805_v18 = vrot.slane %v3765_v1, 1  ;;  %v19729_v5 = vld [vmem:[#allocation83_spill] sm:$0xff] }
 0x316   : > { %v3806_v9 = vrot.slane %v3781_v28, 1  ;;  %v3808_v54 = vrot.slane %v3766_v36, 1  ;;  %v3809_v33 = vrot.slane %v3782_v55, 1  ;;  %vm3717_vm8 = vcmp.ge.f32.partialorder %v13294_v62, %v13358_v51  ;;  %v19735_v62 = vld [vmem:[#allocation36_spill] sm:$0xff] }
 0x317   : > { %v3788_v50 = vsel %vm3756_vm15, 1, %v19158_v4  ;;  %v3789_v39 = vsel %vm3757_vm14, 1, %v19158_v4  ;;  %v3811_v19 = vrot.slane %v3767_v49, 1  ;;  %v3812_v41 = vrot.slane %v3783_v53, 1 }
 0x318   : > { %vm19696_vm5 = vcmp.le.f32.partialorder %v13330_v14, %v12827_v37  ;;  %v3791_v55 = vsel %vm3759_vm9, 1, %v19158_v4  ;;  %v3814_v28 = vrot.slane %v13481_v12, 1  ;;  %v3815_v2 = vrot.slane %v3784_v60, 1 }
 0x319   : > { %v3790_v36 = vsel %vm19696_vm5, 1, %v19158_v4  ;;  %v3792_v49 = vsel %vm3760_vm6, 1, %v19158_v4  ;;  %vm19697_vm15 = vcmask 1046528   ;;  %v3817_v1 = vrot.slane %v13487_v24, 1 }
 0x31a   : > { %v3795_v53 = vsel %vm19697_vm15, %v3793_v3, %v3794_v10  ;;  %vm19698_vm4 = vmmov %vm19697_vm15  ;;  %v3824_v24 = vrot.slane %v13579_v42, 1  ;;  %vm19714_vm6 = vcmask 1046528  }
 0x31b   : > { %v3798_v26 = vsel %vm19698_vm4, %v3796_v22, %v3797_v47  ;;  %vm19699_vm2 = vmmov %vm19698_vm4  ;;  %v3818_v47 = vrot.slane %v13567_v32, 1  ;;  %v19705_v32 = vld [vmem:[#allocation76_spill] sm:$0xff]  ;;  %v3833_v22 = vrot.slane %v3790_v36, 1 }
 0x31c   : > { %v3801_v52 = vsel %vm19699_vm2, %v3799_v15, %v3800_v6  ;;  %vm19700_vm10 = vmmov %vm19699_vm2  ;;  %v3820_v6 = vrot.slane %v13493_v29, 1  ;;  %v3821_v15 = vrot.slane %v13573_v0, 1  ;;  %v3829_v10 = vrot.slane %v19705_v32, 1 }
 0x31d   : > { %v3804_v12 = vsel %vm19700_vm10, %v3802_v63, %v3803_v8  ;;  %vm19701_vm1 = vmmov %vm19699_vm2  ;;  %vm3841_vm2 = vcmp.ne.s32.totalorder %v3795_v53, 0  ;;  %vm3842_vm10 = vcmp.ne.s32.totalorder %v3798_v26, 0  ;;  %v3826_v63 = vrot.slane %v13505_v11, 1  ;;  %v19707_v8 = vld [vmem:[#allocation96_spill] sm:$0xff] }
 0x31e   : > { %v3807_v60 = vsel %vm19701_vm1, %v3805_v18, %v3806_v9  ;;  %vm19702_vm12 = vmmov %vm19701_vm1  ;;  %v3823_v9 = vrot.slane %v13499_v61, 1  ;;  %v3830_v29 = vrot.slane %v3789_v39, 1  ;;  %v19715_v39 = vld [vmem:[#allocation38_spill] sm:$0xff]  ;;  %v19718_v53 = vld [vmem:[#allocation80_spill] sm:$0xff] }
 0x31f   : > { %v3810_v40 = vsel %vm19702_vm12, %v3808_v54, %v3809_v33  ;;  %vm19703_vm5 = vmmov %vm19701_vm1  ;;  %v3827_v54 = vrot.slane %v3788_v50, 1  ;;  %v19706_v33 = vld [vmem:[#allocation24_spill] sm:$0xff]  ;;  %vm3844_vm12 = vcmp.ne.s32.totalorder %v3804_v12, 0  ;;  %v3819_v50 = vsel %vm19714_vm6, %v3817_v1, %v3818_v47  ;;  %v19762_v61 = vld [vmem:[#allocation54_spill] sm:$0xff] }
 0x320   : > { %v3813_v3 = vsel %vm19703_vm5, %v3811_v19, %v3812_v41  ;;  %vm19704_vm4 = vmmov %vm19701_vm1  ;;  %vm3843_vm1 = vcmp.ne.s32.totalorder %v3801_v52, 0  ;;  %v3832_v0 = vrot.slane %v19706_v33, 1  ;;  %v3835_v19 = vrot.slane %v19707_v8, 1  ;;  %v19720_v26 = vld [vmem:[#allocation64_spill] sm:$0xff] }
 0x321   : > { %v3816_v18 = vsel %vm19704_vm4, %v3814_v28, %v3815_v2  ;;  %v3836_v41 = vrot.slane %v3791_v55, 1  ;;  %vm3845_vm5 = vcmp.ne.s32.totalorder %v3807_v60, 0  ;;  %v19709_v28 = vld [vmem:[#allocation66_spill] sm:$0xff]  ;;  %vm13646_vm4 = vmand %vm3713_vm13, %vm3841_vm2  ;;  %v3838_v36 = vrot.slane %v19715_v39, 1  ;;  %v19756_v33 = vld [vmem:[#allocation32_spill] sm:$0xff] }
 0x322   : > { %vm13653_vm15 = vmand %vm3714_vm0, %vm3842_vm10  ;;  %v3839_v55 = vrot.slane %v3792_v49, 1  ;;  %vm3846_vm9 = vcmp.ne.s32.totalorder %v3810_v40, 0  ;;  %v19716_v2 = vmov 0  ;;  %v19722_v49 = vmov 0  ;;  %v19763_v39 = vld [vmem:[#allocation55_spill] sm:$0xff] }
 0x323   : > { %vm13663_vm13 = vmand %vm3715_vm11, %vm3843_vm1  ;;  %v19727_v12 = vmov 0  ;;  %v19733_v60 = vmov 0  ;;  %v19789_v40 = vld [vmem:[#allocation91_spill] sm:$0xff] }
 0x324   : > { %v19717_v2 = vsel %vm13663_vm13, 4294967295, %v19716_v2  ;;  %vm19721_vm10 = vmmov %vm19714_vm6  ;;  %vm3847_vm6 = vcmp.ne.s32.totalorder %v3813_v3, 0  ;;  %v19749_v3 = vld [vmem:[#allocation37_spill] sm:$0xff] }
 0x325   : > { %v3822_v1 = vsel %vm19721_vm10, %v3820_v6, %v3821_v15  ;;  %vm13676_vm14 = vmand %vm3716_vm7, %vm3844_vm12 }
 0x326   : > { %v19723_v49 = vsel %vm13676_vm14, 4294967295, %v19722_v49  ;;  %vm19724_vm11 = vmmov %vm19721_vm10 }
 0x327   : > { %v3825_v13 = vsel %vm19724_vm11, %v3823_v9, %v3824_v24  ;;  %vm19725_vm1 = vmmov %vm19721_vm10  ;;  %vm3849_vm11 = vcmp.ne.s32.totalorder %v3819_v50, 0  ;;  %v19736_v9 = vld [vmem:[#allocation84_spill] sm:$0xff]  ;;  %v3900_v50 = vrot.slane %v19762_v61, %v19749_v3 }
 0x328   : > { %v3828_v52 = vsel %vm19725_vm1, %v3826_v63, %v3827_v54  ;;  %vm19726_vm3 = vmmov %vm19725_vm1  ;;  %v19750_v54 = vld [vmem:[#allocation39_spill] sm:$0xff] }
 0x329   : > { %v3831_v47 = vsel %vm19726_vm3, %v3829_v10, %v3830_v29  ;;  %vm13687_vm10 = vmand %vm3717_vm8, %vm3845_vm5  ;;  %vm19732_vm3 = vcmp.ge.f32.partialorder %v13298_v30, %v13363_v57  ;;  %v19741_v30 = vld [vmem:[#allocation75_spill] sm:$0xff]  ;;  %vm19743_vm5 = vcmp.ge.f32.partialorder %v13306_v17, %v13373_v20  ;;  %v3876_v32 = vrot.slane %v19750_v54, %v19749_v3 }
 0x32a   : > { %v19728_v12 = vsel %vm13687_vm10, 4294967295, %v19727_v12  ;;  %vm19730_vm12 = vmmov %vm19725_vm1  ;;  %vm3853_vm8 = vcmp.ne.s32.totalorder %v3831_v47, 0  ;;  %vm19742_vm10 = vcmp.ne.s32.totalorder %v3816_v18, 0  ;;  %v19751_v18 = vld [vmem:[#allocation40_spill] sm:$0xff]  ;;  %v19780_v47 = vld [vmem:[#allocation47_spill] sm:$0xff] }
 0x32b   : > { %v3834_v6 = vsel %vm19730_vm12, %v3832_v0, %v3833_v22  ;;  %vm19731_vm2 = vmmov %vm19725_vm1  ;;  %vm3850_vm12 = vcmp.ne.s32.totalorder %v3822_v1, 0  ;;  %v3880_v10 = vrot.slane %v19751_v18, %v19749_v3  ;;  %v3888_v0 = vrot.slane %v19756_v33, %v19749_v3  ;;  %v19757_v22 = vld [vmem:[#allocation51_spill] sm:$0xff]  ;;  %v19769_v18 = vld [vmem:[#allocation42_spill] sm:$0xff] }
 0x32c   : > { %v3837_v15 = vsel %vm19731_vm2, %v3835_v19, %v3836_v41  ;;  %vm13699_vm1 = vmand %vm19732_vm3, %vm3846_vm9  ;;  %vm3851_vm3 = vcmp.ne.s32.totalorder %v3825_v13, 0  ;;  %vm3854_vm14 = vcmp.ne.s32.totalorder %v3834_v6, 0  ;;  %v3892_v8 = vrot.slane %v19757_v22, %v19749_v3  ;;  %v19768_v13 = vld [vmem:[#allocation57_spill] sm:$0xff]  ;;  %v19770_v33 = vld [vmem:[#allocation43_spill] sm:$0xff] }
 0x32d   : > { %v19734_v60 = vsel %vm13699_vm1, 4294967295, %v19733_v60  ;;  %vm19737_vm7 = vmmov %vm19731_vm2  ;;  %vm19738_vm2 = vcmp.ge.f32.partialorder %v13302_v21, %v13368_v48  ;;  %vm3852_vm1 = vcmp.ne.s32.totalorder %v3828_v52, 0  ;;  %vm3855_vm13 = vcmp.ne.s32.totalorder %v3837_v15, 0  ;;  %v19775_v52 = vld [vmem:[#allocation45_spill] sm:$0xff]  ;;  %v19787_v15 = vld [vmem:[#allocation70_spill] sm:$0xff] }
 0x32e   : > { %v3840_v24 = vsel %vm19737_vm7, %v3838_v36, %v3839_v55  ;;  %vm13712_vm0 = vmand %vm19738_vm2, %vm3847_vm6  ;;  %vm19746_vm6 = vcmp.ge.f32.partialorder %v13310_v7, %v13378_v44  ;;  %v19755_v7 = vld [vmem:[#allocation50_spill] sm:$0xff]  ;;  %v3904_v36 = vrot.slane %v19763_v39, %v19749_v3  ;;  %v19764_v55 = vld [vmem:[#allocation56_spill] sm:$0xff]  ;;  %v3912_v54 = vrot.slane %v19768_v13, %v19749_v3 }
 0x32f   : > { %vm13722_vm7 = vmand %vm19743_vm5, %vm19742_vm10  ;;  %vm3856_vm9 = vcmp.ne.s32.totalorder %v3840_v24, 0  ;;  %vm19752_vm10 = vcmp.ge.f32.partialorder %v13314_v23, %v13383_v56  ;;  %v3884_v29 = vrot.slane %v19755_v7, %v19749_v3  ;;  %v19761_v23 = vld [vmem:[#allocation53_spill] sm:$0xff]  ;;  %v3908_v1 = vrot.slane %v19764_v55, %v19749_v3  ;;  %v19776_v55 = vld [vmem:[#allocation46_spill] sm:$0xff] }
 0x330   : > { %vm13729_vm2 = vmand %vm19746_vm6, %vm3849_vm11  ;;  %vm19758_vm11 = vcmp.ge.f32.partialorder %v19719_v34, %v19718_v53  ;;  %v3896_v41 = vrot.slane %v19761_v23, %v19749_v3  ;;  %v3916_v7 = vrot.slane %v19769_v18, %v19749_v3  ;;  %v3920_v22 = vrot.slane %v19770_v33, %v19749_v3  ;;  %v19771_v23 = vld [vmem:[#allocation94_spill] sm:$0xff] }
 0x331   : > { %vm13740_vm5 = vmand %vm19752_vm10, %vm3850_vm12  ;;  %vm19765_vm12 = vcmp.ge.f32.partialorder %v13322_v45, %v19720_v26  ;;  %v3924_v61 = vrot.slane %v19771_v23, %v19749_v3  ;;  %vm19772_vm10 = vcmp.ge.f32.partialorder %v13326_v35, %v19729_v5  ;;  %v3928_v39 = vrot.slane %v19775_v52, %v19749_v3  ;;  %v19797_v19 = vld [vmem:[#allocation98_spill] sm:$0xff] }
 0x332   : > { %vm13753_vm6 = vmand %vm19758_vm11, %vm3851_vm3  ;;  %v3932_v13 = vrot.slane %v19776_v55, %v19749_v3  ;;  %v3937_v18 = vsel %vm13646_vm4, %v3876_v32, 0.0  ;;  %v3938_v33 = vsel %vm13653_vm15, %v3880_v10, 0.0  ;;  %vm19777_vm11 = vcmp.ge.f32.partialorder %v13330_v14, %v19735_v62  ;;  %v19793_v32 = vld [vmem:[#allocation21_spill] sm:$0xff]  ;;  %v19801_v34 = vld [vmem:[#allocation74_spill] sm:$0xff] }
 0x333   : > { %vm13769_vm3 = vmand %vm19765_vm12, %vm3852_vm1  ;;  %v3936_v23 = vrot.slane %v19780_v47, %v19749_v3  ;;  %vm19781_vm12 = vnez %v19717_v2  ;;  %vm19783_vm4 = vnez %v19728_v12  ;;  %vm19784_vm15 = vcmp.ge.f32.partialorder %v13334_v46, %v19736_v9  ;;  %v19813_v47 = vld [vmem:[#allocation26_spill] sm:$0xff] }
 0x334   : > { %vm13785_vm1 = vmand %vm19772_vm10, %vm3853_vm8  ;;  %v3939_v52 = vsel %vm19781_vm12, %v3884_v29, 0.0  ;;  %vm19782_vm10 = vnez %v19723_v49  ;;  %v3941_v11 = vsel %vm19783_vm4, %v3892_v8, 0.0  ;;  %v3943_v6 = vsel %vm13712_vm0, %v3900_v50, 0.0 }
 0x335   : > { %vm13801_vm8 = vmand %vm19777_vm11, %vm3854_vm14  ;;  %v3940_v42 = vsel %vm19782_vm10, %v3888_v0, 0.0  ;;  %vm19785_vm11 = vnez %v19734_v60  ;;  %v3944_v2 = vsel %vm13722_vm7, %v3904_v36, 0.0  ;;  %v3945_v49 = vsel %vm13729_vm2, %v3908_v1, 0.0  ;;  %v19795_v0 = vld [vmem:[#allocation23_spill] sm:$0xff]  ;;  %v19799_v36 = vld [vmem:[#allocation58_spill] sm:$0xff] }
 0x336   : > { %vm3871_vm14 = vmand %vm19784_vm15, %vm3855_vm13  ;;  %v3942_v14 = vsel %vm19785_vm11, %v3896_v41, 0.0  ;;  %vm19786_vm12 = vcmp.ge.f32.partialorder %v13338_v58, %v19741_v30  ;;  %v3946_v46 = vsel %vm13740_vm5, %v3912_v54, 0.0  ;;  %v3947_v12 = vsel %vm13753_vm6, %v3916_v7, 0.0  ;;  %v19791_v58 = vld [vmem:[#allocation78_spill] sm:$0xff]  ;;  %v19803_v7 = vld [vmem:[#allocation59_spill] sm:$0xff] }
 0x337   : > { %vm3872_vm10 = vmand %vm19786_vm12, %vm3856_vm9  ;;  %v13834_v60 = vadd.f32 %v3937_v18, %v19787_v15  ;;  %v13837_v63 = vadd.f32 %v3938_v33, %v19789_v40  ;;  %v3948_v21 = vsel %vm13769_vm3, %v3920_v22, 0.0  ;;  %v3949_v24 = vsel %vm13785_vm1, %v3924_v61, 0.0  ;;  %v19805_v61 = vld [vmem:[#allocation69_spill] sm:$0xff]  ;;  %v19811_v33 = vld [vmem:[#allocation67_spill] sm:$0xff] }
 0x338   : > { %v13844_v3 = vadd.f32 %v3939_v52, %v19791_v58  ;;  %v13847_v10 = vadd.f32 %v3940_v42, %v19793_v32  ;;  %v3950_v17 = vsel %vm13801_vm8, %v3928_v39, 0.0  ;;  %v3951_v29 = vsel %vm3871_vm14, %v3932_v13, 0.0  ;;  %v19807_v39 = vld [vmem:[#allocation71_spill] sm:$0xff]  ;;  %v19809_v13 = vld [vmem:[#allocation72_spill] sm:$0xff]  ;;  %v13896_v15 = vld [vmem:[%s6737_s20 + $0x90] sm:$0xff] }
 0x339   : > { %19788 = vst [vmem:[#allocation73_spill] sm:$0xff] %v13834_v60  ;;  %19790 = vst [vmem:[#allocation97_spill] sm:$0xff] %v13837_v63  ;;  %v13852_v8 = vadd.f32 %v3941_v11, %v19795_v0  ;;  %v13855_v41 = vadd.f32 %v3942_v14, %v19797_v19  ;;  %v3952_v50 = vsel %vm3872_vm10, %v3936_v23, 0.0  ;;  %v13858_v1 = vadd.f32 %v3943_v6, %v19799_v36  ;;  %v19815_v52 = vld [vmem:[#allocation48_spill] sm:$0xff]  ;;  %v19817_v11 = vld [vmem:[#allocation95_spill] sm:$0xff] }
 0x33a   : > { %19792 = vst [vmem:[#allocation25_spill] sm:$0xff] %v13844_v3  ;;  %19794 = vst [vmem:[#allocation34_spill] sm:$0xff] %v13847_v10  ;;  %v13861_v54 = vadd.f32 %v3944_v2, %v19801_v34  ;;  %v13864_v22 = vadd.f32 %v3945_v49, %v19803_v7  ;;  %v13867_v45 = vadd.f32 %v3946_v46, %v19805_v61  ;;  %v19818_v14 = vld [vmem:[#allocation29_spill] sm:$0xff]  ;;  %v19820_v2 = vld [vmem:[#allocation22_spill] sm:$0xff] }
 0x33b   : > { %19796 = vst [vmem:[#allocation61_spill] sm:$0xff] %v13852_v8  ;;  %19798 = vst [vmem:[#allocation62_spill] sm:$0xff] %v13855_v41  ;;  %v13870_v55 = vadd.f32 %v3947_v12, %v19807_v39  ;;  %v13873_v18 = vadd.f32 %v3948_v21, %v19809_v13  ;;  %v13876_v35 = vadd.f32 %v3949_v24, %v19811_v33  ;;  %v19821_v46 = vld [vmem:[#allocation81_spill] sm:$0xff]  ;;  %v13903_v21 = vld [vmem:[%s6737_s20 + $0x98] sm:$0xff] }
 0x33c   : > { %19800 = vst [vmem:[#allocation63_spill] sm:$0xff] %v13858_v1  ;;  %19802 = vst [vmem:[#allocation85_spill] sm:$0xff] %v13861_v54  ;;  %v13879_v23 = vadd.f32 %v3950_v17, %v19813_v47  ;;  %v13882_v42 = vadd.f32 %v3951_v29, %v19815_v52  ;;  %v13886_v6 = vrot.slane %v19818_v14, %v19817_v11  ;;  %v13910_v58 = vld [vmem:[%s6737_s20 + $0xa0] sm:$0xff]  ;;  %v13917_v17 = vld [vmem:[%s6737_s20 + $0xa8] sm:$0xff] }
 0x33d   : > { %19804 = vst [vmem:[#allocation86_spill] sm:$0xff] %v13864_v22  ;;  %19806 = vst [vmem:[#allocation44_spill] sm:$0xff] %v13867_v45  ;;  %v13890_v49 = vrot.slane %v19820_v2, %v19817_v11  ;;  %v13893_v12 = vadd.f32 %v3952_v50, %v19821_v46  ;;  %v13900_v40 = vrot.slane %v13896_v15, %v19817_v11  ;;  %v13924_v0 = vld [vmem:[%s6737_s20 + $0xb0] sm:$0xff]  ;;  %v13931_v50 = vld [vmem:[%s6737_s20 + $0xb8] sm:$0xff] }
 0x33e   : > { %19808 = vst [vmem:[#allocation89_spill] sm:$0xff] %v13870_v55  ;;  %19810 = vst [vmem:[#allocation90_spill] sm:$0xff] %v13873_v18  ;;  %v13907_v24 = vrot.slane %v13903_v21, %v19817_v11  ;;  %v13914_v32 = vrot.slane %v13910_v58, %v19817_v11  ;;  %v13921_v29 = vrot.slane %v13917_v17, %v19817_v11  ;;  %v13938_v34 = vld [vmem:[%s6737_s20 + $0xc0] sm:$0xff]  ;;  %v13945_v61 = vld [vmem:[%s6737_s20 + $0xc8] sm:$0xff] }
 0x33f   : > { %19812 = vst [vmem:[#allocation93_spill] sm:$0xff] %v13876_v35  ;;  %19814 = vst [vmem:[#allocation82_spill] sm:$0xff] %v13879_v23  ;;  %v13928_v19 = vrot.slane %v13924_v0, %v19817_v11  ;;  %v13935_v36 = vrot.slane %v13931_v50, %v19817_v11  ;;  %v13942_v7 = vrot.slane %v13938_v34, %v19817_v11  ;;  %v13952_v13 = vld [vmem:[%s6737_s20 + $0xd0] sm:$0xff]  ;;  %v13959_v47 = vld [vmem:[%s6737_s20 + $0xd8] sm:$0xff] }
 0x340   : > { %19816 = vst [vmem:[#allocation20_spill] sm:$0xff] %v13882_v42  ;;  %19819 = vst [vmem:[#allocation76_spill] sm:$0xff] %v13886_v6  ;;  %v13949_v39 = vrot.slane %v13945_v61, %v19817_v11  ;;  %v13956_v33 = vrot.slane %v13952_v13, %v19817_v11  ;;  %v13963_v52 = vrot.slane %v13959_v47, %v19817_v11  ;;  %v13966_v14 = vld [vmem:[%s6737_s20 + $0xe0] sm:$0xff]  ;;  %v13973_v46 = vld [vmem:[%s6737_s20 + $0xe8] sm:$0xff] }
 0x341   : > { %19822 = vst [vmem:[#allocation24_spill] sm:$0xff] %v13893_v12  ;;  %19823 = vst [vmem:[#allocation96_spill] sm:$0xff] %v13896_v15  ;;  %v13970_v2 = vrot.slane %v13966_v14, %v19817_v11  ;;  %vm4049_vm13 = vcmp.le.f32.partialorder %v13886_v6, %v19709_v28  ;;  %vm4050_vm0 = vcmp.le.f32.partialorder %v13890_v49, %v13343_v59  ;;  %v19846_v15 = vld [vmem:[#allocation65_spill] sm:$0xff]  ;;  %v19847_v12 = vld [vmem:[#allocation92_spill] sm:$0xff] }
 0x342   : > { %19824 = vst [vmem:[#allocation49_spill] sm:$0xff] %v13903_v21  ;;  %19825 = vst [vmem:[#allocation38_spill] sm:$0xff] %v13910_v58  ;;  %vm4051_vm9 = vcmp.le.f32.partialorder %v13900_v40, %v13348_v27  ;;  %vm4052_vm7 = vcmp.le.f32.partialorder %v13907_v24, %v13353_v38  ;;  %vm4053_vm2 = vcmp.le.f32.partialorder %v13914_v32, %v13358_v51  ;;  %v19844_v58 = vld [vmem:[#allocation87_spill] sm:$0xff]  ;;  %v19845_v21 = vld [vmem:[#allocation88_spill] sm:$0xff]  ;;  %v4081_v23 = vsel %vm4049_vm13, 1, %v19158_v4 }
 0x343   : > { %19826 = vst [vmem:[#allocation79_spill] sm:$0xff] %v13917_v17  ;;  %19827 = vst [vmem:[#allocation37_spill] sm:$0xff] %v13924_v0  ;;  %vm4054_vm5 = vcmp.le.f32.partialorder %v13921_v29, %v13363_v57  ;;  %vm4055_vm6 = vcmp.le.f32.partialorder %v13928_v19, %v13368_v48  ;;  %vm4056_vm3 = vcmp.le.f32.partialorder %v13935_v36, %v13373_v20  ;;  %v19842_v0 = vld [vmem:[#allocation41_spill] sm:$0xff]  ;;  %v19843_v17 = vld [vmem:[#allocation30_spill] sm:$0xff]  ;;  %v4082_v35 = vsel %vm4050_vm0, 1, %v19158_v4 }
 0x344   : > { %19828 = vst [vmem:[#allocation39_spill] sm:$0xff] %v13931_v50  ;;  %19829 = vst [vmem:[#allocation40_spill] sm:$0xff] %v13938_v34  ;;  %vm4057_vm1 = vcmp.le.f32.partialorder %v13942_v7, %v13378_v44  ;;  %vm4073_vm4 = vcmp.le.f32.partialorder %v13942_v7, %v19846_v15  ;;  %vm4074_vm15 = vcmp.le.f32.partialorder %v13949_v39, %v19847_v12  ;;  %v19848_v42 = vld [vmem:[#allocation27_spill] sm:$0xff]  ;;  %v4083_v18 = vsel %vm4051_vm9, 1, %v19158_v4 }
 0x345   : > { %19830 = vst [vmem:[#allocation50_spill] sm:$0xff] %v13945_v61  ;;  %19831 = vst [vmem:[#allocation32_spill] sm:$0xff] %v13952_v13  ;;  %v13977_v61 = vrot.slane %v13973_v46, %v19817_v11  ;;  %v13980_v13 = vld [vmem:[%s6737_s20 + $0xf0] sm:$0xff]  ;;  %vm4075_vm14 = vcmp.le.f32.partialorder %v13956_v33, %v19848_v42  ;;  %vm4076_vm11 = vcmp.le.f32.partialorder %v13963_v52, %v12817_v16  ;;  %v4084_v55 = vsel %vm4052_vm7, 1, %v19158_v4 }
 0x346   : > { %19832 = vst [vmem:[#allocation51_spill] sm:$0xff] %v13956_v33  ;;  %19833 = vst [vmem:[#allocation53_spill] sm:$0xff] %v13959_v47  ;;  %v13984_v34 = vrot.slane %v13980_v13, %v19817_v11  ;;  %v13987_v47 = vld [vmem:[%s6737_s20 + $0xf8] sm:$0xff]  ;;  %vm4077_vm12 = vcmp.le.f32.partialorder %v13970_v2, %v12822_v25  ;;  %v4085_v45 = vsel %vm4053_vm2, 1, %v19158_v4  ;;  %v4086_v22 = vsel %vm4054_vm5, 1, %v19158_v4 }
 0x347   : > { %19834 = vst [vmem:[#allocation54_spill] sm:$0xff] %v13966_v14  ;;  %19835 = vst [vmem:[#allocation55_spill] sm:$0xff] %v13973_v46  ;;  %v13991_v50 = vrot.slane %v13987_v47, %v19817_v11  ;;  %v19840_v46 = vld [vmem:[#allocation28_spill] sm:$0xff]  ;;  %v19841_v14 = vld [vmem:[#allocation33_spill] sm:$0xff]  ;;  %v4087_v54 = vsel %vm4055_vm6, 1, %v19158_v4  ;;  %v14089_v1 = vsel %vm4056_vm3, 1, %v19158_v4  ;;  %vm19849_vm13 = vcmp.le.f32.partialorder %v13949_v39, %v13383_v56 }
 0x348   : > { %19836 = vst [vmem:[#allocation56_spill] sm:$0xff] %v13980_v13  ;;  %19837 = vst [vmem:[#allocation57_spill] sm:$0xff] %v13987_v47  ;;  %v19838_v47 = vld [vmem:[#allocation77_spill] sm:$0xff]  ;;  %v19839_v13 = vld [vmem:[#allocation68_spill] sm:$0xff]  ;;  %vm4079_vm8 = vcmp.le.f32.partialorder %v13984_v34, %v12832_v43  ;;  %v14095_v41 = vsel %vm4057_vm1, 1, %v19158_v4  ;;  %v14101_v8 = vsel %vm19849_vm13, 1, %v19158_v4  ;;  %vm19850_vm0 = vcmp.le.f32.partialorder %v13956_v33, %v19718_v53 }
 0x349   : > { %vm4080_vm10 = vcmp.le.f32.partialorder %v13991_v50, %v12849_v31  ;;  %v14107_v10 = vsel %vm19850_vm0, 1, %v19158_v4  ;;  %vm19851_vm9 = vcmp.le.f32.partialorder %v13963_v52, %v19720_v26  ;;  %vm19852_vm7 = vcmp.le.f32.partialorder %v13970_v2, %v19729_v5 }
 0x34a   : > { %v14113_v3 = vsel %vm19851_vm9, 1, %v19158_v4  ;;  %v14119_v63 = vsel %vm19852_vm7, 1, %v19158_v4  ;;  %vm19854_vm2 = vcmp.le.f32.partialorder %v13977_v61, %v19735_v62  ;;  %vm19856_vm5 = vcmp.le.f32.partialorder %v13984_v34, %v19736_v9 }
 0x34b   : > { %19853 = vst [vmem:[#allocation42_spill] sm:$0xff] %v14119_v63  ;;  %v14125_v60 = vsel %vm19854_vm2, 1, %v19158_v4  ;;  %v14131_v11 = vsel %vm19856_vm5, 1, %v19158_v4  ;;  %vm19858_vm6 = vcmp.le.f32.partialorder %v13991_v50, %v19741_v30  ;;  %vm19860_vm3 = vcmp.le.f32.partialorder %v13886_v6, %v19838_v47 }
 0x34c   : > { %19855 = vst [vmem:[#allocation43_spill] sm:$0xff] %v14125_v60  ;;  %19857 = vst [vmem:[#allocation94_spill] sm:$0xff] %v14131_v11  ;;  %v14137_v26 = vsel %vm19858_vm6, 1, %v19158_v4  ;;  %v4097_v5 = vsel %vm19860_vm3, 1, %v19158_v4  ;;  %vm19861_vm1 = vcmp.le.f32.partialorder %v13890_v49, %v19839_v13  ;;  %vm19862_vm13 = vcmp.le.f32.partialorder %v13900_v40, %v19840_v46 }
 0x34d   : > { %19859 = vst [vmem:[#allocation45_spill] sm:$0xff] %v14137_v26  ;;  %v4098_v62 = vsel %vm19861_vm1, 1, %v19158_v4  ;;  %v4099_v9 = vsel %vm19862_vm13, 1, %v19158_v4  ;;  %vm19863_vm0 = vcmp.le.f32.partialorder %v13907_v24, %v19841_v14  ;;  %vm19864_vm9 = vcmp.le.f32.partialorder %v13914_v32, %v19842_v0 }
 0x34e   : > { %v4100_v30 = vsel %vm19863_vm0, 1, %v19158_v4  ;;  %v4101_v47 = vsel %vm19864_vm9, 1, %v19158_v4  ;;  %vm19865_vm7 = vcmp.le.f32.partialorder %v13921_v29, %v19843_v17  ;;  %vm19866_vm2 = vcmp.le.f32.partialorder %v13928_v19, %v19844_v58 }
 0x34f   : > { %v4102_v13 = vsel %vm19865_vm7, 1, %v19158_v4  ;;  %v4103_v46 = vsel %vm19866_vm2, 1, %v19158_v4  ;;  %vm19867_vm5 = vcmp.le.f32.partialorder %v13935_v36, %v19845_v21  ;;  %v14175_v0 = vsel %vm4073_vm4, 1, %v19158_v4 }
 0x350   : > { %v4104_v14 = vsel %vm19867_vm5, 1, %v19158_v4  ;;  %v14181_v17 = vsel %vm4074_vm15, 1, %v19158_v4  ;;  %v14187_v58 = vsel %vm4075_vm14, 1, %v19158_v4  ;;  %vm4033_vm6 = vcmp.ge.f32.partialorder %v13886_v6, %v19709_v28 }
 0x351   : > { %vm4034_vm3 = vcmp.ge.f32.partialorder %v13890_v49, %v13343_v59  ;;  %v4113_v15 = vrot.slane %v4081_v23, 1  ;;  %v4114_v21 = vrot.slane %v4097_v5, 1  ;;  %v4116_v53 = vrot.slane %v4082_v35, 1  ;;  %v19890_v49 = vld [vmem:[#allocation51_spill] sm:$0xff] }
 0x352   : > { %v4117_v26 = vrot.slane %v4098_v62, 1  ;;  %vm4035_vm4 = vcmp.ge.f32.partialorder %v13900_v40, %v13348_v27  ;;  %v4119_v12 = vrot.slane %v4083_v18, 1  ;;  %v4120_v11 = vrot.slane %v4099_v9, 1 }
 0x353   : > { %v4122_v60 = vrot.slane %v4084_v55, 1  ;;  %v4123_v63 = vrot.slane %v4100_v30, 1  ;;  %vm4036_vm15 = vcmp.ge.f32.partialorder %v13907_v24, %v13353_v38  ;;  %v4125_v42 = vrot.slane %v4085_v45, 1  ;;  %v19900_v24 = vld [vmem:[#allocation83_spill] sm:$0xff] }
 0x354   : > { %v4126_v33 = vrot.slane %v4101_v47, 1  ;;  %v4128_v28 = vrot.slane %v4086_v22, 1  ;;  %v4129_v6 = vrot.slane %v4102_v13, 1  ;;  %vm4037_vm14 = vcmp.ge.f32.partialorder %v13914_v32, %v13358_v51  ;;  %v19877_v13 = vld [vmem:[#allocation43_spill] sm:$0xff]  ;;  %v19906_v32 = vld [vmem:[#allocation36_spill] sm:$0xff] }
 0x355   : > { %v4108_v5 = vsel %vm4076_vm11, 1, %v19158_v4  ;;  %v4109_v62 = vsel %vm4077_vm12, 1, %v19158_v4  ;;  %v4131_v9 = vrot.slane %v4087_v54, 1  ;;  %v4132_v30 = vrot.slane %v4103_v46, 1 }
 0x356   : > { %vm19868_vm13 = vcmp.le.f32.partialorder %v13977_v61, %v12827_v37  ;;  %v4111_v16 = vsel %vm4079_vm8, 1, %v19158_v4  ;;  %v4134_v45 = vrot.slane %v14089_v1, 1  ;;  %v4135_v55 = vrot.slane %v4104_v14, 1 }
 0x357   : > { %v4110_v22 = vsel %vm19868_vm13, 1, %v19158_v4  ;;  %v4112_v25 = vsel %vm4080_vm10, 1, %v19158_v4  ;;  %vm19869_vm12 = vcmask 1046528   ;;  %v4137_v23 = vrot.slane %v14095_v41, 1 }
 0x358   : > { %v4115_v54 = vsel %vm19869_vm12, %v4113_v15, %v4114_v21  ;;  %vm19870_vm0 = vmmov %vm19869_vm12  ;;  %v4146_v41 = vrot.slane %v14113_v3, 1  ;;  %v4152_v46 = vrot.slane %v19877_v13, 1  ;;  %v4153_v14 = vrot.slane %v4110_v22, 1  ;;  %v19880_v21 = vld [vmem:[#allocation66_spill] sm:$0xff]  ;;  %v19891_v22 = vld [vmem:[#allocation64_spill] sm:$0xff] }
 0x359   : > { %v4118_v37 = vsel %vm19870_vm0, %v4116_v53, %v4117_v26  ;;  %vm19871_vm9 = vmmov %vm19870_vm0  ;;  %v4138_v53 = vrot.slane %v14175_v0, 1  ;;  %v4140_v26 = vrot.slane %v14101_v8, 1  ;;  %v4150_v8 = vrot.slane %v4109_v62, 1  ;;  %v19878_v0 = vld [vmem:[#allocation94_spill] sm:$0xff] }
 0x35a   : > { %v4121_v18 = vsel %vm19871_vm9, %v4119_v12, %v4120_v11  ;;  %vm19872_vm7 = vmmov %vm19870_vm0  ;;  %v4141_v11 = vrot.slane %v14181_v17, 1  ;;  %vm4161_vm9 = vcmp.ne.s32.totalorder %v4115_v54, 0  ;;  %v4155_v17 = vrot.slane %v19878_v0, 1  ;;  %v14390_v0 = vld [vmem:[%s6740_s8 + $0xb8] sm:$0xff] }
 0x35b   : > { %v4124_v43 = vsel %vm19872_vm7, %v4122_v60, %v4123_v63  ;;  %vm19873_vm2 = vmmov %vm19870_vm0  ;;  %v4136_v60 = vsel %vm19870_vm0, %v4134_v45, %v4135_v55  ;;  %vm4162_vm7 = vcmp.ne.s32.totalorder %v4118_v37, 0  ;;  %v4144_v63 = vrot.slane %v14187_v58, 1  ;;  %19934 = vst [vmem:[#allocation98_spill] sm:$0xff] %v14390_v0 }
 0x35c   : > { %v4127_v1 = vsel %vm19873_vm2, %v4125_v42, %v4126_v33  ;;  %vm19874_vm5 = vmmov %vm19870_vm0  ;;  %vm4163_vm2 = vcmp.ne.s32.totalorder %v4121_v18, 0  ;;  %v19876_v33 = vld [vmem:[#allocation42_spill] sm:$0xff]  ;;  %v4156_v15 = vrot.slane %v4111_v16, 1  ;;  %vm19885_vm10 = vcmask 1046528   ;;  %v19886_v42 = vld [vmem:[#allocation45_spill] sm:$0xff] }
 0x35d   : > { %v4130_v35 = vsel %vm19874_vm5, %v4128_v28, %v4129_v6  ;;  %vm19875_vm13 = vmmov %vm19870_vm0  ;;  %v4143_v28 = vrot.slane %v14107_v10, 1  ;;  %v4147_v6 = vrot.slane %v4108_v5, 1  ;;  %v4149_v47 = vrot.slane %v19876_v33, 1  ;;  %v14367_v33 = vld [vmem:[%s6740_s8 + $0xa0] sm:$0xff] }
 0x35e   : > { %v4133_v31 = vsel %vm19875_vm13, %v4131_v9, %v4132_v30  ;;  %vm4164_vm5 = vcmp.ne.s32.totalorder %v4124_v43, 0  ;;  %vm4165_vm13 = vcmp.ne.s32.totalorder %v4127_v1, 0  ;;  %vm14251_vm0 = vmand %vm4033_vm6, %vm4161_vm9  ;;  %v4139_v12 = vsel %vm19885_vm10, %v4137_v23, %v4138_v53  ;;  %v19889_v30 = vld [vmem:[#allocation80_spill] sm:$0xff]  ;;  %19928 = vst [vmem:[#allocation78_spill] sm:$0xff] %v14367_v33 }
 0x35f   : > { %vm14258_vm12 = vmand %vm4034_vm3, %vm4162_vm7  ;;  %v4158_v5 = vrot.slane %v19886_v42, 1  ;;  %v4159_v62 = vrot.slane %v4112_v25, 1  ;;  %vm4166_vm8 = vcmp.ne.s32.totalorder %v4130_v35, 0  ;;  %v19904_v43 = vmov 0  ;;  %v19907_v1 = vld [vmem:[#allocation84_spill] sm:$0xff]  ;;  %v19911_v35 = vld [vmem:[#allocation75_spill] sm:$0xff] }
 0x360   : > { %vm14268_vm6 = vmand %vm4035_vm4, %vm4163_vm2  ;;  %v14339_v53 = vld [vmem:[%s6740_s8 + $0x80] sm:$0xff]  ;;  %v14408_v42 = vld [vmem:[%s6740_s8 + $0xc8] sm:$0xff] }
 0x361   : > { %vm19892_vm7 = vmmov %vm19885_vm10  ;;  %vm4167_vm10 = vcmp.ne.s32.totalorder %v4133_v31, 0  ;;  %19919 = vst [vmem:[#allocation46_spill] sm:$0xff] %v14339_v53 }
 0x362   : > { %v4142_v16 = vsel %vm19892_vm7, %v4140_v26, %v4141_v11  ;;  %vm14281_vm11 = vmand %vm4036_vm15, %vm4164_vm5  ;;  %vm19908_vm15 = vcmp.ge.f32.partialorder %v13928_v19, %v13368_v48  ;;  %v19920_v26 = vld [vmem:[#allocation95_spill] sm:$0xff]  ;;  %v14344_v11 = vld [vmem:[%s6740_s8 + $0x88] sm:$0xff]  ;;  %19939 = vst [vmem:[#allocation74_spill] sm:$0xff] %v14408_v42 }
 0x363   : > { %vm19895_vm4 = vmmov %vm19892_vm7  ;;  %19921 = vst [vmem:[#allocation47_spill] sm:$0xff] %v14344_v11 }
 0x364   : > { %v4145_v40 = vsel %vm19895_vm4, %v4143_v28, %v4144_v63  ;;  %vm19896_vm2 = vmmov %vm19895_vm4  ;;  %vm4169_vm4 = vcmp.ne.s32.totalorder %v4139_v12, 0  ;;  %v14357_v28 = vld [vmem:[%s6740_s8 + $0x90] sm:$0xff] }
 0x365   : > { %v4148_v55 = vsel %vm19896_vm2, %v4146_v41, %v4147_v6  ;;  %vm19897_vm1 = vmmov %vm19896_vm2  ;;  %19926 = vst [vmem:[#allocation70_spill] sm:$0xff] %v14357_v28  ;;  %v4204_v63 = vrot.slane %v14357_v28, %v19920_v26  ;;  %v14362_v41 = vld [vmem:[%s6740_s8 + $0x98] sm:$0xff] }
 0x366   : > { %v4151_v25 = vsel %vm19897_vm1, %v4149_v47, %v4150_v8  ;;  %vm14292_vm7 = vmand %vm4037_vm14, %vm4165_vm13  ;;  %vm4172_vm14 = vcmp.ne.s32.totalorder %v4148_v55, 0  ;;  %19927 = vst [vmem:[#allocation91_spill] sm:$0xff] %v14362_v41  ;;  %v4208_v6 = vrot.slane %v14362_v41, %v19920_v26  ;;  %v14380_v8 = vld [vmem:[%s6740_s8 + $0xa8] sm:$0xff]  ;;  %v14881_v28 = vld [vmem:[%s6720_s7 + $0x18] sm:$0xff] }
 0x367   : > { %vm19901_vm5 = vmmov %vm19897_vm1  ;;  %vm4173_vm13 = vcmp.ne.s32.totalorder %v4151_v25, 0  ;;  %19932 = vst [vmem:[#allocation21_spill] sm:$0xff] %v14380_v8  ;;  %v4216_v13 = vrot.slane %v14380_v8, %v19920_v26  ;;  %v4259_v58 = vsel %vm14268_vm6, %v4204_v63, 0.0 }
 0x368   : > { %v4154_v37 = vsel %vm19901_vm5, %v4152_v46, %v4153_v14  ;;  %vm19902_vm9 = vmmov %vm19897_vm1  ;;  %vm19903_vm1 = vcmp.ge.f32.partialorder %v13921_v29, %v13363_v57  ;;  %v4160_v23 = vsel %vm19901_vm5, %v4158_v5, %v4159_v62  ;;  %v19909_v29 = vmov 0  ;;  %v14385_v46 = vld [vmem:[%s6740_s8 + $0xb0] sm:$0xff] }
 0x369   : > { %v4157_v18 = vsel %vm19902_vm9, %v4155_v17, %v4156_v15  ;;  %vm14304_vm2 = vmand %vm19903_vm1, %vm4166_vm8  ;;  %vm4171_vm1 = vcmp.ne.s32.totalorder %v4145_v40, 0  ;;  %vm19913_vm5 = vcmp.ge.f32.partialorder %v13935_v36, %v13373_v20  ;;  %v4196_v36 = vrot.slane %v14339_v53, %v19920_v26  ;;  %19933 = vst [vmem:[#allocation23_spill] sm:$0xff] %v14385_v46  ;;  %v14395_v15 = vld [vmem:[%s6740_s8 + $0xc0] sm:$0xff]  ;;  %v14413_v62 = vld [vmem:[%s6740_s8 + $0xd0] sm:$0xff] }
 0x36a   : > { %v19905_v43 = vsel %vm14304_vm2, 4294967295, %v19904_v43  ;;  %vm14317_vm3 = vmand %vm19908_vm15, %vm4167_vm10  ;;  %vm19912_vm2 = vcmp.ne.s32.totalorder %v4136_v60, 0  ;;  %vm4174_vm10 = vcmp.ne.s32.totalorder %v4154_v37, 0  ;;  %vm4175_vm15 = vcmp.ne.s32.totalorder %v4157_v18, 0  ;;  %19935 = vst [vmem:[#allocation58_spill] sm:$0xff] %v14395_v15  ;;  %v14423_v40 = vld [vmem:[%s6740_s8 + $0xe0] sm:$0xff] }
 0x36b   : > { %v19910_v29 = vsel %vm14317_vm3, 4294967295, %v19909_v29  ;;  %vm14327_vm9 = vmand %vm19913_vm5, %vm19912_vm2  ;;  %vm19916_vm3 = vcmp.ge.f32.partialorder %v13942_v7, %v13378_v44  ;;  %v4200_v60 = vrot.slane %v14344_v11, %v19920_v26  ;;  %vm4176_vm2 = vcmp.ne.s32.totalorder %v4160_v23, 0  ;;  %19940 = vst [vmem:[#allocation59_spill] sm:$0xff] %v14413_v62  ;;  %v19956_v18 = vld [vmem:[#allocation73_spill] sm:$0xff]  ;;  %v14888_v11 = vld [vmem:[%s6720_s7 + $0x20] sm:$0xff] }
 0x36c   : > { %vm14334_vm8 = vmand %vm19916_vm3, %vm4169_vm4  ;;  %vm19922_vm5 = vcmp.ne.s32.totalorder %v4142_v16, 0  ;;  %vm19923_vm3 = vcmp.ge.f32.partialorder %v13949_v39, %v13383_v56  ;;  %v4212_v39 = vrot.slane %v14367_v33, %v19920_v26  ;;  %v4220_v14 = vrot.slane %v14385_v46, %v19920_v26  ;;  %v14418_v16 = vld [vmem:[%s6740_s8 + $0xd8] sm:$0xff]  ;;  %19942 = vst [vmem:[#allocation71_spill] sm:$0xff] %v14423_v40 }
 0x36d   : > { %vm14352_vm4 = vmand %vm19923_vm3, %vm19922_vm5  ;;  %vm19929_vm5 = vcmp.ge.f32.partialorder %v19890_v49, %v19889_v30  ;;  %v4224_v17 = vrot.slane %v14390_v0, %v19920_v26  ;;  %v4228_v10 = vrot.slane %v14395_v15, %v19920_v26  ;;  %v4232_v5 = vrot.slane %v14408_v42, %v19920_v26  ;;  %19941 = vst [vmem:[#allocation69_spill] sm:$0xff] %v14418_v16  ;;  %v14436_v15 = vld [vmem:[%s6740_s8 + $0xe8] sm:$0xff]  ;;  %v14441_v0 = vld [vmem:[%s6740_s8 + $0xf0] sm:$0xff] }
 0x36e   : > { %vm14375_vm3 = vmand %vm19929_vm5, %vm4171_vm1  ;;  %vm19936_vm1 = vcmp.ge.f32.partialorder %v13963_v52, %v19891_v22  ;;  %v4236_v49 = vrot.slane %v14413_v62, %v19920_v26  ;;  %v4240_v52 = vrot.slane %v14418_v16, %v19920_v26  ;;  %v4244_v55 = vrot.slane %v14423_v40, %v19920_v26  ;;  %19946 = vst [vmem:[#allocation72_spill] sm:$0xff] %v14436_v15  ;;  %v19970_v42 = vld [vmem:[#allocation85_spill] sm:$0xff]  ;;  %v19974_v40 = vld [vmem:[#allocation44_spill] sm:$0xff] }
 0x36f   : > { %vm14403_vm5 = vmand %vm19936_vm1, %vm4172_vm14  ;;  %vm19943_vm14 = vcmp.ge.f32.partialorder %v13970_v2, %v19900_v24  ;;  %v4248_v62 = vrot.slane %v14436_v15, %v19920_v26  ;;  %19947 = vst [vmem:[#allocation67_spill] sm:$0xff] %v14441_v0  ;;  %v4252_v16 = vrot.slane %v14441_v0, %v19920_v26  ;;  %v4257_v25 = vsel %vm14251_vm0, %v4196_v36, 0.0  ;;  %v14458_v15 = vld [vmem:[%s6740_s8 + $0xf8] sm:$0xff] }
 0x370   : > { %vm14431_vm1 = vmand %vm19943_vm14, %vm4173_vm13  ;;  %v4258_v2 = vsel %vm14258_vm12, %v4200_v60, 0.0  ;;  %vm19948_vm13 = vcmp.ge.f32.partialorder %v13977_v61, %v19906_v32  ;;  %19951 = vst [vmem:[#allocation26_spill] sm:$0xff] %v14458_v15  ;;  %v4256_v46 = vrot.slane %v14458_v15, %v19920_v26  ;;  %v4260_v3 = vsel %vm14281_vm11, %v4208_v6, 0.0  ;;  %v19962_v60 = vld [vmem:[#allocation34_spill] sm:$0xff] }
 0x371   : > { %vm14453_vm14 = vmand %vm19948_vm13, %vm4174_vm10  ;;  %v4261_v37 = vsel %vm14292_vm7, %v4212_v39, 0.0  ;;  %vm19952_vm12 = vcmp.ge.f32.partialorder %v13984_v34, %v19907_v1  ;;  %vm19953_vm10 = vnez %v19905_v43  ;;  %vm19954_vm13 = vnez %v19910_v29  ;;  %v19958_v29 = vld [vmem:[#allocation97_spill] sm:$0xff] }
 0x372   : > { %vm4191_vm0 = vmand %vm19952_vm12, %vm4175_vm15  ;;  %v4262_v61 = vsel %vm19953_vm10, %v4216_v13, 0.0  ;;  %v4263_v26 = vsel %vm19954_vm13, %v4220_v14, 0.0  ;;  %v4264_v9 = vsel %vm14327_vm9, %v4224_v17, 0.0  ;;  %v4265_v45 = vsel %vm14334_vm8, %v4228_v10, 0.0  ;;  %v19964_v39 = vld [vmem:[#allocation61_spill] sm:$0xff]  ;;  %v19966_v13 = vld [vmem:[#allocation62_spill] sm:$0xff] }
 0x373   : > { %vm19955_vm11 = vcmp.ge.f32.partialorder %v13991_v50, %v19911_v35  ;;  %v4266_v34 = vsel %vm14352_vm4, %v4232_v5, 0.0  ;;  %v4267_v54 = vsel %vm14375_vm3, %v4236_v49, 0.0  ;;  %v14489_v43 = vadd.f32 %v4257_v25, %v19956_v18  ;;  %v19960_v50 = vld [vmem:[#allocation25_spill] sm:$0xff]  ;;  %v19968_v10 = vld [vmem:[#allocation63_spill] sm:$0xff]  ;;  %v19972_v49 = vld [vmem:[#allocation86_spill] sm:$0xff] }
 0x374   : > { %vm4192_vm6 = vmand %vm19955_vm11, %vm4176_vm2  ;;  %v14492_v31 = vadd.f32 %v4258_v2, %v19958_v29  ;;  %v4268_v19 = vsel %vm14403_vm5, %v4240_v52, 0.0  ;;  %v4269_v23 = vsel %vm14431_vm1, %v4244_v55, 0.0  ;;  %v14499_v36 = vadd.f32 %v4259_v58, %v19960_v50  ;;  %v19978_v25 = vld [vmem:[#allocation90_spill] sm:$0xff]  ;;  %v19980_v58 = vld [vmem:[#allocation93_spill] sm:$0xff] }
 0x375   : > { %19957 = vst [vmem:[#allocation48_spill] sm:$0xff] %v14489_v43  ;;  %v14502_v7 = vadd.f32 %v4260_v3, %v19962_v60  ;;  %v4270_v63 = vsel %vm14453_vm14, %v4248_v62, 0.0  ;;  %v4271_v6 = vsel %vm4191_vm0, %v4252_v16, 0.0  ;;  %v14507_v47 = vadd.f32 %v4261_v37, %v19964_v39  ;;  %v19976_v16 = vld [vmem:[#allocation89_spill] sm:$0xff]  ;;  %v19982_v3 = vld [vmem:[#allocation82_spill] sm:$0xff]  ;;  %v19989_v29 = vld [vmem:[#allocation24_spill] sm:$0xff] }
 0x376   : > { %19959 = vst [vmem:[#allocation29_spill] sm:$0xff] %v14492_v31  ;;  %19961 = vst [vmem:[#allocation22_spill] sm:$0xff] %v14499_v36  ;;  %v14510_v14 = vadd.f32 %v4262_v61, %v19966_v13  ;;  %v4272_v17 = vsel %vm4192_vm6, %v4256_v46, 0.0  ;;  %v14513_v12 = vadd.f32 %v4263_v26, %v19968_v10  ;;  %v14516_v5 = vadd.f32 %v4264_v9, %v19970_v42  ;;  %v19984_v61 = vld [vmem:[#allocation20_spill] sm:$0xff]  ;;  %v19992_v60 = vld [vmem:[#allocation49_spill] sm:$0xff] }
 0x377   : > { %19963 = vst [vmem:[#allocation81_spill] sm:$0xff] %v14502_v7  ;;  %19965 = vst [vmem:[#allocation77_spill] sm:$0xff] %v14507_v47  ;;  %v14519_v52 = vadd.f32 %v4265_v45, %v19972_v49  ;;  %v14522_v62 = vadd.f32 %v4266_v34, %v19974_v40  ;;  %v14525_v55 = vadd.f32 %v4267_v54, %v19976_v16  ;;  %v14540_v9 = vld [vmem:[%s6737_s20 + $0x80] sm:$0xff]  ;;  %v19987_v45 = vld [vmem:[#allocation31_spill] sm:$0xff] }
 0x378   : > { %19967 = vst [vmem:[#allocation68_spill] sm:$0xff] %v14510_v14  ;;  %19969 = vst [vmem:[#allocation28_spill] sm:$0xff] %v14513_v12  ;;  %v14528_v2 = vadd.f32 %v4268_v19, %v19978_v25  ;;  %v14531_v46 = vadd.f32 %v4269_v23, %v19980_v58  ;;  %v14534_v37 = vadd.f32 %v4270_v63, %v19982_v3  ;;  %v14547_v54 = vld [vmem:[%s6737_s20 + $0x88] sm:$0xff]  ;;  %v19991_v23 = vld [vmem:[#allocation96_spill] sm:$0xff] }
 0x379   : > { %19971 = vst [vmem:[#allocation33_spill] sm:$0xff] %v14516_v5  ;;  %19973 = vst [vmem:[#allocation41_spill] sm:$0xff] %v14519_v52  ;;  %v14537_v26 = vadd.f32 %v4271_v6, %v19984_v61  ;;  %v14544_v34 = vrot.slane %v14540_v9, %v19987_v45  ;;  %v14551_v18 = vrot.slane %v14547_v54, %v19987_v45  ;;  %v19993_v6 = vld [vmem:[#allocation38_spill] sm:$0xff]  ;;  %v19994_v13 = vld [vmem:[#allocation79_spill] sm:$0xff] }
 0x37a   : > { %19975 = vst [vmem:[#allocation30_spill] sm:$0xff] %v14522_v62  ;;  %19977 = vst [vmem:[#allocation87_spill] sm:$0xff] %v14525_v55  ;;  %v14554_v19 = vadd.f32 %v4272_v17, %v19989_v29  ;;  %v14558_v50 = vrot.slane %v19991_v23, %v19987_v45  ;;  %v14562_v63 = vrot.slane %v19992_v60, %v19987_v45  ;;  %v19995_v42 = vld [vmem:[#allocation37_spill] sm:$0xff]  ;;  %v19996_v49 = vld [vmem:[#allocation39_spill] sm:$0xff] }
 0x37b   : > { %19979 = vst [vmem:[#allocation88_spill] sm:$0xff] %v14528_v2  ;;  %19981 = vst [vmem:[#allocation65_spill] sm:$0xff] %v14531_v46  ;;  %v14566_v39 = vrot.slane %v19993_v6, %v19987_v45  ;;  %v14570_v10 = vrot.slane %v19994_v13, %v19987_v45  ;;  %v14574_v17 = vrot.slane %v19995_v42, %v19987_v45  ;;  %v19997_v16 = vld [vmem:[#allocation40_spill] sm:$0xff]  ;;  %v19998_v58 = vld [vmem:[#allocation50_spill] sm:$0xff] }
 0x37c   : > { %19983 = vst [vmem:[#allocation92_spill] sm:$0xff] %v14534_v37  ;;  %19985 = vst [vmem:[#allocation27_spill] sm:$0xff] %v14537_v26  ;;  %v14578_v40 = vrot.slane %v19996_v49, %v19987_v45  ;;  %v14582_v25 = vrot.slane %v19997_v16, %v19987_v45  ;;  %v14586_v3 = vrot.slane %v19998_v58, %v19987_v45  ;;  %v19999_v61 = vld [vmem:[#allocation32_spill] sm:$0xff]  ;;  %v20000_v13 = vld [vmem:[#allocation53_spill] sm:$0xff] }
 0x37d   : > { %19986 = vst [vmem:[#allocation42_spill] sm:$0xff] %v14540_v9  ;;  %19988 = vst [vmem:[#allocation43_spill] sm:$0xff] %v14547_v54  ;;  %v14590_v29 = vrot.slane %v19999_v61, %v19987_v45  ;;  %v14594_v42 = vrot.slane %v20000_v13, %v19987_v45  ;;  %v20001_v6 = vld [vmem:[#allocation54_spill] sm:$0xff]  ;;  %v20002_v60 = vld [vmem:[#allocation55_spill] sm:$0xff]  ;;  %vm4369_vm7 = vcmp.le.f32.partialorder %v14544_v34, %v19880_v21 }
 0x37e   : > { %19990 = vst [vmem:[#allocation94_spill] sm:$0xff] %v14554_v19  ;;  %v14598_v49 = vrot.slane %v20001_v6, %v19987_v45  ;;  %v14602_v16 = vrot.slane %v20002_v60, %v19987_v45  ;;  %v20003_v23 = vld [vmem:[#allocation56_spill] sm:$0xff]  ;;  %v20004_v19 = vld [vmem:[#allocation57_spill] sm:$0xff]  ;;  %vm4370_vm9 = vcmp.le.f32.partialorder %v14551_v18, %v13343_v59  ;;  %vm4371_vm8 = vcmp.le.f32.partialorder %v14558_v50, %v13348_v27  ;;  %v14655_v60 = vld [vmem:[%s6720_s7 + $0x90] sm:$0x1] }
 0x37f   : > { %v14606_v58 = vrot.slane %v20003_v23, %v19987_v45  ;;  %v14610_v61 = vrot.slane %v20004_v19, %v19987_v45  ;;  %vm4372_vm15 = vcmp.le.f32.partialorder %v14562_v63, %v13353_v38  ;;  %vm4373_vm2 = vcmp.le.f32.partialorder %v14566_v39, %v13358_v51  ;;  %v14645_v19 = vld [vmem:[%s6720_s7 + $0x80] sm:$0x1]  ;;  %v14650_v23 = vld [vmem:[%s6720_s7 + $0x88] sm:$0x1]  ;;  %20007 = vst [vmem:[#allocation45_spill] sm:$0xff] %v14655_v60 }
 0x380   : > { %vm4374_vm4 = vcmp.le.f32.partialorder %v14570_v10, %v13363_v57  ;;  %vm4375_vm3 = vcmp.le.f32.partialorder %v14574_v17, %v13368_v48  ;;  %vm4376_vm5 = vcmp.le.f32.partialorder %v14578_v40, %v13373_v20  ;;  %vm4377_vm1 = vcmp.le.f32.partialorder %v14582_v25, %v13378_v44  ;;  %20005 = vst [vmem:[#allocation76_spill] sm:$0xff] %v14645_v19  ;;  %v14660_v6 = vld [vmem:[%s6720_s7 + $0x98] sm:$0x1]  ;;  %v14665_v13 = vld [vmem:[%s6720_s7 + $0xa0] sm:$0x1] }
 0x381   : > { %vm4378_vm14 = vcmp.le.f32.partialorder %v14586_v3, %v13383_v56  ;;  %vm4379_vm12 = vcmp.le.f32.partialorder %v14590_v29, %v19889_v30  ;;  %vm4382_vm13 = vcmp.le.f32.partialorder %v14602_v16, %v19906_v32  ;;  %20006 = vst [vmem:[#allocation66_spill] sm:$0xff] %v14650_v23  ;;  %20008 = vst [vmem:[#allocation80_spill] sm:$0xff] %v14660_v6  ;;  %v14670_v54 = vld [vmem:[%s6720_s7 + $0xa8] sm:$0x1]  ;;  %v14675_v9 = vld [vmem:[%s6720_s7 + $0xb0] sm:$0x1] }
 0x382   : > { %20009 = vst [vmem:[#allocation51_spill] sm:$0xff] %v14665_v13  ;;  %20010 = vst [vmem:[#allocation64_spill] sm:$0xff] %v14670_v54  ;;  %v14680_v26 = vld [vmem:[%s6720_s7 + $0xb8] sm:$0x1]  ;;  %v14685_v37 = vld [vmem:[%s6720_s7 + $0xc0] sm:$0x1] }
 0x383   : > { %20011 = vst [vmem:[#allocation83_spill] sm:$0xff] %v14675_v9  ;;  %20012 = vst [vmem:[#allocation36_spill] sm:$0xff] %v14680_v26  ;;  %v14690_v46 = vld [vmem:[%s6720_s7 + $0xc8] sm:$0x1]  ;;  %v14695_v2 = vld [vmem:[%s6720_s7 + $0xd0] sm:$0x1] }
 0x384   : > { %20013 = vst [vmem:[#allocation84_spill] sm:$0xff] %v14685_v37  ;;  %20014 = vst [vmem:[#allocation75_spill] sm:$0xff] %v14690_v46  ;;  %v14700_v55 = vld [vmem:[%s6720_s7 + $0xd8] sm:$0x1]  ;;  %v14705_v62 = vld [vmem:[%s6720_s7 + $0xe0] sm:$0x1] }
 0x385   : > { %20015 = vst [vmem:[#allocation95_spill] sm:$0xff] %v14695_v2  ;;  %20016 = vst [vmem:[#allocation73_spill] sm:$0xff] %v14700_v55  ;;  %vm4396_vm6 = vcmp.le.f32.partialorder %v14594_v42, %v14700_v55  ;;  %vm4397_vm0 = vcmp.le.f32.partialorder %v14598_v49, %v14705_v62  ;;  %v14710_v52 = vld [vmem:[%s6720_s7 + $0xe8] sm:$0x1]  ;;  %v14715_v5 = vld [vmem:[%s6720_s7 + $0xf0] sm:$0x1] }
 0x386   : > { %20017 = vst [vmem:[#allocation97_spill] sm:$0xff] %v14705_v62  ;;  %20018 = vst [vmem:[#allocation25_spill] sm:$0xff] %v14710_v52  ;;  %vm4398_vm10 = vcmp.le.f32.partialorder %v14602_v16, %v14710_v52  ;;  %v14723_v12 = vsel %vm4369_vm7, 1, %v19158_v4  ;;  %v14729_v14 = vsel %vm4370_vm9, 1, %v19158_v4  ;;  %v14735_v47 = vsel %vm4371_vm8, 1, %v19158_v4  ;;  %v14947_v45 = vld [vmem:[%s6720_s7 + $0x40] sm:$0xff] }
 0x387   : > { %20019 = vst [vmem:[#allocation34_spill] sm:$0xff] %v14715_v5  ;;  %v14738_v7 = vld [vmem:[%s6720_s7 + $0xf8] sm:$0x1]  ;;  %v14746_v36 = vsel %vm4372_vm15, 1, %v19158_v4  ;;  %v14752_v31 = vsel %vm4373_vm2, 1, %v19158_v4  ;;  %v14758_v43 = vsel %vm4374_vm4, 1, %v19158_v4  ;;  %vm20021_vm7 = vcmp.le.f32.partialorder %v14594_v42, %v19891_v22 }
 0x388   : > { %20020 = vst [vmem:[#allocation61_spill] sm:$0xff] %v14738_v7  ;;  %vm4400_vm11 = vcmp.le.f32.partialorder %v14610_v61, %v14738_v7  ;;  %v14764_v15 = vsel %vm4375_vm3, 1, %v19158_v4  ;;  %v14770_v38 = vsel %vm4376_vm5, 1, %v19158_v4  ;;  %v14776_v51 = vsel %vm4377_vm1, 1, %v19158_v4 }
 0x389   : > { %v14782_v57 = vsel %vm4378_vm14, 1, %v19158_v4  ;;  %v14788_v48 = vsel %vm4379_vm12, 1, %v19158_v4  ;;  %v14794_v20 = vsel %vm20021_vm7, 1, %v19158_v4  ;;  %vm20022_vm9 = vcmp.le.f32.partialorder %v14598_v49, %v19900_v24 }
 0x38a   : > { %v14800_v44 = vsel %vm20022_vm9, 1, %v19158_v4  ;;  %v14806_v56 = vsel %vm4382_vm13, 1, %v19158_v4  ;;  %vm20023_vm8 = vcmp.le.f32.partialorder %v14606_v58, %v19907_v1  ;;  %vm20024_vm15 = vcmp.le.f32.partialorder %v14610_v61, %v19911_v35 }
 0x38b   : > { %v14812_v30 = vsel %vm20023_vm8, 1, %v19158_v4  ;;  %v14818_v22 = vsel %vm20024_vm15, 1, %v19158_v4  ;;  %vm20025_vm2 = vcmp.le.f32.partialorder %v14544_v34, %v14645_v19  ;;  %vm20026_vm4 = vcmp.le.f32.partialorder %v14551_v18, %v14650_v23 }
 0x38c   : > { %v4417_v24 = vsel %vm20025_vm2, 1, %v19158_v4  ;;  %v4418_v32 = vsel %vm20026_vm4, 1, %v19158_v4  ;;  %vm20027_vm3 = vcmp.le.f32.partialorder %v14558_v50, %v14655_v60  ;;  %vm20028_vm5 = vcmp.le.f32.partialorder %v14562_v63, %v14660_v6 }
 0x38d   : > { %v4419_v1 = vsel %vm20027_vm3, 1, %v19158_v4  ;;  %v4420_v35 = vsel %vm20028_vm5, 1, %v19158_v4  ;;  %vm20029_vm1 = vcmp.le.f32.partialorder %v14566_v39, %v14665_v13  ;;  %vm20030_vm14 = vcmp.le.f32.partialorder %v14570_v10, %v14670_v54 }
 0x38e   : > { %v4421_v19 = vsel %vm20029_vm1, 1, %v19158_v4  ;;  %v4422_v23 = vsel %vm20030_vm14, 1, %v19158_v4  ;;  %vm20031_vm12 = vcmp.le.f32.partialorder %v14574_v17, %v14675_v9  ;;  %vm20032_vm13 = vcmp.le.f32.partialorder %v14578_v40, %v14680_v26 }
 0x38f   : > { %v4423_v60 = vsel %vm20031_vm12, 1, %v19158_v4  ;;  %v4424_v6 = vsel %vm20032_vm13, 1, %v19158_v4  ;;  %vm20033_vm7 = vcmp.le.f32.partialorder %v14582_v25, %v14685_v37  ;;  %vm20034_vm9 = vcmp.le.f32.partialorder %v14586_v3, %v14690_v46 }
 0x390   : > { %v14856_v13 = vsel %vm20033_vm7, 1, %v19158_v4  ;;  %v14862_v54 = vsel %vm20034_vm9, 1, %v19158_v4  ;;  %vm20035_vm8 = vcmp.le.f32.partialorder %v14590_v29, %v14695_v2  ;;  %vm4353_vm15 = vcmp.ge.f32.partialorder %v14544_v34, %v19880_v21 }
 0x391   : > { %v14868_v9 = vsel %vm20035_vm8, 1, %v19158_v4  ;;  %vm4354_vm2 = vcmp.ge.f32.partialorder %v14551_v18, %v13343_v59  ;;  %v4433_v37 = vrot.slane %v14723_v12, 1  ;;  %v4434_v26 = vrot.slane %v4417_v24, 1  ;;  %v14997_v59 = vld [vmem:[%s6720_s7 + $0x50] sm:$0xff] }
 0x392   : > { %v4436_v46 = vrot.slane %v14729_v14, 1  ;;  %v4437_v0 = vrot.slane %v4418_v32, 1  ;;  %vm4355_vm4 = vcmp.ge.f32.partialorder %v14558_v50, %v13348_v27  ;;  %v4439_v2 = vrot.slane %v14735_v47, 1  ;;  %20052 = vst [vmem:[#allocation62_spill] sm:$0xff] %v14997_v59 }
 0x393   : > { %v4440_v8 = vrot.slane %v4419_v1, 1  ;;  %v4442_v33 = vrot.slane %v14746_v36, 1  ;;  %v4443_v41 = vrot.slane %v4420_v35, 1  ;;  %vm4356_vm3 = vcmp.ge.f32.partialorder %v14562_v63, %v14881_v28  ;;  %v14924_v35 = vld [vmem:[%s6720_s7 + $0x30] sm:$0xff]  ;;  %v15027_v63 = vld [vmem:[%s6720_s7 + $0x60] sm:$0xff] }
 0x394   : > { %v4445_v12 = vrot.slane %v14752_v31, 1  ;;  %v4446_v14 = vrot.slane %v4421_v19, 1  ;;  %v4448_v24 = vrot.slane %v14758_v43, 1  ;;  %v4449_v32 = vrot.slane %v4422_v23, 1  ;;  %v14906_v19 = vld [vmem:[%s6720_s7 + $0x28] sm:$0xff]  ;;  %20062 = vst [vmem:[#allocation85_spill] sm:$0xff] %v15027_v63 }
 0x395   : > { %vm4357_vm5 = vcmp.ge.f32.partialorder %v14566_v39, %v14888_v11  ;;  %v14896_v36 = vsel %vm4396_vm6, 1, %v19158_v4  ;;  %v14902_v31 = vsel %vm4397_vm0, 1, %v19158_v4  ;;  %v4451_v43 = vrot.slane %v14764_v15, 1  ;;  %v15042_v39 = vld [vmem:[%s6720_s7 + $0x68] sm:$0xff] }
 0x396   : > { %v4452_v47 = vrot.slane %v4423_v60, 1  ;;  %vm4358_vm1 = vcmp.ge.f32.partialorder %v14570_v10, %v14906_v19  ;;  %v14914_v23 = vsel %vm4398_vm10, 1, %v19158_v4  ;;  %vm20036_vm6 = vcmp.le.f32.partialorder %v14606_v58, %v14715_v5  ;;  %20067 = vst [vmem:[#allocation86_spill] sm:$0xff] %v15042_v39  ;;  %v15061_v10 = vld [vmem:[%s6720_s7 + $0x78] sm:$0xff] }
 0x397   : > { %v14920_v1 = vsel %vm20036_vm6, 1, %v19158_v4  ;;  %v4454_v15 = vrot.slane %v14770_v38, 1  ;;  %v4455_v60 = vrot.slane %v4424_v6, 1  ;;  %v14932_v52 = vsel %vm4400_vm11, 1, %v19158_v4  ;;  %v14938_v38 = vld [vmem:[%s6720_s7 + $0x38] sm:$0xff]  ;;  %20073 = vst [vmem:[#allocation89_spill] sm:$0xff] %v15061_v10 }
 0x398   : > { %vm20037_vm10 = vcmask 1046528   ;;  %v4457_v4 = vrot.slane %v14776_v51, 1  ;;  %v4466_v51 = vrot.slane %v14794_v20, 1  ;;  %vm20049_vm11 = vcmask 1046528  }
 0x399   : > { %v4435_v5 = vsel %vm20037_vm10, %v4433_v37, %v4434_v26  ;;  %vm20038_vm14 = vmmov %vm20037_vm10  ;;  %v4463_v37 = vrot.slane %v14788_v48, 1  ;;  %v4464_v26 = vrot.slane %v14868_v9, 1  ;;  %v4473_v48 = vrot.slane %v14914_v23, 1  ;;  %v20084_v23 = vld [vmem:[#allocation47_spill] sm:$0xff] }
 0x39a   : > { %v4438_v62 = vsel %vm20038_vm14, %v4436_v46, %v4437_v0  ;;  %vm20039_vm12 = vmmov %vm20037_vm10  ;;  %v4458_v0 = vrot.slane %v14856_v13, 1  ;;  %v4461_v46 = vrot.slane %v14862_v54, 1  ;;  %v4467_v13 = vrot.slane %v14896_v36, 1 }
 0x39b   : > { %v4441_v55 = vsel %vm20039_vm12, %v4439_v2, %v4440_v8  ;;  %vm20040_vm7 = vmmov %vm20037_vm10  ;;  %v4460_v2 = vrot.slane %v14782_v57, 1  ;;  %vm4481_vm12 = vcmp.ne.s32.totalorder %v4435_v5, 0  ;;  %v4469_v54 = vrot.slane %v14800_v44, 1 }
 0x39c   : > { %v4444_v6 = vsel %vm20040_vm7, %v4442_v33, %v4443_v41  ;;  %vm20041_vm9 = vmmov %vm20040_vm7  ;;  %v14956_v41 = vld [vmem:[%s6720_s7 + $0x48] sm:$0xff]  ;;  %v4470_v57 = vrot.slane %v14902_v31, 1  ;;  %v4475_v5 = vrot.slane %v14812_v30, 1  ;;  %v4459_v44 = vsel %vm20049_vm11, %v4457_v4, %v4458_v0  ;;  %v15002_v4 = vld [vmem:[%s6720_s7 + $0x58] sm:$0xff] }
 0x39d   : > { %v4447_v53 = vsel %vm20041_vm9, %v4445_v12, %v4446_v14  ;;  %vm20042_vm8 = vmmov %vm20040_vm7  ;;  %vm4483_vm9 = vcmp.ne.s32.totalorder %v4441_v55, 0  ;;  %v4472_v12 = vrot.slane %v14806_v56, 1  ;;  %v4478_v56 = vrot.slane %v14818_v22, 1  ;;  %20053 = vst [vmem:[#allocation63_spill] sm:$0xff] %v15002_v4  ;;  %v20082_v31 = vld [vmem:[#allocation31_spill] sm:$0xff] }
 0x39e   : > { %v4450_v7 = vsel %vm20042_vm8, %v4448_v24, %v4449_v32  ;;  %vm20043_vm6 = vmmov %vm20040_vm7  ;;  %vm4482_vm7 = vcmp.ne.s32.totalorder %v4438_v62, 0  ;;  %vm4484_vm8 = vcmp.ne.s32.totalorder %v4444_v6, 0  ;;  %v4476_v62 = vrot.slane %v14920_v1, 1  ;;  %v15047_v24 = vld [vmem:[%s6720_s7 + $0x70] sm:$0xff] }
 0x39f   : > { %v4453_v8 = vsel %vm20043_vm6, %v4451_v43, %v4452_v47  ;;  %vm20044_vm14 = vmmov %vm20043_vm6  ;;  %vm4485_vm6 = vcmp.ne.s32.totalorder %v4447_v53, 0  ;;  %v4479_v30 = vrot.slane %v14932_v52, 1  ;;  %vm4486_vm13 = vcmp.ne.s32.totalorder %v4450_v7, 0  ;;  %20068 = vst [vmem:[#allocation44_spill] sm:$0xff] %v15047_v24  ;;  %v20083_v43 = vld [vmem:[#allocation46_spill] sm:$0xff] }
 0x3a0   : > { %v4456_v33 = vsel %vm20044_vm14, %v4454_v15, %v4455_v60  ;;  %vm14974_vm14 = vmand %vm4353_vm15, %vm4481_vm12  ;;  %v20055_v27 = vmov 0  ;;  %v20060_v50 = vmov 0  ;;  %v20065_v53 = vmov 0  ;;  %v20089_v60 = vld [vmem:[#allocation91_spill] sm:$0xff] }
 0x3a1   : > { %vm14981_vm10 = vmand %vm4354_vm2, %vm4482_vm7  ;;  %vm4487_vm7 = vcmp.ne.s32.totalorder %v4453_v8, 0  ;;  %v20071_v7 = vmov 0  ;;  %v4516_v47 = vrot.slane %v20083_v43, %v20082_v31  ;;  %v4528_v6 = vrot.slane %v20089_v60, %v20082_v31  ;;  %v20090_v8 = vld [vmem:[#allocation78_spill] sm:$0xff] }
 0x3a2   : > { %vm14992_vm15 = vmand %vm4355_vm4, %vm4483_vm9  ;;  %v4532_v0 = vrot.slane %v20090_v8, %v20082_v31 }
 0x3a3   : > { %vm20054_vm12 = vmmov %vm20049_vm11 }
 0x3a4   : > { %v4462_v52 = vsel %vm20054_vm12, %v4460_v2, %v4461_v46  ;;  %vm15011_vm4 = vmand %vm4356_vm3, %vm4484_vm8  ;;  %v20130_v2 = vld [vmem:[#allocation68_spill] sm:$0xff] }
 0x3a5   : > { %v20056_v27 = vsel %vm15011_vm4, 4294967295, %v20055_v27  ;;  %vm20057_vm9 = vmmov %vm20049_vm11 }
 0x3a6   : > { %v4465_v55 = vsel %vm20057_vm9, %v4463_v37, %v4464_v26  ;;  %vm20058_vm2 = vmmov %vm20057_vm9  ;;  %v20096_v26 = vld [vmem:[#allocation98_spill] sm:$0xff] }
 0x3a7   : > { %v4468_v34 = vsel %vm20058_vm2, %v4466_v51, %v4467_v13  ;;  %vm20059_vm0 = vmmov %vm20058_vm2  ;;  %vm4491_vm3 = vcmp.ne.s32.totalorder %v4465_v55, 0  ;;  %v4544_v51 = vrot.slane %v20096_v26, %v20082_v31  ;;  %v20097_v13 = vld [vmem:[#allocation58_spill] sm:$0xff] }
 0x3a8   : > { %v4471_v18 = vsel %vm20059_vm0, %v4469_v54, %v4470_v57  ;;  %vm15022_vm12 = vmand %vm4357_vm5, %vm4485_vm6  ;;  %vm20074_vm6 = vcmp.ne.s32.totalorder %v4456_v33, 0  ;;  %v20095_v33 = vld [vmem:[#allocation23_spill] sm:$0xff]  ;;  %v4548_v54 = vrot.slane %v20097_v13, %v20082_v31  ;;  %v20101_v57 = vld [vmem:[#allocation74_spill] sm:$0xff] }
 0x3a9   : > { %v20061_v50 = vsel %vm15022_vm12, 4294967295, %v20060_v50  ;;  %vm20063_vm8 = vmmov %vm20059_vm0  ;;  %vm4493_vm11 = vcmp.ne.s32.totalorder %v4471_v18, 0  ;;  %vm20078_vm12 = vcmp.ne.s32.totalorder %v4459_v44, 0  ;;  %v4540_v37 = vrot.slane %v20095_v33, %v20082_v31  ;;  %v20113_v18 = vld [vmem:[#allocation26_spill] sm:$0xff] }
 0x3aa   : > { %v4474_v22 = vsel %vm20063_vm8, %v4472_v12, %v4473_v48  ;;  %vm20064_vm2 = vmmov %vm20059_vm0  ;;  %v4552_v12 = vrot.slane %v20101_v57, %v20082_v31  ;;  %v20102_v48 = vld [vmem:[#allocation59_spill] sm:$0xff] }
 0x3ab   : > { %v4477_v14 = vsel %vm20064_vm2, %v4475_v5, %v4476_v62  ;;  %vm15037_vm9 = vmand %vm4358_vm1, %vm4486_vm13  ;;  %vm4490_vm2 = vcmp.ne.s32.totalorder %v4462_v52, 0  ;;  %vm20070_vm1 = vcmp.ge.f32.partialorder %v14574_v17, %v14924_v35  ;;  %v4556_v5 = vrot.slane %v20102_v48, %v20082_v31  ;;  %v20103_v62 = vld [vmem:[#allocation69_spill] sm:$0xff]  ;;  %v20108_v52 = vld [vmem:[#allocation72_spill] sm:$0xff] }
 0x3ac   : > { %v20066_v53 = vsel %vm15037_vm9, 4294967295, %v20065_v53  ;;  %vm20069_vm8 = vmmov %vm20059_vm0  ;;  %vm4492_vm0 = vcmp.ne.s32.totalorder %v4468_v34, 0  ;;  %v4560_v44 = vrot.slane %v20103_v62, %v20082_v31  ;;  %v4568_v55 = vrot.slane %v20108_v52, %v20082_v31  ;;  %v20109_v34 = vld [vmem:[#allocation67_spill] sm:$0xff] }
 0x3ad   : > { %v4480_v32 = vsel %vm20069_vm8, %v4478_v56, %v4479_v30  ;;  %vm15056_vm13 = vmand %vm20070_vm1, %vm4487_vm7  ;;  %vm20075_vm8 = vcmp.ge.f32.partialorder %v14578_v40, %v14938_v38  ;;  %vm4494_vm7 = vcmp.ne.s32.totalorder %v4474_v22, 0  ;;  %vm4495_vm1 = vcmp.ne.s32.totalorder %v4477_v14, 0  ;;  %v20104_v56 = vld [vmem:[#allocation71_spill] sm:$0xff]  ;;  %v20120_v14 = vld [vmem:[#allocation48_spill] sm:$0xff] }
 0x3ae   : > { %v20072_v7 = vsel %vm15056_vm13, 4294967295, %v20071_v7  ;;  %vm15069_vm9 = vmand %vm20075_vm8, %vm20074_vm6  ;;  %vm20079_vm13 = vcmp.ge.f32.partialorder %v14582_v25, %v14947_v45  ;;  %v4520_v40 = vrot.slane %v20084_v23, %v20082_v31  ;;  %vm4496_vm6 = vcmp.ne.s32.totalorder %v4480_v32, 0  ;;  %v20088_v25 = vld [vmem:[#allocation70_spill] sm:$0xff] }
 0x3af   : > { %vm15077_vm4 = vmand %vm20079_vm13, %vm20078_vm12  ;;  %vm20085_vm8 = vcmp.ge.f32.partialorder %v14586_v3, %v14956_v41  ;;  %v4524_v15 = vrot.slane %v20088_v25, %v20082_v31  ;;  %vm20091_vm12 = vcmp.ge.f32.partialorder %v14590_v29, %v14997_v59  ;;  %v20094_v3 = vld [vmem:[#allocation21_spill] sm:$0xff]  ;;  %v4564_v30 = vrot.slane %v20104_v56, %v20082_v31 }
 0x3b0   : > { %vm15088_vm5 = vmand %vm20085_vm8, %vm4490_vm2  ;;  %v4536_v46 = vrot.slane %v20094_v3, %v20082_v31  ;;  %vm20098_vm2 = vcmp.ge.f32.partialorder %v14594_v42, %v15002_v4  ;;  %vm20105_vm8 = vcmp.ge.f32.partialorder %v14598_v49, %v15027_v63  ;;  %v4572_v48 = vrot.slane %v20109_v34, %v20082_v31  ;;  %v20134_v29 = vld [vmem:[#allocation33_spill] sm:$0xff]  ;;  %v20142_v42 = vld [vmem:[#allocation88_spill] sm:$0xff] }
 0x3b1   : > { %vm15101_vm13 = vmand %vm20091_vm12, %vm4491_vm3  ;;  %v4577_v62 = vsel %vm14974_vm14, %v4516_v47, 0.0  ;;  %v4578_v56 = vsel %vm14981_vm10, %v4520_v40, 0.0  ;;  %vm20110_vm12 = vcmp.ge.f32.partialorder %v14602_v16, %v15042_v39  ;;  %v4576_v52 = vrot.slane %v20113_v18, %v20082_v31  ;;  %v20126_v47 = vld [vmem:[#allocation81_spill] sm:$0xff]  ;;  %v20146_v49 = vld [vmem:[#allocation92_spill] sm:$0xff] }
 0x3b2   : > { %vm15117_vm3 = vmand %vm20098_vm2, %vm4492_vm0  ;;  %v4579_v34 = vsel %vm14992_vm15, %v4524_v15, 0.0  ;;  %vm20114_vm2 = vnez %v20056_v27  ;;  %vm20115_vm14 = vnez %v20061_v50  ;;  %vm20116_vm10 = vcmp.ge.f32.partialorder %v14606_v58, %v15047_v24 }
 0x3b3   : > { %vm15133_vm0 = vmand %vm20105_vm8, %vm4493_vm11  ;;  %v4580_v9 = vsel %vm20114_vm2, %v4528_v6, 0.0  ;;  %v4581_v20 = vsel %vm20115_vm14, %v4532_v0, 0.0  ;;  %vm20117_vm8 = vnez %v20066_v53  ;;  %v4584_v21 = vsel %vm15069_vm9, %v4544_v51, 0.0  ;;  %v20128_v6 = vld [vmem:[#allocation77_spill] sm:$0xff]  ;;  %v20132_v51 = vld [vmem:[#allocation28_spill] sm:$0xff] }
 0x3b4   : > { %vm15149_vm11 = vmand %vm20110_vm12, %vm4494_vm7  ;;  %v4582_v16 = vsel %vm20117_vm8, %v4536_v46, 0.0  ;;  %vm20118_vm12 = vnez %v20072_v7  ;;  %v4585_v27 = vsel %vm15077_vm4, %v4548_v54, 0.0  ;;  %vm20119_vm15 = vcmp.ge.f32.partialorder %v14610_v61, %v15061_v10  ;;  %v20122_v7 = vld [vmem:[#allocation29_spill] sm:$0xff]  ;;  %v20124_v61 = vld [vmem:[#allocation22_spill] sm:$0xff] }
 0x3b5   : > { %vm4511_vm7 = vmand %vm20116_vm10, %vm4495_vm1  ;;  %v4583_v22 = vsel %vm20118_vm12, %v4540_v37, 0.0  ;;  %v4586_v58 = vsel %vm15088_vm5, %v4552_v12, 0.0  ;;  %v4587_v50 = vsel %vm15101_vm13, %v4556_v5, 0.0  ;;  %v15182_v53 = vadd.f32 %v4577_v62, %v20120_v14  ;;  %v20136_v5 = vld [vmem:[#allocation41_spill] sm:$0xff]  ;;  %v20154_v14 = vld [vmem:[#allocation94_spill] sm:$0xff] }
 0x3b6   : > { %vm4512_vm2 = vmand %vm20119_vm15, %vm4496_vm6  ;;  %v15185_v36 = vadd.f32 %v4578_v56, %v20122_v7  ;;  %v4588_v17 = vsel %vm15117_vm3, %v4560_v44, 0.0  ;;  %v4589_v32 = vsel %vm15133_vm0, %v4564_v30, 0.0  ;;  %v15192_v31 = vadd.f32 %v4579_v34, %v20124_v61  ;;  %v20138_v44 = vld [vmem:[#allocation30_spill] sm:$0xff]  ;;  %v20144_v34 = vld [vmem:[#allocation65_spill] sm:$0xff] }
 0x3b7   : > { %20121 = vst [vmem:[#allocation90_spill] sm:$0xff] %v15182_v53  ;;  %v15195_v40 = vadd.f32 %v4580_v9, %v20126_v47  ;;  %v4590_v1 = vsel %vm15149_vm11, %v4568_v55, 0.0  ;;  %v4591_v15 = vsel %vm4511_vm7, %v4572_v48, 0.0  ;;  %v15200_v0 = vadd.f32 %v4581_v20, %v20128_v6  ;;  %v20140_v48 = vld [vmem:[#allocation87_spill] sm:$0xff]  ;;  %v20157_v61 = vld [vmem:[#allocation49_spill] sm:$0xff] }
 0x3b8   : > { %20123 = vst [vmem:[#allocation93_spill] sm:$0xff] %v15185_v36  ;;  %20125 = vst [vmem:[#allocation82_spill] sm:$0xff] %v15192_v31  ;;  %v15203_v46 = vadd.f32 %v4582_v16, %v20130_v2  ;;  %v4592_v37 = vsel %vm4512_vm2, %v4576_v52, 0.0  ;;  %v15206_v54 = vadd.f32 %v4583_v22, %v20132_v51  ;;  %v15209_v12 = vadd.f32 %v4584_v21, %v20134_v29  ;;  %v20148_v20 = vld [vmem:[#allocation27_spill] sm:$0xff]  ;;  %v20151_v21 = vld [vmem:[#allocation42_spill] sm:$0xff] }
 0x3b9   : > { %20127 = vst [vmem:[#allocation20_spill] sm:$0xff] %v15195_v40  ;;  %20129 = vst [vmem:[#allocation24_spill] sm:$0xff] %v15200_v0  ;;  %v15212_v62 = vadd.f32 %v4585_v27, %v20136_v5  ;;  %v15215_v56 = vadd.f32 %v4586_v58, %v20138_v44  ;;  %v15218_v30 = vadd.f32 %v4587_v50, %v20140_v48  ;;  %v20150_v22 = vld [vmem:[#allocation35_spill] sm:$0xff]  ;;  %v20162_v44 = vld [vmem:[#allocation40_spill] sm:$0xff]  ;;  %v20187_v0 = vmov 0  }
 0x3ba   : > { %20131 = vst [vmem:[#allocation31_spill] sm:$0xff] %v15203_v46  ;;  %20133 = vst [vmem:[#allocation48_spill] sm:$0xff] %v15206_v54  ;;  %v15221_v55 = vadd.f32 %v4588_v17, %v20142_v42  ;;  %v15224_v52 = vadd.f32 %v4589_v32, %v20144_v34  ;;  %v15227_v9 = vadd.f32 %v4590_v1, %v20146_v49  ;;  %v20153_v58 = vld [vmem:[#allocation43_spill] sm:$0xff]  ;;  %v20156_v17 = vld [vmem:[#allocation96_spill] sm:$0xff] }
 0x3bb   : > { %20135 = vst [vmem:[#allocation29_spill] sm:$0xff] %v15209_v12  ;;  %20137 = vst [vmem:[#allocation22_spill] sm:$0xff] %v15212_v62  ;;  %v15230_v16 = vadd.f32 %v4591_v15, %v20148_v20  ;;  %v15234_v27 = vrot.slane %v20151_v21, %v20150_v22  ;;  %v15238_v50 = vrot.slane %v20153_v58, %v20150_v22  ;;  %v20158_v1 = vld [vmem:[#allocation38_spill] sm:$0xff]  ;;  %v20159_v6 = vld [vmem:[#allocation79_spill] sm:$0xff] }
 0x3bc   : > { %20139 = vst [vmem:[#allocation81_spill] sm:$0xff] %v15215_v56  ;;  %20141 = vst [vmem:[#allocation77_spill] sm:$0xff] %v15218_v30  ;;  %v15241_v7 = vadd.f32 %v4592_v37, %v20154_v14  ;;  %v15245_v32 = vrot.slane %v20156_v17, %v20150_v22  ;;  %v15249_v47 = vrot.slane %v20157_v61, %v20150_v22  ;;  %v20160_v37 = vld [vmem:[#allocation37_spill] sm:$0xff]  ;;  %v20161_v29 = vld [vmem:[#allocation39_spill] sm:$0xff] }
 0x3bd   : > { %20143 = vst [vmem:[#allocation68_spill] sm:$0xff] %v15221_v55  ;;  %20145 = vst [vmem:[#allocation28_spill] sm:$0xff] %v15224_v52  ;;  %v15253_v15 = vrot.slane %v20158_v1, %v20150_v22  ;;  %v15257_v2 = vrot.slane %v20159_v6, %v20150_v22  ;;  %v15261_v51 = vrot.slane %v20160_v37, %v20150_v22  ;;  %v20163_v42 = vld [vmem:[#allocation50_spill] sm:$0xff]  ;;  %v20164_v49 = vld [vmem:[#allocation32_spill] sm:$0xff] }
 0x3be   : > { %20147 = vst [vmem:[#allocation33_spill] sm:$0xff] %v15227_v9  ;;  %20149 = vst [vmem:[#allocation41_spill] sm:$0xff] %v15230_v16  ;;  %v15265_v5 = vrot.slane %v20161_v29, %v20150_v22  ;;  %v15269_v48 = vrot.slane %v20162_v44, %v20150_v22  ;;  %v15273_v34 = vrot.slane %v20163_v42, %v20150_v22  ;;  %v20166_v14 = vld [vmem:[#allocation53_spill] sm:$0xff]  ;;  %v20167_v61 = vld [vmem:[#allocation54_spill] sm:$0xff] }
 0x3bf   : > { %20152 = vst [vmem:[#allocation30_spill] sm:$0xff] %v15234_v27  ;;  %20155 = vst [vmem:[#allocation87_spill] sm:$0xff] %v15241_v7  ;;  %v15277_v20 = vrot.slane %v20164_v49, %v20150_v22  ;;  %v15281_v17 = vrot.slane %v20166_v14, %v20150_v22  ;;  %v15285_v1 = vrot.slane %v20167_v61, %v20150_v22  ;;  %v20168_v6 = vld [vmem:[#allocation55_spill] sm:$0xff]  ;;  %v20169_v29 = vld [vmem:[#allocation56_spill] sm:$0xff] }
 0x3c0   : > { %v15289_v37 = vrot.slane %v20168_v6, %v20150_v22  ;;  %v15293_v44 = vrot.slane %v20169_v29, %v20150_v22  ;;  %v20170_v42 = vld [vmem:[#allocation57_spill] sm:$0xff]  ;;  %v15300_v7 = vld [vmem:[%s6720_s7] sm:$0xff]  ;;  %v15310_v61 = vld [vmem:[%s6720_s7 + $0x10] sm:$0xff]  ;;  %vm4692_vm1 = vcmp.le.f32.partialorder %v15249_v47, %v14881_v28  ;;  %vm4693_vm6 = vcmp.le.f32.partialorder %v15253_v15, %v14888_v11 }
 0x3c1   : > { %20165 = vst [vmem:[#allocation88_spill] sm:$0xff] %v15277_v20  ;;  %v15297_v49 = vrot.slane %v20170_v42, %v20150_v22  ;;  %20171 = vst [vmem:[#allocation65_spill] sm:$0xff] %v15300_v7  ;;  %vm4689_vm4 = vcmp.le.f32.partialorder %v15234_v27, %v15300_v7  ;;  %v15305_v14 = vld [vmem:[%s6720_s7 + $0x8] sm:$0xff]  ;;  %vm4691_vm5 = vcmp.le.f32.partialorder %v15245_v32, %v15310_v61  ;;  %v20172_v6 = vld [vmem:[#allocation76_spill] sm:$0xff]  ;;  %v4724_v18 = vsel %vm4692_vm1, 1, %v20187_v0 }
 0x3c2   : > { %vm4690_vm9 = vcmp.le.f32.partialorder %v15238_v50, %v15305_v14  ;;  %vm4694_vm13 = vcmp.le.f32.partialorder %v15257_v2, %v14906_v19  ;;  %vm4695_vm3 = vcmp.le.f32.partialorder %v15261_v51, %v14924_v35  ;;  %vm4696_vm0 = vcmp.le.f32.partialorder %v15265_v5, %v14938_v38  ;;  %v20173_v29 = vld [vmem:[#allocation66_spill] sm:$0xff]  ;;  %v20174_v42 = vld [vmem:[#allocation45_spill] sm:$0xff]  ;;  %v20175_v58 = vld [vmem:[#allocation80_spill] sm:$0xff] }
 0x3c3   : > { %vm4697_vm11 = vcmp.le.f32.partialorder %v15269_v48, %v14947_v45  ;;  %v20176_v21 = vld [vmem:[#allocation51_spill] sm:$0xff]  ;;  %v20177_v16 = vld [vmem:[#allocation64_spill] sm:$0xff]  ;;  %v20183_v62 = vld [vmem:[#allocation73_spill] sm:$0xff]  ;;  %v4721_v40 = vsel %vm4689_vm4, 1, %v20187_v0  ;;  %v4722_v31 = vsel %vm4690_vm9, 1, %v20187_v0  ;;  %v4723_v36 = vsel %vm4691_vm5, 1, %v20187_v0 }
 0x3c4   : > { %v20178_v9 = vld [vmem:[#allocation83_spill] sm:$0xff]  ;;  %v20179_v52 = vld [vmem:[#allocation36_spill] sm:$0xff]  ;;  %vm4716_vm12 = vcmp.le.f32.partialorder %v15281_v17, %v20183_v62  ;;  %v20184_v12 = vld [vmem:[#allocation97_spill] sm:$0xff]  ;;  %v4725_v57 = vsel %vm4693_vm6, 1, %v20187_v0  ;;  %v4726_v13 = vsel %vm4694_vm13, 1, %v20187_v0  ;;  %v4727_v26 = vsel %vm4695_vm3, 1, %v20187_v0 }
 0x3c5   : > { %v20180_v55 = vld [vmem:[#allocation84_spill] sm:$0xff]  ;;  %v20181_v30 = vld [vmem:[#allocation75_spill] sm:$0xff]  ;;  %vm4717_vm15 = vcmp.le.f32.partialorder %v15285_v1, %v20184_v12  ;;  %v20185_v54 = vld [vmem:[#allocation25_spill] sm:$0xff]  ;;  %v15404_v33 = vsel %vm4696_vm0, 1, %v20187_v0  ;;  %v15410_v3 = vsel %vm4697_vm11, 1, %v20187_v0  ;;  %vm20189_vm4 = vcmp.le.f32.partialorder %v15273_v34, %v14956_v41 }
 0x3c6   : > { %vm4713_vm10 = vcmp.le.f32.partialorder %v15269_v48, %v20180_v55  ;;  %vm4714_vm7 = vcmp.le.f32.partialorder %v15273_v34, %v20181_v30  ;;  %v20182_v56 = vld [vmem:[#allocation95_spill] sm:$0xff]  ;;  %v20186_v46 = vld [vmem:[#allocation34_spill] sm:$0xff]  ;;  %v20188_v53 = vld [vmem:[#allocation61_spill] sm:$0xff]  ;;  %v15416_v8 = vsel %vm20189_vm4, 1, %v20187_v0  ;;  %vm20190_vm9 = vcmp.le.f32.partialorder %v15277_v20, %v14997_v59 }
 0x3c7   : > { %vm4715_vm8 = vcmp.le.f32.partialorder %v15277_v20, %v20182_v56  ;;  %vm4719_vm14 = vcmp.le.f32.partialorder %v15293_v44, %v20186_v46  ;;  %vm4720_vm2 = vcmp.le.f32.partialorder %v15297_v49, %v20188_v53  ;;  %v15422_v60 = vsel %vm20190_vm9, 1, %v20187_v0 }
 0x3c8   : > { %vm20191_vm5 = vcmp.le.f32.partialorder %v15281_v17, %v15002_v4  ;;  %vm20192_vm1 = vcmp.le.f32.partialorder %v15285_v1, %v15027_v63  ;;  %vm20194_vm6 = vcmp.le.f32.partialorder %v15289_v37, %v15042_v39  ;;  %vm20196_vm13 = vcmp.le.f32.partialorder %v15293_v44, %v15047_v24 }
 0x3c9   : > { %v15428_v25 = vsel %vm20191_vm5, 1, %v20187_v0  ;;  %v15434_v23 = vsel %vm20192_vm1, 1, %v20187_v0  ;;  %v15440_v43 = vsel %vm20194_vm6, 1, %v20187_v0  ;;  %v15446_v22 = vsel %vm20196_vm13, 1, %v20187_v0 }
 0x3ca   : > { %20193 = vst [vmem:[#allocation92_spill] sm:$0xff] %v15434_v23  ;;  %20195 = vst [vmem:[#allocation27_spill] sm:$0xff] %v15440_v43  ;;  %vm20198_vm3 = vcmp.le.f32.partialorder %v15297_v49, %v15061_v10  ;;  %vm20200_vm0 = vcmp.le.f32.partialorder %v15234_v27, %v20172_v6  ;;  %vm20201_vm11 = vcmp.le.f32.partialorder %v15238_v50, %v20173_v29  ;;  %v4753_v55 = vrot.slane %v4721_v40, 1 }
 0x3cb   : > { %20197 = vst [vmem:[#allocation94_spill] sm:$0xff] %v15446_v22  ;;  %v15452_v4 = vsel %vm20198_vm3, 1, %v20187_v0  ;;  %v4737_v63 = vsel %vm20200_vm0, 1, %v20187_v0  ;;  %v4738_v39 = vsel %vm20201_vm11, 1, %v20187_v0  ;;  %vm20202_vm4 = vcmp.le.f32.partialorder %v15245_v32, %v20174_v42 }
 0x3cc   : > { %20199 = vst [vmem:[#allocation96_spill] sm:$0xff] %v15452_v4  ;;  %v4739_v24 = vsel %vm20202_vm4, 1, %v20187_v0  ;;  %vm20203_vm9 = vcmp.le.f32.partialorder %v15249_v47, %v20175_v58  ;;  %vm20204_vm5 = vcmp.le.f32.partialorder %v15253_v15, %v20176_v21  ;;  %vm20205_vm1 = vcmp.le.f32.partialorder %v15257_v2, %v20177_v16 }
 0x3cd   : > { %v4740_v10 = vsel %vm20203_vm9, 1, %v20187_v0  ;;  %v4741_v6 = vsel %vm20204_vm5, 1, %v20187_v0  ;;  %v4742_v29 = vsel %vm20205_vm1, 1, %v20187_v0  ;;  %vm20206_vm6 = vcmp.le.f32.partialorder %v15261_v51, %v20178_v9 }
 0x3ce   : > { %v4743_v42 = vsel %vm20206_vm6, 1, %v20187_v0  ;;  %vm20207_vm13 = vcmp.le.f32.partialorder %v15265_v5, %v20179_v52  ;;  %v15490_v21 = vsel %vm4713_vm10, 1, %v20187_v0  ;;  %v15496_v16 = vsel %vm4714_vm7, 1, %v20187_v0 }
 0x3cf   : > { %v4744_v58 = vsel %vm20207_vm13, 1, %v20187_v0  ;;  %v15502_v9 = vsel %vm4715_vm8, 1, %v20187_v0  ;;  %vm4673_vm3 = vcmp.ge.f32.partialorder %v15234_v27, %v15300_v7  ;;  %vm4674_vm0 = vcmp.ge.f32.partialorder %v15238_v50, %v15305_v14  ;;  %v20231_v50 = vld [vmem:[#allocation88_spill] sm:$0xff] }
 0x3d0   : > { %v4754_v52 = vrot.slane %v4737_v63, 1  ;;  %v4756_v59 = vrot.slane %v4722_v31, 1  ;;  %v4757_v4 = vrot.slane %v4738_v39, 1  ;;  %vm4675_vm10 = vcmp.ge.f32.partialorder %v15245_v32, %v15310_v61 }
 0x3d1   : > { %v4759_v30 = vrot.slane %v4723_v36, 1  ;;  %v4760_v22 = vrot.slane %v4739_v24, 1  ;;  %v4762_v43 = vrot.slane %v4724_v18, 1  ;;  %v4763_v23 = vrot.slane %v4740_v10, 1 }
 0x3d2   : > { %vm4676_vm7 = vcmp.ge.f32.partialorder %v15249_v47, %v14881_v28  ;;  %v4765_v56 = vrot.slane %v4725_v57, 1  ;;  %v4766_v20 = vrot.slane %v4741_v6, 1  ;;  %v4768_v7 = vrot.slane %v4726_v13, 1  ;;  %v20241_v47 = vld [vmem:[#allocation85_spill] sm:$0xff] }
 0x3d3   : > { %v4769_v27 = vrot.slane %v4742_v29, 1  ;;  %vm4677_vm8 = vcmp.ge.f32.partialorder %v15253_v15, %v14888_v11  ;;  %v4748_v63 = vsel %vm4716_vm12, 1, %v20187_v0  ;;  %v4749_v39 = vsel %vm4717_vm15, 1, %v20187_v0  ;;  %v20247_v15 = vld [vmem:[#allocation86_spill] sm:$0xff] }
 0x3d4   : > { %v4771_v24 = vrot.slane %v4727_v26, 1  ;;  %v4772_v10 = vrot.slane %v4743_v42, 1  ;;  %vm20208_vm4 = vcmp.le.f32.partialorder %v15289_v37, %v20185_v54  ;;  %v4751_v57 = vsel %vm4719_vm14, 1, %v20187_v0 }
 0x3d5   : > { %v4750_v13 = vsel %vm20208_vm4, 1, %v20187_v0  ;;  %v4774_v18 = vrot.slane %v15404_v33, 1  ;;  %v4775_v36 = vrot.slane %v4744_v58, 1  ;;  %v4752_v26 = vsel %vm4720_vm2, 1, %v20187_v0 }
 0x3d6   : > { %vm20209_vm15 = vcmask 1046528   ;;  %v4777_v42 = vrot.slane %v15410_v3, 1  ;;  %v4784_v3 = vrot.slane %v15502_v9, 1  ;;  %vm20226_vm2 = vcmask 1046528  }
 0x3d7   : > { %v4755_v31 = vsel %vm20209_vm15, %v4753_v55, %v4754_v52  ;;  %vm20210_vm9 = vmmov %vm20209_vm15  ;;  %v4787_v52 = vrot.slane %v4748_v63, 1 }
 0x3d8   : > { %v4758_v40 = vsel %vm20210_vm9, %v4756_v59, %v4757_v4  ;;  %vm20211_vm5 = vmmov %vm20210_vm9  ;;  %v4778_v59 = vrot.slane %v15490_v21, 1  ;;  %v4780_v4 = vrot.slane %v15416_v8, 1  ;;  %v4790_v8 = vrot.slane %v4749_v39, 1  ;;  %v20227_v39 = vld [vmem:[#allocation96_spill] sm:$0xff] }
 0x3d9   : > { %v4761_v6 = vsel %vm20211_vm5, %v4759_v30, %v4760_v22  ;;  %vm20212_vm1 = vmmov %vm20211_vm5  ;;  %v4781_v30 = vrot.slane %v15496_v16, 1  ;;  %vm4801_vm5 = vcmp.ne.s32.totalorder %v4755_v31, 0  ;;  %v20217_v22 = vld [vmem:[#allocation92_spill] sm:$0xff]  ;;  %v20230_v31 = vld [vmem:[#allocation62_spill] sm:$0xff] }
 0x3da   : > { %v4764_v33 = vsel %vm20212_vm1, %v4762_v43, %v4763_v23  ;;  %vm20213_vm6 = vmmov %vm20212_vm1  ;;  %v4783_v23 = vrot.slane %v15422_v60, 1  ;;  %v4789_v21 = vrot.slane %v20217_v22, 1  ;;  %v4779_v63 = vsel %vm20226_vm2, %v4777_v42, %v4778_v59  ;;  %v20274_v60 = vld [vmem:[#allocation23_spill] sm:$0xff] }
 0x3db   : > { %v4767_v58 = vsel %vm20213_vm6, %v4765_v56, %v4766_v20  ;;  %vm20214_vm13 = vmmov %vm20212_vm1  ;;  %v4786_v56 = vrot.slane %v15428_v25, 1  ;;  %vm4803_vm6 = vcmp.ne.s32.totalorder %v4761_v6, 0  ;;  %v20219_v20 = vld [vmem:[#allocation94_spill] sm:$0xff] }
 0x3dc   : > { %v4770_v29 = vsel %vm20214_vm13, %v4768_v7, %v4769_v27  ;;  %vm20215_vm4 = vmmov %vm20212_vm1  ;;  %v20218_v27 = vld [vmem:[#allocation27_spill] sm:$0xff]  ;;  %vm4804_vm13 = vcmp.ne.s32.totalorder %v4764_v33, 0  ;;  %v4793_v7 = vrot.slane %v4750_v13, 1  ;;  %v4798_v13 = vrot.slane %v20227_v39, 1  ;;  %v20275_v39 = vld [vmem:[#allocation98_spill] sm:$0xff] }
 0x3dd   : > { %v4773_v55 = vsel %vm20215_vm4, %v4771_v24, %v4772_v10  ;;  %vm20216_vm9 = vmmov %vm20212_vm1  ;;  %vm4802_vm1 = vcmp.ne.s32.totalorder %v4758_v40, 0  ;;  %v4792_v16 = vrot.slane %v20218_v27, 1  ;;  %v4795_v24 = vrot.slane %v20219_v20, 1  ;;  %v20232_v40 = vld [vmem:[#allocation63_spill] sm:$0xff] }
 0x3de   : > { %v4776_v43 = vsel %vm20216_vm9, %v4774_v18, %v4775_v36  ;;  %v4796_v10 = vrot.slane %v4751_v57, 1  ;;  %vm4805_vm4 = vcmp.ne.s32.totalorder %v4767_v58, 0  ;;  %v20221_v18 = vld [vmem:[#allocation65_spill] sm:$0xff]  ;;  %vm15566_vm9 = vmand %vm4673_vm3, %vm4801_vm5  ;;  %v4799_v57 = vrot.slane %v4752_v26, 1  ;;  %v20268_v27 = vld [vmem:[#allocation91_spill] sm:$0xff] }
 0x3df   : > { %vm15573_vm15 = vmand %vm4674_vm0, %vm4802_vm1  ;;  %vm4806_vm14 = vcmp.ne.s32.totalorder %v4770_v29, 0  ;;  %v20228_v36 = vmov 0  ;;  %v20234_v26 = vmov 0  ;;  %v20239_v33 = vmov 0  ;;  %v20301_v29 = vld [vmem:[#allocation93_spill] sm:$0xff] }
 0x3e0   : > { %vm15583_vm3 = vmand %vm4675_vm10, %vm4803_vm6  ;;  %v20245_v58 = vmov 0 }
 0x3e1   : > { %v20229_v36 = vsel %vm15583_vm3, 4294967295, %v20228_v36  ;;  %vm20233_vm1 = vmmov %vm20226_vm2  ;;  %vm4807_vm2 = vcmp.ne.s32.totalorder %v4773_v55, 0  ;;  %v20261_v55 = vld [vmem:[#allocation35_spill] sm:$0xff] }
 0x3e2   : > { %v4782_v42 = vsel %vm20233_vm1, %v4780_v4, %v4781_v30  ;;  %vm15596_vm12 = vmand %vm4676_vm7, %vm4804_vm13 }
 0x3e3   : > { %v20235_v26 = vsel %vm15596_vm12, 4294967295, %v20234_v26  ;;  %vm20236_vm10 = vmmov %vm20233_vm1 }
 0x3e4   : > { %v4785_v32 = vsel %vm20236_vm10, %v4783_v23, %v4784_v3  ;;  %vm20237_vm6 = vmmov %vm20233_vm1  ;;  %vm4809_vm10 = vcmp.ne.s32.totalorder %v4779_v63, 0  ;;  %v20248_v23 = vld [vmem:[#allocation44_spill] sm:$0xff]  ;;  %v4860_v63 = vrot.slane %v20274_v60, %v20261_v55 }
 0x3e5   : > { %v4788_v6 = vsel %vm20237_vm6, %v4786_v56, %v4787_v52  ;;  %vm20238_vm11 = vmmov %vm20233_vm1  ;;  %v20262_v52 = vld [vmem:[#allocation46_spill] sm:$0xff] }
 0x3e6   : > { %v4791_v59 = vsel %vm20238_vm11, %v4789_v21, %v4790_v8  ;;  %vm15607_vm1 = vmand %vm4677_vm8, %vm4805_vm4  ;;  %vm20244_vm11 = vcmp.ge.f32.partialorder %v15257_v2, %v14906_v19  ;;  %v20253_v2 = vld [vmem:[#allocation89_spill] sm:$0xff]  ;;  %vm20255_vm4 = vcmp.ge.f32.partialorder %v15265_v5, %v14938_v38  ;;  %v4836_v22 = vrot.slane %v20262_v52, %v20261_v55 }
 0x3e7   : > { %v20240_v33 = vsel %vm15607_vm1, 4294967295, %v20239_v33  ;;  %vm20242_vm13 = vmmov %vm20237_vm6  ;;  %vm4813_vm8 = vcmp.ne.s32.totalorder %v4791_v59, 0  ;;  %vm20254_vm1 = vcmp.ne.s32.totalorder %v4776_v43, 0  ;;  %v20263_v43 = vld [vmem:[#allocation47_spill] sm:$0xff]  ;;  %v20292_v59 = vld [vmem:[#allocation26_spill] sm:$0xff] }
 0x3e8   : > { %v4794_v4 = vsel %vm20242_vm13, %v4792_v16, %v4793_v7  ;;  %vm20243_vm5 = vmmov %vm20237_vm6  ;;  %vm4810_vm13 = vcmp.ne.s32.totalorder %v4782_v42, 0  ;;  %v4840_v21 = vrot.slane %v20263_v43, %v20261_v55  ;;  %v4848_v16 = vrot.slane %v20268_v27, %v20261_v55  ;;  %v20269_v7 = vld [vmem:[#allocation78_spill] sm:$0xff]  ;;  %v20281_v43 = vld [vmem:[#allocation59_spill] sm:$0xff] }
 0x3e9   : > { %v4797_v30 = vsel %vm20243_vm5, %v4795_v24, %v4796_v10  ;;  %vm15619_vm6 = vmand %vm20244_vm11, %vm4806_vm14  ;;  %vm4811_vm11 = vcmp.ne.s32.totalorder %v4785_v32, 0  ;;  %vm4814_vm12 = vcmp.ne.s32.totalorder %v4794_v4, 0  ;;  %v4852_v20 = vrot.slane %v20269_v7, %v20261_v55  ;;  %v20280_v32 = vld [vmem:[#allocation74_spill] sm:$0xff]  ;;  %v20282_v27 = vld [vmem:[#allocation69_spill] sm:$0xff] }
 0x3ea   : > { %v20246_v58 = vsel %vm15619_vm6, 4294967295, %v20245_v58  ;;  %vm20249_vm7 = vmmov %vm20243_vm5  ;;  %vm20250_vm5 = vcmp.ge.f32.partialorder %v15261_v51, %v14924_v35  ;;  %vm4812_vm6 = vcmp.ne.s32.totalorder %v4788_v6, 0  ;;  %vm4815_vm3 = vcmp.ne.s32.totalorder %v4797_v30, 0  ;;  %v20287_v6 = vld [vmem:[#allocation72_spill] sm:$0xff]  ;;  %v20299_v30 = vld [vmem:[#allocation90_spill] sm:$0xff] }
 0x3eb   : > { %v4800_v3 = vsel %vm20249_vm7, %v4798_v13, %v4799_v57  ;;  %vm15632_vm0 = vmand %vm20250_vm5, %vm4807_vm2  ;;  %vm20258_vm2 = vcmp.ge.f32.partialorder %v15269_v48, %v14947_v45  ;;  %v20267_v48 = vld [vmem:[#allocation70_spill] sm:$0xff]  ;;  %v4864_v13 = vrot.slane %v20275_v39, %v20261_v55  ;;  %v4872_v52 = vrot.slane %v20280_v32, %v20261_v55  ;;  %v20309_v24 = vld [vmem:[#allocation31_spill] sm:$0xff] }
 0x3ec   : > { %vm15642_vm7 = vmand %vm20255_vm4, %vm20254_vm1  ;;  %vm4816_vm14 = vcmp.ne.s32.totalorder %v4800_v3, 0  ;;  %vm20264_vm1 = vcmp.ge.f32.partialorder %v15273_v34, %v14956_v41  ;;  %v4844_v8 = vrot.slane %v20267_v48, %v20261_v55  ;;  %v20273_v34 = vld [vmem:[#allocation21_spill] sm:$0xff]  ;;  %v20276_v57 = vld [vmem:[#allocation58_spill] sm:$0xff]  ;;  %v4876_v48 = vrot.slane %v20281_v43, %v20261_v55 }
 0x3ed   : > { %vm15649_vm5 = vmand %vm20258_vm2, %vm4809_vm10  ;;  %vm20270_vm10 = vcmp.ge.f32.partialorder %v20231_v50, %v20230_v31  ;;  %v4856_v10 = vrot.slane %v20273_v34, %v20261_v55  ;;  %v4868_v42 = vrot.slane %v20276_v57, %v20261_v55  ;;  %v4880_v7 = vrot.slane %v20282_v27, %v20261_v55  ;;  %v20283_v34 = vld [vmem:[#allocation71_spill] sm:$0xff]  ;;  %v20313_v50 = vld [vmem:[#allocation29_spill] sm:$0xff] }
 0x3ee   : > { %vm15660_vm4 = vmand %vm20264_vm1, %vm4810_vm13  ;;  %vm20277_vm13 = vcmp.ge.f32.partialorder %v15281_v17, %v20232_v40  ;;  %v4884_v60 = vrot.slane %v20283_v34, %v20261_v55  ;;  %vm20284_vm1 = vcmp.ge.f32.partialorder %v15285_v1, %v20241_v47  ;;  %v4888_v39 = vrot.slane %v20287_v6, %v20261_v55  ;;  %v20288_v57 = vld [vmem:[#allocation67_spill] sm:$0xff] }
 0x3ef   : > { %vm15673_vm2 = vmand %vm20270_vm10, %vm4811_vm11  ;;  %v4892_v32 = vrot.slane %v20288_v57, %v20261_v55  ;;  %v4897_v43 = vsel %vm15566_vm9, %v4836_v22, 0.0  ;;  %v4898_v27 = vsel %vm15573_vm15, %v4840_v21, 0.0  ;;  %vm20289_vm10 = vcmp.ge.f32.partialorder %v15289_v37, %v20247_v15  ;;  %v20305_v22 = vld [vmem:[#allocation20_spill] sm:$0xff] }
 0x3f0   : > { %vm15689_vm11 = vmand %vm20277_vm13, %vm4812_vm6  ;;  %v4896_v34 = vrot.slane %v20292_v59, %v20261_v55  ;;  %vm20293_vm13 = vnez %v20229_v36  ;;  %vm20295_vm9 = vnez %v20240_v33  ;;  %vm20296_vm15 = vcmp.ge.f32.partialorder %v15293_v44, %v20248_v23  ;;  %v20325_v59 = vld [vmem:[#allocation33_spill] sm:$0xff] }
 0x3f1   : > { %vm15705_vm6 = vmand %vm20284_vm1, %vm4813_vm8  ;;  %v4899_v6 = vsel %vm20293_vm13, %v4844_v8, 0.0  ;;  %vm20294_vm1 = vnez %v20235_v26  ;;  %v4901_v25 = vsel %vm20295_vm9, %v4852_v20, 0.0  ;;  %v4903_v4 = vsel %vm15632_vm0, %v4860_v63, 0.0 }
 0x3f2   : > { %vm15721_vm8 = vmand %vm20289_vm10, %vm4814_vm12  ;;  %v4900_v9 = vsel %vm20294_vm1, %v4848_v16, 0.0  ;;  %vm20297_vm10 = vnez %v20246_v58  ;;  %v4904_v36 = vsel %vm15642_vm7, %v4864_v13, 0.0  ;;  %v4905_v26 = vsel %vm15649_vm5, %v4868_v42, 0.0  ;;  %v20307_v16 = vld [vmem:[#allocation24_spill] sm:$0xff] }
 0x3f3   : > { %vm4831_vm12 = vmand %vm20296_vm15, %vm4815_vm3  ;;  %v4902_v37 = vsel %vm20297_vm10, %v4856_v10, 0.0  ;;  %vm20298_vm13 = vcmp.ge.f32.partialorder %v15297_v49, %v20253_v2  ;;  %v4906_v44 = vsel %vm15660_vm4, %v4872_v52, 0.0  ;;  %v4907_v33 = vsel %vm15673_vm2, %v4876_v48, 0.0  ;;  %v20303_v49 = vld [vmem:[#allocation82_spill] sm:$0xff]  ;;  %v20311_v13 = vld [vmem:[#allocation48_spill] sm:$0xff] }
 0x3f4   : > { %vm4832_vm1 = vmand %vm20298_vm13, %vm4816_vm14  ;;  %v15754_v58 = vadd.f32 %v4897_v43, %v20299_v30  ;;  %v15757_v56 = vadd.f32 %v4898_v27, %v20301_v29  ;;  %v4908_v51 = vsel %vm15689_vm11, %v4880_v7, 0.0  ;;  %v4909_v3 = vsel %vm15705_vm6, %v4884_v60, 0.0  ;;  %v20315_v48 = vld [vmem:[#allocation22_spill] sm:$0xff]  ;;  %v20317_v60 = vld [vmem:[#allocation81_spill] sm:$0xff] }
 0x3f5   : > { %v15764_v55 = vadd.f32 %v4899_v6, %v20303_v49  ;;  %v15767_v21 = vadd.f32 %v4900_v9, %v20305_v22  ;;  %v4910_v5 = vsel %vm15721_vm8, %v4888_v39, 0.0  ;;  %v4911_v8 = vsel %vm4831_vm12, %v4892_v32, 0.0  ;;  %v20319_v39 = vld [vmem:[#allocation77_spill] sm:$0xff]  ;;  %v20321_v32 = vld [vmem:[#allocation68_spill] sm:$0xff]  ;;  %v15816_v30 = vld [vmem:[%s6737_s20 + $0x90] sm:$0xff] }
 0x3f6   : > { %20300 = vst [vmem:[#allocation49_spill] sm:$0xff] %v15754_v58  ;;  %20302 = vst [vmem:[#allocation38_spill] sm:$0xff] %v15757_v56  ;;  %v15772_v20 = vadd.f32 %v4901_v25, %v20307_v16  ;;  %v15775_v10 = vadd.f32 %v4902_v37, %v20309_v24  ;;  %v4912_v63 = vsel %vm4832_vm1, %v4896_v34, 0.0  ;;  %v15778_v42 = vadd.f32 %v4903_v4, %v20311_v13  ;;  %v20323_v27 = vld [vmem:[#allocation28_spill] sm:$0xff]  ;;  %v20327_v6 = vld [vmem:[#allocation41_spill] sm:$0xff] }
 0x3f7   : > { %20304 = vst [vmem:[#allocation79_spill] sm:$0xff] %v15764_v55  ;;  %20306 = vst [vmem:[#allocation37_spill] sm:$0xff] %v15767_v21  ;;  %v15781_v52 = vadd.f32 %v4904_v36, %v20313_v50  ;;  %v15784_v7 = vadd.f32 %v4905_v26, %v20315_v48  ;;  %v15787_v17 = vadd.f32 %v4906_v44, %v20317_v60  ;;  %v20329_v25 = vld [vmem:[#allocation52_spill] sm:$0xff]  ;;  %v20330_v37 = vld [vmem:[#allocation42_spill] sm:$0xff] }
 0x3f8   : > { %20308 = vst [vmem:[#allocation39_spill] sm:$0xff] %v15772_v20  ;;  %20310 = vst [vmem:[#allocation40_spill] sm:$0xff] %v15775_v10  ;;  %v15790_v57 = vadd.f32 %v4907_v33, %v20319_v39  ;;  %v15793_v43 = vadd.f32 %v4908_v51, %v20321_v32  ;;  %v15796_v1 = vadd.f32 %v4909_v3, %v20323_v27  ;;  %v20332_v36 = vld [vmem:[#allocation43_spill] sm:$0xff]  ;;  %v15830_v49 = vld [vmem:[%s6737_s20 + $0xa0] sm:$0xff] }
 0x3f9   : > { %20312 = vst [vmem:[#allocation50_spill] sm:$0xff] %v15778_v42  ;;  %20314 = vst [vmem:[#allocation32_spill] sm:$0xff] %v15781_v52  ;;  %v15799_v34 = vadd.f32 %v4910_v5, %v20325_v59  ;;  %v15802_v9 = vadd.f32 %v4911_v8, %v20327_v6  ;;  %v15806_v4 = vrot.slane %v20330_v37, %v20329_v25  ;;  %v20333_v44 = vld [vmem:[#allocation87_spill] sm:$0xff]  ;;  %v15837_v5 = vld [vmem:[%s6737_s20 + $0xa8] sm:$0xff] }
 0x3fa   : > { %20316 = vst [vmem:[#allocation53_spill] sm:$0xff] %v15784_v7  ;;  %20318 = vst [vmem:[#allocation54_spill] sm:$0xff] %v15787_v17  ;;  %v15810_v26 = vrot.slane %v20332_v36, %v20329_v25  ;;  %v15813_v33 = vadd.f32 %v4912_v63, %v20333_v44  ;;  %v15820_v29 = vrot.slane %v15816_v30, %v20329_v25  ;;  %v15823_v51 = vld [vmem:[%s6737_s20 + $0x98] sm:$0xff]  ;;  %v15844_v16 = vld [vmem:[%s6737_s20 + $0xb0] sm:$0xff] }
 0x3fb   : > { %20320 = vst [vmem:[#allocation55_spill] sm:$0xff] %v15790_v57  ;;  %20322 = vst [vmem:[#allocation56_spill] sm:$0xff] %v15793_v43  ;;  %v15827_v3 = vrot.slane %v15823_v51, %v20329_v25  ;;  %v15834_v22 = vrot.slane %v15830_v49, %v20329_v25  ;;  %v15841_v8 = vrot.slane %v15837_v5, %v20329_v25  ;;  %v15851_v63 = vld [vmem:[%s6737_s20 + $0xb8] sm:$0xff]  ;;  %v15858_v50 = vld [vmem:[%s6737_s20 + $0xc0] sm:$0xff] }
 0x3fc   : > { %20324 = vst [vmem:[#allocation57_spill] sm:$0xff] %v15796_v1  ;;  %20326 = vst [vmem:[#allocation73_spill] sm:$0xff] %v15799_v34  ;;  %v15848_v24 = vrot.slane %v15844_v16, %v20329_v25  ;;  %v15855_v13 = vrot.slane %v15851_v63, %v20329_v25  ;;  %v15862_v48 = vrot.slane %v15858_v50, %v20329_v25  ;;  %v15865_v60 = vld [vmem:[%s6737_s20 + $0xc8] sm:$0xff]  ;;  %v15872_v32 = vld [vmem:[%s6737_s20 + $0xd0] sm:$0xff] }
 0x3fd   : > { %20328 = vst [vmem:[#allocation97_spill] sm:$0xff] %v15802_v9  ;;  %20331 = vst [vmem:[#allocation25_spill] sm:$0xff] %v15806_v4  ;;  %v15869_v39 = vrot.slane %v15865_v60, %v20329_v25  ;;  %v15876_v27 = vrot.slane %v15872_v32, %v20329_v25  ;;  %v15879_v59 = vld [vmem:[%s6737_s20 + $0xd8] sm:$0xff]  ;;  %v15886_v37 = vld [vmem:[%s6737_s20 + $0xe0] sm:$0xff]  ;;  %vm5009_vm3 = vcmp.le.f32.partialorder %v15806_v4, %v20221_v18 }
 0x3fe   : > { %20334 = vst [vmem:[#allocation34_spill] sm:$0xff] %v15813_v33  ;;  %20335 = vst [vmem:[#allocation61_spill] sm:$0xff] %v15816_v30  ;;  %v15883_v6 = vrot.slane %v15879_v59, %v20329_v25  ;;  %v15890_v36 = vrot.slane %v15886_v37, %v20329_v25  ;;  %v15893_v44 = vld [vmem:[%s6737_s20 + $0xe8] sm:$0xff]  ;;  %vm5010_vm0 = vcmp.le.f32.partialorder %v15810_v26, %v15305_v14  ;;  %v20358_v30 = vld [vmem:[#allocation84_spill] sm:$0xff]  ;;  %v5041_v34 = vsel %vm5009_vm3, 1, %v20187_v0 }
 0x3ff   : > { %20336 = vst [vmem:[#allocation92_spill] sm:$0xff] %v15823_v51  ;;  %20337 = vst [vmem:[#allocation27_spill] sm:$0xff] %v15830_v49  ;;  %vm5011_vm14 = vcmp.le.f32.partialorder %v15820_v29, %v15310_v61  ;;  %vm5012_vm7 = vcmp.le.f32.partialorder %v15827_v3, %v14881_v28  ;;  %vm5013_vm5 = vcmp.le.f32.partialorder %v15834_v22, %v14888_v11  ;;  %v20356_v49 = vld [vmem:[#allocation83_spill] sm:$0xff]  ;;  %v20357_v51 = vld [vmem:[#allocation36_spill] sm:$0xff]  ;;  %v5042_v1 = vsel %vm5010_vm0, 1, %v20187_v0 }
 0x400   : > { %20338 = vst [vmem:[#allocation94_spill] sm:$0xff] %v15837_v5  ;;  %20339 = vst [vmem:[#allocation30_spill] sm:$0xff] %v15844_v16  ;;  %vm5014_vm4 = vcmp.le.f32.partialorder %v15841_v8, %v14906_v19  ;;  %vm5015_vm2 = vcmp.le.f32.partialorder %v15848_v24, %v14924_v35  ;;  %vm5016_vm11 = vcmp.le.f32.partialorder %v15855_v13, %v14938_v38  ;;  %v20354_v16 = vld [vmem:[#allocation51_spill] sm:$0xff]  ;;  %v20355_v5 = vld [vmem:[#allocation64_spill] sm:$0xff]  ;;  %v5043_v43 = vsel %vm5011_vm14, 1, %v20187_v0 }
 0x401   : > { %20340 = vst [vmem:[#allocation96_spill] sm:$0xff] %v15851_v63  ;;  %20341 = vst [vmem:[#allocation88_spill] sm:$0xff] %v15858_v50  ;;  %vm5017_vm6 = vcmp.le.f32.partialorder %v15862_v48, %v14947_v45  ;;  %vm5033_vm9 = vcmp.le.f32.partialorder %v15862_v48, %v20358_v30  ;;  %v20359_v33 = vld [vmem:[#allocation75_spill] sm:$0xff]  ;;  %vm5036_vm10 = vcmp.le.f32.partialorder %v15883_v6, %v20183_v62  ;;  %v5044_v57 = vsel %vm5012_vm7, 1, %v20187_v0 }
 0x402   : > { %20342 = vst [vmem:[#allocation35_spill] sm:$0xff] %v15865_v60  ;;  %20343 = vst [vmem:[#allocation46_spill] sm:$0xff] %v15872_v32  ;;  %v15897_v60 = vrot.slane %v15893_v44, %v20329_v25  ;;  %v15900_v32 = vld [vmem:[%s6737_s20 + $0xf0] sm:$0xff]  ;;  %vm5034_vm15 = vcmp.le.f32.partialorder %v15869_v39, %v20359_v33  ;;  %v20360_v9 = vld [vmem:[#allocation95_spill] sm:$0xff]  ;;  %vm5037_vm13 = vcmp.le.f32.partialorder %v15890_v36, %v20184_v12  ;;  %v5045_v17 = vsel %vm5013_vm5, 1, %v20187_v0 }
 0x403   : > { %20344 = vst [vmem:[#allocation47_spill] sm:$0xff] %v15876_v27  ;;  %20345 = vst [vmem:[#allocation70_spill] sm:$0xff] %v15879_v59  ;;  %v15904_v50 = vrot.slane %v15900_v32, %v20329_v25  ;;  %v15907_v59 = vld [vmem:[%s6737_s20 + $0xf8] sm:$0xff]  ;;  %vm5035_vm12 = vcmp.le.f32.partialorder %v15876_v27, %v20360_v9  ;;  %v5046_v7 = vsel %vm5014_vm4, 1, %v20187_v0  ;;  %v5047_v52 = vsel %vm5015_vm2, 1, %v20187_v0 }
 0x404   : > { %20346 = vst [vmem:[#allocation91_spill] sm:$0xff] %v15886_v37  ;;  %20347 = vst [vmem:[#allocation78_spill] sm:$0xff] %v15893_v44  ;;  %v15911_v63 = vrot.slane %v15907_v59, %v20329_v25  ;;  %v20352_v44 = vld [vmem:[#allocation45_spill] sm:$0xff]  ;;  %v20353_v37 = vld [vmem:[#allocation80_spill] sm:$0xff]  ;;  %v16009_v42 = vsel %vm5016_vm11, 1, %v20187_v0  ;;  %v16015_v10 = vsel %vm5017_vm6, 1, %v20187_v0  ;;  %vm20361_vm3 = vcmp.le.f32.partialorder %v15869_v39, %v14956_v41 }
 0x405   : > { %20348 = vst [vmem:[#allocation21_spill] sm:$0xff] %v15900_v32  ;;  %20349 = vst [vmem:[#allocation23_spill] sm:$0xff] %v15907_v59  ;;  %v20350_v59 = vld [vmem:[#allocation76_spill] sm:$0xff]  ;;  %v20351_v32 = vld [vmem:[#allocation66_spill] sm:$0xff]  ;;  %vm5039_vm8 = vcmp.le.f32.partialorder %v15904_v50, %v20186_v46  ;;  %v16021_v20 = vsel %vm20361_vm3, 1, %v20187_v0  ;;  %vm20362_vm0 = vcmp.le.f32.partialorder %v15876_v27, %v20230_v31  ;;  %vm20363_vm14 = vcmp.le.f32.partialorder %v15883_v6, %v20232_v40 }
 0x406   : > { %vm5040_vm1 = vcmp.le.f32.partialorder %v15911_v63, %v20188_v53  ;;  %v16027_v21 = vsel %vm20362_vm0, 1, %v20187_v0  ;;  %v16033_v55 = vsel %vm20363_vm14, 1, %v20187_v0  ;;  %vm20364_vm7 = vcmp.le.f32.partialorder %v15890_v36, %v20241_v47 }
 0x407   : > { %v16039_v56 = vsel %vm20364_vm7, 1, %v20187_v0  ;;  %vm20366_vm5 = vcmp.le.f32.partialorder %v15897_v60, %v20247_v15  ;;  %vm20368_vm4 = vcmp.le.f32.partialorder %v15904_v50, %v20248_v23  ;;  %vm20370_vm2 = vcmp.le.f32.partialorder %v15911_v63, %v20253_v2 }
 0x408   : > { %20365 = vst [vmem:[#allocation98_spill] sm:$0xff] %v16039_v56  ;;  %v16045_v58 = vsel %vm20366_vm5, 1, %v20187_v0  ;;  %v16051_v25 = vsel %vm20368_vm4, 1, %v20187_v0  ;;  %v16057_v40 = vsel %vm20370_vm2, 1, %v20187_v0  ;;  %vm20372_vm11 = vcmp.le.f32.partialorder %v15806_v4, %v20350_v59 }
 0x409   : > { %20367 = vst [vmem:[#allocation58_spill] sm:$0xff] %v16045_v58  ;;  %20369 = vst [vmem:[#allocation74_spill] sm:$0xff] %v16051_v25  ;;  %v5057_v47 = vsel %vm20372_vm11, 1, %v20187_v0  ;;  %vm20373_vm6 = vcmp.le.f32.partialorder %v15810_v26, %v20351_v32  ;;  %vm20374_vm3 = vcmp.le.f32.partialorder %v15820_v29, %v20352_v44  ;;  %vm20375_vm0 = vcmp.le.f32.partialorder %v15827_v3, %v20353_v37 }
 0x40a   : > { %20371 = vst [vmem:[#allocation59_spill] sm:$0xff] %v16057_v40  ;;  %v5058_v15 = vsel %vm20373_vm6, 1, %v20187_v0  ;;  %v5059_v23 = vsel %vm20374_vm3, 1, %v20187_v0  ;;  %v5060_v2 = vsel %vm20375_vm0, 1, %v20187_v0  ;;  %vm20376_vm14 = vcmp.le.f32.partialorder %v15834_v22, %v20354_v16 }
 0x40b   : > { %v5061_v59 = vsel %vm20376_vm14, 1, %v20187_v0  ;;  %vm20377_vm7 = vcmp.le.f32.partialorder %v15841_v8, %v20355_v5  ;;  %vm20378_vm5 = vcmp.le.f32.partialorder %v15848_v24, %v20356_v49  ;;  %vm20379_vm4 = vcmp.le.f32.partialorder %v15855_v13, %v20357_v51 }
 0x40c   : > { %v5062_v32 = vsel %vm20377_vm7, 1, %v20187_v0  ;;  %v5063_v44 = vsel %vm20378_vm5, 1, %v20187_v0  ;;  %v5064_v37 = vsel %vm20379_vm4, 1, %v20187_v0  ;;  %v16095_v16 = vsel %vm5033_vm9, 1, %v20187_v0 }
 0x40d   : > { %v16101_v5 = vsel %vm5034_vm15, 1, %v20187_v0  ;;  %v16107_v49 = vsel %vm5035_vm12, 1, %v20187_v0  ;;  %vm4993_vm2 = vcmp.ge.f32.partialorder %v15806_v4, %v20221_v18  ;;  %vm4994_vm11 = vcmp.ge.f32.partialorder %v15810_v26, %v15305_v14  ;;  %v20402_v26 = vld [vmem:[#allocation47_spill] sm:$0xff] }
 0x40e   : > { %v5073_v30 = vrot.slane %v5041_v34, 1  ;;  %v5074_v51 = vrot.slane %v5057_v47, 1  ;;  %v5076_v31 = vrot.slane %v5042_v1, 1  ;;  %v5077_v40 = vrot.slane %v5058_v15, 1 }
 0x40f   : > { %vm4995_vm9 = vcmp.ge.f32.partialorder %v15820_v29, %v15310_v61  ;;  %v5079_v33 = vrot.slane %v5043_v43, 1  ;;  %v5080_v25 = vrot.slane %v5059_v23, 1  ;;  %v5082_v58 = vrot.slane %v5044_v57, 1 }
 0x410   : > { %v5083_v56 = vrot.slane %v5060_v2, 1  ;;  %vm4996_vm15 = vcmp.ge.f32.partialorder %v15827_v3, %v14881_v28  ;;  %v5085_v9 = vrot.slane %v5045_v17, 1  ;;  %v5086_v27 = vrot.slane %v5061_v59, 1  ;;  %v20412_v28 = vld [vmem:[#allocation85_spill] sm:$0xff] }
 0x411   : > { %v5088_v18 = vrot.slane %v5046_v7, 1  ;;  %v5089_v4 = vrot.slane %v5062_v32, 1  ;;  %vm4997_vm12 = vcmp.ge.f32.partialorder %v15834_v22, %v14888_v11  ;;  %v5068_v47 = vsel %vm5036_vm10, 1, %v20187_v0  ;;  %v20389_v32 = vld [vmem:[#allocation58_spill] sm:$0xff]  ;;  %v20419_v22 = vld [vmem:[#allocation44_spill] sm:$0xff] }
 0x412   : > { %v5069_v15 = vsel %vm5037_vm13, 1, %v20187_v0  ;;  %v5091_v23 = vrot.slane %v5047_v52, 1  ;;  %v5092_v2 = vrot.slane %v5063_v44, 1  ;;  %vm20380_vm3 = vcmp.le.f32.partialorder %v15897_v60, %v20185_v54  ;;  %v20418_v11 = vld [vmem:[#allocation86_spill] sm:$0xff] }
 0x413   : > { %v5070_v7 = vsel %vm20380_vm3, 1, %v20187_v0  ;;  %v5071_v62 = vsel %vm5039_vm8, 1, %v20187_v0  ;;  %v5094_v17 = vrot.slane %v16009_v42, 1  ;;  %v5095_v57 = vrot.slane %v5064_v37, 1 }
 0x414   : > { %v5072_v12 = vsel %vm5040_vm1, 1, %v20187_v0  ;;  %vm20381_vm13 = vcmask 1046528   ;;  %v5097_v34 = vrot.slane %v16015_v10, 1  ;;  %v5106_v10 = vrot.slane %v16033_v55, 1 }
 0x415   : > { %v5075_v52 = vsel %vm20381_vm13, %v5073_v30, %v5074_v51  ;;  %vm20382_vm0 = vmmov %vm20381_vm13  ;;  %v5112_v44 = vrot.slane %v20389_v32, 1  ;;  %v5113_v37 = vrot.slane %v5070_v7, 1  ;;  %v5116_v30 = vrot.slane %v5071_v62, 1  ;;  %v20392_v51 = vld [vmem:[#allocation65_spill] sm:$0xff]  ;;  %v20403_v7 = vld [vmem:[#allocation63_spill] sm:$0xff] }
 0x416   : > { %v5078_v54 = vsel %vm20382_vm0, %v5076_v31, %v5077_v40  ;;  %vm20383_vm14 = vmmov %vm20382_vm0  ;;  %v5098_v31 = vrot.slane %v16095_v16, 1  ;;  %v5100_v40 = vrot.slane %v16021_v20, 1  ;;  %v5110_v20 = vrot.slane %v5069_v15, 1  ;;  %v20390_v16 = vld [vmem:[#allocation74_spill] sm:$0xff] }
 0x417   : > { %v5081_v43 = vsel %vm20383_vm14, %v5079_v33, %v5080_v25  ;;  %vm20384_vm7 = vmmov %vm20382_vm0  ;;  %v5101_v25 = vrot.slane %v16101_v5, 1  ;;  %vm5121_vm14 = vcmp.ne.s32.totalorder %v5075_v52, 0  ;;  %v5115_v5 = vrot.slane %v20390_v16, 1  ;;  %v16333_v16 = vld [vmem:[%s6740_s8 + $0xd0] sm:$0xff] }
 0x418   : > { %v5084_v46 = vsel %vm20384_vm7, %v5082_v58, %v5083_v56  ;;  %vm20385_vm5 = vmmov %vm20382_vm0  ;;  %v5096_v58 = vsel %vm20382_vm0, %v5094_v17, %v5095_v57  ;;  %vm5122_vm7 = vcmp.ne.s32.totalorder %v5078_v54, 0  ;;  %v5104_v56 = vrot.slane %v16107_v49, 1  ;;  %20452 = vst [vmem:[#allocation31_spill] sm:$0xff] %v16333_v16  ;;  %v20486_v32 = vld [vmem:[#allocation54_spill] sm:$0xff] }
 0x419   : > { %v5087_v42 = vsel %vm20385_vm5, %v5085_v9, %v5086_v27  ;;  %vm20386_vm4 = vmmov %vm20382_vm0  ;;  %vm5123_vm5 = vcmp.ne.s32.totalorder %v5081_v43, 0  ;;  %v20388_v27 = vld [vmem:[#allocation98_spill] sm:$0xff]  ;;  %vm20397_vm1 = vcmask 1046528   ;;  %v20398_v9 = vld [vmem:[#allocation59_spill] sm:$0xff]  ;;  %v5119_v15 = vrot.slane %v5072_v12, 1 }
 0x41a   : > { %v5090_v1 = vsel %vm20386_vm4, %v5088_v18, %v5089_v4  ;;  %vm20387_vm3 = vmmov %vm20382_vm0  ;;  %v5103_v18 = vrot.slane %v16027_v21, 1  ;;  %v5107_v4 = vrot.slane %v5068_v47, 1  ;;  %v5109_v59 = vrot.slane %v20388_v27, 1  ;;  %v16343_v21 = vld [vmem:[%s6740_s8 + $0xe0] sm:$0xff] }
 0x41b   : > { %v5093_v53 = vsel %vm20387_vm3, %v5091_v23, %v5092_v2  ;;  %vm5124_vm4 = vcmp.ne.s32.totalorder %v5084_v46, 0  ;;  %vm5125_vm3 = vcmp.ne.s32.totalorder %v5087_v42, 0  ;;  %vm16171_vm0 = vmand %vm4993_vm2, %vm5121_vm14  ;;  %v5099_v33 = vsel %vm20397_vm1, %v5097_v34, %v5098_v31  ;;  %v20401_v2 = vld [vmem:[#allocation62_spill] sm:$0xff]  ;;  %v16282_v31 = vld [vmem:[%s6740_s8 + $0x98] sm:$0xff]  ;;  %20454 = vst [vmem:[#allocation29_spill] sm:$0xff] %v16343_v21 }
 0x41c   : > { %vm16178_vm13 = vmand %vm4994_vm11, %vm5122_vm7  ;;  %v5118_v47 = vrot.slane %v20398_v9, 1  ;;  %vm5126_vm8 = vcmp.ne.s32.totalorder %v5090_v1, 0  ;;  %v20416_v43 = vmov 0  ;;  %v20432_v1 = vld [vmem:[#allocation52_spill] sm:$0xff]  ;;  %20439 = vst [vmem:[#allocation67_spill] sm:$0xff] %v16282_v31 }
 0x41d   : > { %vm16188_vm2 = vmand %vm4995_vm9, %vm5123_vm5 }
 0x41e   : > { %vm20404_vm7 = vmmov %vm20397_vm1  ;;  %vm5127_vm1 = vcmp.ne.s32.totalorder %v5093_v53, 0 }
 0x41f   : > { %v5102_v62 = vsel %vm20404_vm7, %v5100_v40, %v5101_v25  ;;  %vm16201_vm10 = vmand %vm4996_vm15, %vm5124_vm4  ;;  %vm20420_vm15 = vcmp.ge.f32.partialorder %v15848_v24, %v14924_v35  ;;  %v16259_v24 = vld [vmem:[%s6740_s8 + $0x80] sm:$0xff]  ;;  %v5168_v40 = vrot.slane %v16282_v31, %v20432_v1 }
 0x420   : > { %vm20407_vm9 = vmmov %vm20404_vm7  ;;  %20431 = vst [vmem:[#allocation69_spill] sm:$0xff] %v16259_v24  ;;  %v16287_v25 = vld [vmem:[%s6740_s8 + $0xa0] sm:$0xff] }
 0x421   : > { %v5105_v29 = vsel %vm20407_vm9, %v5103_v18, %v5104_v56  ;;  %vm20408_vm5 = vmmov %vm20404_vm7  ;;  %vm5129_vm9 = vcmp.ne.s32.totalorder %v5099_v33, 0  ;;  %20440 = vst [vmem:[#allocation26_spill] sm:$0xff] %v16287_v25  ;;  %v16305_v56 = vld [vmem:[%s6740_s8 + $0xb0] sm:$0xff]  ;;  %v5204_v33 = vrot.slane %v16343_v21, %v20432_v1  ;;  %v5220_v55 = vsel %vm16201_vm10, %v5168_v40, 0.0 }
 0x422   : > { %v5108_v57 = vsel %vm20408_vm5, %v5106_v10, %v5107_v4  ;;  %vm20409_vm6 = vmmov %vm20408_vm5  ;;  %20445 = vst [vmem:[#allocation93_spill] sm:$0xff] %v16305_v56  ;;  %v5180_v10 = vrot.slane %v16305_v56, %v20432_v1  ;;  %v16310_v4 = vld [vmem:[%s6740_s8 + $0xb8] sm:$0xff] }
 0x423   : > { %v5111_v12 = vsel %vm20409_vm6, %v5109_v59, %v5110_v20  ;;  %vm16212_vm7 = vmand %vm4997_vm12, %vm5125_vm3  ;;  %vm20415_vm6 = vcmp.ge.f32.partialorder %v15841_v8, %v14906_v19  ;;  %v20421_v19 = vmov 0  ;;  %v20423_v8 = vld [vmem:[#allocation89_spill] sm:$0xff]  ;;  %vm5132_vm12 = vcmp.ne.s32.totalorder %v5108_v57, 0  ;;  %20446 = vst [vmem:[#allocation82_spill] sm:$0xff] %v16310_v4  ;;  %v16315_v59 = vld [vmem:[%s6740_s8 + $0xc0] sm:$0xff] }
 0x424   : > { %vm20413_vm4 = vmmov %vm20408_vm5  ;;  %vm5133_vm3 = vcmp.ne.s32.totalorder %v5111_v12, 0  ;;  %v5184_v27 = vrot.slane %v16310_v4, %v20432_v1  ;;  %20447 = vst [vmem:[#allocation20_spill] sm:$0xff] %v16315_v59  ;;  %v5188_v20 = vrot.slane %v16315_v59, %v20432_v1  ;;  %vm20467_vm10 = vcmp.ge.f32.partialorder %v15911_v63, %v20423_v8  ;;  %v20472_v63 = vld [vmem:[#allocation79_spill] sm:$0xff]  ;;  %v20474_v8 = vld [vmem:[#allocation37_spill] sm:$0xff] }
 0x425   : > { %v5114_v3 = vsel %vm20413_vm4, %v5112_v44, %v5113_v37  ;;  %vm20414_vm14 = vmmov %vm20413_vm4  ;;  %v5120_v46 = vsel %vm20413_vm4, %v5118_v47, %v5119_v15  ;;  %vm20425_vm4 = vcmp.ge.f32.partialorder %v15855_v13, %v14938_v38  ;;  %v5156_v38 = vrot.slane %v16259_v24, %v20432_v1  ;;  %v16264_v13 = vld [vmem:[%s6740_s8 + $0x88] sm:$0xff] }
 0x426   : > { %v5117_v54 = vsel %vm20414_vm14, %v5115_v5, %v5116_v30  ;;  %vm16224_vm5 = vmand %vm20415_vm6, %vm5126_vm8  ;;  %vm5131_vm6 = vcmp.ne.s32.totalorder %v5105_v29, 0  ;;  %20433 = vst [vmem:[#allocation71_spill] sm:$0xff] %v16264_v13  ;;  %v5160_v34 = vrot.slane %v16264_v13, %v20432_v1  ;;  %v16328_v44 = vld [vmem:[%s6740_s8 + $0xc8] sm:$0xff]  ;;  %v5196_v5 = vrot.slane %v16333_v16, %v20432_v1  ;;  %v16338_v30 = vld [vmem:[%s6740_s8 + $0xd8] sm:$0xff] }
 0x427   : > { %v20417_v43 = vsel %vm16224_vm5, 4294967295, %v20416_v43  ;;  %vm16237_vm11 = vmand %vm20420_vm15, %vm5127_vm1  ;;  %vm20424_vm5 = vcmp.ne.s32.totalorder %v5096_v58, 0  ;;  %vm5134_vm1 = vcmp.ne.s32.totalorder %v5114_v3, 0  ;;  %vm5135_vm15 = vcmp.ne.s32.totalorder %v5117_v54, 0  ;;  %v16300_v58 = vld [vmem:[%s6740_s8 + $0xa8] sm:$0xff]  ;;  %20451 = vst [vmem:[#allocation24_spill] sm:$0xff] %v16328_v44 }
 0x428   : > { %v20422_v19 = vsel %vm16237_vm11, 4294967295, %v20421_v19  ;;  %vm16247_vm14 = vmand %vm20425_vm4, %vm20424_vm5  ;;  %vm20428_vm11 = vcmp.ge.f32.partialorder %v15862_v48, %v14947_v45  ;;  %vm5136_vm5 = vcmp.ne.s32.totalorder %v5120_v46, 0  ;;  %vm20434_vm4 = vcmp.ne.s32.totalorder %v5102_v62, 0  ;;  %v16277_v48 = vld [vmem:[%s6740_s8 + $0x90] sm:$0xff]  ;;  %20444 = vst [vmem:[#allocation90_spill] sm:$0xff] %v16300_v58  ;;  %v16356_v47 = vld [vmem:[%s6740_s8 + $0xe8] sm:$0xff] }
 0x429   : > { %vm16254_vm8 = vmand %vm20428_vm11, %vm5129_vm9  ;;  %vm20435_vm11 = vcmp.ge.f32.partialorder %v15869_v39, %v14956_v41  ;;  %20438 = vst [vmem:[#allocation72_spill] sm:$0xff] %v16277_v48  ;;  %v5164_v53 = vrot.slane %v16277_v48, %v20432_v1  ;;  %v5172_v41 = vrot.slane %v16287_v25, %v20432_v1  ;;  %v5176_v18 = vrot.slane %v16300_v58, %v20432_v1  ;;  %v16378_v29 = vld [vmem:[%s6740_s8 + $0xf8] sm:$0xff]  ;;  %v20468_v3 = vld [vmem:[#allocation49_spill] sm:$0xff] }
 0x42a   : > { %vm16272_vm9 = vmand %vm20435_vm11, %vm20434_vm4  ;;  %vm20441_vm4 = vcmp.ge.f32.partialorder %v20402_v26, %v20401_v2  ;;  %v5192_v37 = vrot.slane %v16328_v44, %v20432_v1  ;;  %20453 = vst [vmem:[#allocation48_spill] sm:$0xff] %v16338_v30  ;;  %v5208_v15 = vrot.slane %v16356_v47, %v20432_v1  ;;  %v16361_v2 = vld [vmem:[%s6740_s8 + $0xf0] sm:$0xff]  ;;  %v5216_v57 = vrot.slane %v16378_v29, %v20432_v1  ;;  %v20478_v45 = vld [vmem:[#allocation40_spill] sm:$0xff] }
 0x42b   : > { %vm16295_vm11 = vmand %vm20441_vm4, %vm5131_vm6  ;;  %vm20448_vm6 = vcmp.ge.f32.partialorder %v15883_v6, %v20403_v7  ;;  %v5200_v6 = vrot.slane %v16338_v30, %v20432_v1  ;;  %20458 = vst [vmem:[#allocation22_spill] sm:$0xff] %v16356_v47  ;;  %v5212_v26 = vrot.slane %v16361_v2, %v20432_v1  ;;  %v5217_v7 = vsel %vm16171_vm0, %v5156_v38, 0.0  ;;  %v20476_v38 = vld [vmem:[#allocation39_spill] sm:$0xff]  ;;  %v20496_v62 = vld [vmem:[#allocation97_spill] sm:$0xff] }
 0x42c   : > { %vm16323_vm4 = vmand %vm20448_vm6, %vm5132_vm12  ;;  %vm20455_vm12 = vcmp.ge.f32.partialorder %v15890_v36, %v20412_v28  ;;  %20459 = vst [vmem:[#allocation81_spill] sm:$0xff] %v16361_v2  ;;  %v5218_v36 = vsel %vm16178_vm13, %v5160_v34, 0.0  ;;  %v5219_v49 = vsel %vm16188_vm2, %v5164_v53, 0.0  ;;  %v5221_v12 = vsel %vm16212_vm7, %v5172_v41, 0.0  ;;  %v20480_v41 = vld [vmem:[#allocation50_spill] sm:$0xff] }
 0x42d   : > { %vm16351_vm6 = vmand %vm20455_vm12, %vm5133_vm3  ;;  %vm20460_vm3 = vcmp.ge.f32.partialorder %v15897_v60, %v20418_v11  ;;  %20463 = vst [vmem:[#allocation77_spill] sm:$0xff] %v16378_v29  ;;  %vm20464_vm13 = vcmp.ge.f32.partialorder %v15904_v50, %v20419_v22  ;;  %v5224_v23 = vsel %vm16247_vm14, %v5184_v27, 0.0  ;;  %v5225_v17 = vsel %vm16254_vm8, %v5188_v20, 0.0  ;;  %v20484_v27 = vld [vmem:[#allocation53_spill] sm:$0xff]  ;;  %v6261_v29 = vld [vmem:[%s6720_s7 + $0xf0] sm:$0x1] }
 0x42e   : > { %vm16373_vm12 = vmand %vm20460_vm3, %vm5134_vm1  ;;  %vm20465_vm1 = vnez %v20417_v43  ;;  %vm20466_vm3 = vnez %v20422_v19  ;;  %v5226_v50 = vsel %vm16272_vm9, %v5192_v37, 0.0  ;;  %v5227_v52 = vsel %vm16295_vm11, %v5196_v5, 0.0  ;;  %v20470_v43 = vld [vmem:[#allocation38_spill] sm:$0xff]  ;;  %v20488_v5 = vld [vmem:[#allocation55_spill] sm:$0xff] }
 0x42f   : > { %vm5151_vm0 = vmand %vm20464_vm13, %vm5135_vm15  ;;  %v5222_v60 = vsel %vm20465_vm1, %v5176_v18, 0.0  ;;  %v5223_v28 = vsel %vm20466_vm3, %v5180_v10, 0.0  ;;  %v16409_v54 = vadd.f32 %v5217_v7, %v20468_v3  ;;  %v16412_v11 = vadd.f32 %v5218_v36, %v20470_v43  ;;  %v20482_v18 = vld [vmem:[#allocation32_spill] sm:$0xff]  ;;  %v20494_v7 = vld [vmem:[#allocation73_spill] sm:$0xff] }
 0x430   : > { %vm5152_vm2 = vmand %vm20467_vm10, %vm5136_vm5  ;;  %v5228_v22 = vsel %vm16323_vm4, %v5200_v6, 0.0  ;;  %v5229_v46 = vsel %vm16351_vm6, %v5204_v33, 0.0  ;;  %v16419_v19 = vadd.f32 %v5219_v49, %v20472_v63  ;;  %v16422_v42 = vadd.f32 %v5220_v55, %v20474_v8  ;;  %v20490_v33 = vld [vmem:[#allocation56_spill] sm:$0xff]  ;;  %v20505_v63 = vld [vmem:[#allocation94_spill] sm:$0xff] }
 0x431   : > { %20469 = vst [vmem:[#allocation68_spill] sm:$0xff] %v16409_v54  ;;  %20471 = vst [vmem:[#allocation28_spill] sm:$0xff] %v16412_v11  ;;  %v5230_v35 = vsel %vm16373_vm12, %v5208_v15, 0.0  ;;  %v5231_v1 = vsel %vm5151_vm0, %v5212_v26, 0.0  ;;  %v16427_v34 = vadd.f32 %v5221_v12, %v20476_v38  ;;  %v16430_v53 = vadd.f32 %v5222_v60, %v20478_v45  ;;  %v20492_v15 = vld [vmem:[#allocation57_spill] sm:$0xff]  ;;  %v6232_v49 = vld [vmem:[%s6737_s20 + $0x80] sm:$0xff] }
 0x432   : > { %20473 = vst [vmem:[#allocation33_spill] sm:$0xff] %v16419_v19  ;;  %20475 = vst [vmem:[#allocation41_spill] sm:$0xff] %v16422_v42  ;;  %v5232_v40 = vsel %vm5152_vm2, %v5216_v57, 0.0  ;;  %v16433_v39 = vadd.f32 %v5223_v28, %v20480_v41  ;;  %v16436_v10 = vadd.f32 %v5224_v23, %v20482_v18  ;;  %v16439_v20 = vadd.f32 %v5225_v17, %v20484_v27  ;;  %v20498_v55 = vld [vmem:[#allocation60_spill] sm:$0xff]  ;;  %v6233_v60 = vld [vmem:[%s6737_s20 + $0x88] sm:$0xff] }
 0x433   : > { %20477 = vst [vmem:[#allocation42_spill] sm:$0xff] %v16427_v34  ;;  %20479 = vst [vmem:[#allocation43_spill] sm:$0xff] %v16430_v53  ;;  %v16442_v37 = vadd.f32 %v5226_v50, %v20486_v32  ;;  %v16445_v6 = vadd.f32 %v5227_v52, %v20488_v5  ;;  %v16448_v9 = vadd.f32 %v5228_v22, %v20490_v33  ;;  %v20500_v23 = vld [vmem:[#allocation34_spill] sm:$0xff]  ;;  %v20502_v50 = vld [vmem:[#allocation61_spill] sm:$0xff] }
 0x434   : > { %20481 = vst [vmem:[#allocation87_spill] sm:$0xff] %v16433_v39  ;;  %20483 = vst [vmem:[#allocation76_spill] sm:$0xff] %v16436_v10  ;;  %v16451_v26 = vadd.f32 %v5229_v46, %v20492_v15  ;;  %v16454_v36 = vadd.f32 %v5230_v35, %v20494_v7  ;;  %v16457_v57 = vadd.f32 %v5231_v1, %v20496_v62  ;;  %v20503_v3 = vld [vmem:[#allocation92_spill] sm:$0xff]  ;;  %v20504_v22 = vld [vmem:[#allocation27_spill] sm:$0xff] }
 0x435   : > { %20485 = vst [vmem:[#allocation66_spill] sm:$0xff] %v16439_v20  ;;  %20487 = vst [vmem:[#allocation45_spill] sm:$0xff] %v16442_v37  ;;  %v16461_v12 = vrot.slane %v6232_v49, %v20498_v55  ;;  %v16465_v28 = vrot.slane %v6233_v60, %v20498_v55  ;;  %v16468_v17 = vadd.f32 %v5232_v40, %v20500_v23  ;;  %v20506_v35 = vld [vmem:[#allocation30_spill] sm:$0xff]  ;;  %v20507_v38 = vld [vmem:[#allocation96_spill] sm:$0xff] }
 0x436   : > { %20489 = vst [vmem:[#allocation80_spill] sm:$0xff] %v16445_v6  ;;  %20491 = vst [vmem:[#allocation51_spill] sm:$0xff] %v16448_v9  ;;  %v16472_v52 = vrot.slane %v20502_v50, %v20498_v55  ;;  %v16476_v43 = vrot.slane %v20503_v3, %v20498_v55  ;;  %v16480_v46 = vrot.slane %v20504_v22, %v20498_v55  ;;  %v20508_v40 = vld [vmem:[#allocation88_spill] sm:$0xff]  ;;  %v20509_v18 = vld [vmem:[#allocation35_spill] sm:$0xff] }
 0x437   : > { %20493 = vst [vmem:[#allocation64_spill] sm:$0xff] %v16451_v26  ;;  %20495 = vst [vmem:[#allocation83_spill] sm:$0xff] %v16454_v36  ;;  %v16484_v8 = vrot.slane %v20505_v63, %v20498_v55  ;;  %v16488_v1 = vrot.slane %v20506_v35, %v20498_v55  ;;  %v16492_v45 = vrot.slane %v20507_v38, %v20498_v55  ;;  %v20510_v32 = vld [vmem:[#allocation46_spill] sm:$0xff]  ;;  %v20512_v7 = vld [vmem:[#allocation91_spill] sm:$0xff] }
 0x438   : > { %20497 = vst [vmem:[#allocation36_spill] sm:$0xff] %v16457_v57  ;;  %20499 = vst [vmem:[#allocation84_spill] sm:$0xff] %v16461_v12  ;;  %v16496_v41 = vrot.slane %v20508_v40, %v20498_v55  ;;  %v16500_v27 = vrot.slane %v20509_v18, %v20498_v55  ;;  %v16504_v5 = vrot.slane %v20510_v32, %v20498_v55  ;;  %v20511_v33 = vld [vmem:[#allocation70_spill] sm:$0xff]  ;;  %v20514_v23 = vld [vmem:[#allocation21_spill] sm:$0xff] }
 0x439   : > { %20501 = vst [vmem:[#allocation75_spill] sm:$0xff] %v16468_v17  ;;  %v16508_v15 = vrot.slane %v20511_v33, %v20498_v55  ;;  %v16512_v62 = vrot.slane %v20512_v7, %v20498_v55  ;;  %v20513_v49 = vld [vmem:[#allocation78_spill] sm:$0xff]  ;;  %v16520_v50 = vrot.slane %v20514_v23, %v20498_v55  ;;  %v20515_v3 = vld [vmem:[#allocation23_spill] sm:$0xff]  ;;  %vm5329_vm7 = vcmp.le.f32.partialorder %v16461_v12, %v20392_v51  ;;  %v16538_v35 = vld [vmem:[%s6720_s7 + $0x20] sm:$0xff] }
 0x43a   : > { %v16516_v60 = vrot.slane %v20513_v49, %v20498_v55  ;;  %v16524_v22 = vrot.slane %v20515_v3, %v20498_v55  ;;  %vm5330_vm14 = vcmp.le.f32.partialorder %v16465_v28, %v15305_v14  ;;  %vm5331_vm8 = vcmp.le.f32.partialorder %v16472_v52, %v15310_v61  ;;  %v16533_v63 = vld [vmem:[%s6720_s7 + $0x18] sm:$0xff]  ;;  %v16543_v38 = vld [vmem:[%s6720_s7 + $0x28] sm:$0xff]  ;;  %v16548_v40 = vld [vmem:[%s6720_s7 + $0x30] sm:$0xff] }
 0x43b   : > { %vm5332_vm15 = vcmp.le.f32.partialorder %v16476_v43, %v16533_v63  ;;  %vm5333_vm5 = vcmp.le.f32.partialorder %v16480_v46, %v16538_v35  ;;  %vm5334_vm9 = vcmp.le.f32.partialorder %v16484_v8, %v16543_v38  ;;  %vm5335_vm11 = vcmp.le.f32.partialorder %v16488_v1, %v16548_v40  ;;  %v16553_v18 = vld [vmem:[%s6720_s7 + $0x38] sm:$0xff]  ;;  %v16558_v32 = vld [vmem:[%s6720_s7 + $0x40] sm:$0xff]  ;;  %v16563_v33 = vld [vmem:[%s6720_s7 + $0x48] sm:$0xff] }
 0x43c   : > { %vm5336_vm4 = vcmp.le.f32.partialorder %v16492_v45, %v16553_v18  ;;  %vm5337_vm6 = vcmp.le.f32.partialorder %v16496_v41, %v16558_v32  ;;  %v16568_v7 = vld [vmem:[%s6720_s7 + $0x50] sm:$0xff]  ;;  %v16573_v49 = vld [vmem:[%s6720_s7 + $0x58] sm:$0xff]  ;;  %v16578_v23 = vld [vmem:[%s6720_s7 + $0x60] sm:$0xff]  ;;  %vm5359_vm0 = vcmp.le.f32.partialorder %v16520_v50, %v6261_v29  ;;  %v5361_v47 = vsel %vm5329_vm7, 1, %v20187_v0 }
 0x43d   : > { %20516 = vst [vmem:[#allocation95_spill] sm:$0xff] %v16573_v49  ;;  %20517 = vst [vmem:[#allocation98_spill] sm:$0xff] %v16578_v23  ;;  %v16583_v3 = vld [vmem:[%s6720_s7 + $0x68] sm:$0xff]  ;;  %v16588_v17 = vld [vmem:[%s6720_s7 + $0x70] sm:$0xff]  ;;  %v5362_v21 = vsel %vm5330_vm14, 1, %v20187_v0  ;;  %v5363_v30 = vsel %vm5331_vm8, 1, %v20187_v0  ;;  %vm20521_vm7 = vcmp.le.f32.partialorder %v16500_v27, %v16563_v33  ;;  %vm20522_vm14 = vcmp.le.f32.partialorder %v16504_v5, %v16568_v7 }
 0x43e   : > { %20518 = vst [vmem:[#allocation58_spill] sm:$0xff] %v16583_v3  ;;  %20519 = vst [vmem:[#allocation74_spill] sm:$0xff] %v16588_v17  ;;  %v16593_v57 = vld [vmem:[%s6720_s7 + $0x78] sm:$0xff]  ;;  %v6247_v36 = vld [vmem:[%s6720_s7 + $0x80] sm:$0x1]  ;;  %v5364_v16 = vsel %vm5332_vm15, 1, %v20187_v0  ;;  %vm20523_vm8 = vcmp.le.f32.partialorder %v16508_v15, %v16573_v49  ;;  %vm20525_vm15 = vcmp.le.f32.partialorder %v16512_v62, %v16578_v23 }
 0x43f   : > { %20520 = vst [vmem:[#allocation25_spill] sm:$0xff] %v16593_v57  ;;  %v6248_v26 = vld [vmem:[%s6720_s7 + $0x88] sm:$0x1]  ;;  %v6249_v9 = vld [vmem:[%s6720_s7 + $0x90] sm:$0x1]  ;;  %v5365_v44 = vsel %vm5333_vm5, 1, %v20187_v0  ;;  %vm20527_vm5 = vcmp.le.f32.partialorder %v16516_v60, %v16583_v3 }
 0x440   : > { %v6250_v6 = vld [vmem:[%s6720_s7 + $0x98] sm:$0x1]  ;;  %v6251_v37 = vld [vmem:[%s6720_s7 + $0xa0] sm:$0x1]  ;;  %v6252_v20 = vld [vmem:[%s6720_s7 + $0xa8] sm:$0x1] }
 0x441   : > { %v6253_v10 = vld [vmem:[%s6720_s7 + $0xb0] sm:$0x1]  ;;  %v6254_v39 = vld [vmem:[%s6720_s7 + $0xb8] sm:$0x1]  ;;  %v6255_v53 = vld [vmem:[%s6720_s7 + $0xc0] sm:$0x1] }
 0x442   : > { %v6256_v34 = vld [vmem:[%s6720_s7 + $0xc8] sm:$0x1]  ;;  %v6257_v42 = vld [vmem:[%s6720_s7 + $0xd0] sm:$0x1]  ;;  %v6258_v19 = vld [vmem:[%s6720_s7 + $0xd8] sm:$0x1] }
 0x443   : > { %vm5354_vm10 = vcmp.le.f32.partialorder %v16500_v27, %v6256_v34  ;;  %vm5355_vm2 = vcmp.le.f32.partialorder %v16504_v5, %v6257_v42  ;;  %vm5356_vm1 = vcmp.le.f32.partialorder %v16508_v15, %v6258_v19  ;;  %v6259_v11 = vld [vmem:[%s6720_s7 + $0xe0] sm:$0x1]  ;;  %v6260_v54 = vld [vmem:[%s6720_s7 + $0xe8] sm:$0x1]  ;;  %v6262_v2 = vld [vmem:[%s6720_s7 + $0xf8] sm:$0x1] }
 0x444   : > { %vm5357_vm12 = vcmp.le.f32.partialorder %v16512_v62, %v6259_v11  ;;  %vm5358_vm3 = vcmp.le.f32.partialorder %v16516_v60, %v6260_v54  ;;  %vm5360_vm13 = vcmp.le.f32.partialorder %v16524_v22, %v6262_v2  ;;  %v5366_v59 = vsel %vm5334_vm9, 1, %v20187_v0 }
 0x445   : > { %v5367_v4 = vsel %vm5335_vm11, 1, %v20187_v0  ;;  %v16661_v56 = vsel %vm5336_vm4, 1, %v20187_v0  ;;  %v16667_v58 = vsel %vm5337_vm6, 1, %v20187_v0  ;;  %v16673_v25 = vsel %vm20521_vm7, 1, %v20187_v0 }
 0x446   : > { %v16679_v31 = vsel %vm20522_vm14, 1, %v20187_v0  ;;  %v16685_v48 = vsel %vm20523_vm8, 1, %v20187_v0  ;;  %v16691_v13 = vsel %vm20525_vm15, 1, %v20187_v0  ;;  %v16697_v24 = vsel %vm20527_vm5, 1, %v20187_v0 }
 0x447   : > { %20524 = vst [vmem:[#allocation59_spill] sm:$0xff] %v16685_v48  ;;  %20526 = vst [vmem:[#allocation62_spill] sm:$0xff] %v16691_v13  ;;  %vm20529_vm9 = vcmp.le.f32.partialorder %v16461_v12, %v6247_v36  ;;  %vm20530_vm11 = vcmp.le.f32.partialorder %v16520_v50, %v16588_v17  ;;  %vm20532_vm4 = vcmp.le.f32.partialorder %v16524_v22, %v16593_v57  ;;  %v5391_v42 = vsel %vm5359_vm0, 1, %v20187_v0 }
 0x448   : > { %20528 = vst [vmem:[#allocation47_spill] sm:$0xff] %v16697_v24  ;;  %v5377_v55 = vsel %vm20529_vm9, 1, %v20187_v0  ;;  %v16706_v49 = vsel %vm20530_vm11, 1, %v20187_v0  ;;  %v16712_v23 = vsel %vm20532_vm4, 1, %v20187_v0  ;;  %vm20534_vm6 = vcmp.le.f32.partialorder %v16465_v28, %v6248_v26 }
 0x449   : > { %20531 = vst [vmem:[#allocation63_spill] sm:$0xff] %v16706_v49  ;;  %20533 = vst [vmem:[#allocation85_spill] sm:$0xff] %v16712_v23  ;;  %v5378_v3 = vsel %vm20534_vm6, 1, %v20187_v0  ;;  %vm20535_vm7 = vcmp.le.f32.partialorder %v16472_v52, %v6249_v9  ;;  %vm20536_vm14 = vcmp.le.f32.partialorder %v16476_v43, %v6250_v6  ;;  %vm20537_vm8 = vcmp.le.f32.partialorder %v16480_v46, %v6251_v37 }
 0x44a   : > { %v5379_v36 = vsel %vm20535_vm7, 1, %v20187_v0  ;;  %v5380_v17 = vsel %vm20536_vm14, 1, %v20187_v0  ;;  %v5381_v49 = vsel %vm20537_vm8, 1, %v20187_v0  ;;  %vm20538_vm15 = vcmp.le.f32.partialorder %v16484_v8, %v6252_v20 }
 0x44b   : > { %v5382_v57 = vsel %vm20538_vm15, 1, %v20187_v0  ;;  %vm20539_vm5 = vcmp.le.f32.partialorder %v16488_v1, %v6253_v10  ;;  %vm5313_vm9 = vcmp.ge.f32.partialorder %v16461_v12, %v20392_v51  ;;  %vm20540_vm11 = vcmp.le.f32.partialorder %v16492_v45, %v6254_v39 }
 0x44c   : > { %v5383_v26 = vsel %vm20539_vm5, 1, %v20187_v0  ;;  %v5384_v6 = vsel %vm20540_vm11, 1, %v20187_v0  ;;  %vm20541_vm4 = vcmp.le.f32.partialorder %v16496_v41, %v6255_v53  ;;  %v5393_v9 = vrot.slane %v5361_v47, 1 }
 0x44d   : > { %v16740_v37 = vsel %vm20541_vm4, 1, %v20187_v0  ;;  %v5394_v23 = vrot.slane %v5377_v55, 1  ;;  %vm5314_vm6 = vcmp.ge.f32.partialorder %v16465_v28, %v15305_v14  ;;  %v5396_v20 = vrot.slane %v5362_v21, 1 }
 0x44e   : > { %v5397_v10 = vrot.slane %v5378_v3, 1  ;;  %v5399_v24 = vrot.slane %v5363_v30, 1  ;;  %v5400_v13 = vrot.slane %v5379_v36, 1  ;;  %vm5315_vm7 = vcmp.ge.f32.partialorder %v16472_v52, %v15310_v61  ;;  %v20550_v36 = vld [vmem:[#allocation62_spill] sm:$0xff] }
 0x44f   : > { %v5402_v51 = vrot.slane %v5364_v16, 1  ;;  %v5403_v39 = vrot.slane %v5380_v17, 1  ;;  %v5405_v12 = vrot.slane %v5365_v44, 1  ;;  %v5406_v48 = vrot.slane %v5381_v49, 1 }
 0x450   : > { %vm5316_vm14 = vcmp.ge.f32.partialorder %v16476_v43, %v16533_v63  ;;  %v5386_v47 = vsel %vm5354_vm10, 1, %v20187_v0  ;;  %v5387_v21 = vsel %vm5355_vm2, 1, %v20187_v0  ;;  %v5408_v30 = vrot.slane %v5366_v59, 1  ;;  %v20574_v43 = vld [vmem:[#allocation58_spill] sm:$0xff] }
 0x451   : > { %v5409_v53 = vrot.slane %v5382_v57, 1  ;;  %vm5317_vm8 = vcmp.ge.f32.partialorder %v16480_v46, %v16538_v35  ;;  %v5388_v44 = vsel %vm5356_vm1, 1, %v20187_v0  ;;  %v5389_v16 = vsel %vm5357_vm12, 1, %v20187_v0  ;;  %v20575_v63 = vld [vmem:[#allocation74_spill] sm:$0xff]  ;;  %v20580_v46 = vld [vmem:[#allocation25_spill] sm:$0xff] }
 0x452   : > { %v5411_v55 = vrot.slane %v5367_v4, 1  ;;  %v5412_v34 = vrot.slane %v5383_v26, 1  ;;  %v5390_v59 = vsel %vm5358_vm3, 1, %v20187_v0  ;;  %v5392_v19 = vsel %vm5360_vm13, 1, %v20187_v0 }
 0x453   : > { %vm20542_vm1 = vcmask 1046528   ;;  %v5414_v0 = vrot.slane %v16661_v56, 1  ;;  %v5415_v2 = vrot.slane %v5384_v6, 1  ;;  %v5417_v49 = vrot.slane %v16667_v58, 1  ;;  %v20549_v58 = vld [vmem:[#allocation59_spill] sm:$0xff] }
 0x454   : > { %v5395_v11 = vsel %vm20542_vm1, %v5393_v9, %v5394_v23  ;;  %vm20543_vm2 = vmmov %vm20542_vm1  ;;  %v5424_v56 = vrot.slane %v5387_v21, 1  ;;  %v5427_v3 = vrot.slane %v5388_v44, 1  ;;  %v5429_v26 = vrot.slane %v20550_v36, 1  ;;  %v20551_v6 = vld [vmem:[#allocation95_spill] sm:$0xff] }
 0x455   : > { %v5398_v4 = vsel %vm20543_vm2, %v5396_v20, %v5397_v10  ;;  %vm20544_vm15 = vmmov %vm20542_vm1  ;;  %v5433_v20 = vrot.slane %v5390_v59, 1  ;;  %v20557_v21 = vld [vmem:[#allocation63_spill] sm:$0xff]  ;;  %v5439_v59 = vrot.slane %v5392_v19, 1  ;;  %v20567_v19 = vmov 0 }
 0x456   : > { %v5401_v57 = vsel %vm20544_vm15, %v5399_v24, %v5400_v13  ;;  %vm20545_vm5 = vmmov %vm20542_vm1  ;;  %v5418_v24 = vrot.slane %v16740_v37, 1  ;;  %v5421_v13 = vrot.slane %v5386_v47, 1  ;;  %vm5442_vm15 = vcmp.ne.s32.totalorder %v5398_v4, 0  ;;  %v20552_v37 = vld [vmem:[#allocation47_spill] sm:$0xff] }
 0x457   : > { %v5404_v54 = vsel %vm20545_vm5, %v5402_v51, %v5403_v39  ;;  %vm20546_vm3 = vmmov %vm20542_vm1  ;;  %v5420_v51 = vrot.slane %v16673_v25, 1  ;;  %v5430_v25 = vrot.slane %v5389_v16, 1  ;;  %v5432_v9 = vrot.slane %v20552_v37, 1  ;;  %v20609_v37 = vld [vmem:[#allocation31_spill] sm:$0xff] }
 0x458   : > { %v5407_v17 = vsel %vm20546_vm3, %v5405_v12, %v5406_v48  ;;  %vm20547_vm11 = vmmov %vm20542_vm1  ;;  %v5423_v48 = vrot.slane %v16679_v31, 1  ;;  %v5426_v12 = vrot.slane %v20549_v58, 1  ;;  %vm5443_vm3 = vcmp.ne.s32.totalorder %v5401_v57, 0  ;;  %v20614_v31 = vld [vmem:[#allocation29_spill] sm:$0xff] }
 0x459   : > { %v5410_v29 = vsel %vm20547_vm11, %v5408_v30, %v5409_v53  ;;  %vm20548_vm4 = vmmov %vm20542_vm1  ;;  %vm5441_vm1 = vcmp.ne.s32.totalorder %v5395_v11, 0  ;;  %v5416_v47 = vsel %vm20545_vm5, %v5414_v0, %v5415_v2  ;;  %v5435_v30 = vrot.slane %v20557_v21, 1  ;;  %v20564_v11 = vld [vmem:[#allocation98_spill] sm:$0xff]  ;;  %v20590_v0 = vld [vmem:[#allocation69_spill] sm:$0xff] }
 0x45a   : > { %v5413_v23 = vsel %vm20548_vm4, %v5411_v55, %v5412_v34  ;;  %vm5444_vm4 = vcmp.ne.s32.totalorder %v5404_v54, 0  ;;  %vm16804_vm2 = vmand %vm5313_vm9, %vm5441_vm1  ;;  %v5436_v53 = vrot.slane %v5391_v42, 1  ;;  %vm5445_vm13 = vcmp.ne.s32.totalorder %v5407_v17, 0  ;;  %v20561_v55 = vld [vmem:[#allocation85_spill] sm:$0xff] }
 0x45b   : > { %vm16814_vm11 = vmand %vm5314_vm6, %vm5442_vm15  ;;  %v5438_v34 = vrot.slane %v20561_v55, 1  ;;  %vm5446_vm9 = vcmp.ne.s32.totalorder %v5410_v29, 0  ;;  %v20572_v57 = vmov 0  ;;  %v20578_v17 = vmov 0 }
 0x45c   : > { %vm20560_vm0 = vmmov %vm20545_vm5 }
 0x45d   : > { %v5419_v16 = vsel %vm20560_vm0, %v5417_v49, %v5418_v24  ;;  %vm16824_vm1 = vmand %vm5315_vm7, %vm5443_vm3 }
 0x45e   : > { %vm20565_vm15 = vmmov %vm20560_vm0 }
 0x45f   : > { %v5422_v14 = vsel %vm20565_vm15, %v5420_v51, %v5421_v13  ;;  %vm20566_vm5 = vmmov %vm20560_vm0  ;;  %vm5447_vm0 = vcmp.ne.s32.totalorder %v5413_v23, 0  ;;  %v20596_v23 = vld [vmem:[#allocation67_spill] sm:$0xff]  ;;  %v20601_v13 = vld [vmem:[#allocation90_spill] sm:$0xff] }
 0x460   : > { %v5425_v28 = vsel %vm20566_vm5, %v5423_v48, %v5424_v56  ;;  %vm16836_vm12 = vmand %vm5316_vm14, %vm5444_vm4  ;;  %vm5450_vm14 = vcmp.ne.s32.totalorder %v5422_v14, 0  ;;  %v20602_v56 = vld [vmem:[#allocation93_spill] sm:$0xff]  ;;  %v370_v51 = vld [vmem:[%s6730_s17 + $0x10] sm:$0xff] }
 0x461   : > { %v20568_v19 = vsel %vm16836_vm12, 4294967295, %v20567_v19  ;;  %vm20569_vm7 = vmmov %vm20566_vm5  ;;  %vm5451_vm6 = vcmp.ne.s32.totalorder %v5425_v28, 0  ;;  %vm20585_vm12 = vcmp.ne.s32.totalorder %v5416_v47, 0  ;;  %v20615_v47 = vld [vmem:[#allocation22_spill] sm:$0xff] }
 0x462   : > { %v5428_v61 = vsel %vm20569_vm7, %v5426_v12, %v5427_v3  ;;  %vm20570_vm3 = vmmov %vm20566_vm5  ;;  %vm5449_vm7 = vcmp.ne.s32.totalorder %v5419_v16, 0  ;;  %v20607_v3 = vld [vmem:[#allocation20_spill] sm:$0xff] }
 0x463   : > { %v5431_v52 = vsel %vm20570_vm3, %v5429_v26, %v5430_v25  ;;  %vm20571_vm10 = vmmov %vm20570_vm3  ;;  %v20608_v26 = vld [vmem:[#allocation24_spill] sm:$0xff] }
 0x464   : > { %v5434_v4 = vsel %vm20571_vm10, %v5432_v9, %v5433_v20  ;;  %vm16847_vm15 = vmand %vm5317_vm8, %vm5445_vm13  ;;  %vm20577_vm10 = vcmp.ge.f32.partialorder %v16484_v8, %v16543_v38  ;;  %v20589_v38 = vld [vmem:[#allocation60_spill] sm:$0xff] }
 0x465   : > { %v20573_v57 = vsel %vm16847_vm15, 4294967295, %v20572_v57  ;;  %vm20576_vm5 = vmmov %vm20570_vm3  ;;  %vm5452_vm15 = vcmp.ne.s32.totalorder %v5428_v61, 0  ;;  %v5476_v2 = vrot.slane %v20590_v0, %v20589_v38  ;;  %v5488_v24 = vrot.slane %v20596_v23, %v20589_v38  ;;  %v20631_v61 = vld [vmem:[#allocation68_spill] sm:$0xff] }
 0x466   : > { %v5437_v54 = vsel %vm20576_vm5, %v5435_v30, %v5436_v53  ;;  %vm16860_vm3 = vmand %vm20577_vm10, %vm5446_vm9  ;;  %vm5453_vm9 = vcmp.ne.s32.totalorder %v5431_v52, 0  ;;  %vm5454_vm10 = vcmp.ne.s32.totalorder %v5434_v4, 0  ;;  %v5496_v48 = vrot.slane %v20601_v13, %v20589_v38  ;;  %v20641_v23 = vld [vmem:[#allocation76_spill] sm:$0xff] }
 0x467   : > { %v20579_v17 = vsel %vm16860_vm3, 4294967295, %v20578_v17  ;;  %vm20581_vm13 = vmmov %vm20576_vm5  ;;  %vm20582_vm5 = vcmp.ge.f32.partialorder %v16488_v1, %v16548_v40  ;;  %vm20586_vm3 = vcmp.ge.f32.partialorder %v16492_v45, %v16553_v18  ;;  %v20594_v40 = vld [vmem:[#allocation71_spill] sm:$0xff]  ;;  %v20595_v45 = vld [vmem:[#allocation72_spill] sm:$0xff]  ;;  %v5500_v58 = vrot.slane %v20602_v56, %v20589_v38 }
 0x468   : > { %v5440_v35 = vsel %vm20581_vm13, %v5438_v34, %v5439_v59  ;;  %vm16871_vm4 = vmand %vm20582_vm5, %vm5447_vm0  ;;  %vm20591_vm0 = vcmp.ge.f32.partialorder %v16496_v41, %v16558_v32  ;;  %v5480_v49 = vrot.slane %v20594_v40, %v20589_v38  ;;  %v5484_v18 = vrot.slane %v20595_v45, %v20589_v38  ;;  %v20600_v41 = vld [vmem:[#allocation26_spill] sm:$0xff]  ;;  %v20624_v34 = vld [vmem:[#allocation77_spill] sm:$0xff] }
 0x469   : > { %vm16879_vm8 = vmand %vm20586_vm3, %vm20585_vm12  ;;  %vm5456_vm12 = vcmp.ne.s32.totalorder %v5440_v35, 0  ;;  %vm20597_vm3 = vcmp.ge.f32.partialorder %v16500_v27, %v16563_v33  ;;  %v5492_v32 = vrot.slane %v20600_v41, %v20589_v38  ;;  %v20606_v27 = vld [vmem:[#allocation82_spill] sm:$0xff]  ;;  %v5508_v36 = vrot.slane %v20607_v3, %v20589_v38  ;;  %v368_v35 = vld [vmem:[%s6730_s17] sm:$0xff] }
 0x46a   : > { %vm16888_vm5 = vmand %vm20591_vm0, %vm5449_vm7  ;;  %vm20603_vm7 = vcmp.ge.f32.partialorder %v16504_v5, %v16568_v7  ;;  %v5504_v33 = vrot.slane %v20606_v27, %v20589_v38  ;;  %v5512_v25 = vrot.slane %v20608_v26, %v20589_v38  ;;  %v5516_v9 = vrot.slane %v20609_v37, %v20589_v38  ;;  %v20613_v7 = vld [vmem:[#allocation48_spill] sm:$0xff]  ;;  %v20639_v40 = vld [vmem:[#allocation43_spill] sm:$0xff] }
 0x46b   : > { %vm16901_vm13 = vmand %vm20597_vm3, %vm5450_vm14  ;;  %vm20610_vm14 = vcmp.ge.f32.partialorder %v16508_v15, %v20551_v6  ;;  %v5520_v20 = vrot.slane %v20613_v7, %v20589_v38  ;;  %v5524_v10 = vrot.slane %v20614_v31, %v20589_v38  ;;  %v5528_v21 = vrot.slane %v20615_v47, %v20589_v38  ;;  %v20619_v6 = vld [vmem:[#allocation81_spill] sm:$0xff]  ;;  %v20640_v45 = vld [vmem:[#allocation87_spill] sm:$0xff] }
 0x46c   : > { %vm16915_vm0 = vmand %vm20603_vm7, %vm5451_vm6  ;;  %v5537_v30 = vsel %vm16804_vm2, %v5476_v2, 0.0  ;;  %vm20616_vm3 = vcmp.ge.f32.partialorder %v16512_v62, %v20564_v11  ;;  %v5532_v53 = vrot.slane %v20619_v6, %v20589_v38  ;;  %v5538_v16 = vsel %vm16814_vm11, %v5480_v49, 0.0  ;;  %v369_v2 = vld [vmem:[%s6730_s17 + $0x8] sm:$0xff]  ;;  %v371_v27 = vld [vmem:[%s6730_s17 + $0x18] sm:$0xff] }
 0x46d   : > { %vm16931_vm6 = vmand %vm20610_vm14, %vm5452_vm15  ;;  %v5539_v55 = vsel %vm16824_vm1, %v5484_v18, 0.0  ;;  %vm20620_vm7 = vnez %v20568_v19  ;;  %vm20621_vm2 = vcmp.ge.f32.partialorder %v16516_v60, %v20574_v43  ;;  %v5536_v59 = vrot.slane %v20624_v34, %v20589_v38  ;;  %v20638_v38 = vld [vmem:[#allocation42_spill] sm:$0xff]  ;;  %v372_v5 = vld [vmem:[%s6730_s17 + $0x20] sm:$0xff] }
 0x46e   : > { %vm16947_vm15 = vmand %vm20616_vm3, %vm5453_vm9  ;;  %v5540_v39 = vsel %vm20620_vm7, %v5488_v24, 0.0  ;;  %vm20625_vm11 = vnez %v20573_v57  ;;  %vm20626_vm1 = vnez %v20579_v17  ;;  %v5543_v11 = vsel %vm16871_vm4, %v5500_v58, 0.0  ;;  %v20635_v57 = vld [vmem:[#allocation28_spill] sm:$0xff]  ;;  %v20637_v17 = vld [vmem:[#allocation41_spill] sm:$0xff] }
 0x46f   : > { %vm16963_vm9 = vmand %vm20621_vm2, %vm5454_vm10  ;;  %v5541_v44 = vsel %vm20625_vm11, %v5492_v32, 0.0  ;;  %v5542_v42 = vsel %vm20626_vm1, %v5496_v48, 0.0  ;;  %vm20627_vm14 = vcmp.ne.s32.totalorder %v5437_v54, 0  ;;  %vm20628_vm3 = vcmp.ge.f32.partialorder %v16520_v50, %v20575_v63  ;;  %v20636_v63 = vld [vmem:[#allocation33_spill] sm:$0xff]  ;;  %v20642_v32 = vld [vmem:[#allocation66_spill] sm:$0xff] }
 0x470   : > { %vm16979_vm10 = vmand %vm20628_vm3, %vm20627_vm14  ;;  %v5544_v14 = vsel %vm16879_vm8, %v5504_v33, 0.0  ;;  %v5545_v28 = vsel %vm16888_vm5, %v5508_v36, 0.0  ;;  %v5546_v19 = vsel %vm16901_vm13, %v5512_v25, 0.0  ;;  %v5553_v52 = vadd.f32 %v5537_v30, %v20631_v61  ;;  %v20643_v48 = vld [vmem:[#allocation45_spill] sm:$0xff]  ;;  %v20644_v58 = vld [vmem:[#allocation80_spill] sm:$0xff] }
 0x471   : > { %vm20632_vm4 = vcmp.ge.f32.partialorder %v16524_v22, %v20580_v46  ;;  %v5547_v4 = vsel %vm16915_vm0, %v5516_v9, 0.0  ;;  %v17001_v43 = vadd.f32 %v5538_v16, %v20635_v57  ;;  %v17004_v54 = vadd.f32 %v5539_v55, %v20636_v63  ;;  %v20645_v33 = vld [vmem:[#allocation51_spill] sm:$0xff]  ;;  %v20646_v36 = vld [vmem:[#allocation64_spill] sm:$0xff]  ;;  %v374_v30 = vld [vmem:[%s6730_s17 + $0x30] sm:$0xff] }
 0x472   : > { %vm16994_vm7 = vmand %vm20632_vm4, %vm5456_vm12  ;;  %v17007_v29 = vadd.f32 %v5540_v39, %v20637_v17  ;;  %v5548_v22 = vsel %vm16931_vm6, %v5520_v20, 0.0  ;;  %v5549_v46 = vsel %vm16947_vm15, %v5524_v10, 0.0  ;;  %v5550_v8 = vsel %vm16963_vm9, %v5528_v21, 0.0  ;;  %v20647_v25 = vld [vmem:[#allocation83_spill] sm:$0xff]  ;;  %v20648_v7 = vld [vmem:[#allocation36_spill] sm:$0xff] }
 0x473   : > { %v17017_v0 = vadd.f32 %v5541_v44, %v20638_v38  ;;  %v5551_v1 = vsel %vm16979_vm10, %v5532_v53, 0.0  ;;  %v17023_v49 = vadd.f32 %v5542_v42, %v20639_v40  ;;  %v17026_v18 = vadd.f32 %v5543_v11, %v20640_v45  ;;  %v373_v21 = vld [vmem:[%s6730_s17 + $0x28] sm:$0xff]  ;;  %v20649_v15 = vld [vmem:[#allocation75_spill] sm:$0xff]  ;;  %v376_v62 = vld [vmem:[%s6730_s17 + $0x40] sm:$0xff] }
 0x474   : > { %v17029_v24 = vadd.f32 %v5544_v14, %v20641_v23  ;;  %v5552_v41 = vsel %vm16994_vm7, %v5536_v59, 0.0  ;;  %v17035_v13 = vadd.f32 %v5545_v28, %v20642_v32  ;;  %v17038_v56 = vadd.f32 %v5546_v19, %v20643_v48  ;;  %v375_v39 = vld [vmem:[%s6730_s17 + $0x38] sm:$0xff]  ;;  %v377_v11 = vld [vmem:[%s6730_s17 + $0x48] sm:$0xff]  ;;  %v378_v60 = vld [vmem:[%s6730_s17 + $0x50] sm:$0xff] }
 0x475   : > { %v17041_v12 = vadd.f32 %v5547_v4, %v20644_v58  ;;  %v17045_v3 = vadd.f32 %v5548_v22, %v20645_v33  ;;  %v17048_v26 = vadd.f32 %v5549_v46, %v20646_v36  ;;  %v17051_v37 = vadd.f32 %v5550_v8, %v20647_v25  ;;  %v17075_v61 = vld [vmem:[%s6730_s17 + $0x58] sm:$0xff] }
 0x476   : > { %v5601_v9 = vadd.f32 1.1920929e-07, %v368_v35  ;;  %v17055_v20 = vadd.f32 %v5551_v1, %v20648_v7  ;;  %v5569_v31 = vsub.f32 %v368_v35, %v5553_v52  ;;  %v5570_v10 = vsub.f32 %v369_v2, %v17001_v43  ;;  %v17078_v52 = vld [vmem:[%s6730_s17 + $0x60] sm:$0xff]  ;;  %v17083_v43 = vld [vmem:[%s6730_s17 + $0x68] sm:$0xff]  ;;  %v17095_v8 = vld [vmem:[%s6730_s17 + $0x78] sm:$0xff] }
 0x477   : > { %v5602_v47 = vadd.f32 1.1920929e-07, %v369_v2  ;;  %v17061_v6 = vadd.f32 %v5552_v41, %v20649_v15  ;;  %v5571_v53 = vsub.f32 %v370_v51, %v17004_v54  ;;  %v5572_v16 = vsub.f32 %v371_v27, %v17007_v29  ;;  %v17090_v29 = vld [vmem:[%s6730_s17 + $0x70] sm:$0xff] }
 0x478   : > { %v5603_v55 = vadd.f32 1.1920929e-07, %v370_v51  ;;  %v5573_v34 = vsub.f32 %v372_v5, %v17017_v0  ;;  %v5574_v59 = vsub.f32 %v373_v21, %v17023_v49  ;;  %v5575_v44 = vsub.f32 %v374_v30, %v17026_v18 }
 0x479   : > { %v5604_v42 = vadd.f32 1.1920929e-07, %v371_v27  ;;  %v5576_v14 = vsub.f32 %v375_v39, %v17029_v24  ;;  %v5577_v28 = vsub.f32 %v376_v62, %v17035_v13  ;;  %v5605_v19 = vadd.f32 1.1920929e-07, %v372_v5 }
 0x47a   : > { %5928 = vrcp.f32 %v5601_v9  ;;  %v5578_v50 = vsub.f32 %v377_v11, %v17038_v56  ;;  %v5579_v4 = vsub.f32 %v378_v60, %v17041_v12  ;;  %v5606_v57 = vadd.f32 1.1920929e-07, %v373_v21 }
 0x47b   : > { %5930 = vrcp.f32 %v5602_v47  ;;  %v5580_v63 = vsub.f32 %v17075_v61, %v17045_v3  ;;  %v5581_v54 = vsub.f32 %v17078_v52, %v17048_v26  ;;  %v5607_v17 = vadd.f32 1.1920929e-07, %v374_v30 }
 0x47c   : > { %5932 = vrcp.f32 %v5603_v55  ;;  %v5582_v35 = vsub.f32 %v17083_v43, %v17051_v37  ;;  %v5585_v22 = vmax.f32 %v5569_v31, 0.0  ;;  %v5608_v46 = vadd.f32 1.1920929e-07, %v375_v39 }
 0x47d   : > { %5934 = vrcp.f32 %v5604_v42  ;;  %v5583_v38 = vsub.f32 %v17090_v29, %v17055_v20  ;;  %v5586_v0 = vmax.f32 %v5570_v10, 0.0  ;;  %v5609_v2 = vadd.f32 1.1920929e-07, %v376_v62 }
 0x47e   : > { %5936 = vrcp.f32 %v5605_v19  ;;  %v5584_v1 = vsub.f32 %v17095_v8, %v17061_v6  ;;  %v5587_v40 = vmax.f32 %v5571_v53, 0.0  ;;  %v5610_v49 = vadd.f32 1.1920929e-07, %v377_v11 }
 0x47f   : > { %5938 = vrcp.f32 %v5606_v57  ;;  %v5588_v45 = vmax.f32 %v5572_v16, 0.0  ;;  %v5589_v18 = vmax.f32 %v5573_v34, 0.0  ;;  %v5611_v23 = vadd.f32 1.1920929e-07, %v378_v60 }
 0x480   : > { %5940 = vrcp.f32 %v5607_v17  ;;  %v5590_v24 = vmax.f32 %v5574_v59, 0.0  ;;  %v5612_v51 = vadd.f32 1.1920929e-07, %v17075_v61  ;;  %v5617_v41 = vmul.f32 %v5585_v22, %v5585_v22 }
 0x481   : > { %5942 = vrcp.f32 %v5608_v46  ;;  %v5591_v32 = vmax.f32 %v5575_v44, 0.0  ;;  %v5613_v13 = vadd.f32 1.1920929e-07, %v17078_v52  ;;  %v5618_v48 = vmul.f32 %v5586_v0, %v5586_v0 }
 0x482   : > { %5944 = vrcp.f32 %v5609_v2  ;;  %v5592_v56 = vmax.f32 %v5576_v14, 0.0  ;;  %v5614_v58 = vadd.f32 1.1920929e-07, %v17083_v43  ;;  %v5619_v12 = vmul.f32 %v5587_v40, %v5587_v40 }
 0x483   : > { %5946 = vrcp.f32 %v5610_v49  ;;  %v5593_v33 = vmax.f32 %v5577_v28, 0.0  ;;  %v5615_v3 = vadd.f32 1.1920929e-07, %v17090_v29  ;;  %v5620_v36 = vmul.f32 %v5588_v45, %v5588_v45 }
 0x484   : > { %v5929_v27 = vpop.eup %5928  ;;  %5948 = vrcp.f32 %v5611_v23  ;;  %v5616_v25 = vadd.f32 1.1920929e-07, %v17095_v8  ;;  %v5621_v9 = vmul.f32 %v5589_v18, %v5589_v18  ;;  %v5594_v31 = vmax.f32 %v5578_v50, 0.0 }
 0x485   : > { %v5931_v26 = vpop.eup %5930  ;;  %v5634_v5 = vmul.f32 %v5929_v27, %v5617_v41  ;;  %5950 = vrcp.f32 %v5612_v51  ;;  %v5622_v10 = vmul.f32 %v5590_v24, %v5590_v24  ;;  %v5595_v30 = vmax.f32 %v5579_v4, 0.0 }
 0x486   : > { %v5933_v7 = vpop.eup %5932  ;;  %v5636_v47 = vmul.f32 %v5931_v26, %v5618_v48  ;;  %5952 = vrcp.f32 %v5613_v13  ;;  %v5623_v15 = vmul.f32 %v5591_v32, %v5591_v32  ;;  %v5596_v55 = vmax.f32 %v5580_v63, 0.0 }
 0x487   : > { %v5935_v21 = vpop.eup %5934  ;;  %v5638_v53 = vmul.f32 %v5933_v7, %v5619_v12  ;;  %5954 = vrcp.f32 %v5614_v58  ;;  %5665 = vst [vmem:[%s17108_s25] sm:$0xff] %v5634_v5  ;;  %v5624_v39 = vmul.f32 %v5592_v56, %v5592_v56  ;;  %v5597_v59 = vmax.f32 %v5581_v54, 0.0 }
 0x488   : > { %v5937_v16 = vpop.eup %5936  ;;  %v5640_v62 = vmul.f32 %v5935_v21, %v5620_v36  ;;  %5956 = vrcp.f32 %v5615_v3  ;;  %5666 = vst [vmem:[%s17108_s25 + $0x8] sm:$0xff] %v5636_v47  ;;  %v5625_v44 = vmul.f32 %v5593_v33, %v5593_v33  ;;  %v5598_v60 = vmax.f32 %v5582_v35, 0.0 }
 0x489   : > { %v5939_v34 = vpop.eup %5938  ;;  %v5642_v42 = vmul.f32 %v5937_v16, %v5621_v9  ;;  %5958 = vrcp.f32 %v5616_v25  ;;  %5667 = vst [vmem:[%s17108_s25 + $0x10] sm:$0xff] %v5638_v53  ;;  %v5626_v14 = vmul.f32 %v5594_v31, %v5594_v31  ;;  %v5599_v61 = vmax.f32 %v5583_v38, 0.0 }
 0x48a   : > { %v5941_v11 = vpop.eup %5940  ;;  %v5644_v28 = vmul.f32 %v5939_v34, %v5622_v10  ;;  %5668 = vst [vmem:[%s17108_s25 + $0x18] sm:$0xff] %v5640_v62  ;;  %v5627_v52 = vmul.f32 %v5595_v30, %v5595_v30  ;;  %v5600_v37 = vmax.f32 %v5584_v1, 0.0  ;;  %v5628_v57 = vmul.f32 %v5596_v55, %v5596_v55 }
 0x48b   : > { %v5943_v19 = vpop.eup %5942  ;;  %v5646_v50 = vmul.f32 %v5941_v11, %v5623_v15  ;;  %5669 = vst [vmem:[%s17108_s25 + $0x20] sm:$0xff] %v5642_v42  ;;  %v5629_v54 = vmul.f32 %v5597_v59, %v5597_v59  ;;  %v5630_v29 = vmul.f32 %v5598_v60, %v5598_v60  ;;  %v5631_v6 = vmul.f32 %v5599_v61, %v5599_v61 }
 0x48c   : > { %v5945_v4 = vpop.eup %5944  ;;  %v5648_v43 = vmul.f32 %v5943_v19, %v5624_v39  ;;  %5670 = vst [vmem:[%s17108_s25 + $0x28] sm:$0xff] %v5644_v28  ;;  %v5632_v38 = vmul.f32 %v5600_v37, %v5600_v37 }
 0x48d   : > { %v5947_v63 = vpop.eup %5946  ;;  %v5650_v17 = vmul.f32 %v5945_v4, %v5625_v44  ;;  %5671 = vst [vmem:[%s17108_s25 + $0x30] sm:$0xff] %v5646_v50 }
 0x48e   : > { %v5949_v20 = vpop.eup %5948  ;;  %v5652_v35 = vmul.f32 %v5947_v63, %v5626_v14  ;;  %5672 = vst [vmem:[%s17108_s25 + $0x38] sm:$0xff] %v5648_v43 }
 0x48f   : > { %v5951_v22 = vpop.eup %5950  ;;  %v5654_v46 = vmul.f32 %v5949_v20, %v5627_v52  ;;  %5673 = vst [vmem:[%s17108_s25 + $0x40] sm:$0xff] %v5650_v17 }
 0x490   : > { %v5953_v8 = vpop.eup %5952  ;;  %v5656_v0 = vmul.f32 %v5951_v22, %v5628_v57  ;;  %5674 = vst [vmem:[%s17108_s25 + $0x48] sm:$0xff] %v5652_v35 }
 0x491   : > { %v5955_v2 = vpop.eup %5954  ;;  %v5658_v1 = vmul.f32 %v5953_v8, %v5629_v54  ;;  %5675 = vst [vmem:[%s17108_s25 + $0x50] sm:$0xff] %v5654_v46 }
 0x492   : > { %v5957_v40 = vpop.eup %5956  ;;  %v5660_v49 = vmul.f32 %v5955_v2, %v5630_v29  ;;  %5676 = vst [vmem:[%s17108_s25 + $0x58] sm:$0xff] %v5656_v0 }
 0x493   : > { %v5959_v45 = vpop.eup %5958  ;;  %v5662_v18 = vmul.f32 %v5957_v40, %v5631_v6  ;;  %5677 = vst [vmem:[%s17108_s25 + $0x60] sm:$0xff] %v5658_v1 }
 0x494   : > { %v5664_v23 = vmul.f32 %v5959_v45, %v5632_v38  ;;  %5678 = vst [vmem:[%s17108_s25 + $0x68] sm:$0xff] %v5660_v49 }
 0x495   : > { %5679 = vst [vmem:[%s17108_s25 + $0x70] sm:$0xff] %v5662_v18 }
 0x496   : > { %5680 = vst [vmem:[%s17108_s25 + $0x78] sm:$0xff] %v5664_v23 }
 0x497   : > { %6396 = shalt.err (!%p6393_p4)
}
 0x498   : > { %s6397_s12 = scalar_lea.hbm %s17138_s6, 2048  ;;  %s6401_s18 = scalar_lea.hbm %s17188_s4, 4096 }
 0x499   : > { %p6398_p0 = scmp.ne.s32.totalorder %s17138_s6, %s6397_s12  ;;  %p6402_p12 = scmp.lt.u32.totalorder %s17138_s6, %s17188_s4 }
 0x49a   : > { %p6403_p1 = scmp.lt.u32.totalorder %s6401_s18, %s6397_s12  ;;  %p6405_p13 = scmp.lt.u32.totalorder %s6397_s12, %s17138_s6 }
 0x49b   : > { %p6399_p5 = pnand %p6398_p0, %p20650_p3 }
 0x49c   : > { %p6404_p9 = por %p6403_p1, %p6402_p12 }
 0x49d   : > { %p6400_p6 = pneg %p6399_p5 }
 0x49e   : > { %p6406_p8 = por %p6405_p13, %p6404_p9 }
 0x4a0   : > { %p6407_p10 = pnand %p6406_p8, %p6400_p6 }
 0x4a2   : > { %6410 = shalt.err (!%p6407_p10)
}
 0x4a3   : > { %5871 = dma.vmem_to_hbm [thread:$0]  (%p20650_p3), %s17140_s27, 2048, %s17138_s6, %s5682_s19  }
 0x4a4 PF: > { %s20651_s24 = sld [smem:[#allocation19_spill]]  ;;  %s20652_s28 = sld [smem:[#allocation16_spill]] }
 0x4a5   : > { %s5708_s22 = sand.u32 1, %s6445_s15  }
 0x4a6   : > { %s5709_s17 = scalar_lea.sflag [#allocation4], %s5708_s22 }
 0x4aa   : > { %p20653_p11 = scmp.ne.s32.totalorder %s20651_s24, 0  ;;  %p20654_p7 = scmp.ge.s32.totalorder %s20652_s28, 2 }
 0x4ac   : > { %p5887_p2 = pnand %p20654_p7, %p20653_p11 }
 0x4ae   : > { %6440 = dma.done.wait (!%p5887_p2), %s5709_s17, 2048  }
 0x4af   : > { %6442 = vsyncadd (!%p5887_p2), %s5709_s17, 4294965248  ;;  %s20655_s18 = sld [smem:[#allocation17_spill]]  ;;  %s20656_s13 = sld [smem:[#allocation15_spill]] }
 0x4b0   : > { %s20657_s17 = sld [smem:[#allocation18_spill]]  ;;  %s20658_s15 = smov %s6449_s16 }
 0x4b5   : > { %p23_p4 = scmp.ge.s32.totalorder %s20655_s18, 4   ;;  %s20659_s16 = smov %s20656_s13 }
 0x4b7   :  { %25 = sbr.rel (!%p23_p4) target bundleno = 12 (0xc), region = 118 }
 0x4be   :  { %5714 = vsyncpa [#allocation3], 1 }
 0x4bf   :  { %5716 = vsyncpa [#allocation3 + $0x1], 1 }
 0x4c0   :  { %5717 = vsyncpa [#allocation6], 1 }
 0x4c1   :  { %5719 = vsyncpa [#allocation6 + $0x1], 1 }
 0x4c2   :  { %5720 = vsyncpa [#allocation9], 1 }
 0x4c3   :  { %5722 = vsyncpa [#allocation9 + $0x1], 1 }
 0x4c4   :  { %5723 = vsyncpa [#allocation4], 1 }
 0x4c5   :  { %5725 = vsyncpa [#allocation4 + $0x1], 1 }

</bundles_post_ra>
